<compile_context>
chip_gen: v5e
topology: v5e:2x2
jax: 0.10.0
libtpu: 0.0.40
codegen_flags: <defaults>
</compile_context>

<pallas_src>
import functools

import jax
import jax.numpy as jnp
from jax.experimental import pallas as pl
from jax.experimental.pallas import tpu as pltpu


NUM_LAYERS = 4
_LANE = 128


def _round_up(x, m):
    return (x + m - 1) // m * m


# ----------------------------------------------------------------------------
# Fused kernel: 4 stacked LSTM layers + Linear head for one batch block.
# ----------------------------------------------------------------------------
def _fused_rnn_kernel(x_ref, wih0_ref, wih_ref, whh_ref, b_ref, wo_ref, bo_ref,
                      out_ref, xw_scr, seq_scr, *,
                      seq_len, batch_block, hidden_pad, unroll_threshold):
    T, Bb, Hp = seq_len, batch_block, hidden_pad

    def run_layer(whh_t, write_seq):
        # Recurrence over time.  xw_scr already holds x_t @ W_ih^T + b for every
        # t, so each step only needs the small h @ W_hh^T matmul + gate math.
        def step(t, carry):
            h, c = carry
            start = t * Bb
            if not isinstance(start, int):            # dynamic (fori_loop) offset
                start = pl.multiple_of(start, Bb)
            row = pl.ds(start, Bb)
            gates = xw_scr[row, :] + jnp.dot(
                h.astype(jnp.bfloat16), whh_t, preferred_element_type=jnp.float32)
            # Gate layout after weight prep: [ i | f | o | g ], each Hp lanes.
            sig = jax.nn.sigmoid(gates[:, :3 * Hp])   # one EUP pass over i, f, o
            g_g = jnp.tanh(gates[:, 3 * Hp:])
            c_new = sig[:, Hp:2 * Hp] * c + sig[:, :Hp] * g_g
            h_new = sig[:, 2 * Hp:3 * Hp] * jnp.tanh(c_new)
            if write_seq:                             # skipped on the last layer
                seq_scr[row, :] = h_new.astype(jnp.bfloat16)
            return h_new, c_new

        h = jnp.zeros((Bb, Hp), jnp.float32)
        c = jnp.zeros((Bb, Hp), jnp.float32)
        if T <= unroll_threshold:
            for t in range(T):                        # static unroll, static offsets
                h, c = step(t, (h, c))
        else:
            h, c = jax.lax.fori_loop(0, T, step, (h, c))
        return h

    # Layer 0: hoisted input projection over all T*Bb rows in one MXU matmul;
    # the (b_ih + b_hh) bias is folded in here.
    xw_scr[...] = jnp.dot(x_ref[...], wih0_ref[...],
                          preferred_element_type=jnp.float32) + b_ref[0]
    h_last = run_layer(whh_ref[0], write_seq=True)

    # Layers 1..3: input is the previous layer's bf16 sequence held in VMEM.
    for layer in range(1, NUM_LAYERS):
        xw_scr[...] = jnp.dot(seq_scr[...], wih_ref[layer - 1],
                              preferred_element_type=jnp.float32) + b_ref[layer]
        h_last = run_layer(whh_ref[layer], write_seq=(layer < NUM_LAYERS - 1))

    # Fused h2o head on the final timestep's hidden state only.
    out_ref[...] = jnp.dot(h_last.astype(jnp.bfloat16), wo_ref[...],
                           preferred_element_type=jnp.float32) + bo_ref[...]


# ----------------------------------------------------------------------------
# Weight prep: gate reorder [i,f,g,o] -> [i,f,o,g], zero-pad each gate block
# (and the hidden input dim) to a multiple of 128 lanes, transpose + cast bf16.
# ----------------------------------------------------------------------------
def _prep_weights(params, hidden, hidden_pad):
    H, Hp = hidden, hidden_pad

    def reorder_pad_rows(w):                          # (4H, in), rows = gate outputs
        i_w, f_w, g_w, o_w = jnp.split(w, 4, axis=0)
        pad = lambda blk: jnp.pad(blk, ((0, Hp - H), (0, 0)))
        return jnp.concatenate([pad(i_w), pad(f_w), pad(o_w), pad(g_w)], axis=0)

    def reorder_pad_bias(b):                          # (4H,)
        i_b, f_b, g_b, o_b = jnp.split(b, 4)
        pad = lambda blk: jnp.pad(blk, (0, Hp - H))
        return jnp.concatenate([pad(i_b), pad(f_b), pad(o_b), pad(g_b)])

    def pad_in(w):                                    # (4Hp, H) -> (4Hp, Hp)
        return jnp.pad(w, ((0, 0), (0, Hp - H)))

    lstm = params["lstm"]
    wih0_t = reorder_pad_rows(lstm[0][0]).T.astype(jnp.bfloat16)           # (I, 4Hp)
    wih_rest_t = jnp.stack(
        [pad_in(reorder_pad_rows(w_ih)).T for (w_ih, _, _) in lstm[1:]]
    ).astype(jnp.bfloat16)                                                 # (3, Hp, 4Hp)
    whh_t = jnp.stack(
        [pad_in(reorder_pad_rows(w_hh)).T for (_, w_hh, _) in lstm]
    ).astype(jnp.bfloat16)                                                 # (4, Hp, 4Hp)
    bias = jnp.stack(
        [reorder_pad_bias(b)[None, :] for (_, _, b) in lstm])              # (4, 1, 4Hp) f32
    wo_t = jnp.pad(params["h2o_w"],
                   ((0, 0), (0, Hp - H))).T.astype(jnp.bfloat16)           # (Hp, O)
    bo = params["h2o_b"][None, :]                                          # (1, O) f32
    return wih0_t, wih_rest_t, whh_t, bias, wo_t, bo


# ----------------------------------------------------------------------------
# Wrapper: pre-transpose / pad / cast weights at trace time, call fused kernel.
# ----------------------------------------------------------------------------
def rnn_forward(x, params, *, batch_block=None, unroll_threshold=16):
    """x: (T, B, input_size) -> (B, output_size)."""
    T, B, I = x.shape
    H = params["lstm"][0][1].shape[1]                 # w_hh: (4H, H)
    O = params["h2o_w"].shape[0]
    Hp = _round_up(H, _LANE)                          # lane-aligned gate blocks

    Bb = B if batch_block is None else batch_block
    assert B % Bb == 0, "batch_block must divide the batch"
    assert Bb == B or Bb % 8 == 0, "batch_block must be a multiple of 8 (sublane tile)"
    n_blk = B // Bb

    wih0_t, wih_rest_t, whh_t, bias, wo_t, bo = _prep_weights(params, H, Hp)

    # Group the batch into contiguous per-grid-step blocks of Bb, each flattened
    # time-major to (T*Bb, I) so layer 0's projection is one big MXU matmul.
    x_blocks = (x.astype(jnp.bfloat16)
                 .reshape(T, n_blk, Bb, I)
                 .transpose(1, 0, 2, 3)
                 .reshape(n_blk, T * Bb, I))

    # Resident-set-sized VMEM budget (double-buffered I/O blocks + scratch + slack).
    io_bytes = (T * Bb * I * 2 + I * 4 * Hp * 2
                + (2 * NUM_LAYERS - 1) * Hp * 4 * Hp * 2
                + NUM_LAYERS * 4 * Hp * 4
                + Hp * O * 2 + O * 4 + Bb * O * 4)
    scratch_bytes = T * Bb * 4 * Hp * 4 + T * Bb * Hp * 2
    vmem_limit = int(max(32 << 20,
                         min(100 << 20, 2 * io_bytes + scratch_bytes + (4 << 20))))
    # NOTE: for large H / long sequences on v7x (64 MiB VMEM) the right fix is to
    # chunk the time axis and stream per-layer weights via manual double-buffered
    # DMA rather than raising this limit; unnecessary at these sizes.

    kernel = functools.partial(
        _fused_rnn_kernel, seq_len=T, batch_block=Bb, hidden_pad=Hp,
        unroll_threshold=unroll_threshold)

    return pl.pallas_call(
        kernel,
        out_shape=jax.ShapeDtypeStruct((B, O), jnp.float32),
        grid=(n_blk,),
        in_specs=[
            pl.BlockSpec((None, T * Bb, I), lambda g: (g, 0, 0)),             # x, per batch block
            pl.BlockSpec((I, 4 * Hp), lambda g: (0, 0)),                      # W_ih^T layer 0
            pl.BlockSpec((NUM_LAYERS - 1, Hp, 4 * Hp), lambda g: (0, 0, 0)),  # W_ih^T layers 1..3
            pl.BlockSpec((NUM_LAYERS, Hp, 4 * Hp), lambda g: (0, 0, 0)),      # W_hh^T all layers
            pl.BlockSpec((NUM_LAYERS, 1, 4 * Hp), lambda g: (0, 0, 0)),       # combined biases
            pl.BlockSpec((Hp, O), lambda g: (0, 0)),                          # h2o W^T
            pl.BlockSpec((1, O), lambda g: (0, 0)),                           # h2o bias
        ],
        out_specs=pl.BlockSpec((Bb, O), lambda g: (g, 0)),
        scratch_shapes=[
            pltpu.VMEM((T * Bb, 4 * Hp), jnp.float32),    # hoisted input projections
            pltpu.VMEM((T * Bb, Hp), jnp.bfloat16),       # current layer output sequence
        ],
        compiler_params=pltpu.CompilerParams(
            dimension_semantics=("parallel",),            # batch blocks -> v7x TCs
            vmem_limit_bytes=vmem_limit,
        ),
    )(x_blocks, wih0_t, wih_rest_t, whh_t, bias, wo_t, bo)


# ----------------------------------------------------------------------------
# Parameter init (PyTorch-style: gate order [i, f, g, o], b = b_ih + b_hh).
# ----------------------------------------------------------------------------
def init_params(key, input_size, hidden_size, output_size, num_layers=NUM_LAYERS):
    k = 1.0 / jnp.sqrt(hidden_size)
    params = {"lstm": []}
    for layer in range(num_layers):
        in_sz = input_size if layer == 0 else hidden_size
        key, k1, k2, k3, k4 = jax.random.split(key, 5)
        w_ih = jax.random.uniform(k1, (4 * hidden_size, in_sz), jnp.float32, -k, k)
        w_hh = jax.random.uniform(k2, (4 * hidden_size, hidden_size), jnp.float32, -k, k)
        b_ih = jax.random.uniform(k3, (4 * hidden_size,), jnp.float32, -k, k)
        b_hh = jax.random.uniform(k4, (4 * hidden_size,), jnp.float32, -k, k)
        params["lstm"].append((w_ih, w_hh, b_ih + b_hh))
    key, k5, k6 = jax.random.split(key, 3)
    params["h2o_w"] = jax.random.uniform(k5, (output_size, hidden_size), jnp.float32, -k, k)
    params["h2o_b"] = jax.random.uniform(k6, (output_size,), jnp.float32, -k, k)
    return params


# ----------------------------------------------------------------------------
# Pure-JAX reference (lax.scan) in matching precision (bf16 MXU, f32 accumulate).
# ----------------------------------------------------------------------------
def rnn_reference(x, params):
    h_seq = x
    for (w_ih, w_hh, b) in params["lstm"]:
        B = h_seq.shape[1]
        H = w_hh.shape[1]
        w_ih_t = w_ih.T.astype(jnp.bfloat16)
        w_hh_t = w_hh.T.astype(jnp.bfloat16)

        def step(carry, x_t, w_ih_t=w_ih_t, w_hh_t=w_hh_t, b=b, H=H):
            h, c = carry
            gates = (jnp.dot(x_t.astype(jnp.bfloat16), w_ih_t,
                             preferred_element_type=jnp.float32)
                     + jnp.dot(h.astype(jnp.bfloat16), w_hh_t,
                               preferred_element_type=jnp.float32)
                     + b)
            i = jax.nn.sigmoid(gates[:, 0 * H:1 * H])
            f = jax.nn.sigmoid(gates[:, 1 * H:2 * H])
            g = jnp.tanh(gates[:, 2 * H:3 * H])
            o = jax.nn.sigmoid(gates[:, 3 * H:4 * H])
            c_new = f * c + i * g
            h_new = o * jnp.tanh(c_new)
            return (h_new, c_new), h_new

        init = (jnp.zeros((B, H), jnp.float32), jnp.zeros((B, H), jnp.float32))
        _, h_seq = jax.lax.scan(step, init, h_seq)
    return (jnp.dot(h_seq[-1].astype(jnp.bfloat16),
                    params["h2o_w"].T.astype(jnp.bfloat16),
                    preferred_element_type=jnp.float32)
            + params["h2o_b"])


if __name__ == "__main__":
    T, B = 8, 16
    input_size, hidden_size, output_size = 16, 32, 8

    key = jax.random.PRNGKey(0)
    key, kx, kp = jax.random.split(key, 3)
    x = jax.random.normal(kx, (T, B, input_size), jnp.float32)
    params = init_params(kp, input_size, hidden_size, output_size)

    # batch_block=8 -> grid=(2,), marked "parallel" (uses both TCs on v7x).
    fwd = jax.jit(functools.partial(rnn_forward, batch_block=8))
    out = fwd(x, params)
    jax.block_until_ready(out)

    ref = rnn_reference(x, params)
    assert out.shape == (B, output_size)
    # bf16 MXU operands (f32 accumulate) in both kernel and reference -> loose tol.
    assert jnp.allclose(out, ref, atol=5e-3, rtol=5e-3), (out, ref)

    print("KERNEL_OK")
</pallas_src>

<mosaic_0001>
module attributes {stable_mosaic.version = 11 : i64} {
  func.func @_fused_rnn_kernel(%arg0: i32, %arg1: memref<1x64x16xbf16, #tpu.memory_space<vmem>>, %arg2: memref<16x512xbf16, #tpu.memory_space<vmem>>, %arg3: memref<3x128x512xbf16, #tpu.memory_space<vmem>>, %arg4: memref<4x128x512xbf16, #tpu.memory_space<vmem>>, %arg5: memref<4x1x512xf32, #tpu.memory_space<vmem>>, %arg6: memref<128x8xbf16, #tpu.memory_space<vmem>>, %arg7: memref<1x8xf32, #tpu.memory_space<vmem>>, %arg8: memref<8x8xf32, #tpu.memory_space<vmem>>, %arg9: memref<64x512xf32, #tpu.memory_space<vmem>>, %arg10: memref<64x128xbf16, #tpu.memory_space<vmem>>) attributes {dimension_semantics = [#tpu.dimension_semantics<parallel>], iteration_bounds = array<i64: 2>, scalar_prefetch = 0 : i64, scratch_operands = 2 : i64, tpu.core_type = #tpu.core_type<tc>, window_params = [{transform_indices = @transform_0, window_bounds = array<i64: 1, 64, 16>}, {pipeline_mode = #tpu.pipeline_mode<synchronous>, transform_indices = @transform_1, window_bounds = array<i64: 16, 512>}, {pipeline_mode = #tpu.pipeline_mode<synchronous>, transform_indices = @transform_2, window_bounds = array<i64: 3, 128, 512>}, {pipeline_mode = #tpu.pipeline_mode<synchronous>, transform_indices = @transform_3, window_bounds = array<i64: 4, 128, 512>}, {pipeline_mode = #tpu.pipeline_mode<synchronous>, transform_indices = @transform_4, window_bounds = array<i64: 4, 1, 512>}, {pipeline_mode = #tpu.pipeline_mode<synchronous>, transform_indices = @transform_5, window_bounds = array<i64: 128, 8>}, {pipeline_mode = #tpu.pipeline_mode<synchronous>, transform_indices = @transform_6, window_bounds = array<i64: 1, 8>}, {transform_indices = @transform_7, window_bounds = array<i64: 8, 8>}]} {
    %c0 = arith.constant 0 : index
    %c0_0 = arith.constant 0 : index
    %c0_1 = arith.constant 0 : index
    %0 = vector.load %arg1[%c0, %c0_0, %c0_1] : memref<1x64x16xbf16, #tpu.memory_space<vmem>>, vector<1x64x16xbf16>
    %1 = vector.shape_cast %0 : vector<1x64x16xbf16> to vector<64x16xbf16>
    %c0_2 = arith.constant 0 : index
    %c0_3 = arith.constant 0 : index
    %2 = vector.load %arg2[%c0_2, %c0_3] : memref<16x512xbf16, #tpu.memory_space<vmem>>, vector<16x512xbf16>
    %cst = arith.constant dense<0.000000e+00> : vector<64x512xf32>
    %3 = tpu.matmul %1, %2, %cst {dimension_numbers = #tpu.dot_dimension_numbers<[1], [0], [0], [1], [0, 0, 1, 1], [], []>} : vector<64x16xbf16>, vector<16x512xbf16>, vector<64x512xf32> -> vector<64x512xf32>
    %c0_4 = arith.constant 0 : index
    %c0_5 = arith.constant 0 : index
    %c0_6 = arith.constant 0 : index
    %4 = vector.load %arg5[%c0_4, %c0_5, %c0_6] : memref<4x1x512xf32, #tpu.memory_space<vmem>>, vector<1x1x512xf32>
    %5 = vector.shape_cast %4 : vector<1x1x512xf32> to vector<1x512xf32>
    %6 = vector.broadcast %5 : vector<1x512xf32> to vector<64x512xf32>
    %7 = arith.addf %3, %6 : vector<64x512xf32>
    %c0_7 = arith.constant 0 : index
    %c0_8 = arith.constant 0 : index
    %8 = vector.load %arg9[%c0_7, %c0_8] : memref<64x512xf32, #tpu.memory_space<vmem>>, vector<64x512xf32>
    tpu.vector_store %arg9[%c0_7, %c0_8], %7 {strides = array<i32>} : memref<64x512xf32, #tpu.memory_space<vmem>>, vector<64x512xf32>,
    %c0_9 = arith.constant 0 : index
    %c0_10 = arith.constant 0 : index
    %c0_11 = arith.constant 0 : index
    %9 = vector.load %arg4[%c0_9, %c0_10, %c0_11] : memref<4x128x512xbf16, #tpu.memory_space<vmem>>, vector<1x128x512xbf16>
    %10 = vector.shape_cast %9 : vector<1x128x512xbf16> to vector<128x512xbf16>
    %cst_12 = arith.constant 0.000000e+00 : f32
    %11 = vector.broadcast %cst_12 : f32 to vector<8x128xf32>
    %cst_13 = arith.constant 0.000000e+00 : f32
    %12 = vector.broadcast %cst_13 : f32 to vector<8x128xf32>
    %c0_14 = arith.constant 0 : index
    %c0_15 = arith.constant 0 : index
    %13 = vector.load %arg9[%c0_14, %c0_15] : memref<64x512xf32, #tpu.memory_space<vmem>>, vector<8x512xf32>
    %14 = arith.truncf %11 : vector<8x128xf32> to vector<8x128xbf16>
    %cst_16 = arith.constant dense<0.000000e+00> : vector<8x512xf32>
    %15 = tpu.matmul %14, %10, %cst_16 {dimension_numbers = #tpu.dot_dimension_numbers<[1], [0], [0], [1], [0, 0, 1, 1], [], []>} : vector<8x128xbf16>, vector<128x512xbf16>, vector<8x512xf32> -> vector<8x512xf32>
    %16 = arith.addf %13, %15 : vector<8x512xf32>
    %17 = vector.extract_strided_slice %16 {offsets = [0, 0], sizes = [8, 384], strides = [1, 1]} : vector<8x512xf32> to vector<8x384xf32>
    %18 = arith.negf %17 : vector<8x384xf32>
    %19 = math.exp %18 : vector<8x384xf32>
    %cst_17 = arith.constant 1.000000e+00 : f32
    %20 = vector.broadcast %cst_17 : f32 to vector<8x384xf32>
    %21 = arith.addf %20, %19 : vector<8x384xf32>
    %22 = arith.divf %20, %21 : vector<8x384xf32>
    %23 = vector.extract_strided_slice %16 {offsets = [0, 384], sizes = [8, 128], strides = [1, 1]} : vector<8x512xf32> to vector<8x128xf32>
    %24 = math.tanh %23 : vector<8x128xf32>
    %25 = vector.extract_strided_slice %22 {offsets = [0, 128], sizes = [8, 128], strides = [1, 1]} : vector<8x384xf32> to vector<8x128xf32>
    %26 = arith.mulf %25, %12 : vector<8x128xf32>
    %27 = vector.extract_strided_slice %22 {offsets = [0, 0], sizes = [8, 128], strides = [1, 1]} : vector<8x384xf32> to vector<8x128xf32>
    %28 = arith.mulf %27, %24 : vector<8x128xf32>
    %29 = arith.addf %26, %28 : vector<8x128xf32>
    %30 = vector.extract_strided_slice %22 {offsets = [0, 256], sizes = [8, 128], strides = [1, 1]} : vector<8x384xf32> to vector<8x128xf32>
    %31 = math.tanh %29 : vector<8x128xf32>
    %32 = arith.mulf %30, %31 : vector<8x128xf32>
    %33 = arith.truncf %32 : vector<8x128xf32> to vector<8x128xbf16>
    %c0_18 = arith.constant 0 : index
    %c0_19 = arith.constant 0 : index
    %34 = vector.load %arg10[%c0_18, %c0_19] : memref<64x128xbf16, #tpu.memory_space<vmem>>, vector<8x128xbf16>
    tpu.vector_store %arg10[%c0_18, %c0_19], %33 {strides = array<i32>} : memref<64x128xbf16, #tpu.memory_space<vmem>>, vector<8x128xbf16>,
    %c8 = arith.constant 8 : index
    %c0_20 = arith.constant 0 : index
    %35 = vector.load %arg9[%c8, %c0_20] : memref<64x512xf32, #tpu.memory_space<vmem>>, vector<8x512xf32>
    %36 = arith.truncf %32 : vector<8x128xf32> to vector<8x128xbf16>
    %cst_21 = arith.constant dense<0.000000e+00> : vector<8x512xf32>
    %37 = tpu.matmul %36, %10, %cst_21 {dimension_numbers = #tpu.dot_dimension_numbers<[1], [0], [0], [1], [0, 0, 1, 1], [], []>} : vector<8x128xbf16>, vector<128x512xbf16>, vector<8x512xf32> -> vector<8x512xf32>
    %38 = arith.addf %35, %37 : vector<8x512xf32>
    %39 = vector.extract_strided_slice %38 {offsets = [0, 0], sizes = [8, 384], strides = [1, 1]} : vector<8x512xf32> to vector<8x384xf32>
    %40 = arith.negf %39 : vector<8x384xf32>
    %41 = math.exp %40 : vector<8x384xf32>
    %cst_22 = arith.constant 1.000000e+00 : f32
    %42 = vector.broadcast %cst_22 : f32 to vector<8x384xf32>
    %43 = arith.addf %42, %41 : vector<8x384xf32>
    %44 = arith.divf %42, %43 : vector<8x384xf32>
    %45 = vector.extract_strided_slice %38 {offsets = [0, 384], sizes = [8, 128], strides = [1, 1]} : vector<8x512xf32> to vector<8x128xf32>
    %46 = math.tanh %45 : vector<8x128xf32>
    %47 = vector.extract_strided_slice %44 {offsets = [0, 128], sizes = [8, 128], strides = [1, 1]} : vector<8x384xf32> to vector<8x128xf32>
    %48 = arith.mulf %47, %29 : vector<8x128xf32>
    %49 = vector.extract_strided_slice %44 {offsets = [0, 0], sizes = [8, 128], strides = [1, 1]} : vector<8x384xf32> to vector<8x128xf32>
    %50 = arith.mulf %49, %46 : vector<8x128xf32>
    %51 = arith.addf %48, %50 : vector<8x128xf32>
    %52 = vector.extract_strided_slice %44 {offsets = [0, 256], sizes = [8, 128], strides = [1, 1]} : vector<8x384xf32> to vector<8x128xf32>
    %53 = math.tanh %51 : vector<8x128xf32>
    %54 = arith.mulf %52, %53 : vector<8x128xf32>
    %55 = arith.truncf %54 : vector<8x128xf32> to vector<8x128xbf16>
    %c8_23 = arith.constant 8 : index
    %c0_24 = arith.constant 0 : index
    %56 = vector.load %arg10[%c8_23, %c0_24] : memref<64x128xbf16, #tpu.memory_space<vmem>>, vector<8x128xbf16>
    tpu.vector_store %arg10[%c8_23, %c0_24], %55 {strides = array<i32>} : memref<64x128xbf16, #tpu.memory_space<vmem>>, vector<8x128xbf16>,
    %c16 = arith.constant 16 : index
    %c0_25 = arith.constant 0 : index
    %57 = vector.load %arg9[%c16, %c0_25] : memref<64x512xf32, #tpu.memory_space<vmem>>, vector<8x512xf32>
    %58 = arith.truncf %54 : vector<8x128xf32> to vector<8x128xbf16>
    %cst_26 = arith.constant dense<0.000000e+00> : vector<8x512xf32>
    %59 = tpu.matmul %58, %10, %cst_26 {dimension_numbers = #tpu.dot_dimension_numbers<[1], [0], [0], [1], [0, 0, 1, 1], [], []>} : vector<8x128xbf16>, vector<128x512xbf16>, vector<8x512xf32> -> vector<8x512xf32>
    %60 = arith.addf %57, %59 : vector<8x512xf32>
    %61 = vector.extract_strided_slice %60 {offsets = [0, 0], sizes = [8, 384], strides = [1, 1]} : vector<8x512xf32> to vector<8x384xf32>
    %62 = arith.negf %61 : vector<8x384xf32>
    %63 = math.exp %62 : vector<8x384xf32>
    %cst_27 = arith.constant 1.000000e+00 : f32
    %64 = vector.broadcast %cst_27 : f32 to vector<8x384xf32>
    %65 = arith.addf %64, %63 : vector<8x384xf32>
    %66 = arith.divf %64, %65 : vector<8x384xf32>
    %67 = vector.extract_strided_slice %60 {offsets = [0, 384], sizes = [8, 128], strides = [1, 1]} : vector<8x512xf32> to vector<8x128xf32>
    %68 = math.tanh %67 : vector<8x128xf32>
    %69 = vector.extract_strided_slice %66 {offsets = [0, 128], sizes = [8, 128], strides = [1, 1]} : vector<8x384xf32> to vector<8x128xf32>
    %70 = arith.mulf %69, %51 : vector<8x128xf32>
    %71 = vector.extract_strided_slice %66 {offsets = [0, 0], sizes = [8, 128], strides = [1, 1]} : vector<8x384xf32> to vector<8x128xf32>
    %72 = arith.mulf %71, %68 : vector<8x128xf32>
    %73 = arith.addf %70, %72 : vector<8x128xf32>
    %74 = vector.extract_strided_slice %66 {offsets = [0, 256], sizes = [8, 128], strides = [1, 1]} : vector<8x384xf32> to vector<8x128xf32>
    %75 = math.tanh %73 : vector<8x128xf32>
    %76 = arith.mulf %74, %75 : vector<8x128xf32>
    %77 = arith.truncf %76 : vector<8x128xf32> to vector<8x128xbf16>
    %c16_28 = arith.constant 16 : index
    %c0_29 = arith.constant 0 : index
    %78 = vector.load %arg10[%c16_28, %c0_29] : memref<64x128xbf16, #tpu.memory_space<vmem>>, vector<8x128xbf16>
    tpu.vector_store %arg10[%c16_28, %c0_29], %77 {strides = array<i32>} : memref<64x128xbf16, #tpu.memory_space<vmem>>, vector<8x128xbf16>,
    %c24 = arith.constant 24 : index
    %c0_30 = arith.constant 0 : index
    %79 = vector.load %arg9[%c24, %c0_30] : memref<64x512xf32, #tpu.memory_space<vmem>>, vector<8x512xf32>
    %80 = arith.truncf %76 : vector<8x128xf32> to vector<8x128xbf16>
    %cst_31 = arith.constant dense<0.000000e+00> : vector<8x512xf32>
    %81 = tpu.matmul %80, %10, %cst_31 {dimension_numbers = #tpu.dot_dimension_numbers<[1], [0], [0], [1], [0, 0, 1, 1], [], []>} : vector<8x128xbf16>, vector<128x512xbf16>, vector<8x512xf32> -> vector<8x512xf32>
    %82 = arith.addf %79, %81 : vector<8x512xf32>
    %83 = vector.extract_strided_slice %82 {offsets = [0, 0], sizes = [8, 384], strides = [1, 1]} : vector<8x512xf32> to vector<8x384xf32>
    %84 = arith.negf %83 : vector<8x384xf32>
    %85 = math.exp %84 : vector<8x384xf32>
    %cst_32 = arith.constant 1.000000e+00 : f32
    %86 = vector.broadcast %cst_32 : f32 to vector<8x384xf32>
    %87 = arith.addf %86, %85 : vector<8x384xf32>
    %88 = arith.divf %86, %87 : vector<8x384xf32>
    %89 = vector.extract_strided_slice %82 {offsets = [0, 384], sizes = [8, 128], strides = [1, 1]} : vector<8x512xf32> to vector<8x128xf32>
    %90 = math.tanh %89 : vector<8x128xf32>
    %91 = vector.extract_strided_slice %88 {offsets = [0, 128], sizes = [8, 128], strides = [1, 1]} : vector<8x384xf32> to vector<8x128xf32>
    %92 = arith.mulf %91, %73 : vector<8x128xf32>
    %93 = vector.extract_strided_slice %88 {offsets = [0, 0], sizes = [8, 128], strides = [1, 1]} : vector<8x384xf32> to vector<8x128xf32>
    %94 = arith.mulf %93, %90 : vector<8x128xf32>
    %95 = arith.addf %92, %94 : vector<8x128xf32>
    %96 = vector.extract_strided_slice %88 {offsets = [0, 256], sizes = [8, 128], strides = [1, 1]} : vector<8x384xf32> to vector<8x128xf32>
    %97 = math.tanh %95 : vector<8x128xf32>
    %98 = arith.mulf %96, %97 : vector<8x128xf32>
    %99 = arith.truncf %98 : vector<8x128xf32> to vector<8x128xbf16>
    %c24_33 = arith.constant 24 : index
    %c0_34 = arith.constant 0 : index
    %100 = vector.load %arg10[%c24_33, %c0_34] : memref<64x128xbf16, #tpu.memory_space<vmem>>, vector<8x128xbf16>
    tpu.vector_store %arg10[%c24_33, %c0_34], %99 {strides = array<i32>} : memref<64x128xbf16, #tpu.memory_space<vmem>>, vector<8x128xbf16>,
    %c32 = arith.constant 32 : index
    %c0_35 = arith.constant 0 : index
    %101 = vector.load %arg9[%c32, %c0_35] : memref<64x512xf32, #tpu.memory_space<vmem>>, vector<8x512xf32>
    %102 = arith.truncf %98 : vector<8x128xf32> to vector<8x128xbf16>
    %cst_36 = arith.constant dense<0.000000e+00> : vector<8x512xf32>
    %103 = tpu.matmul %102, %10, %cst_36 {dimension_numbers = #tpu.dot_dimension_numbers<[1], [0], [0], [1], [0, 0, 1, 1], [], []>} : vector<8x128xbf16>, vector<128x512xbf16>, vector<8x512xf32> -> vector<8x512xf32>
    %104 = arith.addf %101, %103 : vector<8x512xf32>
    %105 = vector.extract_strided_slice %104 {offsets = [0, 0], sizes = [8, 384], strides = [1, 1]} : vector<8x512xf32> to vector<8x384xf32>
    %106 = arith.negf %105 : vector<8x384xf32>
    %107 = math.exp %106 : vector<8x384xf32>
    %cst_37 = arith.constant 1.000000e+00 : f32
    %108 = vector.broadcast %cst_37 : f32 to vector<8x384xf32>
    %109 = arith.addf %108, %107 : vector<8x384xf32>
    %110 = arith.divf %108, %109 : vector<8x384xf32>
    %111 = vector.extract_strided_slice %104 {offsets = [0, 384], sizes = [8, 128], strides = [1, 1]} : vector<8x512xf32> to vector<8x128xf32>
    %112 = math.tanh %111 : vector<8x128xf32>
    %113 = vector.extract_strided_slice %110 {offsets = [0, 128], sizes = [8, 128], strides = [1, 1]} : vector<8x384xf32> to vector<8x128xf32>
    %114 = arith.mulf %113, %95 : vector<8x128xf32>
    %115 = vector.extract_strided_slice %110 {offsets = [0, 0], sizes = [8, 128], strides = [1, 1]} : vector<8x384xf32> to vector<8x128xf32>
    %116 = arith.mulf %115, %112 : vector<8x128xf32>
    %117 = arith.addf %114, %116 : vector<8x128xf32>
    %118 = vector.extract_strided_slice %110 {offsets = [0, 256], sizes = [8, 128], strides = [1, 1]} : vector<8x384xf32> to vector<8x128xf32>
    %119 = math.tanh %117 : vector<8x128xf32>
    %120 = arith.mulf %118, %119 : vector<8x128xf32>
    %121 = arith.truncf %120 : vector<8x128xf32> to vector<8x128xbf16>
    %c32_38 = arith.constant 32 : index
    %c0_39 = arith.constant 0 : index
    %122 = vector.load %arg10[%c32_38, %c0_39] : memref<64x128xbf16, #tpu.memory_space<vmem>>, vector<8x128xbf16>
    tpu.vector_store %arg10[%c32_38, %c0_39], %121 {strides = array<i32>} : memref<64x128xbf16, #tpu.memory_space<vmem>>, vector<8x128xbf16>,
    %c40 = arith.constant 40 : index
    %c0_40 = arith.constant 0 : index
    %123 = vector.load %arg9[%c40, %c0_40] : memref<64x512xf32, #tpu.memory_space<vmem>>, vector<8x512xf32>
    %124 = arith.truncf %120 : vector<8x128xf32> to vector<8x128xbf16>
    %cst_41 = arith.constant dense<0.000000e+00> : vector<8x512xf32>
    %125 = tpu.matmul %124, %10, %cst_41 {dimension_numbers = #tpu.dot_dimension_numbers<[1], [0], [0], [1], [0, 0, 1, 1], [], []>} : vector<8x128xbf16>, vector<128x512xbf16>, vector<8x512xf32> -> vector<8x512xf32>
    %126 = arith.addf %123, %125 : vector<8x512xf32>
    %127 = vector.extract_strided_slice %126 {offsets = [0, 0], sizes = [8, 384], strides = [1, 1]} : vector<8x512xf32> to vector<8x384xf32>
    %128 = arith.negf %127 : vector<8x384xf32>
    %129 = math.exp %128 : vector<8x384xf32>
    %cst_42 = arith.constant 1.000000e+00 : f32
    %130 = vector.broadcast %cst_42 : f32 to vector<8x384xf32>
    %131 = arith.addf %130, %129 : vector<8x384xf32>
    %132 = arith.divf %130, %131 : vector<8x384xf32>
    %133 = vector.extract_strided_slice %126 {offsets = [0, 384], sizes = [8, 128], strides = [1, 1]} : vector<8x512xf32> to vector<8x128xf32>
    %134 = math.tanh %133 : vector<8x128xf32>
    %135 = vector.extract_strided_slice %132 {offsets = [0, 128], sizes = [8, 128], strides = [1, 1]} : vector<8x384xf32> to vector<8x128xf32>
    %136 = arith.mulf %135, %117 : vector<8x128xf32>
    %137 = vector.extract_strided_slice %132 {offsets = [0, 0], sizes = [8, 128], strides = [1, 1]} : vector<8x384xf32> to vector<8x128xf32>
    %138 = arith.mulf %137, %134 : vector<8x128xf32>
    %139 = arith.addf %136, %138 : vector<8x128xf32>
    %140 = vector.extract_strided_slice %132 {offsets = [0, 256], sizes = [8, 128], strides = [1, 1]} : vector<8x384xf32> to vector<8x128xf32>
    %141 = math.tanh %139 : vector<8x128xf32>
    %142 = arith.mulf %140, %141 : vector<8x128xf32>
    %143 = arith.truncf %142 : vector<8x128xf32> to vector<8x128xbf16>
    %c40_43 = arith.constant 40 : index
    %c0_44 = arith.constant 0 : index
    %144 = vector.load %arg10[%c40_43, %c0_44] : memref<64x128xbf16, #tpu.memory_space<vmem>>, vector<8x128xbf16>
    tpu.vector_store %arg10[%c40_43, %c0_44], %143 {strides = array<i32>} : memref<64x128xbf16, #tpu.memory_space<vmem>>, vector<8x128xbf16>,
    %c48 = arith.constant 48 : index
    %c0_45 = arith.constant 0 : index
    %145 = vector.load %arg9[%c48, %c0_45] : memref<64x512xf32, #tpu.memory_space<vmem>>, vector<8x512xf32>
    %146 = arith.truncf %142 : vector<8x128xf32> to vector<8x128xbf16>
    %cst_46 = arith.constant dense<0.000000e+00> : vector<8x512xf32>
    %147 = tpu.matmul %146, %10, %cst_46 {dimension_numbers = #tpu.dot_dimension_numbers<[1], [0], [0], [1], [0, 0, 1, 1], [], []>} : vector<8x128xbf16>, vector<128x512xbf16>, vector<8x512xf32> -> vector<8x512xf32>
    %148 = arith.addf %145, %147 : vector<8x512xf32>
    %149 = vector.extract_strided_slice %148 {offsets = [0, 0], sizes = [8, 384], strides = [1, 1]} : vector<8x512xf32> to vector<8x384xf32>
    %150 = arith.negf %149 : vector<8x384xf32>
    %151 = math.exp %150 : vector<8x384xf32>
    %cst_47 = arith.constant 1.000000e+00 : f32
    %152 = vector.broadcast %cst_47 : f32 to vector<8x384xf32>
    %153 = arith.addf %152, %151 : vector<8x384xf32>
    %154 = arith.divf %152, %153 : vector<8x384xf32>
    %155 = vector.extract_strided_slice %148 {offsets = [0, 384], sizes = [8, 128], strides = [1, 1]} : vector<8x512xf32> to vector<8x128xf32>
    %156 = math.tanh %155 : vector<8x128xf32>
    %157 = vector.extract_strided_slice %154 {offsets = [0, 128], sizes = [8, 128], strides = [1, 1]} : vector<8x384xf32> to vector<8x128xf32>
    %158 = arith.mulf %157, %139 : vector<8x128xf32>
    %159 = vector.extract_strided_slice %154 {offsets = [0, 0], sizes = [8, 128], strides = [1, 1]} : vector<8x384xf32> to vector<8x128xf32>
    %160 = arith.mulf %159, %156 : vector<8x128xf32>
    %161 = arith.addf %158, %160 : vector<8x128xf32>
    %162 = vector.extract_strided_slice %154 {offsets = [0, 256], sizes = [8, 128], strides = [1, 1]} : vector<8x384xf32> to vector<8x128xf32>
    %163 = math.tanh %161 : vector<8x128xf32>
    %164 = arith.mulf %162, %163 : vector<8x128xf32>
    %165 = arith.truncf %164 : vector<8x128xf32> to vector<8x128xbf16>
    %c48_48 = arith.constant 48 : index
    %c0_49 = arith.constant 0 : index
    %166 = vector.load %arg10[%c48_48, %c0_49] : memref<64x128xbf16, #tpu.memory_space<vmem>>, vector<8x128xbf16>
    tpu.vector_store %arg10[%c48_48, %c0_49], %165 {strides = array<i32>} : memref<64x128xbf16, #tpu.memory_space<vmem>>, vector<8x128xbf16>,
    %c56 = arith.constant 56 : index
    %c0_50 = arith.constant 0 : index
    %167 = vector.load %arg9[%c56, %c0_50] : memref<64x512xf32, #tpu.memory_space<vmem>>, vector<8x512xf32>
    %168 = arith.truncf %164 : vector<8x128xf32> to vector<8x128xbf16>
    %cst_51 = arith.constant dense<0.000000e+00> : vector<8x512xf32>
    %169 = tpu.matmul %168, %10, %cst_51 {dimension_numbers = #tpu.dot_dimension_numbers<[1], [0], [0], [1], [0, 0, 1, 1], [], []>} : vector<8x128xbf16>, vector<128x512xbf16>, vector<8x512xf32> -> vector<8x512xf32>
    %170 = arith.addf %167, %169 : vector<8x512xf32>
    %171 = vector.extract_strided_slice %170 {offsets = [0, 0], sizes = [8, 384], strides = [1, 1]} : vector<8x512xf32> to vector<8x384xf32>
    %172 = arith.negf %171 : vector<8x384xf32>
    %173 = math.exp %172 : vector<8x384xf32>
    %cst_52 = arith.constant 1.000000e+00 : f32
    %174 = vector.broadcast %cst_52 : f32 to vector<8x384xf32>
    %175 = arith.addf %174, %173 : vector<8x384xf32>
    %176 = arith.divf %174, %175 : vector<8x384xf32>
    %177 = vector.extract_strided_slice %170 {offsets = [0, 384], sizes = [8, 128], strides = [1, 1]} : vector<8x512xf32> to vector<8x128xf32>
    %178 = math.tanh %177 : vector<8x128xf32>
    %179 = vector.extract_strided_slice %176 {offsets = [0, 128], sizes = [8, 128], strides = [1, 1]} : vector<8x384xf32> to vector<8x128xf32>
    %180 = arith.mulf %179, %161 : vector<8x128xf32>
    %181 = vector.extract_strided_slice %176 {offsets = [0, 0], sizes = [8, 128], strides = [1, 1]} : vector<8x384xf32> to vector<8x128xf32>
    %182 = arith.mulf %181, %178 : vector<8x128xf32>
    %183 = arith.addf %180, %182 : vector<8x128xf32>
    %184 = vector.extract_strided_slice %176 {offsets = [0, 256], sizes = [8, 128], strides = [1, 1]} : vector<8x384xf32> to vector<8x128xf32>
    %185 = math.tanh %183 : vector<8x128xf32>
    %186 = arith.mulf %184, %185 : vector<8x128xf32>
    %187 = arith.truncf %186 : vector<8x128xf32> to vector<8x128xbf16>
    %c56_53 = arith.constant 56 : index
    %c0_54 = arith.constant 0 : index
    %188 = vector.load %arg10[%c56_53, %c0_54] : memref<64x128xbf16, #tpu.memory_space<vmem>>, vector<8x128xbf16>
    tpu.vector_store %arg10[%c56_53, %c0_54], %187 {strides = array<i32>} : memref<64x128xbf16, #tpu.memory_space<vmem>>, vector<8x128xbf16>,
    %c0_55 = arith.constant 0 : index
    %c0_56 = arith.constant 0 : index
    %189 = vector.load %arg10[%c0_55, %c0_56] : memref<64x128xbf16, #tpu.memory_space<vmem>>, vector<64x128xbf16>
    %c0_57 = arith.constant 0 : index
    %c0_58 = arith.constant 0 : index
    %c0_59 = arith.constant 0 : index
    %190 = vector.load %arg3[%c0_57, %c0_58, %c0_59] : memref<3x128x512xbf16, #tpu.memory_space<vmem>>, vector<1x128x512xbf16>
    %191 = vector.shape_cast %190 : vector<1x128x512xbf16> to vector<128x512xbf16>
    %cst_60 = arith.constant dense<0.000000e+00> : vector<64x512xf32>
    %192 = tpu.matmul %189, %191, %cst_60 {dimension_numbers = #tpu.dot_dimension_numbers<[1], [0], [0], [1], [0, 0, 1, 1], [], []>} : vector<64x128xbf16>, vector<128x512xbf16>, vector<64x512xf32> -> vector<64x512xf32>
    %c1 = arith.constant 1 : index
    %c0_61 = arith.constant 0 : index
    %c0_62 = arith.constant 0 : index
    %193 = vector.load %arg5[%c1, %c0_61, %c0_62] : memref<4x1x512xf32, #tpu.memory_space<vmem>>, vector<1x1x512xf32>
    %194 = vector.shape_cast %193 : vector<1x1x512xf32> to vector<1x512xf32>
    %195 = vector.broadcast %194 : vector<1x512xf32> to vector<64x512xf32>
    %196 = arith.addf %192, %195 : vector<64x512xf32>
    %c0_63 = arith.constant 0 : index
    %c0_64 = arith.constant 0 : index
    %197 = vector.load %arg9[%c0_63, %c0_64] : memref<64x512xf32, #tpu.memory_space<vmem>>, vector<64x512xf32>
    tpu.vector_store %arg9[%c0_63, %c0_64], %196 {strides = array<i32>} : memref<64x512xf32, #tpu.memory_space<vmem>>, vector<64x512xf32>,
    %c1_65 = arith.constant 1 : index
    %c0_66 = arith.constant 0 : index
    %c0_67 = arith.constant 0 : index
    %198 = vector.load %arg4[%c1_65, %c0_66, %c0_67] : memref<4x128x512xbf16, #tpu.memory_space<vmem>>, vector<1x128x512xbf16>
    %199 = vector.shape_cast %198 : vector<1x128x512xbf16> to vector<128x512xbf16>
    %cst_68 = arith.constant 0.000000e+00 : f32
    %200 = vector.broadcast %cst_68 : f32 to vector<8x128xf32>
    %cst_69 = arith.constant 0.000000e+00 : f32
    %201 = vector.broadcast %cst_69 : f32 to vector<8x128xf32>
    %c0_70 = arith.constant 0 : index
    %c0_71 = arith.constant 0 : index
    %202 = vector.load %arg9[%c0_70, %c0_71] : memref<64x512xf32, #tpu.memory_space<vmem>>, vector<8x512xf32>
    %203 = arith.truncf %200 : vector<8x128xf32> to vector<8x128xbf16>
    %cst_72 = arith.constant dense<0.000000e+00> : vector<8x512xf32>
    %204 = tpu.matmul %203, %199, %cst_72 {dimension_numbers = #tpu.dot_dimension_numbers<[1], [0], [0], [1], [0, 0, 1, 1], [], []>} : vector<8x128xbf16>, vector<128x512xbf16>, vector<8x512xf32> -> vector<8x512xf32>
    %205 = arith.addf %202, %204 : vector<8x512xf32>
    %206 = vector.extract_strided_slice %205 {offsets = [0, 0], sizes = [8, 384], strides = [1, 1]} : vector<8x512xf32> to vector<8x384xf32>
    %207 = arith.negf %206 : vector<8x384xf32>
    %208 = math.exp %207 : vector<8x384xf32>
    %cst_73 = arith.constant 1.000000e+00 : f32
    %209 = vector.broadcast %cst_73 : f32 to vector<8x384xf32>
    %210 = arith.addf %209, %208 : vector<8x384xf32>
    %211 = arith.divf %209, %210 : vector<8x384xf32>
    %212 = vector.extract_strided_slice %205 {offsets = [0, 384], sizes = [8, 128], strides = [1, 1]} : vector<8x512xf32> to vector<8x128xf32>
    %213 = math.tanh %212 : vector<8x128xf32>
    %214 = vector.extract_strided_slice %211 {offsets = [0, 128], sizes = [8, 128], strides = [1, 1]} : vector<8x384xf32> to vector<8x128xf32>
    %215 = arith.mulf %214, %201 : vector<8x128xf32>
    %216 = vector.extract_strided_slice %211 {offsets = [0, 0], sizes = [8, 128], strides = [1, 1]} : vector<8x384xf32> to vector<8x128xf32>
    %217 = arith.mulf %216, %213 : vector<8x128xf32>
    %218 = arith.addf %215, %217 : vector<8x128xf32>
    %219 = vector.extract_strided_slice %211 {offsets = [0, 256], sizes = [8, 128], strides = [1, 1]} : vector<8x384xf32> to vector<8x128xf32>
    %220 = math.tanh %218 : vector<8x128xf32>
    %221 = arith.mulf %219, %220 : vector<8x128xf32>
    %222 = arith.truncf %221 : vector<8x128xf32> to vector<8x128xbf16>
    %c0_74 = arith.constant 0 : index
    %c0_75 = arith.constant 0 : index
    %223 = vector.load %arg10[%c0_74, %c0_75] : memref<64x128xbf16, #tpu.memory_space<vmem>>, vector<8x128xbf16>
    tpu.vector_store %arg10[%c0_74, %c0_75], %222 {strides = array<i32>} : memref<64x128xbf16, #tpu.memory_space<vmem>>, vector<8x128xbf16>,
    %c8_76 = arith.constant 8 : index
    %c0_77 = arith.constant 0 : index
    %224 = vector.load %arg9[%c8_76, %c0_77] : memref<64x512xf32, #tpu.memory_space<vmem>>, vector<8x512xf32>
    %225 = arith.truncf %221 : vector<8x128xf32> to vector<8x128xbf16>
    %cst_78 = arith.constant dense<0.000000e+00> : vector<8x512xf32>
    %226 = tpu.matmul %225, %199, %cst_78 {dimension_numbers = #tpu.dot_dimension_numbers<[1], [0], [0], [1], [0, 0, 1, 1], [], []>} : vector<8x128xbf16>, vector<128x512xbf16>, vector<8x512xf32> -> vector<8x512xf32>
    %227 = arith.addf %224, %226 : vector<8x512xf32>
    %228 = vector.extract_strided_slice %227 {offsets = [0, 0], sizes = [8, 384], strides = [1, 1]} : vector<8x512xf32> to vector<8x384xf32>
    %229 = arith.negf %228 : vector<8x384xf32>
    %230 = math.exp %229 : vector<8x384xf32>
    %cst_79 = arith.constant 1.000000e+00 : f32
    %231 = vector.broadcast %cst_79 : f32 to vector<8x384xf32>
    %232 = arith.addf %231, %230 : vector<8x384xf32>
    %233 = arith.divf %231, %232 : vector<8x384xf32>
    %234 = vector.extract_strided_slice %227 {offsets = [0, 384], sizes = [8, 128], strides = [1, 1]} : vector<8x512xf32> to vector<8x128xf32>
    %235 = math.tanh %234 : vector<8x128xf32>
    %236 = vector.extract_strided_slice %233 {offsets = [0, 128], sizes = [8, 128], strides = [1, 1]} : vector<8x384xf32> to vector<8x128xf32>
    %237 = arith.mulf %236, %218 : vector<8x128xf32>
    %238 = vector.extract_strided_slice %233 {offsets = [0, 0], sizes = [8, 128], strides = [1, 1]} : vector<8x384xf32> to vector<8x128xf32>
    %239 = arith.mulf %238, %235 : vector<8x128xf32>
    %240 = arith.addf %237, %239 : vector<8x128xf32>
    %241 = vector.extract_strided_slice %233 {offsets = [0, 256], sizes = [8, 128], strides = [1, 1]} : vector<8x384xf32> to vector<8x128xf32>
    %242 = math.tanh %240 : vector<8x128xf32>
    %243 = arith.mulf %241, %242 : vector<8x128xf32>
    %244 = arith.truncf %243 : vector<8x128xf32> to vector<8x128xbf16>
    %c8_80 = arith.constant 8 : index
    %c0_81 = arith.constant 0 : index
    %245 = vector.load %arg10[%c8_80, %c0_81] : memref<64x128xbf16, #tpu.memory_space<vmem>>, vector<8x128xbf16>
    tpu.vector_store %arg10[%c8_80, %c0_81], %244 {strides = array<i32>} : memref<64x128xbf16, #tpu.memory_space<vmem>>, vector<8x128xbf16>,
    %c16_82 = arith.constant 16 : index
    %c0_83 = arith.constant 0 : index
    %246 = vector.load %arg9[%c16_82, %c0_83] : memref<64x512xf32, #tpu.memory_space<vmem>>, vector<8x512xf32>
    %247 = arith.truncf %243 : vector<8x128xf32> to vector<8x128xbf16>
    %cst_84 = arith.constant dense<0.000000e+00> : vector<8x512xf32>
    %248 = tpu.matmul %247, %199, %cst_84 {dimension_numbers = #tpu.dot_dimension_numbers<[1], [0], [0], [1], [0, 0, 1, 1], [], []>} : vector<8x128xbf16>, vector<128x512xbf16>, vector<8x512xf32> -> vector<8x512xf32>
    %249 = arith.addf %246, %248 : vector<8x512xf32>
    %250 = vector.extract_strided_slice %249 {offsets = [0, 0], sizes = [8, 384], strides = [1, 1]} : vector<8x512xf32> to vector<8x384xf32>
    %251 = arith.negf %250 : vector<8x384xf32>
    %252 = math.exp %251 : vector<8x384xf32>
    %cst_85 = arith.constant 1.000000e+00 : f32
    %253 = vector.broadcast %cst_85 : f32 to vector<8x384xf32>
    %254 = arith.addf %253, %252 : vector<8x384xf32>
    %255 = arith.divf %253, %254 : vector<8x384xf32>
    %256 = vector.extract_strided_slice %249 {offsets = [0, 384], sizes = [8, 128], strides = [1, 1]} : vector<8x512xf32> to vector<8x128xf32>
    %257 = math.tanh %256 : vector<8x128xf32>
    %258 = vector.extract_strided_slice %255 {offsets = [0, 128], sizes = [8, 128], strides = [1, 1]} : vector<8x384xf32> to vector<8x128xf32>
    %259 = arith.mulf %258, %240 : vector<8x128xf32>
    %260 = vector.extract_strided_slice %255 {offsets = [0, 0], sizes = [8, 128], strides = [1, 1]} : vector<8x384xf32> to vector<8x128xf32>
    %261 = arith.mulf %260, %257 : vector<8x128xf32>
    %262 = arith.addf %259, %261 : vector<8x128xf32>
    %263 = vector.extract_strided_slice %255 {offsets = [0, 256], sizes = [8, 128], strides = [1, 1]} : vector<8x384xf32> to vector<8x128xf32>
    %264 = math.tanh %262 : vector<8x128xf32>
    %265 = arith.mulf %263, %264 : vector<8x128xf32>
    %266 = arith.truncf %265 : vector<8x128xf32> to vector<8x128xbf16>
    %c16_86 = arith.constant 16 : index
    %c0_87 = arith.constant 0 : index
    %267 = vector.load %arg10[%c16_86, %c0_87] : memref<64x128xbf16, #tpu.memory_space<vmem>>, vector<8x128xbf16>
    tpu.vector_store %arg10[%c16_86, %c0_87], %266 {strides = array<i32>} : memref<64x128xbf16, #tpu.memory_space<vmem>>, vector<8x128xbf16>,
    %c24_88 = arith.constant 24 : index
    %c0_89 = arith.constant 0 : index
    %268 = vector.load %arg9[%c24_88, %c0_89] : memref<64x512xf32, #tpu.memory_space<vmem>>, vector<8x512xf32>
    %269 = arith.truncf %265 : vector<8x128xf32> to vector<8x128xbf16>
    %cst_90 = arith.constant dense<0.000000e+00> : vector<8x512xf32>
    %270 = tpu.matmul %269, %199, %cst_90 {dimension_numbers = #tpu.dot_dimension_numbers<[1], [0], [0], [1], [0, 0, 1, 1], [], []>} : vector<8x128xbf16>, vector<128x512xbf16>, vector<8x512xf32> -> vector<8x512xf32>
    %271 = arith.addf %268, %270 : vector<8x512xf32>
    %272 = vector.extract_strided_slice %271 {offsets = [0, 0], sizes = [8, 384], strides = [1, 1]} : vector<8x512xf32> to vector<8x384xf32>
    %273 = arith.negf %272 : vector<8x384xf32>
    %274 = math.exp %273 : vector<8x384xf32>
    %cst_91 = arith.constant 1.000000e+00 : f32
    %275 = vector.broadcast %cst_91 : f32 to vector<8x384xf32>
    %276 = arith.addf %275, %274 : vector<8x384xf32>
    %277 = arith.divf %275, %276 : vector<8x384xf32>
    %278 = vector.extract_strided_slice %271 {offsets = [0, 384], sizes = [8, 128], strides = [1, 1]} : vector<8x512xf32> to vector<8x128xf32>
    %279 = math.tanh %278 : vector<8x128xf32>
    %280 = vector.extract_strided_slice %277 {offsets = [0, 128], sizes = [8, 128], strides = [1, 1]} : vector<8x384xf32> to vector<8x128xf32>
    %281 = arith.mulf %280, %262 : vector<8x128xf32>
    %282 = vector.extract_strided_slice %277 {offsets = [0, 0], sizes = [8, 128], strides = [1, 1]} : vector<8x384xf32> to vector<8x128xf32>
    %283 = arith.mulf %282, %279 : vector<8x128xf32>
    %284 = arith.addf %281, %283 : vector<8x128xf32>
    %285 = vector.extract_strided_slice %277 {offsets = [0, 256], sizes = [8, 128], strides = [1, 1]} : vector<8x384xf32> to vector<8x128xf32>
    %286 = math.tanh %284 : vector<8x128xf32>
    %287 = arith.mulf %285, %286 : vector<8x128xf32>
    %288 = arith.truncf %287 : vector<8x128xf32> to vector<8x128xbf16>
    %c24_92 = arith.constant 24 : index
    %c0_93 = arith.constant 0 : index
    %289 = vector.load %arg10[%c24_92, %c0_93] : memref<64x128xbf16, #tpu.memory_space<vmem>>, vector<8x128xbf16>
    tpu.vector_store %arg10[%c24_92, %c0_93], %288 {strides = array<i32>} : memref<64x128xbf16, #tpu.memory_space<vmem>>, vector<8x128xbf16>,
    %c32_94 = arith.constant 32 : index
    %c0_95 = arith.constant 0 : index
    %290 = vector.load %arg9[%c32_94, %c0_95] : memref<64x512xf32, #tpu.memory_space<vmem>>, vector<8x512xf32>
    %291 = arith.truncf %287 : vector<8x128xf32> to vector<8x128xbf16>
    %cst_96 = arith.constant dense<0.000000e+00> : vector<8x512xf32>
    %292 = tpu.matmul %291, %199, %cst_96 {dimension_numbers = #tpu.dot_dimension_numbers<[1], [0], [0], [1], [0, 0, 1, 1], [], []>} : vector<8x128xbf16>, vector<128x512xbf16>, vector<8x512xf32> -> vector<8x512xf32>
    %293 = arith.addf %290, %292 : vector<8x512xf32>
    %294 = vector.extract_strided_slice %293 {offsets = [0, 0], sizes = [8, 384], strides = [1, 1]} : vector<8x512xf32> to vector<8x384xf32>
    %295 = arith.negf %294 : vector<8x384xf32>
    %296 = math.exp %295 : vector<8x384xf32>
    %cst_97 = arith.constant 1.000000e+00 : f32
    %297 = vector.broadcast %cst_97 : f32 to vector<8x384xf32>
    %298 = arith.addf %297, %296 : vector<8x384xf32>
    %299 = arith.divf %297, %298 : vector<8x384xf32>
    %300 = vector.extract_strided_slice %293 {offsets = [0, 384], sizes = [8, 128], strides = [1, 1]} : vector<8x512xf32> to vector<8x128xf32>
    %301 = math.tanh %300 : vector<8x128xf32>
    %302 = vector.extract_strided_slice %299 {offsets = [0, 128], sizes = [8, 128], strides = [1, 1]} : vector<8x384xf32> to vector<8x128xf32>
    %303 = arith.mulf %302, %284 : vector<8x128xf32>
    %304 = vector.extract_strided_slice %299 {offsets = [0, 0], sizes = [8, 128], strides = [1, 1]} : vector<8x384xf32> to vector<8x128xf32>
    %305 = arith.mulf %304, %301 : vector<8x128xf32>
    %306 = arith.addf %303, %305 : vector<8x128xf32>
    %307 = vector.extract_strided_slice %299 {offsets = [0, 256], sizes = [8, 128], strides = [1, 1]} : vector<8x384xf32> to vector<8x128xf32>
    %308 = math.tanh %306 : vector<8x128xf32>
    %309 = arith.mulf %307, %308 : vector<8x128xf32>
    %310 = arith.truncf %309 : vector<8x128xf32> to vector<8x128xbf16>
    %c32_98 = arith.constant 32 : index
    %c0_99 = arith.constant 0 : index
    %311 = vector.load %arg10[%c32_98, %c0_99] : memref<64x128xbf16, #tpu.memory_space<vmem>>, vector<8x128xbf16>
    tpu.vector_store %arg10[%c32_98, %c0_99], %310 {strides = array<i32>} : memref<64x128xbf16, #tpu.memory_space<vmem>>, vector<8x128xbf16>,
    %c40_100 = arith.constant 40 : index
    %c0_101 = arith.constant 0 : index
    %312 = vector.load %arg9[%c40_100, %c0_101] : memref<64x512xf32, #tpu.memory_space<vmem>>, vector<8x512xf32>
    %313 = arith.truncf %309 : vector<8x128xf32> to vector<8x128xbf16>
    %cst_102 = arith.constant dense<0.000000e+00> : vector<8x512xf32>
    %314 = tpu.matmul %313, %199, %cst_102 {dimension_numbers = #tpu.dot_dimension_numbers<[1], [0], [0], [1], [0, 0, 1, 1], [], []>} : vector<8x128xbf16>, vector<128x512xbf16>, vector<8x512xf32> -> vector<8x512xf32>
    %315 = arith.addf %312, %314 : vector<8x512xf32>
    %316 = vector.extract_strided_slice %315 {offsets = [0, 0], sizes = [8, 384], strides = [1, 1]} : vector<8x512xf32> to vector<8x384xf32>
    %317 = arith.negf %316 : vector<8x384xf32>
    %318 = math.exp %317 : vector<8x384xf32>
    %cst_103 = arith.constant 1.000000e+00 : f32
    %319 = vector.broadcast %cst_103 : f32 to vector<8x384xf32>
    %320 = arith.addf %319, %318 : vector<8x384xf32>
    %321 = arith.divf %319, %320 : vector<8x384xf32>
    %322 = vector.extract_strided_slice %315 {offsets = [0, 384], sizes = [8, 128], strides = [1, 1]} : vector<8x512xf32> to vector<8x128xf32>
    %323 = math.tanh %322 : vector<8x128xf32>
    %324 = vector.extract_strided_slice %321 {offsets = [0, 128], sizes = [8, 128], strides = [1, 1]} : vector<8x384xf32> to vector<8x128xf32>
    %325 = arith.mulf %324, %306 : vector<8x128xf32>
    %326 = vector.extract_strided_slice %321 {offsets = [0, 0], sizes = [8, 128], strides = [1, 1]} : vector<8x384xf32> to vector<8x128xf32>
    %327 = arith.mulf %326, %323 : vector<8x128xf32>
    %328 = arith.addf %325, %327 : vector<8x128xf32>
    %329 = vector.extract_strided_slice %321 {offsets = [0, 256], sizes = [8, 128], strides = [1, 1]} : vector<8x384xf32> to vector<8x128xf32>
    %330 = math.tanh %328 : vector<8x128xf32>
    %331 = arith.mulf %329, %330 : vector<8x128xf32>
    %332 = arith.truncf %331 : vector<8x128xf32> to vector<8x128xbf16>
    %c40_104 = arith.constant 40 : index
    %c0_105 = arith.constant 0 : index
    %333 = vector.load %arg10[%c40_104, %c0_105] : memref<64x128xbf16, #tpu.memory_space<vmem>>, vector<8x128xbf16>
    tpu.vector_store %arg10[%c40_104, %c0_105], %332 {strides = array<i32>} : memref<64x128xbf16, #tpu.memory_space<vmem>>, vector<8x128xbf16>,
    %c48_106 = arith.constant 48 : index
    %c0_107 = arith.constant 0 : index
    %334 = vector.load %arg9[%c48_106, %c0_107] : memref<64x512xf32, #tpu.memory_space<vmem>>, vector<8x512xf32>
    %335 = arith.truncf %331 : vector<8x128xf32> to vector<8x128xbf16>
    %cst_108 = arith.constant dense<0.000000e+00> : vector<8x512xf32>
    %336 = tpu.matmul %335, %199, %cst_108 {dimension_numbers = #tpu.dot_dimension_numbers<[1], [0], [0], [1], [0, 0, 1, 1], [], []>} : vector<8x128xbf16>, vector<128x512xbf16>, vector<8x512xf32> -> vector<8x512xf32>
    %337 = arith.addf %334, %336 : vector<8x512xf32>
    %338 = vector.extract_strided_slice %337 {offsets = [0, 0], sizes = [8, 384], strides = [1, 1]} : vector<8x512xf32> to vector<8x384xf32>
    %339 = arith.negf %338 : vector<8x384xf32>
    %340 = math.exp %339 : vector<8x384xf32>
    %cst_109 = arith.constant 1.000000e+00 : f32
    %341 = vector.broadcast %cst_109 : f32 to vector<8x384xf32>
    %342 = arith.addf %341, %340 : vector<8x384xf32>
    %343 = arith.divf %341, %342 : vector<8x384xf32>
    %344 = vector.extract_strided_slice %337 {offsets = [0, 384], sizes = [8, 128], strides = [1, 1]} : vector<8x512xf32> to vector<8x128xf32>
    %345 = math.tanh %344 : vector<8x128xf32>
    %346 = vector.extract_strided_slice %343 {offsets = [0, 128], sizes = [8, 128], strides = [1, 1]} : vector<8x384xf32> to vector<8x128xf32>
    %347 = arith.mulf %346, %328 : vector<8x128xf32>
    %348 = vector.extract_strided_slice %343 {offsets = [0, 0], sizes = [8, 128], strides = [1, 1]} : vector<8x384xf32> to vector<8x128xf32>
    %349 = arith.mulf %348, %345 : vector<8x128xf32>
    %350 = arith.addf %347, %349 : vector<8x128xf32>
    %351 = vector.extract_strided_slice %343 {offsets = [0, 256], sizes = [8, 128], strides = [1, 1]} : vector<8x384xf32> to vector<8x128xf32>
    %352 = math.tanh %350 : vector<8x128xf32>
    %353 = arith.mulf %351, %352 : vector<8x128xf32>
    %354 = arith.truncf %353 : vector<8x128xf32> to vector<8x128xbf16>
    %c48_110 = arith.constant 48 : index
    %c0_111 = arith.constant 0 : index
    %355 = vector.load %arg10[%c48_110, %c0_111] : memref<64x128xbf16, #tpu.memory_space<vmem>>, vector<8x128xbf16>
    tpu.vector_store %arg10[%c48_110, %c0_111], %354 {strides = array<i32>} : memref<64x128xbf16, #tpu.memory_space<vmem>>, vector<8x128xbf16>,
    %c56_112 = arith.constant 56 : index
    %c0_113 = arith.constant 0 : index
    %356 = vector.load %arg9[%c56_112, %c0_113] : memref<64x512xf32, #tpu.memory_space<vmem>>, vector<8x512xf32>
    %357 = arith.truncf %353 : vector<8x128xf32> to vector<8x128xbf16>
    %cst_114 = arith.constant dense<0.000000e+00> : vector<8x512xf32>
    %358 = tpu.matmul %357, %199, %cst_114 {dimension_numbers = #tpu.dot_dimension_numbers<[1], [0], [0], [1], [0, 0, 1, 1], [], []>} : vector<8x128xbf16>, vector<128x512xbf16>, vector<8x512xf32> -> vector<8x512xf32>
    %359 = arith.addf %356, %358 : vector<8x512xf32>
    %360 = vector.extract_strided_slice %359 {offsets = [0, 0], sizes = [8, 384], strides = [1, 1]} : vector<8x512xf32> to vector<8x384xf32>
    %361 = arith.negf %360 : vector<8x384xf32>
    %362 = math.exp %361 : vector<8x384xf32>
    %cst_115 = arith.constant 1.000000e+00 : f32
    %363 = vector.broadcast %cst_115 : f32 to vector<8x384xf32>
    %364 = arith.addf %363, %362 : vector<8x384xf32>
    %365 = arith.divf %363, %364 : vector<8x384xf32>
    %366 = vector.extract_strided_slice %359 {offsets = [0, 384], sizes = [8, 128], strides = [1, 1]} : vector<8x512xf32> to vector<8x128xf32>
    %367 = math.tanh %366 : vector<8x128xf32>
    %368 = vector.extract_strided_slice %365 {offsets = [0, 128], sizes = [8, 128], strides = [1, 1]} : vector<8x384xf32> to vector<8x128xf32>
    %369 = arith.mulf %368, %350 : vector<8x128xf32>
    %370 = vector.extract_strided_slice %365 {offsets = [0, 0], sizes = [8, 128], strides = [1, 1]} : vector<8x384xf32> to vector<8x128xf32>
    %371 = arith.mulf %370, %367 : vector<8x128xf32>
    %372 = arith.addf %369, %371 : vector<8x128xf32>
    %373 = vector.extract_strided_slice %365 {offsets = [0, 256], sizes = [8, 128], strides = [1, 1]} : vector<8x384xf32> to vector<8x128xf32>
    %374 = math.tanh %372 : vector<8x128xf32>
    %375 = arith.mulf %373, %374 : vector<8x128xf32>
    %376 = arith.truncf %375 : vector<8x128xf32> to vector<8x128xbf16>
    %c56_116 = arith.constant 56 : index
    %c0_117 = arith.constant 0 : index
    %377 = vector.load %arg10[%c56_116, %c0_117] : memref<64x128xbf16, #tpu.memory_space<vmem>>, vector<8x128xbf16>
    tpu.vector_store %arg10[%c56_116, %c0_117], %376 {strides = array<i32>} : memref<64x128xbf16, #tpu.memory_space<vmem>>, vector<8x128xbf16>,
    %c0_118 = arith.constant 0 : index
    %c0_119 = arith.constant 0 : index
    %378 = vector.load %arg10[%c0_118, %c0_119] : memref<64x128xbf16, #tpu.memory_space<vmem>>, vector<64x128xbf16>
    %c1_120 = arith.constant 1 : index
    %c0_121 = arith.constant 0 : index
    %c0_122 = arith.constant 0 : index
    %379 = vector.load %arg3[%c1_120, %c0_121, %c0_122] : memref<3x128x512xbf16, #tpu.memory_space<vmem>>, vector<1x128x512xbf16>
    %380 = vector.shape_cast %379 : vector<1x128x512xbf16> to vector<128x512xbf16>
    %cst_123 = arith.constant dense<0.000000e+00> : vector<64x512xf32>
    %381 = tpu.matmul %378, %380, %cst_123 {dimension_numbers = #tpu.dot_dimension_numbers<[1], [0], [0], [1], [0, 0, 1, 1], [], []>} : vector<64x128xbf16>, vector<128x512xbf16>, vector<64x512xf32> -> vector<64x512xf32>
    %c2 = arith.constant 2 : index
    %c0_124 = arith.constant 0 : index
    %c0_125 = arith.constant 0 : index
    %382 = vector.load %arg5[%c2, %c0_124, %c0_125] : memref<4x1x512xf32, #tpu.memory_space<vmem>>, vector<1x1x512xf32>
    %383 = vector.shape_cast %382 : vector<1x1x512xf32> to vector<1x512xf32>
    %384 = vector.broadcast %383 : vector<1x512xf32> to vector<64x512xf32>
    %385 = arith.addf %381, %384 : vector<64x512xf32>
    %c0_126 = arith.constant 0 : index
    %c0_127 = arith.constant 0 : index
    %386 = vector.load %arg9[%c0_126, %c0_127] : memref<64x512xf32, #tpu.memory_space<vmem>>, vector<64x512xf32>
    tpu.vector_store %arg9[%c0_126, %c0_127], %385 {strides = array<i32>} : memref<64x512xf32, #tpu.memory_space<vmem>>, vector<64x512xf32>,
    %c2_128 = arith.constant 2 : index
    %c0_129 = arith.constant 0 : index
    %c0_130 = arith.constant 0 : index
    %387 = vector.load %arg4[%c2_128, %c0_129, %c0_130] : memref<4x128x512xbf16, #tpu.memory_space<vmem>>, vector<1x128x512xbf16>
    %388 = vector.shape_cast %387 : vector<1x128x512xbf16> to vector<128x512xbf16>
    %cst_131 = arith.constant 0.000000e+00 : f32
    %389 = vector.broadcast %cst_131 : f32 to vector<8x128xf32>
    %cst_132 = arith.constant 0.000000e+00 : f32
    %390 = vector.broadcast %cst_132 : f32 to vector<8x128xf32>
    %c0_133 = arith.constant 0 : index
    %c0_134 = arith.constant 0 : index
    %391 = vector.load %arg9[%c0_133, %c0_134] : memref<64x512xf32, #tpu.memory_space<vmem>>, vector<8x512xf32>
    %392 = arith.truncf %389 : vector<8x128xf32> to vector<8x128xbf16>
    %cst_135 = arith.constant dense<0.000000e+00> : vector<8x512xf32>
    %393 = tpu.matmul %392, %388, %cst_135 {dimension_numbers = #tpu.dot_dimension_numbers<[1], [0], [0], [1], [0, 0, 1, 1], [], []>} : vector<8x128xbf16>, vector<128x512xbf16>, vector<8x512xf32> -> vector<8x512xf32>
    %394 = arith.addf %391, %393 : vector<8x512xf32>
    %395 = vector.extract_strided_slice %394 {offsets = [0, 0], sizes = [8, 384], strides = [1, 1]} : vector<8x512xf32> to vector<8x384xf32>
    %396 = arith.negf %395 : vector<8x384xf32>
    %397 = math.exp %396 : vector<8x384xf32>
    %cst_136 = arith.constant 1.000000e+00 : f32
    %398 = vector.broadcast %cst_136 : f32 to vector<8x384xf32>
    %399 = arith.addf %398, %397 : vector<8x384xf32>
    %400 = arith.divf %398, %399 : vector<8x384xf32>
    %401 = vector.extract_strided_slice %394 {offsets = [0, 384], sizes = [8, 128], strides = [1, 1]} : vector<8x512xf32> to vector<8x128xf32>
    %402 = math.tanh %401 : vector<8x128xf32>
    %403 = vector.extract_strided_slice %400 {offsets = [0, 128], sizes = [8, 128], strides = [1, 1]} : vector<8x384xf32> to vector<8x128xf32>
    %404 = arith.mulf %403, %390 : vector<8x128xf32>
    %405 = vector.extract_strided_slice %400 {offsets = [0, 0], sizes = [8, 128], strides = [1, 1]} : vector<8x384xf32> to vector<8x128xf32>
    %406 = arith.mulf %405, %402 : vector<8x128xf32>
    %407 = arith.addf %404, %406 : vector<8x128xf32>
    %408 = vector.extract_strided_slice %400 {offsets = [0, 256], sizes = [8, 128], strides = [1, 1]} : vector<8x384xf32> to vector<8x128xf32>
    %409 = math.tanh %407 : vector<8x128xf32>
    %410 = arith.mulf %408, %409 : vector<8x128xf32>
    %411 = arith.truncf %410 : vector<8x128xf32> to vector<8x128xbf16>
    %c0_137 = arith.constant 0 : index
    %c0_138 = arith.constant 0 : index
    %412 = vector.load %arg10[%c0_137, %c0_138] : memref<64x128xbf16, #tpu.memory_space<vmem>>, vector<8x128xbf16>
    tpu.vector_store %arg10[%c0_137, %c0_138], %411 {strides = array<i32>} : memref<64x128xbf16, #tpu.memory_space<vmem>>, vector<8x128xbf16>,
    %c8_139 = arith.constant 8 : index
    %c0_140 = arith.constant 0 : index
    %413 = vector.load %arg9[%c8_139, %c0_140] : memref<64x512xf32, #tpu.memory_space<vmem>>, vector<8x512xf32>
    %414 = arith.truncf %410 : vector<8x128xf32> to vector<8x128xbf16>
    %cst_141 = arith.constant dense<0.000000e+00> : vector<8x512xf32>
    %415 = tpu.matmul %414, %388, %cst_141 {dimension_numbers = #tpu.dot_dimension_numbers<[1], [0], [0], [1], [0, 0, 1, 1], [], []>} : vector<8x128xbf16>, vector<128x512xbf16>, vector<8x512xf32> -> vector<8x512xf32>
    %416 = arith.addf %413, %415 : vector<8x512xf32>
    %417 = vector.extract_strided_slice %416 {offsets = [0, 0], sizes = [8, 384], strides = [1, 1]} : vector<8x512xf32> to vector<8x384xf32>
    %418 = arith.negf %417 : vector<8x384xf32>
    %419 = math.exp %418 : vector<8x384xf32>
    %cst_142 = arith.constant 1.000000e+00 : f32
    %420 = vector.broadcast %cst_142 : f32 to vector<8x384xf32>
    %421 = arith.addf %420, %419 : vector<8x384xf32>
    %422 = arith.divf %420, %421 : vector<8x384xf32>
    %423 = vector.extract_strided_slice %416 {offsets = [0, 384], sizes = [8, 128], strides = [1, 1]} : vector<8x512xf32> to vector<8x128xf32>
    %424 = math.tanh %423 : vector<8x128xf32>
    %425 = vector.extract_strided_slice %422 {offsets = [0, 128], sizes = [8, 128], strides = [1, 1]} : vector<8x384xf32> to vector<8x128xf32>
    %426 = arith.mulf %425, %407 : vector<8x128xf32>
    %427 = vector.extract_strided_slice %422 {offsets = [0, 0], sizes = [8, 128], strides = [1, 1]} : vector<8x384xf32> to vector<8x128xf32>
    %428 = arith.mulf %427, %424 : vector<8x128xf32>
    %429 = arith.addf %426, %428 : vector<8x128xf32>
    %430 = vector.extract_strided_slice %422 {offsets = [0, 256], sizes = [8, 128], strides = [1, 1]} : vector<8x384xf32> to vector<8x128xf32>
    %431 = math.tanh %429 : vector<8x128xf32>
    %432 = arith.mulf %430, %431 : vector<8x128xf32>
    %433 = arith.truncf %432 : vector<8x128xf32> to vector<8x128xbf16>
    %c8_143 = arith.constant 8 : index
    %c0_144 = arith.constant 0 : index
    %434 = vector.load %arg10[%c8_143, %c0_144] : memref<64x128xbf16, #tpu.memory_space<vmem>>, vector<8x128xbf16>
    tpu.vector_store %arg10[%c8_143, %c0_144], %433 {strides = array<i32>} : memref<64x128xbf16, #tpu.memory_space<vmem>>, vector<8x128xbf16>,
    %c16_145 = arith.constant 16 : index
    %c0_146 = arith.constant 0 : index
    %435 = vector.load %arg9[%c16_145, %c0_146] : memref<64x512xf32, #tpu.memory_space<vmem>>, vector<8x512xf32>
    %436 = arith.truncf %432 : vector<8x128xf32> to vector<8x128xbf16>
    %cst_147 = arith.constant dense<0.000000e+00> : vector<8x512xf32>
    %437 = tpu.matmul %436, %388, %cst_147 {dimension_numbers = #tpu.dot_dimension_numbers<[1], [0], [0], [1], [0, 0, 1, 1], [], []>} : vector<8x128xbf16>, vector<128x512xbf16>, vector<8x512xf32> -> vector<8x512xf32>
    %438 = arith.addf %435, %437 : vector<8x512xf32>
    %439 = vector.extract_strided_slice %438 {offsets = [0, 0], sizes = [8, 384], strides = [1, 1]} : vector<8x512xf32> to vector<8x384xf32>
    %440 = arith.negf %439 : vector<8x384xf32>
    %441 = math.exp %440 : vector<8x384xf32>
    %cst_148 = arith.constant 1.000000e+00 : f32
    %442 = vector.broadcast %cst_148 : f32 to vector<8x384xf32>
    %443 = arith.addf %442, %441 : vector<8x384xf32>
    %444 = arith.divf %442, %443 : vector<8x384xf32>
    %445 = vector.extract_strided_slice %438 {offsets = [0, 384], sizes = [8, 128], strides = [1, 1]} : vector<8x512xf32> to vector<8x128xf32>
    %446 = math.tanh %445 : vector<8x128xf32>
    %447 = vector.extract_strided_slice %444 {offsets = [0, 128], sizes = [8, 128], strides = [1, 1]} : vector<8x384xf32> to vector<8x128xf32>
    %448 = arith.mulf %447, %429 : vector<8x128xf32>
    %449 = vector.extract_strided_slice %444 {offsets = [0, 0], sizes = [8, 128], strides = [1, 1]} : vector<8x384xf32> to vector<8x128xf32>
    %450 = arith.mulf %449, %446 : vector<8x128xf32>
    %451 = arith.addf %448, %450 : vector<8x128xf32>
    %452 = vector.extract_strided_slice %444 {offsets = [0, 256], sizes = [8, 128], strides = [1, 1]} : vector<8x384xf32> to vector<8x128xf32>
    %453 = math.tanh %451 : vector<8x128xf32>
    %454 = arith.mulf %452, %453 : vector<8x128xf32>
    %455 = arith.truncf %454 : vector<8x128xf32> to vector<8x128xbf16>
    %c16_149 = arith.constant 16 : index
    %c0_150 = arith.constant 0 : index
    %456 = vector.load %arg10[%c16_149, %c0_150] : memref<64x128xbf16, #tpu.memory_space<vmem>>, vector<8x128xbf16>
    tpu.vector_store %arg10[%c16_149, %c0_150], %455 {strides = array<i32>} : memref<64x128xbf16, #tpu.memory_space<vmem>>, vector<8x128xbf16>,
    %c24_151 = arith.constant 24 : index
    %c0_152 = arith.constant 0 : index
    %457 = vector.load %arg9[%c24_151, %c0_152] : memref<64x512xf32, #tpu.memory_space<vmem>>, vector<8x512xf32>
    %458 = arith.truncf %454 : vector<8x128xf32> to vector<8x128xbf16>
    %cst_153 = arith.constant dense<0.000000e+00> : vector<8x512xf32>
    %459 = tpu.matmul %458, %388, %cst_153 {dimension_numbers = #tpu.dot_dimension_numbers<[1], [0], [0], [1], [0, 0, 1, 1], [], []>} : vector<8x128xbf16>, vector<128x512xbf16>, vector<8x512xf32> -> vector<8x512xf32>
    %460 = arith.addf %457, %459 : vector<8x512xf32>
    %461 = vector.extract_strided_slice %460 {offsets = [0, 0], sizes = [8, 384], strides = [1, 1]} : vector<8x512xf32> to vector<8x384xf32>
    %462 = arith.negf %461 : vector<8x384xf32>
    %463 = math.exp %462 : vector<8x384xf32>
    %cst_154 = arith.constant 1.000000e+00 : f32
    %464 = vector.broadcast %cst_154 : f32 to vector<8x384xf32>
    %465 = arith.addf %464, %463 : vector<8x384xf32>
    %466 = arith.divf %464, %465 : vector<8x384xf32>
    %467 = vector.extract_strided_slice %460 {offsets = [0, 384], sizes = [8, 128], strides = [1, 1]} : vector<8x512xf32> to vector<8x128xf32>
    %468 = math.tanh %467 : vector<8x128xf32>
    %469 = vector.extract_strided_slice %466 {offsets = [0, 128], sizes = [8, 128], strides = [1, 1]} : vector<8x384xf32> to vector<8x128xf32>
    %470 = arith.mulf %469, %451 : vector<8x128xf32>
    %471 = vector.extract_strided_slice %466 {offsets = [0, 0], sizes = [8, 128], strides = [1, 1]} : vector<8x384xf32> to vector<8x128xf32>
    %472 = arith.mulf %471, %468 : vector<8x128xf32>
    %473 = arith.addf %470, %472 : vector<8x128xf32>
    %474 = vector.extract_strided_slice %466 {offsets = [0, 256], sizes = [8, 128], strides = [1, 1]} : vector<8x384xf32> to vector<8x128xf32>
    %475 = math.tanh %473 : vector<8x128xf32>
    %476 = arith.mulf %474, %475 : vector<8x128xf32>
    %477 = arith.truncf %476 : vector<8x128xf32> to vector<8x128xbf16>
    %c24_155 = arith.constant 24 : index
    %c0_156 = arith.constant 0 : index
    %478 = vector.load %arg10[%c24_155, %c0_156] : memref<64x128xbf16, #tpu.memory_space<vmem>>, vector<8x128xbf16>
    tpu.vector_store %arg10[%c24_155, %c0_156], %477 {strides = array<i32>} : memref<64x128xbf16, #tpu.memory_space<vmem>>, vector<8x128xbf16>,
    %c32_157 = arith.constant 32 : index
    %c0_158 = arith.constant 0 : index
    %479 = vector.load %arg9[%c32_157, %c0_158] : memref<64x512xf32, #tpu.memory_space<vmem>>, vector<8x512xf32>
    %480 = arith.truncf %476 : vector<8x128xf32> to vector<8x128xbf16>
    %cst_159 = arith.constant dense<0.000000e+00> : vector<8x512xf32>
    %481 = tpu.matmul %480, %388, %cst_159 {dimension_numbers = #tpu.dot_dimension_numbers<[1], [0], [0], [1], [0, 0, 1, 1], [], []>} : vector<8x128xbf16>, vector<128x512xbf16>, vector<8x512xf32> -> vector<8x512xf32>
    %482 = arith.addf %479, %481 : vector<8x512xf32>
    %483 = vector.extract_strided_slice %482 {offsets = [0, 0], sizes = [8, 384], strides = [1, 1]} : vector<8x512xf32> to vector<8x384xf32>
    %484 = arith.negf %483 : vector<8x384xf32>
    %485 = math.exp %484 : vector<8x384xf32>
    %cst_160 = arith.constant 1.000000e+00 : f32
    %486 = vector.broadcast %cst_160 : f32 to vector<8x384xf32>
    %487 = arith.addf %486, %485 : vector<8x384xf32>
    %488 = arith.divf %486, %487 : vector<8x384xf32>
    %489 = vector.extract_strided_slice %482 {offsets = [0, 384], sizes = [8, 128], strides = [1, 1]} : vector<8x512xf32> to vector<8x128xf32>
    %490 = math.tanh %489 : vector<8x128xf32>
    %491 = vector.extract_strided_slice %488 {offsets = [0, 128], sizes = [8, 128], strides = [1, 1]} : vector<8x384xf32> to vector<8x128xf32>
    %492 = arith.mulf %491, %473 : vector<8x128xf32>
    %493 = vector.extract_strided_slice %488 {offsets = [0, 0], sizes = [8, 128], strides = [1, 1]} : vector<8x384xf32> to vector<8x128xf32>
    %494 = arith.mulf %493, %490 : vector<8x128xf32>
    %495 = arith.addf %492, %494 : vector<8x128xf32>
    %496 = vector.extract_strided_slice %488 {offsets = [0, 256], sizes = [8, 128], strides = [1, 1]} : vector<8x384xf32> to vector<8x128xf32>
    %497 = math.tanh %495 : vector<8x128xf32>
    %498 = arith.mulf %496, %497 : vector<8x128xf32>
    %499 = arith.truncf %498 : vector<8x128xf32> to vector<8x128xbf16>
    %c32_161 = arith.constant 32 : index
    %c0_162 = arith.constant 0 : index
    %500 = vector.load %arg10[%c32_161, %c0_162] : memref<64x128xbf16, #tpu.memory_space<vmem>>, vector<8x128xbf16>
    tpu.vector_store %arg10[%c32_161, %c0_162], %499 {strides = array<i32>} : memref<64x128xbf16, #tpu.memory_space<vmem>>, vector<8x128xbf16>,
    %c40_163 = arith.constant 40 : index
    %c0_164 = arith.constant 0 : index
    %501 = vector.load %arg9[%c40_163, %c0_164] : memref<64x512xf32, #tpu.memory_space<vmem>>, vector<8x512xf32>
    %502 = arith.truncf %498 : vector<8x128xf32> to vector<8x128xbf16>
    %cst_165 = arith.constant dense<0.000000e+00> : vector<8x512xf32>
    %503 = tpu.matmul %502, %388, %cst_165 {dimension_numbers = #tpu.dot_dimension_numbers<[1], [0], [0], [1], [0, 0, 1, 1], [], []>} : vector<8x128xbf16>, vector<128x512xbf16>, vector<8x512xf32> -> vector<8x512xf32>
    %504 = arith.addf %501, %503 : vector<8x512xf32>
    %505 = vector.extract_strided_slice %504 {offsets = [0, 0], sizes = [8, 384], strides = [1, 1]} : vector<8x512xf32> to vector<8x384xf32>
    %506 = arith.negf %505 : vector<8x384xf32>
    %507 = math.exp %506 : vector<8x384xf32>
    %cst_166 = arith.constant 1.000000e+00 : f32
    %508 = vector.broadcast %cst_166 : f32 to vector<8x384xf32>
    %509 = arith.addf %508, %507 : vector<8x384xf32>
    %510 = arith.divf %508, %509 : vector<8x384xf32>
    %511 = vector.extract_strided_slice %504 {offsets = [0, 384], sizes = [8, 128], strides = [1, 1]} : vector<8x512xf32> to vector<8x128xf32>
    %512 = math.tanh %511 : vector<8x128xf32>
    %513 = vector.extract_strided_slice %510 {offsets = [0, 128], sizes = [8, 128], strides = [1, 1]} : vector<8x384xf32> to vector<8x128xf32>
    %514 = arith.mulf %513, %495 : vector<8x128xf32>
    %515 = vector.extract_strided_slice %510 {offsets = [0, 0], sizes = [8, 128], strides = [1, 1]} : vector<8x384xf32> to vector<8x128xf32>
    %516 = arith.mulf %515, %512 : vector<8x128xf32>
    %517 = arith.addf %514, %516 : vector<8x128xf32>
    %518 = vector.extract_strided_slice %510 {offsets = [0, 256], sizes = [8, 128], strides = [1, 1]} : vector<8x384xf32> to vector<8x128xf32>
    %519 = math.tanh %517 : vector<8x128xf32>
    %520 = arith.mulf %518, %519 : vector<8x128xf32>
    %521 = arith.truncf %520 : vector<8x128xf32> to vector<8x128xbf16>
    %c40_167 = arith.constant 40 : index
    %c0_168 = arith.constant 0 : index
    %522 = vector.load %arg10[%c40_167, %c0_168] : memref<64x128xbf16, #tpu.memory_space<vmem>>, vector<8x128xbf16>
    tpu.vector_store %arg10[%c40_167, %c0_168], %521 {strides = array<i32>} : memref<64x128xbf16, #tpu.memory_space<vmem>>, vector<8x128xbf16>,
    %c48_169 = arith.constant 48 : index
    %c0_170 = arith.constant 0 : index
    %523 = vector.load %arg9[%c48_169, %c0_170] : memref<64x512xf32, #tpu.memory_space<vmem>>, vector<8x512xf32>
    %524 = arith.truncf %520 : vector<8x128xf32> to vector<8x128xbf16>
    %cst_171 = arith.constant dense<0.000000e+00> : vector<8x512xf32>
    %525 = tpu.matmul %524, %388, %cst_171 {dimension_numbers = #tpu.dot_dimension_numbers<[1], [0], [0], [1], [0, 0, 1, 1], [], []>} : vector<8x128xbf16>, vector<128x512xbf16>, vector<8x512xf32> -> vector<8x512xf32>
    %526 = arith.addf %523, %525 : vector<8x512xf32>
    %527 = vector.extract_strided_slice %526 {offsets = [0, 0], sizes = [8, 384], strides = [1, 1]} : vector<8x512xf32> to vector<8x384xf32>
    %528 = arith.negf %527 : vector<8x384xf32>
    %529 = math.exp %528 : vector<8x384xf32>
    %cst_172 = arith.constant 1.000000e+00 : f32
    %530 = vector.broadcast %cst_172 : f32 to vector<8x384xf32>
    %531 = arith.addf %530, %529 : vector<8x384xf32>
    %532 = arith.divf %530, %531 : vector<8x384xf32>
    %533 = vector.extract_strided_slice %526 {offsets = [0, 384], sizes = [8, 128], strides = [1, 1]} : vector<8x512xf32> to vector<8x128xf32>
    %534 = math.tanh %533 : vector<8x128xf32>
    %535 = vector.extract_strided_slice %532 {offsets = [0, 128], sizes = [8, 128], strides = [1, 1]} : vector<8x384xf32> to vector<8x128xf32>
    %536 = arith.mulf %535, %517 : vector<8x128xf32>
    %537 = vector.extract_strided_slice %532 {offsets = [0, 0], sizes = [8, 128], strides = [1, 1]} : vector<8x384xf32> to vector<8x128xf32>
    %538 = arith.mulf %537, %534 : vector<8x128xf32>
    %539 = arith.addf %536, %538 : vector<8x128xf32>
    %540 = vector.extract_strided_slice %532 {offsets = [0, 256], sizes = [8, 128], strides = [1, 1]} : vector<8x384xf32> to vector<8x128xf32>
    %541 = math.tanh %539 : vector<8x128xf32>
    %542 = arith.mulf %540, %541 : vector<8x128xf32>
    %543 = arith.truncf %542 : vector<8x128xf32> to vector<8x128xbf16>
    %c48_173 = arith.constant 48 : index
    %c0_174 = arith.constant 0 : index
    %544 = vector.load %arg10[%c48_173, %c0_174] : memref<64x128xbf16, #tpu.memory_space<vmem>>, vector<8x128xbf16>
    tpu.vector_store %arg10[%c48_173, %c0_174], %543 {strides = array<i32>} : memref<64x128xbf16, #tpu.memory_space<vmem>>, vector<8x128xbf16>,
    %c56_175 = arith.constant 56 : index
    %c0_176 = arith.constant 0 : index
    %545 = vector.load %arg9[%c56_175, %c0_176] : memref<64x512xf32, #tpu.memory_space<vmem>>, vector<8x512xf32>
    %546 = arith.truncf %542 : vector<8x128xf32> to vector<8x128xbf16>
    %cst_177 = arith.constant dense<0.000000e+00> : vector<8x512xf32>
    %547 = tpu.matmul %546, %388, %cst_177 {dimension_numbers = #tpu.dot_dimension_numbers<[1], [0], [0], [1], [0, 0, 1, 1], [], []>} : vector<8x128xbf16>, vector<128x512xbf16>, vector<8x512xf32> -> vector<8x512xf32>
    %548 = arith.addf %545, %547 : vector<8x512xf32>
    %549 = vector.extract_strided_slice %548 {offsets = [0, 0], sizes = [8, 384], strides = [1, 1]} : vector<8x512xf32> to vector<8x384xf32>
    %550 = arith.negf %549 : vector<8x384xf32>
    %551 = math.exp %550 : vector<8x384xf32>
    %cst_178 = arith.constant 1.000000e+00 : f32
    %552 = vector.broadcast %cst_178 : f32 to vector<8x384xf32>
    %553 = arith.addf %552, %551 : vector<8x384xf32>
    %554 = arith.divf %552, %553 : vector<8x384xf32>
    %555 = vector.extract_strided_slice %548 {offsets = [0, 384], sizes = [8, 128], strides = [1, 1]} : vector<8x512xf32> to vector<8x128xf32>
    %556 = math.tanh %555 : vector<8x128xf32>
    %557 = vector.extract_strided_slice %554 {offsets = [0, 128], sizes = [8, 128], strides = [1, 1]} : vector<8x384xf32> to vector<8x128xf32>
    %558 = arith.mulf %557, %539 : vector<8x128xf32>
    %559 = vector.extract_strided_slice %554 {offsets = [0, 0], sizes = [8, 128], strides = [1, 1]} : vector<8x384xf32> to vector<8x128xf32>
    %560 = arith.mulf %559, %556 : vector<8x128xf32>
    %561 = arith.addf %558, %560 : vector<8x128xf32>
    %562 = vector.extract_strided_slice %554 {offsets = [0, 256], sizes = [8, 128], strides = [1, 1]} : vector<8x384xf32> to vector<8x128xf32>
    %563 = math.tanh %561 : vector<8x128xf32>
    %564 = arith.mulf %562, %563 : vector<8x128xf32>
    %565 = arith.truncf %564 : vector<8x128xf32> to vector<8x128xbf16>
    %c56_179 = arith.constant 56 : index
    %c0_180 = arith.constant 0 : index
    %566 = vector.load %arg10[%c56_179, %c0_180] : memref<64x128xbf16, #tpu.memory_space<vmem>>, vector<8x128xbf16>
    tpu.vector_store %arg10[%c56_179, %c0_180], %565 {strides = array<i32>} : memref<64x128xbf16, #tpu.memory_space<vmem>>, vector<8x128xbf16>,
    %c0_181 = arith.constant 0 : index
    %c0_182 = arith.constant 0 : index
    %567 = vector.load %arg10[%c0_181, %c0_182] : memref<64x128xbf16, #tpu.memory_space<vmem>>, vector<64x128xbf16>
    %c2_183 = arith.constant 2 : index
    %c0_184 = arith.constant 0 : index
    %c0_185 = arith.constant 0 : index
    %568 = vector.load %arg3[%c2_183, %c0_184, %c0_185] : memref<3x128x512xbf16, #tpu.memory_space<vmem>>, vector<1x128x512xbf16>
    %569 = vector.shape_cast %568 : vector<1x128x512xbf16> to vector<128x512xbf16>
    %cst_186 = arith.constant dense<0.000000e+00> : vector<64x512xf32>
    %570 = tpu.matmul %567, %569, %cst_186 {dimension_numbers = #tpu.dot_dimension_numbers<[1], [0], [0], [1], [0, 0, 1, 1], [], []>} : vector<64x128xbf16>, vector<128x512xbf16>, vector<64x512xf32> -> vector<64x512xf32>
    %c3 = arith.constant 3 : index
    %c0_187 = arith.constant 0 : index
    %c0_188 = arith.constant 0 : index
    %571 = vector.load %arg5[%c3, %c0_187, %c0_188] : memref<4x1x512xf32, #tpu.memory_space<vmem>>, vector<1x1x512xf32>
    %572 = vector.shape_cast %571 : vector<1x1x512xf32> to vector<1x512xf32>
    %573 = vector.broadcast %572 : vector<1x512xf32> to vector<64x512xf32>
    %574 = arith.addf %570, %573 : vector<64x512xf32>
    %c0_189 = arith.constant 0 : index
    %c0_190 = arith.constant 0 : index
    %575 = vector.load %arg9[%c0_189, %c0_190] : memref<64x512xf32, #tpu.memory_space<vmem>>, vector<64x512xf32>
    tpu.vector_store %arg9[%c0_189, %c0_190], %574 {strides = array<i32>} : memref<64x512xf32, #tpu.memory_space<vmem>>, vector<64x512xf32>,
    %c3_191 = arith.constant 3 : index
    %c0_192 = arith.constant 0 : index
    %c0_193 = arith.constant 0 : index
    %576 = vector.load %arg4[%c3_191, %c0_192, %c0_193] : memref<4x128x512xbf16, #tpu.memory_space<vmem>>, vector<1x128x512xbf16>
    %577 = vector.shape_cast %576 : vector<1x128x512xbf16> to vector<128x512xbf16>
    %cst_194 = arith.constant 0.000000e+00 : f32
    %578 = vector.broadcast %cst_194 : f32 to vector<8x128xf32>
    %cst_195 = arith.constant 0.000000e+00 : f32
    %579 = vector.broadcast %cst_195 : f32 to vector<8x128xf32>
    %c0_196 = arith.constant 0 : index
    %c0_197 = arith.constant 0 : index
    %580 = vector.load %arg9[%c0_196, %c0_197] : memref<64x512xf32, #tpu.memory_space<vmem>>, vector<8x512xf32>
    %581 = arith.truncf %578 : vector<8x128xf32> to vector<8x128xbf16>
    %cst_198 = arith.constant dense<0.000000e+00> : vector<8x512xf32>
    %582 = tpu.matmul %581, %577, %cst_198 {dimension_numbers = #tpu.dot_dimension_numbers<[1], [0], [0], [1], [0, 0, 1, 1], [], []>} : vector<8x128xbf16>, vector<128x512xbf16>, vector<8x512xf32> -> vector<8x512xf32>
    %583 = arith.addf %580, %582 : vector<8x512xf32>
    %584 = vector.extract_strided_slice %583 {offsets = [0, 0], sizes = [8, 384], strides = [1, 1]} : vector<8x512xf32> to vector<8x384xf32>
    %585 = arith.negf %584 : vector<8x384xf32>
    %586 = math.exp %585 : vector<8x384xf32>
    %cst_199 = arith.constant 1.000000e+00 : f32
    %587 = vector.broadcast %cst_199 : f32 to vector<8x384xf32>
    %588 = arith.addf %587, %586 : vector<8x384xf32>
    %589 = arith.divf %587, %588 : vector<8x384xf32>
    %590 = vector.extract_strided_slice %583 {offsets = [0, 384], sizes = [8, 128], strides = [1, 1]} : vector<8x512xf32> to vector<8x128xf32>
    %591 = math.tanh %590 : vector<8x128xf32>
    %592 = vector.extract_strided_slice %589 {offsets = [0, 128], sizes = [8, 128], strides = [1, 1]} : vector<8x384xf32> to vector<8x128xf32>
    %593 = arith.mulf %592, %579 : vector<8x128xf32>
    %594 = vector.extract_strided_slice %589 {offsets = [0, 0], sizes = [8, 128], strides = [1, 1]} : vector<8x384xf32> to vector<8x128xf32>
    %595 = arith.mulf %594, %591 : vector<8x128xf32>
    %596 = arith.addf %593, %595 : vector<8x128xf32>
    %597 = vector.extract_strided_slice %589 {offsets = [0, 256], sizes = [8, 128], strides = [1, 1]} : vector<8x384xf32> to vector<8x128xf32>
    %598 = math.tanh %596 : vector<8x128xf32>
    %599 = arith.mulf %597, %598 : vector<8x128xf32>
    %c8_200 = arith.constant 8 : index
    %c0_201 = arith.constant 0 : index
    %600 = vector.load %arg9[%c8_200, %c0_201] : memref<64x512xf32, #tpu.memory_space<vmem>>, vector<8x512xf32>
    %601 = arith.truncf %599 : vector<8x128xf32> to vector<8x128xbf16>
    %cst_202 = arith.constant dense<0.000000e+00> : vector<8x512xf32>
    %602 = tpu.matmul %601, %577, %cst_202 {dimension_numbers = #tpu.dot_dimension_numbers<[1], [0], [0], [1], [0, 0, 1, 1], [], []>} : vector<8x128xbf16>, vector<128x512xbf16>, vector<8x512xf32> -> vector<8x512xf32>
    %603 = arith.addf %600, %602 : vector<8x512xf32>
    %604 = vector.extract_strided_slice %603 {offsets = [0, 0], sizes = [8, 384], strides = [1, 1]} : vector<8x512xf32> to vector<8x384xf32>
    %605 = arith.negf %604 : vector<8x384xf32>
    %606 = math.exp %605 : vector<8x384xf32>
    %cst_203 = arith.constant 1.000000e+00 : f32
    %607 = vector.broadcast %cst_203 : f32 to vector<8x384xf32>
    %608 = arith.addf %607, %606 : vector<8x384xf32>
    %609 = arith.divf %607, %608 : vector<8x384xf32>
    %610 = vector.extract_strided_slice %603 {offsets = [0, 384], sizes = [8, 128], strides = [1, 1]} : vector<8x512xf32> to vector<8x128xf32>
    %611 = math.tanh %610 : vector<8x128xf32>
    %612 = vector.extract_strided_slice %609 {offsets = [0, 128], sizes = [8, 128], strides = [1, 1]} : vector<8x384xf32> to vector<8x128xf32>
    %613 = arith.mulf %612, %596 : vector<8x128xf32>
    %614 = vector.extract_strided_slice %609 {offsets = [0, 0], sizes = [8, 128], strides = [1, 1]} : vector<8x384xf32> to vector<8x128xf32>
    %615 = arith.mulf %614, %611 : vector<8x128xf32>
    %616 = arith.addf %613, %615 : vector<8x128xf32>
    %617 = vector.extract_strided_slice %609 {offsets = [0, 256], sizes = [8, 128], strides = [1, 1]} : vector<8x384xf32> to vector<8x128xf32>
    %618 = math.tanh %616 : vector<8x128xf32>
    %619 = arith.mulf %617, %618 : vector<8x128xf32>
    %c16_204 = arith.constant 16 : index
    %c0_205 = arith.constant 0 : index
    %620 = vector.load %arg9[%c16_204, %c0_205] : memref<64x512xf32, #tpu.memory_space<vmem>>, vector<8x512xf32>
    %621 = arith.truncf %619 : vector<8x128xf32> to vector<8x128xbf16>
    %cst_206 = arith.constant dense<0.000000e+00> : vector<8x512xf32>
    %622 = tpu.matmul %621, %577, %cst_206 {dimension_numbers = #tpu.dot_dimension_numbers<[1], [0], [0], [1], [0, 0, 1, 1], [], []>} : vector<8x128xbf16>, vector<128x512xbf16>, vector<8x512xf32> -> vector<8x512xf32>
    %623 = arith.addf %620, %622 : vector<8x512xf32>
    %624 = vector.extract_strided_slice %623 {offsets = [0, 0], sizes = [8, 384], strides = [1, 1]} : vector<8x512xf32> to vector<8x384xf32>
    %625 = arith.negf %624 : vector<8x384xf32>
    %626 = math.exp %625 : vector<8x384xf32>
    %cst_207 = arith.constant 1.000000e+00 : f32
    %627 = vector.broadcast %cst_207 : f32 to vector<8x384xf32>
    %628 = arith.addf %627, %626 : vector<8x384xf32>
    %629 = arith.divf %627, %628 : vector<8x384xf32>
    %630 = vector.extract_strided_slice %623 {offsets = [0, 384], sizes = [8, 128], strides = [1, 1]} : vector<8x512xf32> to vector<8x128xf32>
    %631 = math.tanh %630 : vector<8x128xf32>
    %632 = vector.extract_strided_slice %629 {offsets = [0, 128], sizes = [8, 128], strides = [1, 1]} : vector<8x384xf32> to vector<8x128xf32>
    %633 = arith.mulf %632, %616 : vector<8x128xf32>
    %634 = vector.extract_strided_slice %629 {offsets = [0, 0], sizes = [8, 128], strides = [1, 1]} : vector<8x384xf32> to vector<8x128xf32>
    %635 = arith.mulf %634, %631 : vector<8x128xf32>
    %636 = arith.addf %633, %635 : vector<8x128xf32>
    %637 = vector.extract_strided_slice %629 {offsets = [0, 256], sizes = [8, 128], strides = [1, 1]} : vector<8x384xf32> to vector<8x128xf32>
    %638 = math.tanh %636 : vector<8x128xf32>
    %639 = arith.mulf %637, %638 : vector<8x128xf32>
    %c24_208 = arith.constant 24 : index
    %c0_209 = arith.constant 0 : index
    %640 = vector.load %arg9[%c24_208, %c0_209] : memref<64x512xf32, #tpu.memory_space<vmem>>, vector<8x512xf32>
    %641 = arith.truncf %639 : vector<8x128xf32> to vector<8x128xbf16>
    %cst_210 = arith.constant dense<0.000000e+00> : vector<8x512xf32>
    %642 = tpu.matmul %641, %577, %cst_210 {dimension_numbers = #tpu.dot_dimension_numbers<[1], [0], [0], [1], [0, 0, 1, 1], [], []>} : vector<8x128xbf16>, vector<128x512xbf16>, vector<8x512xf32> -> vector<8x512xf32>
    %643 = arith.addf %640, %642 : vector<8x512xf32>
    %644 = vector.extract_strided_slice %643 {offsets = [0, 0], sizes = [8, 384], strides = [1, 1]} : vector<8x512xf32> to vector<8x384xf32>
    %645 = arith.negf %644 : vector<8x384xf32>
    %646 = math.exp %645 : vector<8x384xf32>
    %cst_211 = arith.constant 1.000000e+00 : f32
    %647 = vector.broadcast %cst_211 : f32 to vector<8x384xf32>
    %648 = arith.addf %647, %646 : vector<8x384xf32>
    %649 = arith.divf %647, %648 : vector<8x384xf32>
    %650 = vector.extract_strided_slice %643 {offsets = [0, 384], sizes = [8, 128], strides = [1, 1]} : vector<8x512xf32> to vector<8x128xf32>
    %651 = math.tanh %650 : vector<8x128xf32>
    %652 = vector.extract_strided_slice %649 {offsets = [0, 128], sizes = [8, 128], strides = [1, 1]} : vector<8x384xf32> to vector<8x128xf32>
    %653 = arith.mulf %652, %636 : vector<8x128xf32>
    %654 = vector.extract_strided_slice %649 {offsets = [0, 0], sizes = [8, 128], strides = [1, 1]} : vector<8x384xf32> to vector<8x128xf32>
    %655 = arith.mulf %654, %651 : vector<8x128xf32>
    %656 = arith.addf %653, %655 : vector<8x128xf32>
    %657 = vector.extract_strided_slice %649 {offsets = [0, 256], sizes = [8, 128], strides = [1, 1]} : vector<8x384xf32> to vector<8x128xf32>
    %658 = math.tanh %656 : vector<8x128xf32>
    %659 = arith.mulf %657, %658 : vector<8x128xf32>
    %c32_212 = arith.constant 32 : index
    %c0_213 = arith.constant 0 : index
    %660 = vector.load %arg9[%c32_212, %c0_213] : memref<64x512xf32, #tpu.memory_space<vmem>>, vector<8x512xf32>
    %661 = arith.truncf %659 : vector<8x128xf32> to vector<8x128xbf16>
    %cst_214 = arith.constant dense<0.000000e+00> : vector<8x512xf32>
    %662 = tpu.matmul %661, %577, %cst_214 {dimension_numbers = #tpu.dot_dimension_numbers<[1], [0], [0], [1], [0, 0, 1, 1], [], []>} : vector<8x128xbf16>, vector<128x512xbf16>, vector<8x512xf32> -> vector<8x512xf32>
    %663 = arith.addf %660, %662 : vector<8x512xf32>
    %664 = vector.extract_strided_slice %663 {offsets = [0, 0], sizes = [8, 384], strides = [1, 1]} : vector<8x512xf32> to vector<8x384xf32>
    %665 = arith.negf %664 : vector<8x384xf32>
    %666 = math.exp %665 : vector<8x384xf32>
    %cst_215 = arith.constant 1.000000e+00 : f32
    %667 = vector.broadcast %cst_215 : f32 to vector<8x384xf32>
    %668 = arith.addf %667, %666 : vector<8x384xf32>
    %669 = arith.divf %667, %668 : vector<8x384xf32>
    %670 = vector.extract_strided_slice %663 {offsets = [0, 384], sizes = [8, 128], strides = [1, 1]} : vector<8x512xf32> to vector<8x128xf32>
    %671 = math.tanh %670 : vector<8x128xf32>
    %672 = vector.extract_strided_slice %669 {offsets = [0, 128], sizes = [8, 128], strides = [1, 1]} : vector<8x384xf32> to vector<8x128xf32>
    %673 = arith.mulf %672, %656 : vector<8x128xf32>
    %674 = vector.extract_strided_slice %669 {offsets = [0, 0], sizes = [8, 128], strides = [1, 1]} : vector<8x384xf32> to vector<8x128xf32>
    %675 = arith.mulf %674, %671 : vector<8x128xf32>
    %676 = arith.addf %673, %675 : vector<8x128xf32>
    %677 = vector.extract_strided_slice %669 {offsets = [0, 256], sizes = [8, 128], strides = [1, 1]} : vector<8x384xf32> to vector<8x128xf32>
    %678 = math.tanh %676 : vector<8x128xf32>
    %679 = arith.mulf %677, %678 : vector<8x128xf32>
    %c40_216 = arith.constant 40 : index
    %c0_217 = arith.constant 0 : index
    %680 = vector.load %arg9[%c40_216, %c0_217] : memref<64x512xf32, #tpu.memory_space<vmem>>, vector<8x512xf32>
    %681 = arith.truncf %679 : vector<8x128xf32> to vector<8x128xbf16>
    %cst_218 = arith.constant dense<0.000000e+00> : vector<8x512xf32>
    %682 = tpu.matmul %681, %577, %cst_218 {dimension_numbers = #tpu.dot_dimension_numbers<[1], [0], [0], [1], [0, 0, 1, 1], [], []>} : vector<8x128xbf16>, vector<128x512xbf16>, vector<8x512xf32> -> vector<8x512xf32>
    %683 = arith.addf %680, %682 : vector<8x512xf32>
    %684 = vector.extract_strided_slice %683 {offsets = [0, 0], sizes = [8, 384], strides = [1, 1]} : vector<8x512xf32> to vector<8x384xf32>
    %685 = arith.negf %684 : vector<8x384xf32>
    %686 = math.exp %685 : vector<8x384xf32>
    %cst_219 = arith.constant 1.000000e+00 : f32
    %687 = vector.broadcast %cst_219 : f32 to vector<8x384xf32>
    %688 = arith.addf %687, %686 : vector<8x384xf32>
    %689 = arith.divf %687, %688 : vector<8x384xf32>
    %690 = vector.extract_strided_slice %683 {offsets = [0, 384], sizes = [8, 128], strides = [1, 1]} : vector<8x512xf32> to vector<8x128xf32>
    %691 = math.tanh %690 : vector<8x128xf32>
    %692 = vector.extract_strided_slice %689 {offsets = [0, 128], sizes = [8, 128], strides = [1, 1]} : vector<8x384xf32> to vector<8x128xf32>
    %693 = arith.mulf %692, %676 : vector<8x128xf32>
    %694 = vector.extract_strided_slice %689 {offsets = [0, 0], sizes = [8, 128], strides = [1, 1]} : vector<8x384xf32> to vector<8x128xf32>
    %695 = arith.mulf %694, %691 : vector<8x128xf32>
    %696 = arith.addf %693, %695 : vector<8x128xf32>
    %697 = vector.extract_strided_slice %689 {offsets = [0, 256], sizes = [8, 128], strides = [1, 1]} : vector<8x384xf32> to vector<8x128xf32>
    %698 = math.tanh %696 : vector<8x128xf32>
    %699 = arith.mulf %697, %698 : vector<8x128xf32>
    %c48_220 = arith.constant 48 : index
    %c0_221 = arith.constant 0 : index
    %700 = vector.load %arg9[%c48_220, %c0_221] : memref<64x512xf32, #tpu.memory_space<vmem>>, vector<8x512xf32>
    %701 = arith.truncf %699 : vector<8x128xf32> to vector<8x128xbf16>
    %cst_222 = arith.constant dense<0.000000e+00> : vector<8x512xf32>
    %702 = tpu.matmul %701, %577, %cst_222 {dimension_numbers = #tpu.dot_dimension_numbers<[1], [0], [0], [1], [0, 0, 1, 1], [], []>} : vector<8x128xbf16>, vector<128x512xbf16>, vector<8x512xf32> -> vector<8x512xf32>
    %703 = arith.addf %700, %702 : vector<8x512xf32>
    %704 = vector.extract_strided_slice %703 {offsets = [0, 0], sizes = [8, 384], strides = [1, 1]} : vector<8x512xf32> to vector<8x384xf32>
    %705 = arith.negf %704 : vector<8x384xf32>
    %706 = math.exp %705 : vector<8x384xf32>
    %cst_223 = arith.constant 1.000000e+00 : f32
    %707 = vector.broadcast %cst_223 : f32 to vector<8x384xf32>
    %708 = arith.addf %707, %706 : vector<8x384xf32>
    %709 = arith.divf %707, %708 : vector<8x384xf32>
    %710 = vector.extract_strided_slice %703 {offsets = [0, 384], sizes = [8, 128], strides = [1, 1]} : vector<8x512xf32> to vector<8x128xf32>
    %711 = math.tanh %710 : vector<8x128xf32>
    %712 = vector.extract_strided_slice %709 {offsets = [0, 128], sizes = [8, 128], strides = [1, 1]} : vector<8x384xf32> to vector<8x128xf32>
    %713 = arith.mulf %712, %696 : vector<8x128xf32>
    %714 = vector.extract_strided_slice %709 {offsets = [0, 0], sizes = [8, 128], strides = [1, 1]} : vector<8x384xf32> to vector<8x128xf32>
    %715 = arith.mulf %714, %711 : vector<8x128xf32>
    %716 = arith.addf %713, %715 : vector<8x128xf32>
    %717 = vector.extract_strided_slice %709 {offsets = [0, 256], sizes = [8, 128], strides = [1, 1]} : vector<8x384xf32> to vector<8x128xf32>
    %718 = math.tanh %716 : vector<8x128xf32>
    %719 = arith.mulf %717, %718 : vector<8x128xf32>
    %c56_224 = arith.constant 56 : index
    %c0_225 = arith.constant 0 : index
    %720 = vector.load %arg9[%c56_224, %c0_225] : memref<64x512xf32, #tpu.memory_space<vmem>>, vector<8x512xf32>
    %721 = arith.truncf %719 : vector<8x128xf32> to vector<8x128xbf16>
    %cst_226 = arith.constant dense<0.000000e+00> : vector<8x512xf32>
    %722 = tpu.matmul %721, %577, %cst_226 {dimension_numbers = #tpu.dot_dimension_numbers<[1], [0], [0], [1], [0, 0, 1, 1], [], []>} : vector<8x128xbf16>, vector<128x512xbf16>, vector<8x512xf32> -> vector<8x512xf32>
    %723 = arith.addf %720, %722 : vector<8x512xf32>
    %724 = vector.extract_strided_slice %723 {offsets = [0, 0], sizes = [8, 384], strides = [1, 1]} : vector<8x512xf32> to vector<8x384xf32>
    %725 = arith.negf %724 : vector<8x384xf32>
    %726 = math.exp %725 : vector<8x384xf32>
    %cst_227 = arith.constant 1.000000e+00 : f32
    %727 = vector.broadcast %cst_227 : f32 to vector<8x384xf32>
    %728 = arith.addf %727, %726 : vector<8x384xf32>
    %729 = arith.divf %727, %728 : vector<8x384xf32>
    %730 = vector.extract_strided_slice %723 {offsets = [0, 384], sizes = [8, 128], strides = [1, 1]} : vector<8x512xf32> to vector<8x128xf32>
    %731 = math.tanh %730 : vector<8x128xf32>
    %732 = vector.extract_strided_slice %729 {offsets = [0, 128], sizes = [8, 128], strides = [1, 1]} : vector<8x384xf32> to vector<8x128xf32>
    %733 = arith.mulf %732, %716 : vector<8x128xf32>
    %734 = vector.extract_strided_slice %729 {offsets = [0, 0], sizes = [8, 128], strides = [1, 1]} : vector<8x384xf32> to vector<8x128xf32>
    %735 = arith.mulf %734, %731 : vector<8x128xf32>
    %736 = arith.addf %733, %735 : vector<8x128xf32>
    %737 = vector.extract_strided_slice %729 {offsets = [0, 256], sizes = [8, 128], strides = [1, 1]} : vector<8x384xf32> to vector<8x128xf32>
    %738 = math.tanh %736 : vector<8x128xf32>
    %739 = arith.mulf %737, %738 : vector<8x128xf32>
    %740 = arith.truncf %739 : vector<8x128xf32> to vector<8x128xbf16>
    %c0_228 = arith.constant 0 : index
    %c0_229 = arith.constant 0 : index
    %741 = vector.load %arg6[%c0_228, %c0_229] : memref<128x8xbf16, #tpu.memory_space<vmem>>, vector<128x8xbf16>
    %cst_230 = arith.constant dense<0.000000e+00> : vector<8x8xf32>
    %742 = tpu.matmul %740, %741, %cst_230 {dimension_numbers = #tpu.dot_dimension_numbers<[1], [0], [0], [1], [0, 0, 1, 1], [], []>} : vector<8x128xbf16>, vector<128x8xbf16>, vector<8x8xf32> -> vector<8x8xf32>
    %c0_231 = arith.constant 0 : index
    %c0_232 = arith.constant 0 : index
    %743 = vector.load %arg7[%c0_231, %c0_232] : memref<1x8xf32, #tpu.memory_space<vmem>>, vector<1x8xf32>
    %744 = vector.broadcast %743 : vector<1x8xf32> to vector<8x8xf32>
    %745 = arith.addf %742, %744 : vector<8x8xf32>
    %c0_233 = arith.constant 0 : index
    %c0_234 = arith.constant 0 : index
    %746 = vector.load %arg8[%c0_233, %c0_234] : memref<8x8xf32, #tpu.memory_space<vmem>>, vector<8x8xf32>
    tpu.vector_store %arg8[%c0_233, %c0_234], %745 {strides = array<i32>} : memref<8x8xf32, #tpu.memory_space<vmem>>, vector<8x8xf32>,
    return
  }
  func.func @transform_0(%arg0: i32) -> (i32, i32, i32) {
    %c0_i32 = arith.constant 0 : i32
    %c0_i32_0 = arith.constant 0 : i32
    %c0_i32_1 = arith.constant 0 : i32
    return %arg0, %c0_i32, %c0_i32_0 : i32, i32, i32
  }
  func.func @transform_1(%arg0: i32) -> (i32, i32) {
    %c0_i32 = arith.constant 0 : i32
    %c0_i32_0 = arith.constant 0 : i32
    %c0_i32_1 = arith.constant 0 : i32
    return %c0_i32, %c0_i32_0 : i32, i32
  }
  func.func @transform_2(%arg0: i32) -> (i32, i32, i32) {
    %c0_i32 = arith.constant 0 : i32
    %c0_i32_0 = arith.constant 0 : i32
    %c0_i32_1 = arith.constant 0 : i32
    %c0_i32_2 = arith.constant 0 : i32
    return %c0_i32, %c0_i32_0, %c0_i32_1 : i32, i32, i32
  }
  func.func @transform_3(%arg0: i32) -> (i32, i32, i32) {
    %c0_i32 = arith.constant 0 : i32
    %c0_i32_0 = arith.constant 0 : i32
    %c0_i32_1 = arith.constant 0 : i32
    %c0_i32_2 = arith.constant 0 : i32
    return %c0_i32, %c0_i32_0, %c0_i32_1 : i32, i32, i32
  }
  func.func @transform_4(%arg0: i32) -> (i32, i32, i32) {
    %c0_i32 = arith.constant 0 : i32
    %c0_i32_0 = arith.constant 0 : i32
    %c0_i32_1 = arith.constant 0 : i32
    %c0_i32_2 = arith.constant 0 : i32
    return %c0_i32, %c0_i32_0, %c0_i32_1 : i32, i32, i32
  }
  func.func @transform_5(%arg0: i32) -> (i32, i32) {
    %c0_i32 = arith.constant 0 : i32
    %c0_i32_0 = arith.constant 0 : i32
    %c0_i32_1 = arith.constant 0 : i32
    return %c0_i32, %c0_i32_0 : i32, i32
  }
  func.func @transform_6(%arg0: i32) -> (i32, i32) {
    %c0_i32 = arith.constant 0 : i32
    %c0_i32_0 = arith.constant 0 : i32
    %c0_i32_1 = arith.constant 0 : i32
    return %c0_i32, %c0_i32_0 : i32, i32
  }
  func.func @transform_7(%arg0: i32) -> (i32, i32) {
    %c0_i32 = arith.constant 0 : i32
    %c0_i32_0 = arith.constant 0 : i32
    return %arg0, %c0_i32 : i32, i32
  }
}

</mosaic_0001>

<bundles_post_ra>
// kernel: rnn_forward.1
= control target key start
LH: loop header
LB: loop body
LE: loop exit
PB: predicated region body
PF: predicated region fallthrough
CT: control target
= control target key end

     0   :  { %s8669_s24 = smov 0   ;;  %s12386_s0 = inlined_call_operand.vmem [shape: bf16[2,64,16], index: 0, kind: input, shape index: {}]   ;;  %s12387_s1 = inlined_call_operand.vmem [shape: bf16[16,512], index: 1, kind: input, shape index: {}]   ;;  %s12388_s2 = inlined_call_operand.vmem [shape: bf16[3,128,512], index: 2, kind: input, shape index: {}]   ;;  %s12389_s3 = inlined_call_operand.vmem [shape: bf16[4,128,512], index: 3, kind: input, shape index: {}]   ;;  %s12390_s4 = inlined_call_operand.vmem [shape: f32[4,1,512], index: 4, kind: input, shape index: {}]   ;;  %s12391_s5 = inlined_call_operand.vmem [shape: bf16[128,8], index: 5, kind: input, shape index: {}]   ;;  %s12392_s6 = inlined_call_operand.vmem [shape: f32[1,8], index: 6, kind: input, shape index: {}]   ;;  %s12393_s7 = inlined_call_operand.vmem [shape: f32[16,8], index: 7, kind: output, shape index: {}]  }
   0x1 LB: > { %s6551_s25 = sadd.s32 4294967295, %s8626_s24   ;;  %p6555_p0 = scmp.ge.s32.totalorder %s8626_s24, 1  ;;  %s8626_s24 = sphi %s8669_s24, %s17_s24  }
   0x2   : > { %p237_p1 = scmp.lt.s32.totalorder %s8626_s24, 3 }
   0x4   : > { %p238_p2 = pnand %p6555_p0, %p237_p1 }
   0x6   : > { %241 = sbr.rel (%p238_p2) target bundleno = 5809 (0x16b1), region = 48 }
   0xb   : > { %v6577_v0 = vld [vmem:[%s12387_s1] sm:$0xf]  ;;  %v7851_v1 = vld [vmem:[%s12387_s1 + $0xc] sm:$0xf0]  ;;  %v6585_v2 = vld [vmem:[%s12387_s1 + $0x8] sm:$0xf] }
   0xc   : > { %v6578_v3 = vor.u32 %v7851_v1, %v6577_v0  ;;  %v7852_v4 = vld [vmem:[%s12387_s1 + $0x14] sm:$0xf0]  ;;  %v7850_v5 = vld [vmem:[%s12387_s1 + $0xc] sm:$0xf]  ;;  %v6587_v6 = vld [vmem:[%s12387_s1 + $0x18] sm:$0xf0] }
   0xd   : > { %v6586_v7 = vor.u32 %v7852_v4, %v6585_v2  ;;  %v6590_v8 = vor.u32 %v7850_v5, %v6587_v6  ;;  %p268_p3 = scmp.lt.s32.totalorder %s6551_s25, 1  ;;  %v7849_v9 = vld [vmem:[%s12387_s1 + $0x4] sm:$0xf]  ;;  %v6579_v10 = vld [vmem:[%s12387_s1 + $0x10] sm:$0xf0]  ;;  %vm340_vm0 = vcmask 130048  }
   0xe   : > { %360 = vmatpush.bf16.msra.mxu0 %v6578_v3  ;;  %8097 = vmatpush.bf16.msra.mxu1 %v6578_v3  ;;  %v6582_v11 = vor.u32 %v7849_v9, %v6579_v10  ;;  %v7881_v12 = vld [vmem:[%s12389_s3 + $0xe4] sm:$0xf]  ;;  %v6723_v13 = vld [vmem:[%s12389_s3 + $0xf0] sm:$0xf0]  ;;  %v6721_v14 = vld [vmem:[%s12389_s3 + $0xe0] sm:$0xf] }
   0xf   : > { %418 = vmatpush.bf16.msra.mxu2 %v6586_v7  ;;  %447 = vmatpush.bf16.msra.mxu3 %v6590_v8  ;;  %s12640_s25 = smov (!%p268_p3, %s6551_s25), 1  ;;  %v7883_v15 = vld [vmem:[%s12389_s3 + $0xec] sm:$0xf0]  ;;  %v6705_v16 = vld [vmem:[%s12389_s3 + $0xc0] sm:$0xf]  ;;  %v8750_v26 = vor.u32 %v7881_v12, %v6723_v13 }
  0x10   : > { %v8718_v17 = vor.u32 %v7883_v15, %v6721_v14  ;;  %v7879_v18 = vld [vmem:[%s12389_s3 + $0xcc] sm:$0xf0]  ;;  %v6729_v19 = vld [vmem:[%s12389_s3 + $0xe8] sm:$0xf]  ;;  %v7884_v20 = vld [vmem:[%s12389_s3 + $0xf4] sm:$0xf0] }
  0x11   : > { %s7844_s14 = sshll.u32 %s12640_s25, 5  ;;  %v8730_v21 = vor.u32 %v7884_v20, %v6729_v19  ;;  %v7877_v22 = vld [vmem:[%s12389_s3 + $0xc4] sm:$0xf]  ;;  %v6707_v23 = vld [vmem:[%s12389_s3 + $0xd0] sm:$0xf0]  ;;  %v8752_v27 = vor.u32 %v7879_v18, %v6705_v16  ;;  %s6558_s26 = sshll.u32 %s12640_s25, 3 }
  0x12   : > { %389 = vmatpush.bf16.msrb.mxu1 %v6582_v11  ;;  %s8735_s17 = scalar_lea.vmem %s12386_s0, %s7844_s14  ;;  %697 = vmatpush.bf16.msrb.mxu0 %v8718_v17  ;;  %v6689_v28 = vld [vmem:[%s12389_s3 + $0xa0] sm:$0xf]  ;;  %v7875_v29 = vld [vmem:[%s12389_s3 + $0xac] sm:$0xf0]  ;;  %v6713_v30 = vld [vmem:[%s12389_s3 + $0xc8] sm:$0xf]  ;;  %v8790_v37 = vor.u32 %v7877_v22, %v6707_v23  ;;  %s276_s30 = scalar_lea.vmem %s12393_s7, %s6558_s26 }
  0x13   : > { %v8745_v24 = vld [vmem:[%s8735_s17] sm:$0xff]  ;;  %v8748_v25 = vld [vmem:[%s8735_s17 + $0x18] sm:$0xff]  ;;  %723 = vmatpush.bf16.msrb.mxu2 %v8730_v21  ;;  %v7882_v33 = vld [vmem:[%s12389_s3 + $0xec] sm:$0xf]  ;;  %v8792_v38 = vor.u32 %v7875_v29, %v6689_v28 }
  0x14   : > { %v7880_v31 = vld [vmem:[%s12389_s3 + $0xd4] sm:$0xf0]  ;;  %6591 = vmatmul.msk.bf16.vlgmr.msra.gmra.mxu0 %vm340_vm0, %v8745_v24  ;;  %6594 = vmatmul.msk.bf16.vlgmr.msra.gmra.mxu1 %vm340_vm0, %v8748_v25  ;;  %v6731_v34 = vld [vmem:[%s12389_s3 + $0xf8] sm:$0xf0]  ;;  %v6673_v35 = vld [vmem:[%s12389_s3 + $0x80] sm:$0xf] }
  0x15   : > { %v8771_v32 = vor.u32 %v7880_v31, %v6713_v30  ;;  %6599 = vmatmul.msk.bf16.vlgmr.msra.gmra.mxu2 %vm340_vm0, %v8745_v24  ;;  %6603 = vmatmul.msk.bf16.vlgmr.msra.gmra.mxu3 %vm340_vm0, %v8745_v24  ;;  %v8786_v36 = vor.u32 %v7882_v33, %v6731_v34  ;;  %v7871_v39 = vld [vmem:[%s12389_s3 + $0x8c] sm:$0xf0]  ;;  %v7873_v40 = vld [vmem:[%s12389_s3 + $0xa4] sm:$0xf]  ;;  %v6691_v41 = vld [vmem:[%s12389_s3 + $0xb0] sm:$0xf0] }
  0x16   : > { %710 = vmatpush.bf16.msra.mxu1 %v8750_v26  ;;  %698 = vmatpush.bf16.msrb.mxu0 %v8752_v27  ;;  %v6697_v42 = vld [vmem:[%s12389_s3 + $0xa8] sm:$0xf]  ;;  %v7876_v43 = vld [vmem:[%s12389_s3 + $0xb4] sm:$0xf0]  ;;  %v7878_v44 = vld [vmem:[%s12389_s3 + $0xcc] sm:$0xf]  ;;  %v8829_v50 = vor.u32 %v7871_v39, %v6673_v35  ;;  %v8831_v51 = vor.u32 %v7873_v40, %v6691_v41 }
  0x17   : > { %724 = vmatpush.bf16.msrb.mxu2 %v8771_v32  ;;  %736 = vmatpush.bf16.msrb.mxu3 %v8786_v36  ;;  %v8814_v45 = vor.u32 %v7876_v43, %v6697_v42  ;;  %v6715_v46 = vld [vmem:[%s12389_s3 + $0xd8] sm:$0xf0]  ;;  %v6657_v47 = vld [vmem:[%s12389_s3 + $0x60] sm:$0xf]  ;;  %v7874_v49 = vld [vmem:[%s12389_s3 + $0xac] sm:$0xf] }
  0x18   : > { %v8822_v48 = vor.u32 %v7878_v44, %v6715_v46  ;;  %v7867_v52 = vld [vmem:[%s12389_s3 + $0x6c] sm:$0xf0]  ;;  %v7869_v53 = vld [vmem:[%s12389_s3 + $0x84] sm:$0xf]  ;;  %v6699_v54 = vld [vmem:[%s12389_s3 + $0xb8] sm:$0xf0] }
  0x19   : > { %v6675_v55 = vld [vmem:[%s12389_s3 + $0x90] sm:$0xf0]  ;;  %v8847_v56 = vor.u32 %v7874_v49, %v6699_v54  ;;  %v6681_v57 = vld [vmem:[%s12389_s3 + $0x88] sm:$0xf]  ;;  %v7872_v58 = vld [vmem:[%s12389_s3 + $0x94] sm:$0xf0]  ;;  %v8865_v62 = vor.u32 %v7867_v52, %v6657_v47 }
  0x1a   : > { %711 = vmatpush.bf16.msra.mxu1 %v8790_v37  ;;  %699 = vmatpush.bf16.msrb.mxu0 %v8792_v38  ;;  %v8855_v59 = vor.u32 %v7872_v58, %v6681_v57  ;;  %v7870_v60 = vld [vmem:[%s12389_s3 + $0x8c] sm:$0xf]  ;;  %v6683_v61 = vld [vmem:[%s12389_s3 + $0x98] sm:$0xf0]  ;;  %v8867_v63 = vor.u32 %v7869_v53, %v6675_v55  ;;  %v6641_v0 = vld [vmem:[%s12389_s3 + $0x40] sm:$0xf] }
  0x1b   : > { %725 = vmatpush.bf16.msrb.mxu2 %v8814_v45  ;;  %737 = vmatpush.bf16.msrb.mxu3 %v8822_v48  ;;  %v7863_v1 = vld [vmem:[%s12389_s3 + $0x4c] sm:$0xf0]  ;;  %v8877_v2 = vor.u32 %v7870_v60, %v6683_v61  ;;  %v7846_v3 = vld [vmem:[%s8735_s17 + $0x8] sm:$0xff]  ;;  %v6625_v5 = vld [vmem:[%s12389_s3 + $0x20] sm:$0xf] }
  0x1c   : > { %v8881_v4 = vor.u32 %v7863_v1, %v6641_v0  ;;  %v7859_v6 = vld [vmem:[%s12389_s3 + $0x2c] sm:$0xf0]  ;;  %v6665_v7 = vld [vmem:[%s12389_s3 + $0x68] sm:$0xf]  ;;  %v7868_v8 = vld [vmem:[%s12389_s3 + $0x74] sm:$0xf0] }
  0x1d   : > { %v7866_v9 = vld [vmem:[%s12389_s3 + $0x6c] sm:$0xf]  ;;  %v8903_v10 = vor.u32 %v7868_v8, %v6665_v7  ;;  %v6667_v11 = vld [vmem:[%s12389_s3 + $0x78] sm:$0xf0]  ;;  %v6609_v12 = vld [vmem:[%s12389_s3] sm:$0xf]  ;;  %v8928_v19 = vor.u32 %v7859_v6, %v6625_v5 }
  0x1e   : > { %700 = vmatpush.bf16.msrb.mxu0 %v8829_v50  ;;  %712 = vmatpush.bf16.msra.mxu1 %v8831_v51  ;;  %v7855_v13 = vld [vmem:[%s12389_s3 + $0xc] sm:$0xf0]  ;;  %v7865_v14 = vld [vmem:[%s12389_s3 + $0x64] sm:$0xf]  ;;  %v6659_v15 = vld [vmem:[%s12389_s3 + $0x70] sm:$0xf0]  ;;  %v8922_v16 = vor.u32 %v7866_v9, %v6667_v11 }
  0x1f   : > { %738 = vmatpush.bf16.msrb.mxu3 %v8847_v56  ;;  %726 = vmatpush.bf16.msrb.mxu2 %v8855_v59  ;;  %v6649_v18 = vld [vmem:[%s12389_s3 + $0x48] sm:$0xf]  ;;  %v8930_v20 = vor.u32 %v7865_v14, %v6659_v15  ;;  %v7864_v22 = vld [vmem:[%s12389_s3 + $0x54] sm:$0xf0]  ;;  %v7862_v23 = vld [vmem:[%s12389_s3 + $0x4c] sm:$0xf]  ;;  %v8969_v41 = vor.u32 %v7855_v13, %v6609_v12 }
  0x20   : > { %v8943_v28 = vor.u32 %v7864_v22, %v6649_v18  ;;  %v7861_v30 = vld [vmem:[%s12389_s3 + $0x44] sm:$0xf]  ;;  %v6643_v31 = vld [vmem:[%s12389_s3 + $0x50] sm:$0xf0]  ;;  %v6633_v33 = vld [vmem:[%s12389_s3 + $0x28] sm:$0xf] }
  0x21   : > { %v8957_v34 = vor.u32 %v7861_v30, %v6643_v31  ;;  %v7860_v35 = vld [vmem:[%s12389_s3 + $0x34] sm:$0xf0]  ;;  %v7858_v39 = vld [vmem:[%s12389_s3 + $0x2c] sm:$0xf]  ;;  %v6635_v40 = vld [vmem:[%s12389_s3 + $0x38] sm:$0xf0] }
  0x22   : > { %701 = vmatpush.bf16.msrb.mxu0 %v8865_v62  ;;  %713 = vmatpush.bf16.msra.mxu1 %v8867_v63  ;;  %v8972_v42 = vor.u32 %v7860_v35, %v6633_v33  ;;  %v8975_v43 = vor.u32 %v7858_v39, %v6635_v40  ;;  %v6617_v44 = vld [vmem:[%s12389_s3 + $0x8] sm:$0xf]  ;;  %v7856_v46 = vld [vmem:[%s12389_s3 + $0x14] sm:$0xf0]  ;;  %v7854_v47 = vld [vmem:[%s12389_s3 + $0xc] sm:$0xf] }
  0x23   : > { %739 = vmatpush.bf16.msrb.mxu3 %v8877_v2  ;;  %727 = vmatpush.bf16.msrb.mxu2 %v8903_v10  ;;  %v6619_v49 = vld [vmem:[%s12389_s3 + $0x18] sm:$0xf0]  ;;  %v8992_v52 = vor.u32 %v7856_v46, %v6617_v44  ;;  %v7847_v54 = vld [vmem:[%s8735_s17 + $0x10] sm:$0xff]  ;;  %v7857_v55 = vld [vmem:[%s12389_s3 + $0x24] sm:$0xf]  ;;  %v12394_v1 = vmov 0  }
  0x24   : > { %6592 = vmatmul.msk.bf16.gmra.mxu0 %vm340_vm0, %v7846_v3  ;;  %6595 = vmatmul.msk.bf16.vlgmr.msrb.gmra.mxu1 %vm340_vm0, %v8745_v24  ;;  %v6651_v24 = vld [vmem:[%s12389_s3 + $0x58] sm:$0xf0]  ;;  %v8995_v53 = vor.u32 %v7854_v47, %v6619_v49  ;;  %v6627_v57 = vld [vmem:[%s12389_s3 + $0x30] sm:$0xf0]  ;;  %v7853_v60 = vld [vmem:[%s12389_s3 + $0x4] sm:$0xf] }
  0x25   : > { %6600 = vmatmul.msk.bf16.gmra.mxu2 %vm340_vm0, %v7846_v3  ;;  %6604 = vmatmul.msk.bf16.gmra.mxu3 %vm340_vm0, %v7846_v3  ;;  %v8945_v29 = vor.u32 %v7862_v23, %v6651_v24  ;;  %v9012_v58 = vor.u32 %v7857_v55, %v6627_v57  ;;  %v6611_v61 = vld [vmem:[%s12389_s3 + $0x10] sm:$0xf0] }
  0x26   : > { %702 = vmatpush.bf16.msrb.mxu0 %v8881_v4  ;;  %714 = vmatpush.bf16.msra.mxu1 %v8930_v20  ;;  %v9023_v0 = vor.u32 %v7853_v60, %v6611_v61 }
  0x27   : > { %740 = vmatpush.bf16.msrb.mxu3 %v8922_v16  ;;  %728 = vmatpush.bf16.msrb.mxu2 %v8943_v28 }
  0x2a   : > { %703 = vmatpush.bf16.msrb.mxu0 %v8928_v19  ;;  %715 = vmatpush.bf16.msra.mxu1 %v8957_v34 }
  0x2b   : > { %741 = vmatpush.bf16.msrb.mxu3 %v8945_v29  ;;  %729 = vmatpush.bf16.msrb.mxu2 %v8972_v42 }
  0x2e   : > { %704 = vmatpush.bf16.msrb.mxu0 %v8969_v41  ;;  %716 = vmatpush.bf16.msra.mxu1 %v9012_v58 }
  0x2f   : > { %742 = vmatpush.bf16.msrb.mxu3 %v8975_v43  ;;  %730 = vmatpush.bf16.msrb.mxu2 %v8992_v52 }
  0x32   : > { %822 = vmatpush.bf16.msra.mxu0 %v8718_v17  ;;  %717 = vmatpush.bf16.msra.mxu1 %v9023_v0 }
  0x33   : > { %743 = vmatpush.bf16.msrb.mxu3 %v8995_v53  ;;  %848 = vmatpush.bf16.msra.mxu2 %v8730_v21 }
  0x34   : > { %6593 = vmatmul.msk.bf16.gmra.mxu0 %vm340_vm0, %v7847_v54  ;;  %6596 = vmatmul.msk.bf16.gmra.mxu1 %vm340_vm0, %v7846_v3 }
  0x35   : > { %6601 = vmatmul.msk.bf16.gmra.mxu2 %vm340_vm0, %v7847_v54  ;;  %6605 = vmatmul.msk.bf16.gmra.mxu3 %vm340_vm0, %v7847_v54 }
  0x36   : > { %823 = vmatpush.bf16.msra.mxu0 %v8752_v27  ;;  %835 = vmatpush.bf16.msrb.mxu1 %v8750_v26 }
  0x37   : > { %861 = vmatpush.bf16.msra.mxu3 %v8786_v36  ;;  %849 = vmatpush.bf16.msra.mxu2 %v8771_v32 }
  0x3a   : > { %824 = vmatpush.bf16.msra.mxu0 %v8792_v38  ;;  %836 = vmatpush.bf16.msrb.mxu1 %v8790_v37 }
  0x3b   : > { %862 = vmatpush.bf16.msra.mxu3 %v8822_v48  ;;  %850 = vmatpush.bf16.msra.mxu2 %v8814_v45 }
  0x3e   : > { %825 = vmatpush.bf16.msra.mxu0 %v8829_v50  ;;  %837 = vmatpush.bf16.msrb.mxu1 %v8831_v51 }
  0x3f   : > { %863 = vmatpush.bf16.msra.mxu3 %v8847_v56  ;;  %851 = vmatpush.bf16.msra.mxu2 %v8855_v59 }
  0x42   : > { %826 = vmatpush.bf16.msra.mxu0 %v8865_v62  ;;  %838 = vmatpush.bf16.msrb.mxu1 %v8867_v63 }
  0x43   : > { %864 = vmatpush.bf16.msra.mxu3 %v8877_v2  ;;  %852 = vmatpush.bf16.msra.mxu2 %v8903_v10 }
  0x44   : > { %6597 = vmatmul.msk.bf16.gmra.mxu1 %vm340_vm0, %v7847_v54  ;;  %705 = vmatmul.bf16.vlgmr.msrb.gmra.mxu0 %v12394_v1 }
  0x45   : > { %6602 = vmatmul.msk.bf16.gmra.mxu2 %vm340_vm0, %v8748_v25  ;;  %6606 = vmatmul.msk.bf16.gmra.mxu3 %vm340_vm0, %v8748_v25 }
  0x46   : > { %827 = vmatpush.bf16.msra.mxu0 %v8881_v4  ;;  %839 = vmatpush.bf16.msrb.mxu1 %v8930_v20 }
  0x47   : > { %865 = vmatpush.bf16.msra.mxu3 %v8922_v16  ;;  %853 = vmatpush.bf16.msra.mxu2 %v8943_v28 }
  0x4a   : > { %828 = vmatpush.bf16.msra.mxu0 %v8928_v19  ;;  %840 = vmatpush.bf16.msrb.mxu1 %v8957_v34 }
  0x4b   : > { %866 = vmatpush.bf16.msra.mxu3 %v8945_v29  ;;  %854 = vmatpush.bf16.msra.mxu2 %v8972_v42 }
  0x4e   : > { %829 = vmatpush.bf16.msra.mxu0 %v8969_v41  ;;  %841 = vmatpush.bf16.msrb.mxu1 %v9012_v58 }
  0x4f   : > { %867 = vmatpush.bf16.msra.mxu3 %v8975_v43  ;;  %855 = vmatpush.bf16.msra.mxu2 %v8992_v52 }
  0x52   : > { %947 = vmatpush.bf16.msrb.mxu0 %v8718_v17  ;;  %842 = vmatpush.bf16.msrb.mxu1 %v9023_v0 }
  0x53   : > { %868 = vmatpush.bf16.msra.mxu3 %v8995_v53 }
  0x54   : > { %6598 = vmatmul.msk.bf16.gmra.mxu1 %vm340_vm0, %v8748_v25  ;;  %v290_v25 = vld [vmem:[%s12390_s4] sm:$0xf] }
  0x55   : > { %731 = vmatmul.bf16.vlgmr.msrb.gmra.mxu2 %v12394_v1  ;;  %744 = vmatmul.bf16.vlgmr.msrb.gmra.mxu3 %v12394_v1  ;;  %v9100_v3 = vperm.slane %v290_v25, 0  ;;  %v9118_v23 = vperm.slane %v290_v25, 2  ;;  %v9120_v24 = vperm.slane %v290_v25, 3  ;;  %v9132_v44 = vperm.slane %v290_v25, 1 }
  0x56   : > { %948 = vmatpush.bf16.msrb.mxu0 %v8752_v27  ;;  %973 = vmatpush.bf16.msrb.mxu2 %v8730_v21 }
  0x57   : > { %986 = vmatpush.bf16.msrb.mxu3 %v8786_v36  ;;  %12408 = vst [vmem:[#allocation6_spill] sm:$0xff] %v9120_v24 }
  0x5a   : > { %949 = vmatpush.bf16.msrb.mxu0 %v8792_v38  ;;  %974 = vmatpush.bf16.msrb.mxu2 %v8771_v32 }
  0x5b   : > { %987 = vmatpush.bf16.msrb.mxu3 %v8822_v48 }
  0x5e   : > { %950 = vmatpush.bf16.msrb.mxu0 %v8829_v50  ;;  %975 = vmatpush.bf16.msrb.mxu2 %v8814_v45 }
  0x5f   : > { %988 = vmatpush.bf16.msrb.mxu3 %v8847_v56 }
  0x62   : > { %951 = vmatpush.bf16.msrb.mxu0 %v8865_v62  ;;  %976 = vmatpush.bf16.msrb.mxu2 %v8855_v59 }
  0x63   : > { %989 = vmatpush.bf16.msrb.mxu3 %v8877_v2 }
  0x64   : > { %718 = vmatmul.bf16.vlgmr.msra.gmra.mxu1 %v12394_v1 }
  0x65   : > { %960 = vmatpush.bf16.msra.mxu1 %v8750_v26 }
  0x66   : > { %952 = vmatpush.bf16.msrb.mxu0 %v8881_v4  ;;  %977 = vmatpush.bf16.msrb.mxu2 %v8903_v10 }
  0x67   : > { %990 = vmatpush.bf16.msrb.mxu3 %v8922_v16 }
  0x69   : > { %961 = vmatpush.bf16.msra.mxu1 %v8790_v37 }
  0x6a   : > { %953 = vmatpush.bf16.msrb.mxu0 %v8928_v19  ;;  %978 = vmatpush.bf16.msrb.mxu2 %v8943_v28 }
  0x6b   : > { %991 = vmatpush.bf16.msrb.mxu3 %v8945_v29 }
  0x6d   : > { %962 = vmatpush.bf16.msra.mxu1 %v8831_v51 }
  0x6e   : > { %954 = vmatpush.bf16.msrb.mxu0 %v8969_v41  ;;  %979 = vmatpush.bf16.msrb.mxu2 %v8972_v42 }
  0x6f   : > { %992 = vmatpush.bf16.msrb.mxu3 %v8975_v43 }
  0x71   : > { %963 = vmatpush.bf16.msra.mxu1 %v8867_v63 }
  0x72   : > { %980 = vmatpush.bf16.msrb.mxu2 %v8992_v52 }
  0x73   : > { %993 = vmatpush.bf16.msrb.mxu3 %v8995_v53 }
  0x75   : > { %964 = vmatpush.bf16.msra.mxu1 %v8930_v20 }
  0x79   : > { %965 = vmatpush.bf16.msra.mxu1 %v8957_v34 }
  0x7d   : > { %966 = vmatpush.bf16.msra.mxu1 %v9012_v58 }
  0x81   : > { %967 = vmatpush.bf16.msra.mxu1 %v9023_v0 }
  0x91   : > { %v362_v5 = vpop.f32.mrf.mxu0  ;;  %v377_v6 = vpop.f32.mrf.mxu1 }
  0x92   : > { %v9103_v7 = vadd.f32 %v377_v6, %v9100_v3 }
  0x94   : > { %12406 = vst [vmem:[#allocation4_spill] sm:$0xff] %v9103_v7 }
  0x98   : > { %v420_v8 = vpop.f32.mrf.mxu2  ;;  %v449_v9 = vpop.f32.mrf.mxu3 }
  0x99   : > { %v9105_v11 = vpop.f32.mrf.mxu0  ;;  %v9107_v12 = vpop.f32.mrf.mxu1 }
  0x9a   : > { %12407 = vst [vmem:[#allocation5_spill] sm:$0xff] %v9107_v12 }
  0xa0   : > { %v9109_v13 = vpop.f32.mrf.mxu2  ;;  %v9111_v14 = vpop.f32.mrf.mxu3 }
  0xa1   : > { %v367_v15 = vpop.f32.mrf.mxu0  ;;  %v9113_v18 = vpop.f32.mrf.mxu1 }
  0xa2   : > { %v9116_v22 = vadd.f32 %v367_v15, %v9100_v3 }
  0xa8   : > { %v425_v30 = vpop.f32.mrf.mxu2  ;;  %v454_v31 = vpop.f32.mrf.mxu3 }
  0xa9   : > { %v9123_v33 = vadd.f32 %v425_v30, %v9118_v23  ;;  %v9126_v35 = vadd.f32 %v454_v31, %v9120_v24  ;;  %v9128_v39 = vpop.f32.mrf.mxu0  ;;  %v9130_v40 = vpop.f32.mrf.mxu1  ;;  %v363_v31 = vadd.f32 %v362_v5, %v9100_v3 }
  0xaa   : > { %12410 = vst [vmem:[#allocation8_spill] sm:$0xff] %v9128_v39 }
  0xab   : > { %12409 = vst [vmem:[#allocation7_spill] sm:$0xff] %v9126_v35 }
  0xb0   : > { %v9134_v46 = vpop.f32.mrf.mxu2  ;;  %v9136_v47 = vpop.f32.mrf.mxu3 }
  0xb1   : > { %12411 = vst [vmem:[#allocation9_spill] sm:$0xff] %v9134_v46  ;;  %v372_v49 = vpop.f32.mrf.mxu0  ;;  %v396_v54 = vpop.f32.mrf.mxu1 }
  0xb2   : > { %12412 = vst [vmem:[#allocation10_spill] sm:$0xff] %v9136_v47  ;;  %v9139_v55 = vadd.f32 %v372_v49, %v9100_v3  ;;  %v9142_v57 = vadd.f32 %v396_v54, %v9132_v44 }
  0xb4   : > { %12413 = vst [vmem:[#allocation11_spill] sm:$0xff] %v9139_v55 }
  0xb8   : > { %v430_v60 = vpop.f32.mrf.mxu2  ;;  %v459_v61 = vpop.f32.mrf.mxu3 }
  0xb9   : > { %v9145_v6 = vadd.f32 %v430_v60, %v9118_v23  ;;  %v9148_v25 = vadd.f32 %v459_v61, %v9120_v24  ;;  %v9150_v15 = vpop.f32.mrf.mxu0  ;;  %v9152_v30 = vpop.f32.mrf.mxu1 }
  0xba   : > { %12416 = vst [vmem:[#allocation14_spill] sm:$0xff] %v9150_v15 }
  0xbb   : > { %12414 = vst [vmem:[#allocation12_spill] sm:$0xff] %v9145_v6 }
  0xbc   : > { %12415 = vst [vmem:[#allocation13_spill] sm:$0xff] %v9148_v25 }
  0xbd   : > { %12417 = vst [vmem:[#allocation15_spill] sm:$0xff] %v9152_v30 }
  0xc0   : > { %v9155_v1 = vpop.f32.mrf.mxu2  ;;  %v9157_v49 = vpop.f32.mrf.mxu3 }
  0xc1   : > { %12418 = vst [vmem:[#allocation16_spill] sm:$0xff] %v9155_v1  ;;  %v401_v54 = vpop.f32.mrf.mxu1  ;;  %v706_v12 = vpop.f32.mrf.mxu0 }
  0xc2   : > { %12419 = vst [vmem:[#allocation17_spill] sm:$0xff] %v9157_v49  ;;  %v9160_v7 = vadd.f32 %v401_v54, %v9132_v44  ;;  %v749_v60 = vadd.f32 %v706_v12, %v363_v31 }
  0xc4   : > { %12420 = vst [vmem:[#allocation18_spill] sm:$0xff] %v9160_v7  ;;  %v6735_v6 = vmul.f32 -1.442695, %v749_v60 }
  0xc6   : > { %8108 = vpow2.f32 %v6735_v6 }
  0xc8   : > { %v435_v61 = vpop.f32.mrf.mxu2  ;;  %v464_v25 = vpop.f32.mrf.mxu3 }
  0xc9   : > { %v9163_v15 = vadd.f32 %v435_v61, %v9118_v23  ;;  %v9166_v55 = vadd.f32 %v464_v25, %v9120_v24  ;;  %v9168_v5 = vpop.f32.mrf.mxu1  ;;  %v708_v1 = vpop.f32.mrf.mxu0  ;;  %v450_v61 = vadd.f32 %v449_v9, %v9120_v24  ;;  %v421_v25 = vadd.f32 %v420_v8, %v9118_v23 }
  0xca   : > { %12423 = vst [vmem:[#allocation21_spill] sm:$0xff] %v9168_v5 }
  0xcb   : > { %12421 = vst [vmem:[#allocation19_spill] sm:$0xff] %v9163_v15 }
  0xcc   : > { %12422 = vst [vmem:[#allocation20_spill] sm:$0xff] %v9166_v55  ;;  %v8109_v49 = vpop.eup %8108 }
  0xcd   : > { %v762_v47 = vadd.f32 1.0, %v8109_v49 }
  0xcf   : > { %8110 = vrcp.f32 %v762_v47  ;;  %v776_v49 = vand.u32 2147483648, %v762_v47  ;;  %vm770_vm2 = vweird.f32 %v762_v47 }
  0xd0   : > { %v9170_v46 = vpop.f32.mrf.mxu2  ;;  %v9172_v54 = vpop.f32.mrf.mxu3 }
  0xd1   : > { %12424 = vst [vmem:[#allocation22_spill] sm:$0xff] %v9170_v46  ;;  %v406_v12 = vpop.f32.mrf.mxu1 }
  0xd2   : > { %12425 = vst [vmem:[#allocation23_spill] sm:$0xff] %v9172_v54  ;;  %v9175_v6 = vadd.f32 %v406_v12, %v9132_v44  ;;  %v774_v54 = vand.u32 2147483647, %v762_v47 }
  0xd4   : > { %12426 = vst [vmem:[#allocation24_spill] sm:$0xff] %v9175_v6  ;;  %v777_v6 = vor.u32 1.1754944e-38, %v776_v49  ;;  %vm775_vm4 = vcmp.eq.f32.partialorder %v774_v54, 8.507059e+37 }
  0xd5   : > { %v8111_v31 = vpop.eup %8110 }
  0xd6   : > { %v766_v60 = vmul.f32 %v8111_v31, %v762_v47  ;;  %vm771_vm1 = vweird.f32 %v8111_v31 }
  0xd7   : > { %vm772_vm3 = vmor %vm770_vm2, %vm771_vm1 }
  0xd8   : > { %v767_v55 = vsub.f32 1.0, %v766_v60  ;;  %v732_v15 = vpop.f32.mrf.mxu2  ;;  %v745_v1 = vpop.f32.mrf.mxu3  ;;  %v392_v60 = vadd.f32 %v9113_v18, %v9132_v44 }
  0xd9   : > { %v752_v5 = vadd.f32 %v745_v1, %v450_v61  ;;  %v9179_v7 = vpop.f32.mrf.mxu1  ;;  %v751_v46 = vadd.f32 %v732_v15, %v421_v25 }
  0xda   : > { %12427 = vst [vmem:[#allocation25_spill] sm:$0xff] %v9179_v7  ;;  %v768_v30 = vmul.f32 %v8111_v31, %v767_v55 }
  0xdb   : > { %8112 = vtanh.f32 %v752_v5  ;;  %v6737_v39 = vmul.f32 -1.442695, %v751_v46 }
  0xdc   : > { %v769_v12 = vadd.f32 %v8111_v31, %v768_v30 }
  0xdd   : > { %8114 = vpow2.f32 %v6737_v39 }
  0xde   : > { %v773_v9 = vsel %vm772_vm3, %v8111_v31, %v769_v12 }
  0xdf   : > { %v778_v8 = vsel %vm775_vm4, %v777_v6, %v773_v9 }
  0xe0   : > { %v734_v61 = vpop.f32.mrf.mxu2  ;;  %v747_v1 = vpop.f32.mrf.mxu3 }
  0xe1   : > { %v8113_v35 = vpop.eup %8112  ;;  %v719_v7 = vpop.f32.mrf.mxu1 }
  0xe2   : > { %v812_v55 = vmul.f32 %v8113_v35, %v778_v8  ;;  %v750_v15 = vadd.f32 %v719_v7, %v392_v60 }
  0xe3   : > { %v8115_v30 = vpop.eup %8114 }
  0xe4   : > { %v6736_v25 = vmul.f32 -1.442695, %v750_v15  ;;  %v764_v5 = vadd.f32 1.0, %v8115_v30 }
  0xe6   : > { %8116 = vpow2.f32 %v6736_v25  ;;  %vm800_vm10 = vweird.f32 %v764_v5 }
  0xe7   : > { %8118 = vrcp.f32 %v764_v5 }
  0xe9   : > { %v721_v47 = vpop.f32.mrf.mxu1 }
  0xec   : > { %v8117_v49 = vpop.eup %8116 }
  0xed   : > { %v763_v46 = vadd.f32 1.0, %v8117_v49  ;;  %v8119_v54 = vpop.eup %8118  ;;  %v806_v49 = vand.u32 2147483648, %v764_v5 }
  0xee   : > { %v796_v18 = vmul.f32 %v8119_v54, %v764_v5  ;;  %vm801_vm9 = vweird.f32 %v8119_v54 }
  0xef   : > { %8120 = vrcp.f32 %v763_v46  ;;  %v791_v9 = vand.u32 2147483648, %v763_v46  ;;  %v789_v39 = vand.u32 2147483647, %v763_v46  ;;  %vm785_vm6 = vweird.f32 %v763_v46  ;;  %vm802_vm11 = vmor %vm800_vm10, %vm801_vm9 }
  0xf0   : > { %v797_v35 = vsub.f32 1.0, %v796_v18 }
  0xf1   : > { %v792_v8 = vor.u32 1.1754944e-38, %v791_v9  ;;  %vm790_vm8 = vcmp.eq.f32.partialorder %v789_v39, 8.507059e+37 }
  0xf2   : > { %v798_v1 = vmul.f32 %v8119_v54, %v797_v35 }
  0xf4   : > { %v799_v47 = vadd.f32 %v8119_v54, %v798_v1  ;;  %v423_v1 = vadd.f32 %v9109_v13, %v9118_v23  ;;  %v452_v13 = vadd.f32 %v9111_v14, %v9120_v24 }
  0xf5   : > { %v8121_v6 = vpop.eup %8120 }
  0xf6   : > { %v781_v31 = vmul.f32 %v8121_v6, %v763_v46  ;;  %vm786_vm5 = vweird.f32 %v8121_v6  ;;  %v803_v18 = vsel %vm802_vm11, %v8119_v54, %v799_v47 }
  0xf7   : > { %vm787_vm7 = vmor %vm785_vm6, %vm786_vm5 }
  0xf8   : > { %v782_v12 = vsub.f32 1.0, %v781_v31  ;;  %v804_v31 = vand.u32 2147483647, %v764_v5  ;;  %v394_v5 = vadd.f32 %v9130_v40, %v9132_v44 }
  0xfa   : > { %v783_v61 = vmul.f32 %v8121_v6, %v782_v12  ;;  %v807_v12 = vor.u32 1.1754944e-38, %v806_v49  ;;  %vm805_vm12 = vcmp.eq.f32.partialorder %v804_v31, 8.507059e+37 }
  0xfc   : > { %v784_v7 = vadd.f32 %v8121_v6, %v783_v61  ;;  %v808_v9 = vsel %vm805_vm12, %v807_v12, %v803_v18 }
  0xfe   : > { %v788_v60 = vsel %vm787_vm7, %v8121_v6, %v784_v7 }
  0xff   : > { %v793_v15 = vsel %vm790_vm8, %v792_v8, %v788_v60 }
 0x100   : > { %v811_v25 = vmul.f32 0.0, %v793_v15 }
 0x102   : > { %v9183_v30 = vadd.f32 %v812_v55, %v811_v25  ;;  %v365_v55 = vadd.f32 %v9105_v11, %v9100_v3 }
 0x104   : > { %8122 = vtanh.f32 %v9183_v30 }
 0x10a   : > { %v8123_v46 = vpop.eup %8122 }
 0x10b   : > { %v815_v6 = vmul.f32 %v8123_v46, %v808_v9 }
 0x10d   : > { %v816_v61 = vpack.c.bf16 %v815_v6, %v815_v6 }
 0x10f   : > { %817 = vst [vmem:[#allocation3] sm:$0xf] %v816_v61  ;;  %830 = vmatmul.bf16.vlgmr.msra.gmra.mxu0 %v816_v61  ;;  %843 = vmatmul.bf16.vlgmr.msrb.gmra.mxu1 %v816_v61 }
 0x110   : > { %856 = vmatmul.bf16.vlgmr.msra.gmra.mxu2 %v816_v61  ;;  %869 = vmatmul.bf16.vlgmr.msra.gmra.mxu3 %v816_v61 }
 0x111   : > { %1072 = vmatpush.bf16.msra.mxu0 %v8718_v17  ;;  %1085 = vmatpush.bf16.msrb.mxu1 %v8750_v26 }
 0x112   : > { %1098 = vmatpush.bf16.msra.mxu2 %v8730_v21  ;;  %1111 = vmatpush.bf16.msra.mxu3 %v8786_v36 }
 0x115   : > { %1073 = vmatpush.bf16.msra.mxu0 %v8752_v27  ;;  %1086 = vmatpush.bf16.msrb.mxu1 %v8790_v37 }
 0x116   : > { %1099 = vmatpush.bf16.msra.mxu2 %v8771_v32  ;;  %1112 = vmatpush.bf16.msra.mxu3 %v8822_v48 }
 0x119   : > { %1074 = vmatpush.bf16.msra.mxu0 %v8792_v38  ;;  %1087 = vmatpush.bf16.msrb.mxu1 %v8831_v51 }
 0x11a   : > { %1100 = vmatpush.bf16.msra.mxu2 %v8814_v45  ;;  %1113 = vmatpush.bf16.msra.mxu3 %v8847_v56 }
 0x11d   : > { %1075 = vmatpush.bf16.msra.mxu0 %v8829_v50  ;;  %1088 = vmatpush.bf16.msrb.mxu1 %v8867_v63 }
 0x11e   : > { %1101 = vmatpush.bf16.msra.mxu2 %v8855_v59  ;;  %1114 = vmatpush.bf16.msra.mxu3 %v8877_v2 }
 0x121   : > { %1076 = vmatpush.bf16.msra.mxu0 %v8865_v62  ;;  %1089 = vmatpush.bf16.msrb.mxu1 %v8930_v20 }
 0x122   : > { %1102 = vmatpush.bf16.msra.mxu2 %v8903_v10  ;;  %1115 = vmatpush.bf16.msra.mxu3 %v8922_v16 }
 0x125   : > { %1077 = vmatpush.bf16.msra.mxu0 %v8881_v4  ;;  %1090 = vmatpush.bf16.msrb.mxu1 %v8957_v34 }
 0x126   : > { %1103 = vmatpush.bf16.msra.mxu2 %v8943_v28  ;;  %1116 = vmatpush.bf16.msra.mxu3 %v8945_v29 }
 0x129   : > { %1078 = vmatpush.bf16.msra.mxu0 %v8928_v19  ;;  %1091 = vmatpush.bf16.msrb.mxu1 %v9012_v58 }
 0x12a   : > { %1104 = vmatpush.bf16.msra.mxu2 %v8972_v42  ;;  %1117 = vmatpush.bf16.msra.mxu3 %v8975_v43 }
 0x12d   : > { %1079 = vmatpush.bf16.msra.mxu0 %v8969_v41  ;;  %1092 = vmatpush.bf16.msrb.mxu1 %v9023_v0 }
 0x12e   : > { %1105 = vmatpush.bf16.msra.mxu2 %v8992_v52  ;;  %1118 = vmatpush.bf16.msra.mxu3 %v8995_v53 }
 0x18c   : > { %v831_v54 = vpop.f32.mrf.mxu0  ;;  %v844_v39 = vpop.f32.mrf.mxu1 }
 0x18d   : > { %v874_v35 = vadd.f32 %v831_v54, %v365_v55  ;;  %v875_v7 = vadd.f32 %v844_v39, %v394_v5 }
 0x18f   : > { %v6738_v8 = vmul.f32 -1.442695, %v874_v35  ;;  %v6739_v60 = vmul.f32 -1.442695, %v875_v7 }
 0x191   : > { %8124 = vpow2.f32 %v6738_v8 }
 0x192   : > { %8126 = vpow2.f32 %v6739_v60 }
 0x193   : > { %v857_v15 = vpop.f32.mrf.mxu2  ;;  %v870_v25 = vpop.f32.mrf.mxu3 }
 0x194   : > { %v876_v47 = vadd.f32 %v857_v15, %v423_v1  ;;  %v833_v49 = vpop.f32.mrf.mxu0  ;;  %v846_v31 = vpop.f32.mrf.mxu1  ;;  %v877_v54 = vadd.f32 %v870_v25, %v452_v13 }
 0x196   : > { %v6740_v11 = vmul.f32 -1.442695, %v876_v47 }
 0x197   : > { %v8125_v18 = vpop.eup %8124 }
 0x198   : > { %v8127_v12 = vpop.eup %8126  ;;  %v887_v40 = vadd.f32 1.0, %v8125_v18  ;;  %8128 = vpow2.f32 %v6740_v11 }
 0x199   : > { %v888_v46 = vadd.f32 1.0, %v8127_v12 }
 0x19a   : > { %8130 = vrcp.f32 %v887_v40  ;;  %v901_v1 = vand.u32 2147483648, %v887_v40  ;;  %v899_v49 = vand.u32 2147483647, %v887_v40  ;;  %vm895_vm15 = vweird.f32 %v887_v40 }
 0x19b   : > { %8132 = vrcp.f32 %v888_v46  ;;  %v859_v9 = vpop.f32.mrf.mxu2  ;;  %v872_v6 = vpop.f32.mrf.mxu3  ;;  %v916_v15 = vand.u32 2147483648, %v888_v46  ;;  %v914_v11 = vand.u32 2147483647, %v888_v46  ;;  %vm910_vm0 = vweird.f32 %v888_v46 }
 0x19c   : > { %v902_v12 = vor.u32 1.1754944e-38, %v901_v1  ;;  %vm900_vm3 = vcmp.eq.f32.partialorder %v899_v49, 8.507059e+37 }
 0x19d   : > { %v917_v6 = vor.u32 1.1754944e-38, %v916_v15  ;;  %vm915_vm4 = vcmp.eq.f32.partialorder %v914_v11, 8.507059e+37 }
 0x19e   : > { %v8129_v61 = vpop.eup %8128 }
 0x19f   : > { %v889_v55 = vadd.f32 1.0, %v8129_v61 }
 0x1a0   : > { %v8131_v5 = vpop.eup %8130 }
 0x1a1   : > { %v8133_v39 = vpop.eup %8132  ;;  %v891_v35 = vmul.f32 %v8131_v5, %v887_v40  ;;  %8134 = vrcp.f32 %v889_v55  ;;  %vm896_vm13 = vweird.f32 %v8131_v5  ;;  %v931_v1 = vand.u32 2147483648, %v889_v55 }
 0x1a2   : > { %v906_v7 = vmul.f32 %v8133_v39, %v888_v46  ;;  %8136 = vtanh.f32 %v877_v54  ;;  %vm911_vm14 = vweird.f32 %v8133_v39  ;;  %vm897_vm1 = vmor %vm895_vm15, %vm896_vm13  ;;  %vm925_vm6 = vweird.f32 %v889_v55 }
 0x1a3   : > { %v892_v8 = vsub.f32 1.0, %v891_v35  ;;  %vm912_vm2 = vmor %vm910_vm0, %vm911_vm14  ;;  %v932_v49 = vor.u32 1.1754944e-38, %v931_v1 }
 0x1a4   : > { %v907_v60 = vsub.f32 1.0, %v906_v7 }
 0x1a5   : > { %v893_v47 = vmul.f32 %v8131_v5, %v892_v8 }
 0x1a6   : > { %v908_v31 = vmul.f32 %v8133_v39, %v907_v60 }
 0x1a7   : > { %v8135_v18 = vpop.eup %8134  ;;  %v894_v14 = vadd.f32 %v8131_v5, %v893_v47 }
 0x1a8   : > { %v921_v25 = vmul.f32 %v8135_v18, %v889_v55  ;;  %v909_v9 = vadd.f32 %v8133_v39, %v908_v31  ;;  %v8137_v13 = vpop.eup %8136  ;;  %vm926_vm5 = vweird.f32 %v8135_v18 }
 0x1a9   : > { %v898_v61 = vsel %vm897_vm1, %v8131_v5, %v894_v14  ;;  %v929_v5 = vand.u32 2147483647, %v889_v55  ;;  %vm927_vm7 = vmor %vm925_vm6, %vm926_vm5 }
 0x1aa   : > { %v922_v54 = vsub.f32 1.0, %v921_v25  ;;  %v903_v35 = vsel %vm900_vm3, %v902_v12, %v898_v61  ;;  %v913_v7 = vsel %vm912_vm2, %v8133_v39, %v909_v9 }
 0x1ab   : > { %v918_v8 = vsel %vm915_vm4, %v917_v6, %v913_v7  ;;  %v937_v60 = vmul.f32 %v8137_v13, %v903_v35  ;;  %vm930_vm8 = vcmp.eq.f32.partialorder %v929_v5, 8.507059e+37 }
 0x1ac   : > { %v923_v24 = vmul.f32 %v8135_v18, %v922_v54  ;;  %v936_v47 = vmul.f32 %v918_v8, %v9183_v30 }
 0x1ae   : > { %v9227_v40 = vadd.f32 %v937_v60, %v936_v47  ;;  %v924_v46 = vadd.f32 %v8135_v18, %v923_v24 }
 0x1b0   : > { %8138 = vtanh.f32 %v9227_v40  ;;  %v928_v15 = vsel %vm927_vm7, %v8135_v18, %v924_v46 }
 0x1b1   : > { %v933_v31 = vsel %vm930_vm8, %v932_v49, %v928_v15  ;;  %v12428_v15 = vld [vmem:[#allocation7_spill] sm:$0xff] }
 0x1b6   : > { %v8139_v39 = vpop.eup %8138 }
 0x1b7   : > { %v940_v11 = vmul.f32 %v8139_v39, %v933_v31 }
 0x1b9   : > { %v941_v14 = vpack.c.bf16 %v940_v11, %v940_v11 }
 0x1bb   : > { %942 = vst [vmem:[#allocation3 + $0x4] sm:$0xf] %v941_v14  ;;  %955 = vmatmul.bf16.vlgmr.msrb.gmra.mxu0 %v941_v14  ;;  %968 = vmatmul.bf16.vlgmr.msra.gmra.mxu1 %v941_v14 }
 0x1bc   : > { %981 = vmatmul.bf16.vlgmr.msrb.gmra.mxu2 %v941_v14  ;;  %994 = vmatmul.bf16.vlgmr.msrb.gmra.mxu3 %v941_v14 }
 0x1bd   : > { %1197 = vmatpush.bf16.msrb.mxu0 %v8718_v17  ;;  %1210 = vmatpush.bf16.msra.mxu1 %v8750_v26 }
 0x1be   : > { %1223 = vmatpush.bf16.msrb.mxu2 %v8730_v21  ;;  %1236 = vmatpush.bf16.msrb.mxu3 %v8786_v36 }
 0x1c1   : > { %1198 = vmatpush.bf16.msrb.mxu0 %v8752_v27  ;;  %1211 = vmatpush.bf16.msra.mxu1 %v8790_v37 }
 0x1c2   : > { %1224 = vmatpush.bf16.msrb.mxu2 %v8771_v32  ;;  %1237 = vmatpush.bf16.msrb.mxu3 %v8822_v48 }
 0x1c5   : > { %1199 = vmatpush.bf16.msrb.mxu0 %v8792_v38  ;;  %1212 = vmatpush.bf16.msra.mxu1 %v8831_v51 }
 0x1c6   : > { %1225 = vmatpush.bf16.msrb.mxu2 %v8814_v45  ;;  %1238 = vmatpush.bf16.msrb.mxu3 %v8847_v56 }
 0x1c9   : > { %1200 = vmatpush.bf16.msrb.mxu0 %v8829_v50  ;;  %1213 = vmatpush.bf16.msra.mxu1 %v8867_v63 }
 0x1ca   : > { %1226 = vmatpush.bf16.msrb.mxu2 %v8855_v59  ;;  %1239 = vmatpush.bf16.msrb.mxu3 %v8877_v2 }
 0x1cd   : > { %1201 = vmatpush.bf16.msrb.mxu0 %v8865_v62  ;;  %1214 = vmatpush.bf16.msra.mxu1 %v8930_v20 }
 0x1ce   : > { %1227 = vmatpush.bf16.msrb.mxu2 %v8903_v10  ;;  %1240 = vmatpush.bf16.msrb.mxu3 %v8922_v16 }
 0x1d1   : > { %1202 = vmatpush.bf16.msrb.mxu0 %v8881_v4  ;;  %1215 = vmatpush.bf16.msra.mxu1 %v8957_v34 }
 0x1d2   : > { %1228 = vmatpush.bf16.msrb.mxu2 %v8943_v28  ;;  %1241 = vmatpush.bf16.msrb.mxu3 %v8945_v29 }
 0x1d5   : > { %1203 = vmatpush.bf16.msrb.mxu0 %v8928_v19  ;;  %1216 = vmatpush.bf16.msra.mxu1 %v9012_v58 }
 0x1d6   : > { %1229 = vmatpush.bf16.msrb.mxu2 %v8972_v42  ;;  %1242 = vmatpush.bf16.msrb.mxu3 %v8975_v43 }
 0x1d9   : > { %1204 = vmatpush.bf16.msrb.mxu0 %v8969_v41  ;;  %1217 = vmatpush.bf16.msra.mxu1 %v9023_v0 }
 0x1da   : > { %1230 = vmatpush.bf16.msrb.mxu2 %v8992_v52  ;;  %1243 = vmatpush.bf16.msrb.mxu3 %v8995_v53 }
 0x238   : > { %v956_v24 = vpop.f32.mrf.mxu0  ;;  %v969_v30 = vpop.f32.mrf.mxu1 }
 0x239   : > { %v999_v55 = vadd.f32 %v956_v24, %v9116_v22  ;;  %v1000_v18 = vadd.f32 %v969_v30, %v9142_v57 }
 0x23b   : > { %v6741_v25 = vmul.f32 -1.442695, %v999_v55  ;;  %v6742_v12 = vmul.f32 -1.442695, %v1000_v18 }
 0x23d   : > { %8140 = vpow2.f32 %v6741_v25 }
 0x23e   : > { %8142 = vpow2.f32 %v6742_v12 }
 0x23f   : > { %v982_v9 = vpop.f32.mrf.mxu2  ;;  %v995_v6 = vpop.f32.mrf.mxu3 }
 0x240   : > { %v1001_v61 = vadd.f32 %v982_v9, %v9123_v33  ;;  %v958_v13 = vpop.f32.mrf.mxu0  ;;  %v971_v54 = vpop.f32.mrf.mxu1  ;;  %v1002_v49 = vadd.f32 %v995_v6, %v12428_v15 }
 0x242   : > { %v6743_v35 = vmul.f32 -1.442695, %v1001_v61 }
 0x243   : > { %v8141_v7 = vpop.eup %8140 }
 0x244   : > { %v8143_v8 = vpop.eup %8142  ;;  %v1012_v60 = vadd.f32 1.0, %v8141_v7  ;;  %8144 = vpow2.f32 %v6743_v35 }
 0x245   : > { %v1013_v47 = vadd.f32 1.0, %v8143_v8 }
 0x246   : > { %8146 = vrcp.f32 %v1012_v60  ;;  %v1026_v24 = vand.u32 2147483648, %v1012_v60  ;;  %v1024_v18 = vand.u32 2147483647, %v1012_v60  ;;  %vm1020_vm11 = vweird.f32 %v1012_v60 }
 0x247   : > { %8148 = vrcp.f32 %v1013_v47  ;;  %v984_v22 = vpop.f32.mrf.mxu2  ;;  %v997_v57 = vpop.f32.mrf.mxu3  ;;  %v1041_v30 = vand.u32 2147483648, %v1013_v47  ;;  %v1039_v12 = vand.u32 2147483647, %v1013_v47  ;;  %vm1035_vm12 = vweird.f32 %v1013_v47 }
 0x248   : > { %v1027_v13 = vor.u32 1.1754944e-38, %v1026_v24  ;;  %vm1025_vm15 = vcmp.eq.f32.partialorder %v1024_v18, 8.507059e+37 }
 0x249   : > { %v1042_v35 = vor.u32 1.1754944e-38, %v1041_v30  ;;  %vm1040_vm0 = vcmp.eq.f32.partialorder %v1039_v12, 8.507059e+37 }
 0x24a   : > { %v8145_v46 = vpop.eup %8144 }
 0x24b   : > { %v1014_v1 = vadd.f32 1.0, %v8145_v46 }
 0x24c   : > { %v8147_v5 = vpop.eup %8146 }
 0x24d   : > { %v8149_v39 = vpop.eup %8148  ;;  %v1016_v31 = vmul.f32 %v8147_v5, %v1012_v60  ;;  %8150 = vrcp.f32 %v1014_v1  ;;  %vm1021_vm9 = vweird.f32 %v8147_v5  ;;  %vm1050_vm2 = vweird.f32 %v1014_v1 }
 0x24e   : > { %v1031_v33 = vmul.f32 %v8149_v39, %v1013_v47  ;;  %8152 = vtanh.f32 %v1002_v49  ;;  %vm1036_vm10 = vweird.f32 %v8149_v39  ;;  %vm1022_vm13 = vmor %vm1020_vm11, %vm1021_vm9 }
 0x24f   : > { %v1017_v11 = vsub.f32 1.0, %v1016_v31  ;;  %vm1037_vm14 = vmor %vm1035_vm12, %vm1036_vm10 }
 0x250   : > { %v1032_v14 = vsub.f32 1.0, %v1031_v33 }
 0x251   : > { %v1018_v55 = vmul.f32 %v8147_v5, %v1017_v11  ;;  %v1056_v11 = vand.u32 2147483648, %v1014_v1 }
 0x252   : > { %v1033_v25 = vmul.f32 %v8149_v39, %v1032_v14 }
 0x253   : > { %v8151_v9 = vpop.eup %8150  ;;  %v1019_v61 = vadd.f32 %v8147_v5, %v1018_v55  ;;  %v1057_v24 = vor.u32 1.1754944e-38, %v1056_v11 }
 0x254   : > { %v1046_v6 = vmul.f32 %v8151_v9, %v1014_v1  ;;  %v1034_v54 = vadd.f32 %v8149_v39, %v1033_v25  ;;  %v8153_v8 = vpop.eup %8152  ;;  %vm1051_vm1 = vweird.f32 %v8151_v9  ;;  %v12430_v25 = vld [vmem:[#allocation15_spill] sm:$0xff] }
 0x255   : > { %v1023_v7 = vsel %vm1022_vm13, %v8147_v5, %v1019_v61  ;;  %v1054_v5 = vand.u32 2147483647, %v1014_v1  ;;  %vm1052_vm3 = vmor %vm1050_vm2, %vm1051_vm1  ;;  %v399_v12 = vadd.f32 %v12430_v25, %v9132_v44 }
 0x256   : > { %v1047_v22 = vsub.f32 1.0, %v1046_v6  ;;  %v1028_v57 = vsel %vm1025_vm15, %v1027_v13, %v1023_v7  ;;  %v1038_v46 = vsel %vm1037_vm14, %v8149_v39, %v1034_v54  ;;  %v12431_v7 = vld [vmem:[#allocation9_spill] sm:$0xff] }
 0x257   : > { %v1043_v15 = vsel %vm1040_vm0, %v1042_v35, %v1038_v46  ;;  %v1062_v49 = vmul.f32 %v8153_v8, %v1028_v57  ;;  %vm1055_vm4 = vcmp.eq.f32.partialorder %v1054_v5, 8.507059e+37  ;;  %v428_v8 = vadd.f32 %v12431_v7, %v9118_v23 }
 0x258   : > { %v1048_v31 = vmul.f32 %v8151_v9, %v1047_v22  ;;  %v1061_v33 = vmul.f32 %v1043_v15, %v9227_v40  ;;  %v12429_v40 = vld [vmem:[#allocation8_spill] sm:$0xff] }
 0x259   : > { %v370_v1 = vadd.f32 %v12429_v40, %v9100_v3 }
 0x25a   : > { %v9267_v60 = vadd.f32 %v1062_v49, %v1061_v33  ;;  %v1049_v47 = vadd.f32 %v8151_v9, %v1048_v31 }
 0x25c   : > { %8154 = vtanh.f32 %v9267_v60  ;;  %v1053_v14 = vsel %vm1052_vm3, %v8151_v9, %v1049_v47 }
 0x25d   : > { %v1058_v30 = vsel %vm1055_vm4, %v1057_v24, %v1053_v14 }
 0x262   : > { %v8155_v39 = vpop.eup %8154 }
 0x263   : > { %v1065_v55 = vmul.f32 %v8155_v39, %v1058_v30  ;;  %v12432_v30 = vld [vmem:[#allocation6_spill] sm:$0xff] }
 0x265   : > { %v1066_v18 = vpack.c.bf16 %v1065_v55, %v1065_v55  ;;  %v12433_v55 = vld [vmem:[#allocation10_spill] sm:$0xff] }
 0x267   : > { %1067 = vst [vmem:[#allocation3 + $0x8] sm:$0xf] %v1066_v18  ;;  %1080 = vmatmul.bf16.vlgmr.msra.gmra.mxu0 %v1066_v18  ;;  %1093 = vmatmul.bf16.vlgmr.msrb.gmra.mxu1 %v1066_v18 }
 0x268   : > { %1106 = vmatmul.bf16.vlgmr.msra.gmra.mxu2 %v1066_v18  ;;  %1119 = vmatmul.bf16.vlgmr.msra.gmra.mxu3 %v1066_v18  ;;  %v457_v18 = vadd.f32 %v12433_v55, %v12432_v30 }
 0x269   : > { %1322 = vmatpush.bf16.msra.mxu0 %v8718_v17  ;;  %1335 = vmatpush.bf16.msrb.mxu1 %v8750_v26 }
 0x26a   : > { %1348 = vmatpush.bf16.msra.mxu2 %v8730_v21  ;;  %1361 = vmatpush.bf16.msra.mxu3 %v8786_v36 }
 0x26d   : > { %1323 = vmatpush.bf16.msra.mxu0 %v8752_v27  ;;  %1336 = vmatpush.bf16.msrb.mxu1 %v8790_v37 }
 0x26e   : > { %1349 = vmatpush.bf16.msra.mxu2 %v8771_v32  ;;  %1362 = vmatpush.bf16.msra.mxu3 %v8822_v48 }
 0x271   : > { %1324 = vmatpush.bf16.msra.mxu0 %v8792_v38  ;;  %1337 = vmatpush.bf16.msrb.mxu1 %v8831_v51 }
 0x272   : > { %1350 = vmatpush.bf16.msra.mxu2 %v8814_v45  ;;  %1363 = vmatpush.bf16.msra.mxu3 %v8847_v56 }
 0x275   : > { %1325 = vmatpush.bf16.msra.mxu0 %v8829_v50  ;;  %1338 = vmatpush.bf16.msrb.mxu1 %v8867_v63 }
 0x276   : > { %1351 = vmatpush.bf16.msra.mxu2 %v8855_v59  ;;  %1364 = vmatpush.bf16.msra.mxu3 %v8877_v2 }
 0x279   : > { %1326 = vmatpush.bf16.msra.mxu0 %v8865_v62  ;;  %1339 = vmatpush.bf16.msrb.mxu1 %v8930_v20 }
 0x27a   : > { %1352 = vmatpush.bf16.msra.mxu2 %v8903_v10  ;;  %1365 = vmatpush.bf16.msra.mxu3 %v8922_v16 }
 0x27d   : > { %1327 = vmatpush.bf16.msra.mxu0 %v8881_v4  ;;  %1340 = vmatpush.bf16.msrb.mxu1 %v8957_v34 }
 0x27e   : > { %1353 = vmatpush.bf16.msra.mxu2 %v8943_v28  ;;  %1366 = vmatpush.bf16.msra.mxu3 %v8945_v29 }
 0x281   : > { %1328 = vmatpush.bf16.msra.mxu0 %v8928_v19  ;;  %1341 = vmatpush.bf16.msrb.mxu1 %v9012_v58 }
 0x282   : > { %1354 = vmatpush.bf16.msra.mxu2 %v8972_v42  ;;  %1367 = vmatpush.bf16.msra.mxu3 %v8975_v43 }
 0x285   : > { %1329 = vmatpush.bf16.msra.mxu0 %v8969_v41  ;;  %1342 = vmatpush.bf16.msrb.mxu1 %v9023_v0 }
 0x286   : > { %1355 = vmatpush.bf16.msra.mxu2 %v8992_v52  ;;  %1368 = vmatpush.bf16.msra.mxu3 %v8995_v53 }
 0x2e4   : > { %v1081_v9 = vpop.f32.mrf.mxu0  ;;  %v1094_v61 = vpop.f32.mrf.mxu1 }
 0x2e5   : > { %v1124_v6 = vadd.f32 %v1081_v9, %v370_v1  ;;  %v1125_v13 = vadd.f32 %v1094_v61, %v399_v12 }
 0x2e7   : > { %v6744_v54 = vmul.f32 -1.442695, %v1124_v6  ;;  %v6745_v35 = vmul.f32 -1.442695, %v1125_v13 }
 0x2e9   : > { %8156 = vpow2.f32 %v6744_v54 }
 0x2ea   : > { %8158 = vpow2.f32 %v6745_v35 }
 0x2eb   : > { %v1107_v22 = vpop.f32.mrf.mxu2  ;;  %v1120_v57 = vpop.f32.mrf.mxu3 }
 0x2ec   : > { %v1126_v46 = vadd.f32 %v1107_v22, %v428_v8  ;;  %v1083_v15 = vpop.f32.mrf.mxu0  ;;  %v1096_v49 = vpop.f32.mrf.mxu1  ;;  %v1127_v25 = vadd.f32 %v1120_v57, %v457_v18 }
 0x2ee   : > { %v6746_v31 = vmul.f32 -1.442695, %v1126_v46 }
 0x2ef   : > { %v8157_v33 = vpop.eup %8156 }
 0x2f0   : > { %v8159_v47 = vpop.eup %8158  ;;  %v1137_v11 = vadd.f32 1.0, %v8157_v33  ;;  %8160 = vpow2.f32 %v6746_v31 }
 0x2f1   : > { %v1138_v5 = vadd.f32 1.0, %v8159_v47 }
 0x2f2   : > { %8162 = vrcp.f32 %v1137_v11  ;;  %v1151_v54 = vand.u32 2147483648, %v1137_v11  ;;  %v1149_v8 = vand.u32 2147483647, %v1137_v11  ;;  %vm1145_vm7 = vweird.f32 %v1137_v11 }
 0x2f3   : > { %8164 = vrcp.f32 %v1138_v5  ;;  %v1109_v14 = vpop.f32.mrf.mxu2  ;;  %v1122_v24 = vpop.f32.mrf.mxu3  ;;  %v1166_v35 = vand.u32 2147483648, %v1138_v5  ;;  %v1164_v46 = vand.u32 2147483647, %v1138_v5  ;;  %vm1160_vm8 = vweird.f32 %v1138_v5 }
 0x2f4   : > { %v1152_v31 = vor.u32 1.1754944e-38, %v1151_v54  ;;  %vm1150_vm11 = vcmp.eq.f32.partialorder %v1149_v8, 8.507059e+37 }
 0x2f5   : > { %v1167_v47 = vor.u32 1.1754944e-38, %v1166_v35  ;;  %vm1165_vm12 = vcmp.eq.f32.partialorder %v1164_v46, 8.507059e+37  ;;  %v12434_v46 = vld [vmem:[#allocation11_spill] sm:$0xff] }
 0x2f6   : > { %v8161_v39 = vpop.eup %8160 }
 0x2f7   : > { %v1139_v40 = vadd.f32 1.0, %v8161_v39 }
 0x2f8   : > { %v8163_v1 = vpop.eup %8162 }
 0x2f9   : > { %v8165_v12 = vpop.eup %8164  ;;  %v1141_v9 = vmul.f32 %v8163_v1, %v1137_v11  ;;  %8166 = vrcp.f32 %v1139_v40  ;;  %vm1146_vm5 = vweird.f32 %v8163_v1  ;;  %vm1175_vm14 = vweird.f32 %v1139_v40 }
 0x2fa   : > { %v1156_v61 = vmul.f32 %v8165_v12, %v1138_v5  ;;  %8168 = vtanh.f32 %v1127_v25  ;;  %vm1161_vm6 = vweird.f32 %v8165_v12  ;;  %vm1147_vm9 = vmor %vm1145_vm7, %vm1146_vm5 }
 0x2fb   : > { %v1142_v6 = vsub.f32 1.0, %v1141_v9  ;;  %vm1162_vm10 = vmor %vm1160_vm8, %vm1161_vm6 }
 0x2fc   : > { %v1157_v13 = vsub.f32 1.0, %v1156_v61 }
 0x2fd   : > { %v1143_v7 = vmul.f32 %v8163_v1, %v1142_v6 }
 0x2fe   : > { %v1158_v22 = vmul.f32 %v8165_v12, %v1157_v13  ;;  %v1181_v13 = vand.u32 2147483648, %v1139_v40 }
 0x2ff   : > { %v8167_v15 = vpop.eup %8166  ;;  %v1144_v49 = vadd.f32 %v8163_v1, %v1143_v7 }
 0x300   : > { %v1171_v57 = vmul.f32 %v8167_v15, %v1139_v40  ;;  %v1159_v33 = vadd.f32 %v8165_v12, %v1158_v22  ;;  %v8169_v24 = vpop.eup %8168  ;;  %vm1176_vm13 = vweird.f32 %v8167_v15  ;;  %v1182_v35 = vor.u32 1.1754944e-38, %v1181_v13 }
 0x301   : > { %v1148_v14 = vsel %vm1147_vm9, %v8163_v1, %v1144_v49  ;;  %v1179_v1 = vand.u32 2147483647, %v1139_v40  ;;  %vm1177_vm15 = vmor %vm1175_vm14, %vm1176_vm13  ;;  %v12435_v49 = vld [vmem:[#allocation18_spill] sm:$0xff] }
 0x302   : > { %v1172_v39 = vsub.f32 1.0, %v1171_v57  ;;  %v1153_v55 = vsel %vm1150_vm11, %v1152_v31, %v1148_v14  ;;  %v1163_v18 = vsel %vm1162_vm10, %v8165_v12, %v1159_v33 }
 0x303   : > { %v1168_v25 = vsel %vm1165_vm12, %v1167_v47, %v1163_v18  ;;  %v1187_v9 = vmul.f32 %v8169_v24, %v1153_v55  ;;  %vm1180_vm0 = vcmp.eq.f32.partialorder %v1179_v1, 8.507059e+37  ;;  %v12436_v24 = vld [vmem:[#allocation12_spill] sm:$0xff] }
 0x304   : > { %v1173_v61 = vmul.f32 %v8167_v15, %v1172_v39  ;;  %v1186_v6 = vmul.f32 %v1168_v25, %v9267_v60 }
 0x306   : > { %v9311_v11 = vadd.f32 %v1187_v9, %v1186_v6  ;;  %v1174_v5 = vadd.f32 %v8167_v15, %v1173_v61 }
 0x308   : > { %8170 = vtanh.f32 %v9311_v11  ;;  %v1178_v54 = vsel %vm1177_vm15, %v8167_v15, %v1174_v5 }
 0x309   : > { %v1183_v7 = vsel %vm1180_vm0, %v1182_v35, %v1178_v54 }
 0x30e   : > { %v8171_v12 = vpop.eup %8170 }
 0x30f   : > { %v1190_v8 = vmul.f32 %v8171_v12, %v1183_v7  ;;  %v12437_v7 = vld [vmem:[#allocation13_spill] sm:$0xff] }
 0x311   : > { %v1191_v22 = vpack.c.bf16 %v1190_v8, %v1190_v8 }
 0x313   : > { %1192 = vst [vmem:[#allocation3 + $0xc] sm:$0xf] %v1191_v22  ;;  %1205 = vmatmul.bf16.vlgmr.msrb.gmra.mxu0 %v1191_v22  ;;  %1218 = vmatmul.bf16.vlgmr.msra.gmra.mxu1 %v1191_v22 }
 0x314   : > { %1231 = vmatmul.bf16.vlgmr.msrb.gmra.mxu2 %v1191_v22  ;;  %1244 = vmatmul.bf16.vlgmr.msrb.gmra.mxu3 %v1191_v22 }
 0x315   : > { %1447 = vmatpush.bf16.msrb.mxu0 %v8718_v17  ;;  %1460 = vmatpush.bf16.msra.mxu1 %v8750_v26 }
 0x316   : > { %1473 = vmatpush.bf16.msrb.mxu2 %v8730_v21  ;;  %1486 = vmatpush.bf16.msrb.mxu3 %v8786_v36 }
 0x319   : > { %1448 = vmatpush.bf16.msrb.mxu0 %v8752_v27  ;;  %1461 = vmatpush.bf16.msra.mxu1 %v8790_v37 }
 0x31a   : > { %1474 = vmatpush.bf16.msrb.mxu2 %v8771_v32  ;;  %1487 = vmatpush.bf16.msrb.mxu3 %v8822_v48 }
 0x31d   : > { %1449 = vmatpush.bf16.msrb.mxu0 %v8792_v38  ;;  %1462 = vmatpush.bf16.msra.mxu1 %v8831_v51 }
 0x31e   : > { %1475 = vmatpush.bf16.msrb.mxu2 %v8814_v45  ;;  %1488 = vmatpush.bf16.msrb.mxu3 %v8847_v56 }
 0x321   : > { %1450 = vmatpush.bf16.msrb.mxu0 %v8829_v50  ;;  %1463 = vmatpush.bf16.msra.mxu1 %v8867_v63 }
 0x322   : > { %1476 = vmatpush.bf16.msrb.mxu2 %v8855_v59  ;;  %1489 = vmatpush.bf16.msrb.mxu3 %v8877_v2 }
 0x325   : > { %1451 = vmatpush.bf16.msrb.mxu0 %v8865_v62  ;;  %1464 = vmatpush.bf16.msra.mxu1 %v8930_v20 }
 0x326   : > { %1477 = vmatpush.bf16.msrb.mxu2 %v8903_v10  ;;  %1490 = vmatpush.bf16.msrb.mxu3 %v8922_v16 }
 0x329   : > { %1452 = vmatpush.bf16.msrb.mxu0 %v8881_v4  ;;  %1465 = vmatpush.bf16.msra.mxu1 %v8957_v34 }
 0x32a   : > { %1478 = vmatpush.bf16.msrb.mxu2 %v8943_v28  ;;  %1491 = vmatpush.bf16.msrb.mxu3 %v8945_v29 }
 0x32d   : > { %1453 = vmatpush.bf16.msrb.mxu0 %v8928_v19  ;;  %1466 = vmatpush.bf16.msra.mxu1 %v9012_v58 }
 0x32e   : > { %1479 = vmatpush.bf16.msrb.mxu2 %v8972_v42  ;;  %1492 = vmatpush.bf16.msrb.mxu3 %v8975_v43 }
 0x331   : > { %1454 = vmatpush.bf16.msrb.mxu0 %v8969_v41  ;;  %1467 = vmatpush.bf16.msra.mxu1 %v9023_v0 }
 0x332   : > { %1480 = vmatpush.bf16.msrb.mxu2 %v8992_v52  ;;  %1493 = vmatpush.bf16.msrb.mxu3 %v8995_v53 }
 0x390   : > { %v1206_v60 = vpop.f32.mrf.mxu0  ;;  %v1219_v40 = vpop.f32.mrf.mxu1 }
 0x391   : > { %v1249_v15 = vadd.f32 %v1206_v60, %v12434_v46  ;;  %v1250_v57 = vadd.f32 %v1219_v40, %v12435_v49 }
 0x393   : > { %v6747_v31 = vmul.f32 -1.442695, %v1249_v15  ;;  %v6748_v33 = vmul.f32 -1.442695, %v1250_v57 }
 0x395   : > { %8172 = vpow2.f32 %v6747_v31 }
 0x396   : > { %8174 = vpow2.f32 %v6748_v33 }
 0x397   : > { %v1232_v47 = vpop.f32.mrf.mxu2  ;;  %v1245_v14 = vpop.f32.mrf.mxu3 }
 0x398   : > { %v1251_v39 = vadd.f32 %v1232_v47, %v12436_v24  ;;  %v1208_v55 = vpop.f32.mrf.mxu0  ;;  %v1221_v18 = vpop.f32.mrf.mxu1  ;;  %v1252_v8 = vadd.f32 %v1245_v14, %v12437_v7 }
 0x39a   : > { %v6749_v25 = vmul.f32 -1.442695, %v1251_v39 }
 0x39b   : > { %v8173_v9 = vpop.eup %8172 }
 0x39c   : > { %v8175_v61 = vpop.eup %8174  ;;  %v1262_v6 = vadd.f32 1.0, %v8173_v9  ;;  %8176 = vpow2.f32 %v6749_v25 }
 0x39d   : > { %v1263_v5 = vadd.f32 1.0, %v8175_v61 }
 0x39e   : > { %8178 = vrcp.f32 %v1262_v6  ;;  %v1276_v49 = vand.u32 2147483648, %v1262_v6  ;;  %v1274_v33 = vand.u32 2147483647, %v1262_v6  ;;  %vm1270_vm3 = vweird.f32 %v1262_v6 }
 0x39f   : > { %8180 = vrcp.f32 %v1263_v5  ;;  %v1234_v13 = vpop.f32.mrf.mxu2  ;;  %v1247_v1 = vpop.f32.mrf.mxu3  ;;  %v1291_v57 = vand.u32 2147483648, %v1263_v5  ;;  %v1289_v24 = vand.u32 2147483647, %v1263_v5  ;;  %vm1285_vm4 = vweird.f32 %v1263_v5 }
 0x3a0   : > { %v1277_v18 = vor.u32 1.1754944e-38, %v1276_v49  ;;  %vm1275_vm7 = vcmp.eq.f32.partialorder %v1274_v33, 8.507059e+37 }
 0x3a1   : > { %v1292_v9 = vor.u32 1.1754944e-38, %v1291_v57  ;;  %vm1290_vm8 = vcmp.eq.f32.partialorder %v1289_v24, 8.507059e+37 }
 0x3a2   : > { %v8177_v54 = vpop.eup %8176 }
 0x3a3   : > { %v1264_v35 = vadd.f32 1.0, %v8177_v54 }
 0x3a4   : > { %v8179_v12 = vpop.eup %8178 }
 0x3a5   : > { %v8181_v22 = vpop.eup %8180  ;;  %v1266_v60 = vmul.f32 %v8179_v12, %v1262_v6  ;;  %8182 = vrcp.f32 %v1264_v35  ;;  %vm1271_vm1 = vweird.f32 %v8179_v12  ;;  %vm1300_vm10 = vweird.f32 %v1264_v35 }
 0x3a6   : > { %v1281_v40 = vmul.f32 %v8181_v22, %v1263_v5  ;;  %8184 = vtanh.f32 %v1252_v8  ;;  %vm1286_vm2 = vweird.f32 %v8181_v22  ;;  %vm1272_vm5 = vmor %vm1270_vm3, %vm1271_vm1 }
 0x3a7   : > { %v1267_v46 = vsub.f32 1.0, %v1266_v60  ;;  %vm1287_vm6 = vmor %vm1285_vm4, %vm1286_vm2 }
 0x3a8   : > { %v1282_v15 = vsub.f32 1.0, %v1281_v40 }
 0x3a9   : > { %v1268_v31 = vmul.f32 %v8179_v12, %v1267_v46 }
 0x3aa   : > { %v1283_v47 = vmul.f32 %v8181_v22, %v1282_v15  ;;  %v1306_v15 = vand.u32 2147483648, %v1264_v35 }
 0x3ab   : > { %v8183_v39 = vpop.eup %8182  ;;  %v1269_v55 = vadd.f32 %v8179_v12, %v1268_v31 }
 0x3ac   : > { %v1296_v14 = vmul.f32 %v8183_v39, %v1264_v35  ;;  %v1284_v25 = vadd.f32 %v8181_v22, %v1283_v47  ;;  %v8185_v13 = vpop.eup %8184  ;;  %vm1301_vm9 = vweird.f32 %v8183_v39  ;;  %v1307_v57 = vor.u32 1.1754944e-38, %v1306_v15 }
 0x3ad   : > { %v1273_v61 = vsel %vm1272_vm5, %v8179_v12, %v1269_v55  ;;  %v1304_v12 = vand.u32 2147483647, %v1264_v35  ;;  %vm1302_vm11 = vmor %vm1300_vm10, %vm1301_vm9 }
 0x3ae   : > { %v1297_v1 = vsub.f32 1.0, %v1296_v14  ;;  %v1278_v54 = vsel %vm1275_vm7, %v1277_v18, %v1273_v61  ;;  %v1288_v7 = vsel %vm1287_vm6, %v8181_v22, %v1284_v25 }
 0x3af   : > { %v1293_v8 = vsel %vm1290_vm8, %v1292_v9, %v1288_v7  ;;  %v1312_v60 = vmul.f32 %v8185_v13, %v1278_v54  ;;  %vm1305_vm12 = vcmp.eq.f32.partialorder %v1304_v12, 8.507059e+37 }
 0x3b0   : > { %v1298_v40 = vmul.f32 %v8183_v39, %v1297_v1  ;;  %v1311_v46 = vmul.f32 %v1293_v8, %v9311_v11 }
 0x3b2   : > { %v9351_v6 = vadd.f32 %v1312_v60, %v1311_v46  ;;  %v1299_v5 = vadd.f32 %v8183_v39, %v1298_v40 }
 0x3b4   : > { %8186 = vtanh.f32 %v9351_v6  ;;  %v1303_v49 = vsel %vm1302_vm11, %v8183_v39, %v1299_v5 }
 0x3b5   : > { %v1308_v31 = vsel %vm1305_vm12, %v1307_v57, %v1303_v49 }
 0x3ba   : > { %v8187_v22 = vpop.eup %8186 }
 0x3bb   : > { %v1315_v33 = vmul.f32 %v8187_v22, %v1308_v31 }
 0x3bd   : > { %v1316_v47 = vpack.c.bf16 %v1315_v33, %v1315_v33 }
 0x3bf   : > { %1317 = vst [vmem:[#allocation3 + $0x10] sm:$0xf] %v1316_v47  ;;  %1330 = vmatmul.bf16.vlgmr.msra.gmra.mxu0 %v1316_v47  ;;  %1343 = vmatmul.bf16.vlgmr.msrb.gmra.mxu1 %v1316_v47 }
 0x3c0   : > { %1356 = vmatmul.bf16.vlgmr.msra.gmra.mxu2 %v1316_v47  ;;  %1369 = vmatmul.bf16.vlgmr.msra.gmra.mxu3 %v1316_v47 }
 0x3c1   : > { %1572 = vmatpush.bf16.msra.mxu0 %v8718_v17  ;;  %1585 = vmatpush.bf16.msrb.mxu1 %v8750_v26  ;;  %v12438_v17 = vld [vmem:[#allocation14_spill] sm:$0xff]  ;;  %v12439_v26 = vld [vmem:[#allocation21_spill] sm:$0xff] }
 0x3c2   : > { %1598 = vmatpush.bf16.msra.mxu2 %v8730_v21  ;;  %1611 = vmatpush.bf16.msra.mxu3 %v8786_v36  ;;  %v375_v21 = vadd.f32 %v12438_v17, %v9100_v3 }
 0x3c5   : > { %1573 = vmatpush.bf16.msra.mxu0 %v8752_v27  ;;  %1586 = vmatpush.bf16.msrb.mxu1 %v8790_v37  ;;  %v404_v27 = vadd.f32 %v12439_v26, %v9132_v44 }
 0x3c6   : > { %1599 = vmatpush.bf16.msra.mxu2 %v8771_v32  ;;  %1612 = vmatpush.bf16.msra.mxu3 %v8822_v48 }
 0x3c9   : > { %1574 = vmatpush.bf16.msra.mxu0 %v8792_v38  ;;  %1587 = vmatpush.bf16.msrb.mxu1 %v8831_v51 }
 0x3ca   : > { %1600 = vmatpush.bf16.msra.mxu2 %v8814_v45  ;;  %1613 = vmatpush.bf16.msra.mxu3 %v8847_v56 }
 0x3cd   : > { %1575 = vmatpush.bf16.msra.mxu0 %v8829_v50  ;;  %1588 = vmatpush.bf16.msrb.mxu1 %v8867_v63  ;;  %v12440_v50 = vld [vmem:[#allocation16_spill] sm:$0xff] }
 0x3ce   : > { %1601 = vmatpush.bf16.msra.mxu2 %v8855_v59  ;;  %1614 = vmatpush.bf16.msra.mxu3 %v8877_v2  ;;  %v433_v51 = vadd.f32 %v12440_v50, %v9118_v23  ;;  %v6892_v50 = vld [vmem:[%s12388_s2 + $0xf0] sm:$0xf0] }
 0x3d1   : > { %1576 = vmatpush.bf16.msra.mxu0 %v8865_v62  ;;  %1589 = vmatpush.bf16.msrb.mxu1 %v8930_v20 }
 0x3d2   : > { %1602 = vmatpush.bf16.msra.mxu2 %v8903_v10  ;;  %1615 = vmatpush.bf16.msra.mxu3 %v8922_v16 }
 0x3d5   : > { %1577 = vmatpush.bf16.msra.mxu0 %v8881_v4  ;;  %1590 = vmatpush.bf16.msrb.mxu1 %v8957_v34 }
 0x3d6   : > { %1603 = vmatpush.bf16.msra.mxu2 %v8943_v28  ;;  %1616 = vmatpush.bf16.msra.mxu3 %v8945_v29 }
 0x3d9   : > { %1578 = vmatpush.bf16.msra.mxu0 %v8928_v19  ;;  %1591 = vmatpush.bf16.msrb.mxu1 %v9012_v58 }
 0x3da   : > { %1604 = vmatpush.bf16.msra.mxu2 %v8972_v42  ;;  %1617 = vmatpush.bf16.msra.mxu3 %v8975_v43 }
 0x3dd   : > { %1579 = vmatpush.bf16.msra.mxu0 %v8969_v41  ;;  %1592 = vmatpush.bf16.msrb.mxu1 %v9023_v0  ;;  %v12441_v41 = vld [vmem:[#allocation17_spill] sm:$0xff] }
 0x3de   : > { %1605 = vmatpush.bf16.msra.mxu2 %v8992_v52  ;;  %1618 = vmatpush.bf16.msra.mxu3 %v8995_v53  ;;  %v462_v42 = vadd.f32 %v12441_v41, %v12432_v30  ;;  %v7915_v41 = vld [vmem:[%s12388_s2 + $0xcc] sm:$0xf0] }
 0x43c   : > { %v1331_v32 = vpop.f32.mrf.mxu0  ;;  %v1344_v36 = vpop.f32.mrf.mxu1 }
 0x43d   : > { %v1374_v37 = vadd.f32 %v1331_v32, %v375_v21  ;;  %v1375_v38 = vadd.f32 %v1344_v36, %v404_v27 }
 0x43f   : > { %v6750_v45 = vmul.f32 -1.442695, %v1374_v37  ;;  %v6751_v48 = vmul.f32 -1.442695, %v1375_v38  ;;  %v7919_v38 = vld [vmem:[%s12388_s2 + $0xec] sm:$0xf0] }
 0x441   : > { %8188 = vpow2.f32 %v6750_v45  ;;  %v7917_v45 = vld [vmem:[%s12388_s2 + $0xe4] sm:$0xf] }
 0x442   : > { %8190 = vpow2.f32 %v6751_v48 }
 0x443   : > { %v1357_v56 = vpop.f32.mrf.mxu2  ;;  %v1370_v59 = vpop.f32.mrf.mxu3 }
 0x444   : > { %v1376_v62 = vadd.f32 %v1357_v56, %v433_v51  ;;  %v1333_v63 = vpop.f32.mrf.mxu0  ;;  %v1346_v2 = vpop.f32.mrf.mxu1  ;;  %v1377_v53 = vadd.f32 %v1370_v59, %v462_v42  ;;  %v6898_v51 = vld [vmem:[%s12388_s2 + $0xe8] sm:$0xf]  ;;  %v7920_v56 = vld [vmem:[%s12388_s2 + $0xf4] sm:$0xf0]  ;;  %v7913_v42 = vld [vmem:[%s12388_s2 + $0xc4] sm:$0xf] }
 0x445   : > { %v6895_v63 = vor.u32 %v7917_v45, %v6892_v50  ;;  %v6899_v2 = vor.u32 %v7920_v56, %v6898_v51 }
 0x446   : > { %v6752_v4 = vmul.f32 -1.442695, %v1376_v62 }
 0x447   : > { %v8189_v10 = vpop.eup %8188 }
 0x448   : > { %v8191_v16 = vpop.eup %8190  ;;  %v1387_v19 = vadd.f32 1.0, %v8189_v10  ;;  %8192 = vpow2.f32 %v6752_v4  ;;  %v7918_v4 = vld [vmem:[%s12388_s2 + $0xec] sm:$0xf]  ;;  %v6900_v10 = vld [vmem:[%s12388_s2 + $0xf8] sm:$0xf0] }
 0x449   : > { %v1388_v20 = vadd.f32 1.0, %v8191_v16  ;;  %v12442_v16 = vld [vmem:[#allocation4_spill] sm:$0xff] }
 0x44a   : > { %8194 = vrcp.f32 %v1387_v19  ;;  %v1401_v39 = vand.u32 2147483648, %v1387_v19  ;;  %v1399_v18 = vand.u32 2147483647, %v1387_v19  ;;  %vm1395_vm15 = vweird.f32 %v1387_v19 }
 0x44b   : > { %8196 = vrcp.f32 %v1388_v20  ;;  %v1359_v28 = vpop.f32.mrf.mxu2  ;;  %v1372_v29 = vpop.f32.mrf.mxu3  ;;  %v1416_v55 = vand.u32 2147483648, %v1388_v20  ;;  %v1414_v9 = vand.u32 2147483647, %v1388_v20  ;;  %vm1410_vm0 = vweird.f32 %v1388_v20 }
 0x44c   : > { %v1402_v54 = vor.u32 1.1754944e-38, %v1401_v39  ;;  %vm1400_vm3 = vcmp.eq.f32.partialorder %v1399_v18, 8.507059e+37  ;;  %v6903_v29 = vor.u32 %v7918_v4, %v6900_v10  ;;  %v7911_v18 = vld [vmem:[%s12388_s2 + $0xac] sm:$0xf0] }
 0x44d   : > { %v1417_v8 = vor.u32 1.1754944e-38, %v1416_v55  ;;  %vm1415_vm4 = vcmp.eq.f32.partialorder %v1414_v9, 8.507059e+37  ;;  %v6884_v55 = vld [vmem:[%s12388_s2 + $0xd8] sm:$0xf0]  ;;  %v7903_v4 = vld [vmem:[%s12388_s2 + $0x6c] sm:$0xf0] }
 0x44e   : > { %v8193_v34 = vpop.eup %8192 }
 0x44f   : > { %v1389_v43 = vadd.f32 1.0, %v8193_v34  ;;  %v6874_v34 = vld [vmem:[%s12388_s2 + $0xc0] sm:$0xf] }
 0x450   : > { %v8195_v52 = vpop.eup %8194 }
 0x451   : > { %v8197_v58 = vpop.eup %8196  ;;  %v1391_v0 = vmul.f32 %v8195_v52, %v1387_v19  ;;  %8198 = vrcp.f32 %v1389_v43  ;;  %vm1396_vm13 = vweird.f32 %v8195_v52  ;;  %v1431_v47 = vand.u32 2147483648, %v1389_v43 }
 0x452   : > { %v1406_v11 = vmul.f32 %v8197_v58, %v1388_v20  ;;  %8200 = vtanh.f32 %v1377_v53  ;;  %vm1411_vm14 = vweird.f32 %v8197_v58  ;;  %vm1397_vm1 = vmor %vm1395_vm15, %vm1396_vm13  ;;  %vm1425_vm6 = vweird.f32 %v1389_v43  ;;  %v12443_v20 = vld [vmem:[#allocation24_spill] sm:$0xff] }
 0x453   : > { %v1392_v35 = vsub.f32 1.0, %v1391_v0  ;;  %vm1412_vm2 = vmor %vm1410_vm0, %vm1411_vm14  ;;  %v1429_v17 = vand.u32 2147483647, %v1389_v43  ;;  %v1432_v26 = vor.u32 1.1754944e-38, %v1431_v47  ;;  %v6875_v53 = vor.u32 %v7915_v41, %v6874_v34  ;;  %v7907_v47 = vld [vmem:[%s12388_s2 + $0x8c] sm:$0xf0] }
 0x454   : > { %v1407_v24 = vsub.f32 1.0, %v1406_v11  ;;  %v6882_v11 = vld [vmem:[%s12388_s2 + $0xc8] sm:$0xf]  ;;  %v7904_v34 = vld [vmem:[%s12388_s2 + $0x74] sm:$0xf0] }
 0x455   : > { %v1393_v14 = vmul.f32 %v8195_v52, %v1392_v35  ;;  %vm1430_vm8 = vcmp.eq.f32.partialorder %v1429_v17, 8.507059e+37  ;;  %v7916_v35 = vld [vmem:[%s12388_s2 + $0xd4] sm:$0xf0]  ;;  %v7905_v17 = vld [vmem:[%s12388_s2 + $0x84] sm:$0xf] }
 0x456   : > { %v1408_v25 = vmul.f32 %v8197_v58, %v1407_v24  ;;  %v7914_v24 = vld [vmem:[%s12388_s2 + $0xcc] sm:$0xf]  ;;  %v6883_v39 = vor.u32 %v7916_v35, %v6882_v11 }
 0x457   : > { %v8199_v61 = vpop.eup %8198  ;;  %v1394_v13 = vadd.f32 %v8195_v52, %v1393_v14  ;;  %v6858_v14 = vld [vmem:[%s12388_s2 + $0xa0] sm:$0xf] }
 0x458   : > { %v1421_v1 = vmul.f32 %v8199_v61, %v1389_v43  ;;  %v1409_v7 = vadd.f32 %v8197_v58, %v1408_v25  ;;  %v8201_v40 = vpop.eup %8200  ;;  %vm1426_vm5 = vweird.f32 %v8199_v61  ;;  %v6887_v25 = vor.u32 %v7914_v24, %v6884_v55  ;;  %v7899_v24 = vld [vmem:[%s12388_s2 + $0x4c] sm:$0xf0] }
 0x459   : > { %v1398_v60 = vsel %vm1397_vm1, %v8195_v52, %v1394_v13  ;;  %vm1427_vm7 = vmor %vm1425_vm6, %vm1426_vm5  ;;  %v6859_v9 = vor.u32 %v7911_v18, %v6858_v14  ;;  %v6860_v13 = vld [vmem:[%s12388_s2 + $0xb0] sm:$0xf0] }
 0x45a   : > { %v1422_v46 = vsub.f32 1.0, %v1421_v1  ;;  %v1403_v5 = vsel %vm1400_vm3, %v1402_v54, %v1398_v60  ;;  %v1413_v15 = vsel %vm1412_vm2, %v8197_v58, %v1409_v7  ;;  %v6876_v58 = vld [vmem:[%s12388_s2 + $0xd0] sm:$0xf0]  ;;  %v6866_v1 = vld [vmem:[%s12388_s2 + $0xa8] sm:$0xf] }
 0x45b   : > { %v1418_v12 = vsel %vm1415_vm4, %v1417_v8, %v1413_v15  ;;  %v1437_v49 = vmul.f32 %v8201_v40, %v1403_v5  ;;  %v6879_v0 = vor.u32 %v7913_v42, %v6876_v58  ;;  %v7912_v60 = vld [vmem:[%s12388_s2 + $0xb4] sm:$0xf0]  ;;  %v7910_v40 = vld [vmem:[%s12388_s2 + $0xac] sm:$0xf]  ;;  %v12445_v42 = vld [vmem:[#allocation20_spill] sm:$0xff] }
 0x45c   : > { %v1423_v57 = vmul.f32 %v8199_v61, %v1422_v46  ;;  %v1436_v22 = vmul.f32 %v1418_v12, %v9351_v6  ;;  %v6890_v6 = vld [vmem:[%s12388_s2 + $0xe0] sm:$0xf]  ;;  %v6868_v46 = vld [vmem:[%s12388_s2 + $0xb8] sm:$0xf0]  ;;  %v6812_v18 = vld [vmem:[%s12388_s2 + $0x50] sm:$0xf0] }
 0x45d   : > { %v6891_v48 = vor.u32 %v7919_v38, %v6890_v6  ;;  %v12444_v5 = vld [vmem:[#allocation19_spill] sm:$0xff]  ;;  %v7906_v6 = vld [vmem:[%s12388_s2 + $0x8c] sm:$0xf] }
 0x45e   : > { %v9395_v31 = vadd.f32 %v1437_v49, %v1436_v22  ;;  %v1424_v33 = vadd.f32 %v8199_v61, %v1423_v57  ;;  %v6867_v57 = vor.u32 %v7912_v60, %v6866_v1  ;;  %v6871_v22 = vor.u32 %v7910_v40, %v6868_v46  ;;  %v6852_v38 = vld [vmem:[%s12388_s2 + $0x98] sm:$0xf0]  ;;  %v6794_v40 = vld [vmem:[%s12388_s2 + $0x20] sm:$0xf]  ;;  %v7895_v46 = vld [vmem:[%s12388_s2 + $0x2c] sm:$0xf0] }
 0x45f   : > { %v6855_v56 = vor.u32 %v7906_v6, %v6852_v38  ;;  %v6836_v58 = vld [vmem:[%s12388_s2 + $0x78] sm:$0xf0]  ;;  %v7894_v6 = vld [vmem:[%s12388_s2 + $0x2c] sm:$0xf] }
 0x460   : > { %8202 = vtanh.f32 %v9395_v31  ;;  %v1428_v21 = vsel %vm1427_vm7, %v8199_v61, %v1424_v33  ;;  %v7909_v61 = vld [vmem:[%s12388_s2 + $0xa4] sm:$0xf]  ;;  %v6842_v33 = vld [vmem:[%s12388_s2 + $0x80] sm:$0xf]  ;;  %v6804_v38 = vld [vmem:[%s12388_s2 + $0x38] sm:$0xf0] }
 0x461   : > { %v1433_v32 = vsel %vm1430_vm8, %v1432_v26, %v1428_v21  ;;  %v6863_v8 = vor.u32 %v7909_v61, %v6860_v13  ;;  %v6843_v21 = vor.u32 %v7907_v47, %v6842_v33  ;;  %v6844_v26 = vld [vmem:[%s12388_s2 + $0x90] sm:$0xf0] }
 0x466   : > { %v8203_v27 = vpop.eup %8202 }
 0x467   : > { %v1440_v36 = vmul.f32 %v8203_v27, %v1433_v32  ;;  %v6850_v27 = vld [vmem:[%s12388_s2 + $0x88] sm:$0xf]  ;;  %v7908_v32 = vld [vmem:[%s12388_s2 + $0x94] sm:$0xf0] }
 0x469   : > { %v1441_v37 = vpack.c.bf16 %v1440_v36, %v1440_v36 }
 0x46b   : > { %1442 = vst [vmem:[#allocation3 + $0x14] sm:$0xf] %v1441_v37  ;;  %1455 = vmatmul.bf16.vlgmr.msrb.gmra.mxu0 %v1441_v37  ;;  %1468 = vmatmul.bf16.vlgmr.msra.gmra.mxu1 %v1441_v37 }
 0x46c   : > { %1481 = vmatmul.bf16.vlgmr.msrb.gmra.mxu2 %v1441_v37  ;;  %1494 = vmatmul.bf16.vlgmr.msrb.gmra.mxu3 %v1441_v37  ;;  %v6847_v37 = vor.u32 %v7905_v17, %v6844_v26  ;;  %v6802_v26 = vld [vmem:[%s12388_s2 + $0x28] sm:$0xf] }
 0x46d   : > { %1928 = vmatpush.bf16.msrb.mxu0 %v6891_v48  ;;  %1957 = vmatpush.bf16.msra.mxu1 %v6895_v63  ;;  %v6851_v48 = vor.u32 %v7908_v32, %v6850_v27  ;;  %v7896_v27 = vld [vmem:[%s12388_s2 + $0x34] sm:$0xf0] }
 0x46e   : > { %1986 = vmatpush.bf16.msrb.mxu2 %v6899_v2  ;;  %2015 = vmatpush.bf16.msrb.mxu3 %v6903_v29  ;;  %v6834_v29 = vld [vmem:[%s12388_s2 + $0x68] sm:$0xf] }
 0x471   : > { %1929 = vmatpush.bf16.msrb.mxu0 %v6875_v53  ;;  %1958 = vmatpush.bf16.msra.mxu1 %v6879_v0  ;;  %v7902_v53 = vld [vmem:[%s12388_s2 + $0x6c] sm:$0xf]  ;;  %v6810_v0 = vld [vmem:[%s12388_s2 + $0x40] sm:$0xf] }
 0x472   : > { %1987 = vmatpush.bf16.msrb.mxu2 %v6883_v39  ;;  %2016 = vmatpush.bf16.msrb.mxu3 %v6887_v25  ;;  %v6839_v35 = vor.u32 %v7902_v53, %v6836_v58  ;;  %v7897_v39 = vld [vmem:[%s12388_s2 + $0x44] sm:$0xf]  ;;  %v6811_v14 = vor.u32 %v7899_v24, %v6810_v0  ;;  %v6818_v25 = vld [vmem:[%s12388_s2 + $0x48] sm:$0xf] }
 0x475   : > { %1930 = vmatpush.bf16.msrb.mxu0 %v6859_v9  ;;  %1959 = vmatpush.bf16.msra.mxu1 %v6863_v8  ;;  %v7900_v9 = vld [vmem:[%s12388_s2 + $0x54] sm:$0xf0] }
 0x476   : > { %1988 = vmatpush.bf16.msrb.mxu2 %v6867_v57  ;;  %2017 = vmatpush.bf16.msrb.mxu3 %v6871_v22  ;;  %v7893_v57 = vld [vmem:[%s12388_s2 + $0x24] sm:$0xf]  ;;  %v6796_v22 = vld [vmem:[%s12388_s2 + $0x30] sm:$0xf0] }
 0x479   : > { %1931 = vmatpush.bf16.msrb.mxu0 %v6843_v21  ;;  %1960 = vmatpush.bf16.msra.mxu1 %v6847_v37  ;;  %v6795_v21 = vor.u32 %v7895_v46, %v6794_v40  ;;  %v6803_v37 = vor.u32 %v7896_v27, %v6802_v26  ;;  %v7886_v40 = vld [vmem:[#allocation3 + $0x8] sm:$0xff] }
 0x47a   : > { %1989 = vmatpush.bf16.msrb.mxu2 %v6851_v48  ;;  %2018 = vmatpush.bf16.msrb.mxu3 %v6855_v56  ;;  %v7891_v56 = vld [vmem:[%s12388_s2 + $0xc] sm:$0xf0]  ;;  %v12448_v46 = vld [vmem:[#allocation5_spill] sm:$0xff] }
 0x47e   : > { %2019 = vmatpush.bf16.msrb.mxu3 %v6839_v35 }
 0x4e8   : > { %v1456_v59 = vpop.f32.mrf.mxu0  ;;  %v1469_v62 = vpop.f32.mrf.mxu1 }
 0x4e9   : > { %v1499_v19 = vadd.f32 %v1456_v59, %v12442_v16  ;;  %v1500_v28 = vadd.f32 %v1469_v62, %v12443_v20  ;;  %v6826_v62 = vld [vmem:[%s12388_s2 + $0x60] sm:$0xf]  ;;  %v7901_v16 = vld [vmem:[%s12388_s2 + $0x64] sm:$0xf] }
 0x4ea   : > { %v6827_v10 = vor.u32 %v7903_v4, %v6826_v62  ;;  %v7889_v62 = vld [vmem:[%s12388_s2 + $0x4] sm:$0xf] }
 0x4eb   : > { %v6753_v43 = vmul.f32 -1.442695, %v1499_v19  ;;  %v6754_v52 = vmul.f32 -1.442695, %v1500_v28  ;;  %v6828_v19 = vld [vmem:[%s12388_s2 + $0x70] sm:$0xf0] }
 0x4ec   : > { %v6831_v28 = vor.u32 %v7901_v16, %v6828_v19  ;;  %1932 = vmatpush.bf16.msrb.mxu0 %v6827_v10  ;;  %v6786_v16 = vld [vmem:[%s12388_s2 + $0x8] sm:$0xf]  ;;  %v7892_v19 = vld [vmem:[%s12388_s2 + $0x14] sm:$0xf0] }
 0x4ed   : > { %8204 = vpow2.f32 %v6753_v43 }
 0x4ee   : > { %8206 = vpow2.f32 %v6754_v52  ;;  %v6835_v52 = vor.u32 %v7904_v34, %v6834_v29  ;;  %1961 = vmatpush.bf16.msra.mxu1 %v6831_v28 }
 0x4ef   : > { %v1482_v54 = vpop.f32.mrf.mxu2  ;;  %v1495_v7 = vpop.f32.mrf.mxu3 }
 0x4f0   : > { %v1501_v15 = vadd.f32 %v1482_v54, %v12444_v5  ;;  %v1458_v12 = vpop.f32.mrf.mxu0  ;;  %v1471_v49 = vpop.f32.mrf.mxu1  ;;  %v1502_v43 = vadd.f32 %v1495_v7, %v12445_v42  ;;  %1990 = vmatpush.bf16.msrb.mxu2 %v6835_v52  ;;  %v7898_v54 = vld [vmem:[%s12388_s2 + $0x4c] sm:$0xf]  ;;  %v6820_v7 = vld [vmem:[%s12388_s2 + $0x58] sm:$0xf0]  ;;  %1933 = vmatpush.bf16.msrb.mxu0 %v6811_v14  ;;  %v6787_v52 = vor.u32 %v7892_v19, %v6786_v16  ;;  %v7034_v19 = vld [vmem:[%s12389_s3 + $0x1c0] sm:$0xf] }
 0x4f1   : > { %v6815_v12 = vor.u32 %v7897_v39, %v6812_v18  ;;  %v6819_v49 = vor.u32 %v7900_v9, %v6818_v25  ;;  %v6823_v17 = vor.u32 %v7898_v54, %v6820_v7 }
 0x4f2   : > { %v6755_v36 = vmul.f32 -1.442695, %v1501_v15 }
 0x4f3   : > { %v8205_v45 = vpop.eup %8204  ;;  %1962 = vmatpush.bf16.msra.mxu1 %v6815_v12  ;;  %2020 = vmatpush.bf16.msrb.mxu3 %v6823_v17 }
 0x4f4   : > { %v8207_v50 = vpop.eup %8206  ;;  %v9497_v51 = vadd.f32 1.0, %v8205_v45  ;;  %8208 = vpow2.f32 %v6755_v36  ;;  %1991 = vmatpush.bf16.msrb.mxu2 %v6819_v49  ;;  %v6799_v36 = vor.u32 %v7893_v57, %v6796_v22  ;;  %v6778_v45 = vld [vmem:[%s12388_s2] sm:$0xf]  ;;  %1934 = vmatpush.bf16.msrb.mxu0 %v6795_v21  ;;  %v12450_v21 = vld [vmem:[#allocation22_spill] sm:$0xff] }
 0x4f5   : > { %v9499_v59 = vadd.f32 1.0, %v8207_v50  ;;  %v6807_v50 = vor.u32 %v7894_v6, %v6804_v38  ;;  %v6779_v10 = vor.u32 %v7891_v56, %v6778_v45  ;;  %v438_v26 = vadd.f32 %v12450_v21, %v9118_v23  ;;  %v7052_v45 = vld [vmem:[%s12389_s3 + $0x1f0] sm:$0xf0]  ;;  %v7940_v21 = vld [vmem:[%s12389_s3 + $0x194] sm:$0xf0] }
 0x4f6   : > { %8210 = vrcp.f32 %v9497_v51  ;;  %v1524_v20 = vand.u32 2147483647, %v9497_v51  ;;  %v1526_v1 = vand.u32 2147483648, %v9497_v51  ;;  %vm1520_vm13 = vweird.f32 %v9497_v51 }
 0x4f7   : > { %8212 = vrcp.f32 %v9499_v59  ;;  %v1484_v63 = vpop.f32.mrf.mxu2  ;;  %v1497_v2 = vpop.f32.mrf.mxu3  ;;  %v1539_v60 = vand.u32 2147483647, %v9499_v59  ;;  %v1541_v15 = vand.u32 2147483648, %v9499_v59  ;;  %vm1535_vm12 = vweird.f32 %v9499_v59  ;;  %1963 = vmatpush.bf16.msra.mxu1 %v6799_v36  ;;  %2021 = vmatpush.bf16.msrb.mxu3 %v6807_v50  ;;  %v7949_v36 = vld [vmem:[%s12389_s3 + $0x1e4] sm:$0xf] }
 0x4f8   : > { %vm9579_vm9 = vcmp.eq.f32.partialorder %v1524_v20, 8.507059e+37  ;;  %v6780_v63 = vld [vmem:[%s12388_s2 + $0x10] sm:$0xf0]  ;;  %v7890_v20 = vld [vmem:[%s12388_s2 + $0xc] sm:$0xf]  ;;  %1992 = vmatpush.bf16.msrb.mxu2 %v6803_v37  ;;  %1935 = vmatpush.bf16.msrb.mxu0 %v6779_v10  ;;  %v9671_v56 = vor.u32 %v7949_v36, %v7052_v45 }
 0x4f9   : > { %v1542_v29 = vor.u32 1.1754944e-38, %v1541_v15  ;;  %vm1540_vm0 = vcmp.eq.f32.partialorder %v1539_v60, 8.507059e+37  ;;  %v7885_v60 = vld [vmem:[#allocation3] sm:$0xff]  ;;  %v12449_v15 = vld [vmem:[#allocation25_spill] sm:$0xff]  ;;  %v7952_v50 = vld [vmem:[%s12389_s3 + $0x1f4] sm:$0xf0] }
 0x4fa   : > { %v8209_v41 = vpop.eup %8208  ;;  %v409_v12 = vadd.f32 %v12449_v15, %v9132_v44  ;;  %v7951_v44 = vld [vmem:[%s12389_s3 + $0x1ec] sm:$0xf0]  ;;  %v7028_v36 = vld [vmem:[%s12389_s3 + $0x1b8] sm:$0xf0]  ;;  %v7933_v45 = vld [vmem:[%s12389_s3 + $0x164] sm:$0xf] }
 0x4fb   : > { %v9532_v11 = vadd.f32 1.0, %v8209_v41  ;;  %v6788_v41 = vld [vmem:[%s12388_s2 + $0x18] sm:$0xf0] }
 0x4fc   : > { %v9540_v55 = vpop.eup %8210  ;;  %v6791_v35 = vor.u32 %v7890_v20, %v6788_v41  ;;  %1993 = vmatpush.bf16.msrb.mxu2 %v6787_v52  ;;  %v7947_v20 = vld [vmem:[%s12389_s3 + $0x1cc] sm:$0xf0]  ;;  %v7042_v41 = vld [vmem:[%s12389_s3 + $0x1c8] sm:$0xf]  ;;  %v7948_v52 = vld [vmem:[%s12389_s3 + $0x1d4] sm:$0xf0] }
 0x4fd   : > { %v9551_v61 = vpop.eup %8212  ;;  %v1516_v13 = vmul.f32 %v9540_v55, %v9497_v51  ;;  %8214 = vrcp.f32 %v9532_v11  ;;  %vm1521_vm10 = vweird.f32 %v9540_v55  ;;  %v1527_v51 = vor.u32 1.1754944e-38, %v1526_v1 }
 0x4fe   : > { %v1531_v8 = vmul.f32 %v9551_v61, %v9499_v59  ;;  %8216 = vtanh.f32 %v1502_v43  ;;  %vm1536_vm11 = vweird.f32 %v9551_v61  ;;  %vm1522_vm14 = vmor %vm1520_vm13, %vm1521_vm10  ;;  %v6783_v43 = vor.u32 %v7889_v62, %v6780_v63  ;;  %2022 = vmatpush.bf16.msrb.mxu3 %v6791_v35  ;;  %v7950_v63 = vld [vmem:[%s12389_s3 + $0x1ec] sm:$0xf] }
 0x4ff   : > { %v1517_v5 = vsub.f32 1.0, %v1516_v13  ;;  %vm1537_vm15 = vmor %vm1535_vm12, %vm1536_vm11  ;;  %v1556_v9 = vand.u32 2147483648, %v9532_v11  ;;  %vm1550_vm2 = vweird.f32 %v9532_v11 }
 0x500   : > { %v1532_v33 = vsub.f32 1.0, %v1531_v8  ;;  %1964 = vmatpush.bf16.msra.mxu1 %v6783_v43 }
 0x501   : > { %v1518_v32 = vmul.f32 %v9540_v55, %v1517_v5  ;;  %v1557_v1 = vor.u32 1.1754944e-38, %v1556_v9  ;;  %v380_v5 = vadd.f32 %v12448_v46, %v9100_v3  ;;  %v7050_v3 = vld [vmem:[%s12389_s3 + $0x1e0] sm:$0xf] }
 0x502   : > { %v1533_v48 = vmul.f32 %v9551_v61, %v1532_v33  ;;  %v9660_v23 = vor.u32 %v7951_v44, %v7050_v3 }
 0x503   : > { %v8215_v2 = vpop.eup %8214  ;;  %v1519_v4 = vadd.f32 %v9540_v55, %v1518_v32 }
 0x504   : > { %v8217_v28 = vpop.eup %8216  ;;  %v1546_v59 = vmul.f32 %v8215_v2, %v9532_v11  ;;  %v1534_v34 = vadd.f32 %v9551_v61, %v1533_v48  ;;  %vm1551_vm1 = vweird.f32 %v8215_v2  ;;  %v7058_v48 = vld [vmem:[%s12389_s3 + $0x1e8] sm:$0xf] }
 0x505   : > { %v1523_v42 = vsel %vm1522_vm14, %v9540_v55, %v1519_v4  ;;  %vm1552_vm3 = vmor %vm1550_vm2, %vm1551_vm1  ;;  %v9673_v62 = vor.u32 %v7952_v50, %v7058_v48 }
 0x506   : > { %v1547_v53 = vsub.f32 1.0, %v1546_v59  ;;  %v1528_v58 = vsel %vm9579_vm9, %v1527_v51, %v1523_v42  ;;  %v1538_v0 = vsel %vm1537_vm15, %v9551_v61, %v1534_v34  ;;  %v1554_v61 = vand.u32 2147483647, %v9532_v11  ;;  %v7887_v11 = vld [vmem:[#allocation3 + $0x10] sm:$0xff] }
 0x507   : > { %v1543_v24 = vsel %vm1540_vm0, %v1542_v29, %v1538_v0  ;;  %v1562_v39 = vmul.f32 %v8217_v28, %v1528_v58  ;;  %v7945_v28 = vld [vmem:[%s12389_s3 + $0x1c4] sm:$0xf]  ;;  %v9697_v51 = vor.u32 %v7947_v20, %v7034_v19  ;;  %v7036_v34 = vld [vmem:[%s12389_s3 + $0x1d0] sm:$0xf0]  ;;  %v7044_v58 = vld [vmem:[%s12389_s3 + $0x1d8] sm:$0xf0] }
 0x508   : > { %v1548_v14 = vmul.f32 %v8215_v2, %v1547_v53  ;;  %v1561_v18 = vmul.f32 %v1543_v24, %v9395_v31  ;;  %vm1555_vm4 = vcmp.eq.f32.partialorder %v1554_v61, 8.507059e+37  ;;  %v9708_v43 = vor.u32 %v7945_v28, %v7036_v34  ;;  %v7946_v53 = vld [vmem:[%s12389_s3 + $0x1cc] sm:$0xf]  ;;  %v7018_v24 = vld [vmem:[%s12389_s3 + $0x1a0] sm:$0xf] }
 0x509   : > { %v9735_v9 = vor.u32 %v7946_v53, %v7044_v58  ;;  %v7938_v34 = vld [vmem:[%s12389_s3 + $0x18c] sm:$0xf]  ;;  %v6970_v53 = vld [vmem:[%s12389_s3 + $0x140] sm:$0xf]  ;;  %v7931_v58 = vld [vmem:[%s12389_s3 + $0x14c] sm:$0xf0] }
 0x50a   : > { %v9637_v55 = vadd.f32 %v1562_v39, %v1561_v18  ;;  %v1549_v25 = vadd.f32 %v8215_v2, %v1548_v14  ;;  %v9727_v14 = vor.u32 %v7948_v52, %v7042_v41  ;;  %v7943_v18 = vld [vmem:[%s12389_s3 + $0x1ac] sm:$0xf0]  ;;  %v7012_v52 = vld [vmem:[%s12389_s3 + $0x198] sm:$0xf0] }
 0x50c   : > { %8218 = vtanh.f32 %v9637_v55  ;;  %v1553_v13 = vsel %vm1552_vm3, %v8215_v2, %v1549_v25  ;;  %v7060_v2 = vld [vmem:[%s12389_s3 + $0x1f8] sm:$0xf0]  ;;  %v7941_v25 = vld [vmem:[%s12389_s3 + $0x1a4] sm:$0xf] }
 0x50d   : > { %v1558_v54 = vsel %vm1555_vm4, %v1557_v1, %v1553_v13  ;;  %v9682_v10 = vor.u32 %v7950_v63, %v7060_v2  ;;  %v7020_v13 = vld [vmem:[%s12389_s3 + $0x1b0] sm:$0xf0]  ;;  %v7026_v1 = vld [vmem:[%s12389_s3 + $0x1a8] sm:$0xf] }
 0x512   : > { %v8219_v31 = vpop.eup %8218 }
 0x513   : > { %v1565_v7 = vmul.f32 %v8219_v31, %v1558_v54  ;;  %v12451_v54 = vld [vmem:[#allocation23_spill] sm:$0xff] }
 0x515   : > { %v1566_v8 = vpack.c.bf16 %v1565_v7, %v1565_v7  ;;  %v467_v7 = vadd.f32 %v12451_v54, %v12432_v30  ;;  %v7939_v30 = vld [vmem:[%s12389_s3 + $0x18c] sm:$0xf0]  ;;  %v7934_v54 = vld [vmem:[%s12389_s3 + $0x16c] sm:$0xf] }
 0x517   : > { %1567 = vst [vmem:[#allocation3 + $0x18] sm:$0xf] %v1566_v8  ;;  %1580 = vmatmul.bf16.vlgmr.msra.gmra.mxu0 %v1566_v8  ;;  %1593 = vmatmul.bf16.vlgmr.msrb.gmra.mxu1 %v1566_v8 }
 0x518   : > { %1606 = vmatmul.bf16.vlgmr.msra.gmra.mxu2 %v1566_v8  ;;  %1619 = vmatmul.bf16.vlgmr.msra.gmra.mxu3 %v1566_v8  ;;  %v9747_v8 = vor.u32 %v7943_v18, %v7018_v24  ;;  %v7929_v18 = vld [vmem:[%s12389_s3 + $0x144] sm:$0xf] }
 0x519   : > { %2273 = vmatpush.bf16.msra.mxu0 %v9660_v23  ;;  %2286 = vmatpush.bf16.msrb.mxu1 %v9671_v56 }
 0x51a   : > { %2299 = vmatpush.bf16.msra.mxu2 %v9673_v62  ;;  %2312 = vmatpush.bf16.msra.mxu3 %v9682_v10 }
 0x51d   : > { %2274 = vmatpush.bf16.msra.mxu0 %v9697_v51  ;;  %2287 = vmatpush.bf16.msrb.mxu1 %v9708_v43 }
 0x51e   : > { %2300 = vmatpush.bf16.msra.mxu2 %v9727_v14  ;;  %2313 = vmatpush.bf16.msra.mxu3 %v9735_v9 }
 0x521   : > { %2275 = vmatpush.bf16.msra.mxu0 %v9747_v8 }
 0x527   : > { %1936 = vmatmul.bf16.vlgmr.msrb.gmra.mxu0 %v7885_v60  ;;  %1965 = vmatmul.bf16.vlgmr.msra.gmra.mxu1 %v7885_v60 }
 0x528   : > { %1994 = vmatmul.bf16.vlgmr.msrb.gmra.mxu2 %v7885_v60  ;;  %2023 = vmatmul.bf16.vlgmr.msrb.gmra.mxu3 %v7885_v60  ;;  %v9749_v60 = vor.u32 %v7941_v25, %v7020_v13  ;;  %v6972_v25 = vld [vmem:[%s12389_s3 + $0x150] sm:$0xf0] }
 0x52a   : > { %2288 = vmatpush.bf16.msrb.mxu1 %v9749_v60 }
 0x537   : > { %1941 = vmatmul.bf16.gmra.mxu0 %v7886_v40  ;;  %1970 = vmatmul.bf16.gmra.mxu1 %v7886_v40 }
 0x538   : > { %1999 = vmatmul.bf16.gmra.mxu2 %v7886_v40  ;;  %2028 = vmatmul.bf16.gmra.mxu3 %v7886_v40  ;;  %v7944_v40 = vld [vmem:[%s12389_s3 + $0x1b4] sm:$0xf0] }
 0x539   : > { %v9764_v15 = vor.u32 %v7944_v40, %v7026_v1 }
 0x53b   : > { %2301 = vmatpush.bf16.msra.mxu2 %v9764_v15 }
 0x547   : > { %1946 = vmatmul.bf16.gmra.mxu0 %v7887_v11  ;;  %1975 = vmatmul.bf16.gmra.mxu1 %v7887_v11 }
 0x548   : > { %2004 = vmatmul.bf16.gmra.mxu2 %v7887_v11  ;;  %2033 = vmatmul.bf16.gmra.mxu3 %v7887_v11  ;;  %v7002_v11 = vld [vmem:[%s12389_s3 + $0x180] sm:$0xf] }
 0x594   : > { %v1581_v49 = vpop.f32.mrf.mxu0  ;;  %v1594_v57 = vpop.f32.mrf.mxu1 }
 0x595   : > { %v1624_v22 = vadd.f32 %v1581_v49, %v380_v5  ;;  %v1625_v33 = vadd.f32 %v1594_v57, %v409_v12  ;;  %v7937_v12 = vld [vmem:[%s12389_s3 + $0x184] sm:$0xf]  ;;  %v7004_v49 = vld [vmem:[%s12389_s3 + $0x190] sm:$0xf0] }
 0x597   : > { %v6756_v47 = vmul.f32 -1.442695, %v1624_v22  ;;  %v6757_v17 = vmul.f32 -1.442695, %v1625_v33  ;;  %v9777_v33 = vor.u32 %v7939_v30, %v7002_v11 }
 0x599   : > { %8220 = vpow2.f32 %v6756_v47  ;;  %v9779_v47 = vor.u32 %v7937_v12, %v7004_v49  ;;  %2276 = vmatpush.bf16.msra.mxu0 %v9777_v33  ;;  %v9904_v49 = vor.u32 %v7929_v18, %v6972_v25  ;;  %v6946_v25 = vld [vmem:[%s12389_s3 + $0x108] sm:$0xf] }
 0x59a   : > { %8222 = vpow2.f32 %v6757_v17  ;;  %v7010_v17 = vld [vmem:[%s12389_s3 + $0x188] sm:$0xf] }
 0x59b   : > { %v1607_v27 = vpop.f32.mrf.mxu2  ;;  %v9649_v32 = vpop.f32.mrf.mxu3  ;;  %v9817_v63 = vor.u32 %v7940_v21, %v7010_v17  ;;  %2289 = vmatpush.bf16.msrb.mxu1 %v9779_v47  ;;  %v6954_v17 = vld [vmem:[%s12389_s3 + $0x120] sm:$0xf]  ;;  %v7927_v21 = vld [vmem:[%s12389_s3 + $0x12c] sm:$0xf0] }
 0x59c   : > { %v1626_v37 = vadd.f32 %v1607_v27, %v438_v26  ;;  %v1583_v6 = vpop.f32.mrf.mxu0  ;;  %v1596_v38 = vpop.f32.mrf.mxu1  ;;  %v1627_v22 = vadd.f32 %v9649_v32, %v467_v7  ;;  %v7942_v26 = vld [vmem:[%s12389_s3 + $0x1ac] sm:$0xf]  ;;  %v6996_v7 = vld [vmem:[%s12389_s3 + $0x178] sm:$0xf0] }
 0x59d   : > { %v6986_v6 = vld [vmem:[%s12389_s3 + $0x160] sm:$0xf]  ;;  %v7935_v38 = vld [vmem:[%s12389_s3 + $0x16c] sm:$0xf0]  ;;  %v9819_v2 = vor.u32 %v7942_v26, %v7028_v36  ;;  %2302 = vmatpush.bf16.msra.mxu2 %v9817_v63  ;;  %v7925_v26 = vld [vmem:[%s12389_s3 + $0x124] sm:$0xf] }
 0x59e   : > { %v6758_v4 = vmul.f32 -1.442695, %v1626_v37 }
 0x59f   : > { %v8221_v16 = vpop.eup %8220  ;;  %2314 = vmatpush.bf16.msra.mxu3 %v9819_v2 }
 0x5a0   : > { %v8223_v29 = vpop.eup %8222  ;;  %v9695_v59 = vadd.f32 1.0, %v8221_v16  ;;  %8224 = vpow2.f32 %v6758_v4  ;;  %v6988_v4 = vld [vmem:[%s12389_s3 + $0x170] sm:$0xf0]  ;;  %v6994_v16 = vld [vmem:[%s12389_s3 + $0x168] sm:$0xf] }
 0x5a1   : > { %v9706_v42 = vadd.f32 1.0, %v8223_v29  ;;  %v7936_v29 = vld [vmem:[%s12389_s3 + $0x174] sm:$0xf0] }
 0x5a2   : > { %8226 = vrcp.f32 %v9695_v59  ;;  %v1649_v39 = vand.u32 2147483647, %v9695_v59  ;;  %v1651_v61 = vand.u32 2147483648, %v9695_v59  ;;  %v9857_v24 = vor.u32 %v7936_v29, %v6994_v16  ;;  %v6938_v29 = vld [vmem:[%s12389_s3 + $0x100] sm:$0xf] }
 0x5a3   : > { %8228 = vrcp.f32 %v9706_v42  ;;  %v1609_v0 = vpop.f32.mrf.mxu2  ;;  %v1622_v35 = vpop.f32.mrf.mxu3  ;;  %v1666_v46 = vand.u32 2147483648, %v9706_v42  ;;  %v1664_v44 = vand.u32 2147483647, %v9706_v42  ;;  %vm1660_vm6 = vweird.f32 %v9706_v42 }
 0x5a4   : > { %vm9795_vm5 = vcmp.eq.f32.partialorder %v1649_v39, 8.507059e+37  ;;  %v1652_v50 = vor.u32 1.1754944e-38, %v1651_v61  ;;  %v9855_v35 = vor.u32 %v7933_v45, %v6988_v4  ;;  %v9859_v39 = vor.u32 %v7938_v34, %v7012_v52  ;;  %v6978_v61 = vld [vmem:[%s12389_s3 + $0x148] sm:$0xf]  ;;  %2303 = vmatpush.bf16.msra.mxu2 %v9857_v24  ;;  %v7926_v34 = vld [vmem:[%s12389_s3 + $0x12c] sm:$0xf] }
 0x5a5   : > { %v1667_v28 = vor.u32 1.1754944e-38, %v1666_v46  ;;  %vm1645_vm10 = vweird.f32 %v9695_v59  ;;  %vm9892_vm12 = vcmp.eq.f32.partialorder %v1664_v44, 8.507059e+37  ;;  %v9898_v46 = vor.u32 %v7931_v58, %v6970_v53  ;;  %v7921_v53 = vld [vmem:[%s12389_s3 + $0x104] sm:$0xf]  ;;  %v6940_v58 = vld [vmem:[%s12389_s3 + $0x110] sm:$0xf0] }
 0x5a6   : > { %v8225_v31 = vpop.eup %8224  ;;  %2290 = vmatpush.bf16.msrb.mxu1 %v9855_v35  ;;  %2315 = vmatpush.bf16.msra.mxu3 %v9859_v39 }
 0x5a7   : > { %v9762_v5 = vadd.f32 1.0, %v8225_v31  ;;  %v7932_v31 = vld [vmem:[%s12389_s3 + $0x154] sm:$0xf0] }
 0x5a8   : > { %v9772_v57 = vpop.eup %8226 }
 0x5a9   : > { %v9790_v27 = vpop.eup %8228  ;;  %v1641_v32 = vmul.f32 %v9772_v57, %v9695_v59  ;;  %8230 = vrcp.f32 %v9762_v5  ;;  %vm1646_vm9 = vweird.f32 %v9772_v57  ;;  %vm1675_vm14 = vweird.f32 %v9762_v5 }
 0x5aa   : > { %v1656_v37 = vmul.f32 %v9790_v27, %v9706_v42  ;;  %vm1661_vm7 = vweird.f32 %v9790_v27  ;;  %8232 = vtanh.f32 %v1627_v22  ;;  %v9842_v42 = vor.u32 %v7935_v38, %v6986_v6  ;;  %vm9887_vm11 = vmor %vm1645_vm10, %vm1646_vm9  ;;  %v6956_v6 = vld [vmem:[%s12389_s3 + $0x130] sm:$0xf0]  ;;  %v7930_v38 = vld [vmem:[%s12389_s3 + $0x14c] sm:$0xf]  ;;  %2291 = vmatpush.bf16.msrb.mxu1 %v9904_v49 }
 0x5ab   : > { %v1642_v48 = vsub.f32 1.0, %v1641_v32  ;;  %vm9827_vm8 = vmor %vm1660_vm6, %vm1661_vm7  ;;  %v9906_v22 = vor.u32 %v7934_v54, %v6996_v7  ;;  %v9949_v20 = vor.u32 %v7925_v26, %v6956_v6  ;;  %v1679_v54 = vand.u32 2147483647, %v9762_v5  ;;  %v1966_v6 = vpop.f32.mrf.mxu1 }
 0x5ac   : > { %v1657_v19 = vsub.f32 1.0, %v1656_v37  ;;  %2277 = vmatpush.bf16.msra.mxu0 %v9842_v42  ;;  %v9923_v37 = vor.u32 %v7932_v31, %v6978_v61  ;;  %v7924_v61 = vld [vmem:[%s12389_s3 + $0x114] sm:$0xf0]  ;;  %v9990_v7 = vor.u32 %v7921_v53, %v6940_v58 }
 0x5ad   : > { %v1643_v41 = vmul.f32 %v9772_v57, %v1642_v48  ;;  %v7928_v48 = vld [vmem:[%s12389_s3 + $0x134] sm:$0xf0]  ;;  %2316 = vmatpush.bf16.msra.mxu3 %v9906_v22  ;;  %v9995_v11 = vor.u32 %v7924_v61, %v6946_v25  ;;  %vm1680_vm0 = vcmp.eq.f32.partialorder %v1679_v54, 8.507059e+37 }
 0x5ae   : > { %v1658_v0 = vmul.f32 %v9790_v27, %v1657_v19  ;;  %v9945_v19 = vor.u32 %v7927_v21, %v6954_v17  ;;  %2304 = vmatpush.bf16.msra.mxu2 %v9923_v37  ;;  %2292 = vmatpush.bf16.msrb.mxu1 %v9949_v20 }
 0x5af   : > { %v9870_v13 = vpop.eup %8230  ;;  %v1644_v1 = vadd.f32 %v9772_v57, %v1643_v41 }
 0x5b0   : > { %v1671_v40 = vmul.f32 %v9870_v13, %v9762_v5  ;;  %v1659_v59 = vadd.f32 %v9790_v27, %v1658_v0  ;;  %v8233_v32 = vpop.eup %8232  ;;  %2278 = vmatpush.bf16.msra.mxu0 %v9898_v46  ;;  %v6964_v0 = vld [vmem:[%s12389_s3 + $0x138] sm:$0xf0]  ;;  %vm1676_vm13 = vweird.f32 %v9870_v13 }
 0x5b1   : > { %v1648_v12 = vsel %vm9887_vm11, %v9772_v57, %v1644_v1  ;;  %v1681_v1 = vand.u32 2147483648, %v9762_v5  ;;  %vm1677_vm15 = vmor %vm1675_vm14, %vm1676_vm13  ;;  %v6948_v5 = vld [vmem:[%s12389_s3 + $0x118] sm:$0xf0] }
 0x5b2   : > { %v1672_v57 = vsub.f32 1.0, %v1671_v40  ;;  %v1653_v44 = vsel %vm9795_vm5, %v1652_v50, %v1648_v12  ;;  %v1663_v36 = vsel %vm9827_vm8, %v9790_v27, %v1659_v59  ;;  %v6962_v27 = vld [vmem:[%s12389_s3 + $0x128] sm:$0xf]  ;;  %v6980_v50 = vld [vmem:[%s12389_s3 + $0x158] sm:$0xf0]  ;;  %v9992_v40 = vor.u32 %v7926_v34, %v6964_v0  ;;  %2293 = vmatpush.bf16.msrb.mxu1 %v9990_v7 }
 0x5b3   : > { %v1668_v3 = vsel %vm9892_vm12, %v1667_v28, %v1663_v36  ;;  %v1687_v45 = vmul.f32 %v8233_v32, %v1653_v44  ;;  %v9951_v28 = vor.u32 %v7930_v38, %v6980_v50  ;;  %v9963_v52 = vor.u32 %v7928_v48, %v6962_v27  ;;  %v7922_v59 = vld [vmem:[%s12389_s3 + $0x10c] sm:$0xf]  ;;  %v1937_v36 = vpop.f32.mrf.mxu0  ;;  %v1995_v38 = vpop.f32.mrf.mxu2 }
 0x5b4   : > { %v1673_v4 = vmul.f32 %v9870_v13, %v1672_v57  ;;  %v1686_v16 = vmul.f32 %v1668_v3, %v9637_v55  ;;  %v7923_v55 = vld [vmem:[%s12389_s3 + $0x10c] sm:$0xf0]  ;;  %2279 = vmatpush.bf16.msra.mxu0 %v9945_v19  ;;  %v1682_v12 = vor.u32 1.1754944e-38, %v1681_v1  ;;  %v10007_v17 = vor.u32 %v7922_v59, %v6948_v5  ;;  %v2024_v3 = vpop.f32.mrf.mxu3  ;;  %v10081_v27 = vpop.f32.mrf.mxu1 }
 0x5b5   : > { %v9984_v31 = vor.u32 %v7923_v55, %v6938_v29  ;;  %2317 = vmatpush.bf16.msra.mxu3 %v9951_v28  ;;  %2305 = vmatpush.bf16.msra.mxu2 %v9963_v52  ;;  %v12460_v44 = vmov 0  }
 0x5b6   : > { %v1688_v41 = vadd.f32 %v1687_v45, %v1686_v16  ;;  %v1674_v18 = vadd.f32 %v9870_v13, %v1673_v4  ;;  %2411 = vmatpush.bf16.msra.mxu1 %v9671_v56 }
 0x5b8   : > { %8234 = vtanh.f32 %v1688_v41  ;;  %v1678_v30 = vsel %vm1677_vm15, %v9870_v13, %v1674_v18  ;;  %2280 = vmatpush.bf16.msra.mxu0 %v9984_v31 }
 0x5b9   : > { %2318 = vmatpush.bf16.msra.mxu3 %v9992_v40  ;;  %v1683_v26 = vsel %vm1680_vm0, %v1682_v12, %v1678_v30  ;;  %2306 = vmatpush.bf16.msra.mxu2 %v9995_v11 }
 0x5ba   : > { %2412 = vmatpush.bf16.msra.mxu1 %v9708_v43 }
 0x5bb   : > { %v10079_v45 = vpop.f32.mrf.mxu0  ;;  %v10083_v48 = vpop.f32.mrf.mxu2 }
 0x5bc   : > { %2398 = vmatpush.bf16.msrb.mxu0 %v9660_v23  ;;  %v10085_v50 = vpop.f32.mrf.mxu3  ;;  %v10089_v16 = vpop.f32.mrf.mxu1 }
 0x5bd   : > { %2424 = vmatpush.bf16.msrb.mxu2 %v9673_v62  ;;  %2319 = vmatpush.bf16.msra.mxu3 %v10007_v17  ;;  %12461 = vst [vmem:[#allocation7_spill] sm:$0xff] %v10085_v50 }
 0x5be   : > { %v8235_v21 = vpop.eup %8234  ;;  %2413 = vmatpush.bf16.msra.mxu1 %v9749_v60  ;;  %12463 = vst [vmem:[#allocation15_spill] sm:$0xff] %v10089_v16 }
 0x5bf   : > { %v1690_v32 = vmul.f32 %v8235_v21, %v1683_v26 }
 0x5c0   : > { %2399 = vmatpush.bf16.msrb.mxu0 %v9697_v51 }
 0x5c1   : > { %v1691_v13 = vpack.c.bf16 %v1690_v32, %v1690_v32  ;;  %2437 = vmatpush.bf16.msrb.mxu3 %v9682_v10  ;;  %2425 = vmatpush.bf16.msrb.mxu2 %v9727_v14  ;;  %v6759_v32 = vld [vmem:[%s12390_s4 + $0x4] sm:$0xf] }
 0x5c2   : > { %2414 = vmatpush.bf16.msra.mxu1 %v9779_v47 }
 0x5c3   : > { %1692 = vst [vmem:[#allocation3 + $0x1c] sm:$0xf] %v1691_v13  ;;  %v10087_v4 = vpop.f32.mrf.mxu0  ;;  %v10091_v29 = vpop.f32.mrf.mxu2 }
 0x5c4   : > { %2400 = vmatpush.bf16.msrb.mxu0 %v9747_v8  ;;  %12462 = vst [vmem:[#allocation8_spill] sm:$0xff] %v10087_v4  ;;  %v10093_v55 = vpop.f32.mrf.mxu3  ;;  %v10097_v41 = vpop.f32.mrf.mxu1 }
 0x5c5   : > { %2438 = vmatpush.bf16.msrb.mxu3 %v9735_v9  ;;  %2426 = vmatpush.bf16.msrb.mxu2 %v9764_v15  ;;  %12464 = vst [vmem:[#allocation9_spill] sm:$0xff] %v10091_v29 }
 0x5c6   : > { %2415 = vmatpush.bf16.msra.mxu1 %v9855_v35  ;;  %12465 = vst [vmem:[#allocation6_spill] sm:$0xff] %v10093_v55 }
 0x5c7   : > { %12467 = vst [vmem:[#allocation11_spill] sm:$0xff] %v10097_v41 }
 0x5c8   : > { %2401 = vmatpush.bf16.msrb.mxu0 %v9777_v33 }
 0x5c9   : > { %2439 = vmatpush.bf16.msrb.mxu3 %v9819_v2  ;;  %2427 = vmatpush.bf16.msrb.mxu2 %v9817_v63 }
 0x5ca   : > { %v7888_v57 = vld [vmem:[#allocation3 + $0x18] sm:$0xff]  ;;  %2416 = vmatpush.bf16.msra.mxu1 %v9904_v49 }
 0x5cb   : > { %1951 = vmatmul.bf16.gmra.mxu0 %v7888_v57  ;;  %1980 = vmatmul.bf16.gmra.mxu1 %v7888_v57  ;;  %v10095_v34 = vpop.f32.mrf.mxu0  ;;  %v10099_v53 = vpop.f32.mrf.mxu2 }
 0x5cc   : > { %2009 = vmatmul.bf16.gmra.mxu2 %v7888_v57  ;;  %2038 = vmatmul.bf16.gmra.mxu3 %v7888_v57  ;;  %12466 = vst [vmem:[#allocation10_spill] sm:$0xff] %v10095_v34  ;;  %v10101_v58 = vpop.f32.mrf.mxu3  ;;  %v10105_v18 = vpop.f32.mrf.mxu1 }
 0x5cd   : > { %2440 = vmatpush.bf16.msrb.mxu3 %v9859_v39  ;;  %2402 = vmatpush.bf16.msrb.mxu0 %v9842_v42  ;;  %12468 = vst [vmem:[#allocation18_spill] sm:$0xff] %v10099_v53 }
 0x5ce   : > { %2428 = vmatpush.bf16.msrb.mxu2 %v9857_v24  ;;  %2417 = vmatpush.bf16.msra.mxu1 %v9949_v20  ;;  %12469 = vst [vmem:[#allocation12_spill] sm:$0xff] %v10101_v58 }
 0x5cf   : > { %12471 = vst [vmem:[#allocation14_spill] sm:$0xff] %v10105_v18 }
 0x5d1   : > { %2441 = vmatpush.bf16.msrb.mxu3 %v9906_v22  ;;  %2403 = vmatpush.bf16.msrb.mxu0 %v9898_v46 }
 0x5d2   : > { %2429 = vmatpush.bf16.msrb.mxu2 %v9923_v37  ;;  %2418 = vmatpush.bf16.msra.mxu1 %v9990_v7 }
 0x5d3   : > { %v10103_v0 = vpop.f32.mrf.mxu0  ;;  %v10107_v25 = vpop.f32.mrf.mxu2 }
 0x5d4   : > { %12470 = vst [vmem:[#allocation13_spill] sm:$0xff] %v10103_v0  ;;  %v10109_v61 = vpop.f32.mrf.mxu3  ;;  %v10113_v54 = vpop.f32.mrf.mxu1 }
 0x5d5   : > { %2442 = vmatpush.bf16.msrb.mxu3 %v9951_v28  ;;  %2404 = vmatpush.bf16.msrb.mxu0 %v9945_v19  ;;  %12472 = vst [vmem:[#allocation21_spill] sm:$0xff] %v10107_v25  ;;  %v10144_v25 = vperm.slane %v6759_v32, 2 }
 0x5d6   : > { %2430 = vmatpush.bf16.msrb.mxu2 %v9963_v52  ;;  %12473 = vst [vmem:[#allocation16_spill] sm:$0xff] %v10109_v61 }
 0x5d7   : > { %12475 = vst [vmem:[#allocation4_spill] sm:$0xff] %v10113_v54  ;;  %v1996_v18 = vadd.f32 %v1995_v38, %v10144_v25 }
 0x5d9   : > { %2443 = vmatpush.bf16.msrb.mxu3 %v9992_v40  ;;  %2405 = vmatpush.bf16.msrb.mxu0 %v9984_v31 }
 0x5da   : > { %2431 = vmatpush.bf16.msrb.mxu2 %v9995_v11 }
 0x5db   : > { %2281 = vmatmul.bf16.vlgmr.msra.gmra.mxu0 %v12460_v44  ;;  %2294 = vmatmul.bf16.vlgmr.msrb.gmra.mxu1 %v12460_v44  ;;  %v10111_v1 = vpop.f32.mrf.mxu0  ;;  %v10115_v59 = vpop.f32.mrf.mxu2 }
 0x5dc   : > { %2307 = vmatmul.bf16.vlgmr.msra.gmra.mxu2 %v12460_v44  ;;  %2320 = vmatmul.bf16.vlgmr.msra.gmra.mxu3 %v12460_v44  ;;  %12474 = vst [vmem:[#allocation17_spill] sm:$0xff] %v10111_v1  ;;  %v10117_v5 = vpop.f32.mrf.mxu3  ;;  %v10134_v44 = vperm.slane %v6759_v32, 0 }
 0x5dd   : > { %2444 = vmatpush.bf16.msrb.mxu3 %v10007_v17  ;;  %2523 = vmatpush.bf16.msra.mxu0 %v9660_v23  ;;  %12476 = vst [vmem:[#allocation24_spill] sm:$0xff] %v10115_v59  ;;  %v10136_v59 = vperm.slane %v6759_v32, 1 }
 0x5de   : > { %2536 = vmatpush.bf16.msrb.mxu1 %v9671_v56  ;;  %2549 = vmatpush.bf16.msra.mxu2 %v9673_v62  ;;  %12477 = vst [vmem:[#allocation19_spill] sm:$0xff] %v10117_v5 }
 0x5e1   : > { %2562 = vmatpush.bf16.msra.mxu3 %v9682_v10  ;;  %2524 = vmatpush.bf16.msra.mxu0 %v9697_v51 }
 0x5e2   : > { %2537 = vmatpush.bf16.msrb.mxu1 %v9708_v43  ;;  %2550 = vmatpush.bf16.msra.mxu2 %v9727_v14 }
 0x5e5   : > { %2563 = vmatpush.bf16.msra.mxu3 %v9735_v9  ;;  %2525 = vmatpush.bf16.msra.mxu0 %v9747_v8 }
 0x5e6   : > { %2538 = vmatpush.bf16.msrb.mxu1 %v9749_v60  ;;  %2551 = vmatpush.bf16.msra.mxu2 %v9764_v15 }
 0x5e9   : > { %2564 = vmatpush.bf16.msra.mxu3 %v9819_v2  ;;  %2526 = vmatpush.bf16.msra.mxu0 %v9777_v33 }
 0x5ea   : > { %2539 = vmatpush.bf16.msrb.mxu1 %v9779_v47  ;;  %2552 = vmatpush.bf16.msra.mxu2 %v9817_v63 }
 0x5ed   : > { %2565 = vmatpush.bf16.msra.mxu3 %v9859_v39  ;;  %2527 = vmatpush.bf16.msra.mxu0 %v9842_v42 }
 0x5ee   : > { %2540 = vmatpush.bf16.msrb.mxu1 %v9855_v35  ;;  %2553 = vmatpush.bf16.msra.mxu2 %v9857_v24 }
 0x5f1   : > { %2566 = vmatpush.bf16.msra.mxu3 %v9906_v22  ;;  %2528 = vmatpush.bf16.msra.mxu0 %v9898_v46 }
 0x5f2   : > { %2541 = vmatpush.bf16.msrb.mxu1 %v9904_v49  ;;  %2554 = vmatpush.bf16.msra.mxu2 %v9923_v37 }
 0x5f5   : > { %2567 = vmatpush.bf16.msra.mxu3 %v9951_v28  ;;  %2529 = vmatpush.bf16.msra.mxu0 %v9945_v19 }
 0x5f6   : > { %2542 = vmatpush.bf16.msrb.mxu1 %v9949_v20  ;;  %2555 = vmatpush.bf16.msra.mxu2 %v9963_v52 }
 0x5f9   : > { %2568 = vmatpush.bf16.msra.mxu3 %v9992_v40  ;;  %2530 = vmatpush.bf16.msra.mxu0 %v9984_v31 }
 0x5fa   : > { %2543 = vmatpush.bf16.msrb.mxu1 %v9990_v7  ;;  %2556 = vmatpush.bf16.msra.mxu2 %v9995_v11 }
 0x5fd   : > { %2569 = vmatpush.bf16.msra.mxu3 %v10007_v17 }
 0x648   : > { %v10119_v30 = vpop.f32.mrf.mxu0  ;;  %v10121_v12 = vpop.f32.mrf.mxu1 }
 0x649   : > { %12478 = vst [vmem:[#allocation20_spill] sm:$0xff] %v10119_v30  ;;  %v1938_v30 = vadd.f32 %v1937_v36, %v10134_v44 }
 0x64a   : > { %12479 = vst [vmem:[#allocation5_spill] sm:$0xff] %v10121_v12  ;;  %v1967_v12 = vadd.f32 %v1966_v6, %v10136_v59 }
 0x64f   : > { %v10123_v21 = vpop.f32.mrf.mxu2  ;;  %v10125_v26 = vpop.f32.mrf.mxu3 }
 0x650   : > { %12480 = vst [vmem:[#allocation25_spill] sm:$0xff] %v10123_v21  ;;  %v10130_v13 = vpop.f32.mrf.mxu0  ;;  %v10132_v57 = vpop.f32.mrf.mxu1 }
 0x651   : > { %12481 = vst [vmem:[#allocation22_spill] sm:$0xff] %v10125_v26 }
 0x652   : > { %12482 = vst [vmem:[#allocation23_spill] sm:$0xff] %v10130_v13 }
 0x653   : > { %12483 = vst [vmem:[#allocation26_spill] sm:$0xff] %v10132_v57 }
 0x657   : > { %v10140_v5 = vpop.f32.mrf.mxu2  ;;  %v10142_v21 = vpop.f32.mrf.mxu3 }
 0x658   : > { %12484 = vst [vmem:[#allocation27_spill] sm:$0xff] %v10140_v5  ;;  %v2282_v26 = vpop.f32.mrf.mxu0  ;;  %v2295_v54 = vpop.f32.mrf.mxu1 }
 0x659   : > { %12485 = vst [vmem:[#allocation28_spill] sm:$0xff] %v10142_v21  ;;  %v2325_v1 = vadd.f32 %v2282_v26, %v1938_v30  ;;  %v2326_v61 = vadd.f32 %v2295_v54, %v1967_v12  ;;  %v10147_v54 = vperm.slane %v6759_v32, 3 }
 0x65b   : > { %v7064_v13 = vmul.f32 -1.442695, %v2325_v1  ;;  %v7065_v57 = vmul.f32 -1.442695, %v2326_v61  ;;  %12486 = vst [vmem:[#allocation29_spill] sm:$0xff] %v10147_v54  ;;  %v2025_v38 = vadd.f32 %v2024_v3, %v10147_v54 }
 0x65d   : > { %8236 = vpow2.f32 %v7064_v13 }
 0x65e   : > { %8238 = vpow2.f32 %v7065_v57 }
 0x65f   : > { %v2308_v0 = vpop.f32.mrf.mxu2  ;;  %v2321_v36 = vpop.f32.mrf.mxu3 }
 0x660   : > { %v2327_v58 = vadd.f32 %v2308_v0, %v1996_v18  ;;  %v2284_v6 = vpop.f32.mrf.mxu0  ;;  %v2297_v53 = vpop.f32.mrf.mxu1  ;;  %v2328_v0 = vadd.f32 %v2321_v36, %v2025_v38 }
 0x662   : > { %v7066_v5 = vmul.f32 -1.442695, %v2327_v58 }
 0x663   : > { %v8237_v41 = vpop.eup %8236 }
 0x664   : > { %v8239_v21 = vpop.eup %8238  ;;  %v2338_v34 = vadd.f32 1.0, %v8237_v41  ;;  %8240 = vpow2.f32 %v7066_v5 }
 0x665   : > { %v2339_v30 = vadd.f32 1.0, %v8239_v21 }
 0x666   : > { %8242 = vrcp.f32 %v2338_v34  ;;  %v2352_v5 = vand.u32 2147483648, %v2338_v34  ;;  %v2350_v6 = vand.u32 2147483647, %v2338_v34  ;;  %vm2346_vm3 = vweird.f32 %v2338_v34 }
 0x667   : > { %8244 = vrcp.f32 %v2339_v30  ;;  %v2310_v61 = vpop.f32.mrf.mxu2  ;;  %v2323_v1 = vpop.f32.mrf.mxu3  ;;  %v2367_v21 = vand.u32 2147483648, %v2339_v30  ;;  %vm2361_vm4 = vweird.f32 %v2339_v30 }
 0x668   : > { %v2365_v1 = vand.u32 2147483647, %v2339_v30  ;;  %vm2351_vm6 = vcmp.eq.f32.partialorder %v2350_v6, 8.507059e+37 }
 0x669   : > { %v2368_v29 = vor.u32 1.1754944e-38, %v2367_v21 }
 0x66a   : > { %v8241_v12 = vpop.eup %8240  ;;  %vm2366_vm8 = vcmp.eq.f32.partialorder %v2365_v1, 8.507059e+37 }
 0x66b   : > { %v2340_v26 = vadd.f32 1.0, %v8241_v12  ;;  %v2353_v12 = vor.u32 1.1754944e-38, %v2352_v5 }
 0x66c   : > { %v8243_v13 = vpop.eup %8242 }
 0x66d   : > { %v8245_v18 = vpop.eup %8244  ;;  %v2342_v53 = vmul.f32 %v8243_v13, %v2338_v34  ;;  %8246 = vrcp.f32 %v2340_v26  ;;  %vm2347_vm1 = vweird.f32 %v8243_v13  ;;  %vm2376_vm10 = vweird.f32 %v2340_v26 }
 0x66e   : > { %v2357_v58 = vmul.f32 %v8245_v18, %v2339_v30  ;;  %8248 = vtanh.f32 %v2328_v0  ;;  %vm2362_vm2 = vweird.f32 %v8245_v18  ;;  %vm2348_vm5 = vmor %vm2346_vm3, %vm2347_vm1  ;;  %v2382_v30 = vand.u32 2147483648, %v2340_v26 }
 0x66f   : > { %v2343_v57 = vsub.f32 1.0, %v2342_v53  ;;  %vm2363_vm7 = vmor %vm2361_vm4, %vm2362_vm2 }
 0x670   : > { %v2358_v41 = vsub.f32 1.0, %v2357_v58  ;;  %v2383_v21 = vor.u32 1.1754944e-38, %v2382_v30 }
 0x671   : > { %v2344_v32 = vmul.f32 %v8243_v13, %v2343_v57 }
 0x672   : > { %v2359_v61 = vmul.f32 %v8245_v18, %v2358_v41 }
 0x673   : > { %v8247_v55 = vpop.eup %8246  ;;  %v2345_v3 = vadd.f32 %v8243_v13, %v2344_v32 }
 0x674   : > { %v2372_v36 = vmul.f32 %v8247_v55, %v2340_v26  ;;  %v2360_v38 = vadd.f32 %v8245_v18, %v2359_v61  ;;  %v8249_v0 = vpop.eup %8248  ;;  %vm2377_vm9 = vweird.f32 %v8247_v55 }
 0x675   : > { %v2349_v53 = vsel %vm2348_vm5, %v8243_v13, %v2345_v3  ;;  %v2380_v13 = vand.u32 2147483647, %v2340_v26  ;;  %vm2378_vm11 = vmor %vm2376_vm10, %vm2377_vm9 }
 0x676   : > { %v2373_v58 = vsub.f32 1.0, %v2372_v36  ;;  %v2354_v57 = vsel %vm2351_vm6, %v2353_v12, %v2349_v53  ;;  %v2364_v16 = vsel %vm2363_vm7, %v8245_v18, %v2360_v38  ;;  %v1998_v36 = vadd.f32 %v10083_v48, %v10144_v25 }
 0x677   : > { %v2369_v41 = vsel %vm2366_vm8, %v2368_v29, %v2364_v16  ;;  %v2388_v4 = vmul.f32 %v8249_v0, %v2354_v57  ;;  %vm2381_vm12 = vcmp.eq.f32.partialorder %v2380_v13, 8.507059e+37 }
 0x678   : > { %v2374_v50 = vmul.f32 %v8247_v55, %v2373_v58  ;;  %v2387_v54 = vmul.f32 0.0, %v2369_v41 }
 0x67a   : > { %v10150_v32 = vadd.f32 %v2388_v4, %v2387_v54  ;;  %v2375_v34 = vadd.f32 %v8247_v55, %v2374_v50  ;;  %v1940_v50 = vadd.f32 %v10079_v45, %v10134_v44  ;;  %v1969_v4 = vadd.f32 %v10081_v27, %v10136_v59 }
 0x67c   : > { %8250 = vtanh.f32 %v10150_v32  ;;  %v2379_v5 = vsel %vm2378_vm11, %v8247_v55, %v2375_v34 }
 0x67d   : > { %v2384_v18 = vsel %vm2381_vm12, %v2383_v21, %v2379_v5  ;;  %v12487_v21 = vld [vmem:[#allocation29_spill] sm:$0xff] }
 0x682   : > { %v8251_v6 = vpop.eup %8250 }
 0x683   : > { %v2391_v61 = vmul.f32 %v8251_v6, %v2384_v18  ;;  %v12488_v6 = vld [vmem:[#allocation7_spill] sm:$0xff] }
 0x684   : > { %v2027_v48 = vadd.f32 %v12488_v6, %v12487_v21 }
 0x685   : > { %v2392_v16 = vpack.c.bf16 %v2391_v61, %v2391_v61 }
 0x687   : > { %2393 = vst [vmem:[#allocation3] sm:$0xf] %v2392_v16  ;;  %2406 = vmatmul.bf16.vlgmr.msrb.gmra.mxu0 %v2392_v16  ;;  %2419 = vmatmul.bf16.vlgmr.msra.gmra.mxu1 %v2392_v16 }
 0x688   : > { %2432 = vmatmul.bf16.vlgmr.msrb.gmra.mxu2 %v2392_v16  ;;  %2445 = vmatmul.bf16.vlgmr.msrb.gmra.mxu3 %v2392_v16 }
 0x689   : > { %2648 = vmatpush.bf16.msrb.mxu0 %v9660_v23  ;;  %2661 = vmatpush.bf16.msra.mxu1 %v9671_v56 }
 0x68a   : > { %2674 = vmatpush.bf16.msrb.mxu2 %v9673_v62  ;;  %2687 = vmatpush.bf16.msrb.mxu3 %v9682_v10 }
 0x68d   : > { %2649 = vmatpush.bf16.msrb.mxu0 %v9697_v51  ;;  %2662 = vmatpush.bf16.msra.mxu1 %v9708_v43 }
 0x68e   : > { %2675 = vmatpush.bf16.msrb.mxu2 %v9727_v14  ;;  %2688 = vmatpush.bf16.msrb.mxu3 %v9735_v9 }
 0x691   : > { %2650 = vmatpush.bf16.msrb.mxu0 %v9747_v8  ;;  %2663 = vmatpush.bf16.msra.mxu1 %v9749_v60 }
 0x692   : > { %2676 = vmatpush.bf16.msrb.mxu2 %v9764_v15  ;;  %2689 = vmatpush.bf16.msrb.mxu3 %v9819_v2 }
 0x695   : > { %2651 = vmatpush.bf16.msrb.mxu0 %v9777_v33  ;;  %2664 = vmatpush.bf16.msra.mxu1 %v9779_v47 }
 0x696   : > { %2677 = vmatpush.bf16.msrb.mxu2 %v9817_v63  ;;  %2690 = vmatpush.bf16.msrb.mxu3 %v9859_v39 }
 0x699   : > { %2652 = vmatpush.bf16.msrb.mxu0 %v9842_v42  ;;  %2665 = vmatpush.bf16.msra.mxu1 %v9855_v35 }
 0x69a   : > { %2678 = vmatpush.bf16.msrb.mxu2 %v9857_v24  ;;  %2691 = vmatpush.bf16.msrb.mxu3 %v9906_v22 }
 0x69d   : > { %2653 = vmatpush.bf16.msrb.mxu0 %v9898_v46  ;;  %2666 = vmatpush.bf16.msra.mxu1 %v9904_v49 }
 0x69e   : > { %2679 = vmatpush.bf16.msrb.mxu2 %v9923_v37  ;;  %2692 = vmatpush.bf16.msrb.mxu3 %v9951_v28 }
 0x6a1   : > { %2654 = vmatpush.bf16.msrb.mxu0 %v9945_v19  ;;  %2667 = vmatpush.bf16.msra.mxu1 %v9949_v20 }
 0x6a2   : > { %2680 = vmatpush.bf16.msrb.mxu2 %v9963_v52  ;;  %2693 = vmatpush.bf16.msrb.mxu3 %v9992_v40 }
 0x6a5   : > { %2655 = vmatpush.bf16.msrb.mxu0 %v9984_v31  ;;  %2668 = vmatpush.bf16.msra.mxu1 %v9990_v7 }
 0x6a6   : > { %2681 = vmatpush.bf16.msrb.mxu2 %v9995_v11  ;;  %2694 = vmatpush.bf16.msrb.mxu3 %v10007_v17 }
 0x704   : > { %v2407_v29 = vpop.f32.mrf.mxu0  ;;  %v2420_v55 = vpop.f32.mrf.mxu1 }
 0x705   : > { %v2450_v54 = vadd.f32 %v2407_v29, %v1940_v50  ;;  %v2451_v26 = vadd.f32 %v2420_v55, %v1969_v4 }
 0x707   : > { %v7067_v1 = vmul.f32 -1.442695, %v2450_v54  ;;  %v7068_v3 = vmul.f32 -1.442695, %v2451_v26 }
 0x709   : > { %8252 = vpow2.f32 %v7067_v1 }
 0x70a   : > { %8254 = vpow2.f32 %v7068_v3 }
 0x70b   : > { %v2433_v12 = vpop.f32.mrf.mxu2  ;;  %v2446_v38 = vpop.f32.mrf.mxu3 }
 0x70c   : > { %v2452_v53 = vadd.f32 %v2433_v12, %v1998_v36  ;;  %v2409_v0 = vpop.f32.mrf.mxu0  ;;  %v2422_v58 = vpop.f32.mrf.mxu1  ;;  %v2453_v16 = vadd.f32 %v2446_v38, %v2027_v48 }
 0x70e   : > { %v7069_v45 = vmul.f32 -1.442695, %v2452_v53 }
 0x70f   : > { %v8253_v57 = vpop.eup %8252 }
 0x710   : > { %v8255_v41 = vpop.eup %8254  ;;  %v2463_v27 = vadd.f32 1.0, %v8253_v57  ;;  %8256 = vpow2.f32 %v7069_v45 }
 0x711   : > { %v2464_v34 = vadd.f32 1.0, %v8255_v41 }
 0x712   : > { %8258 = vrcp.f32 %v2463_v27  ;;  %v2477_v26 = vand.u32 2147483648, %v2463_v27  ;;  %v2475_v36 = vand.u32 2147483647, %v2463_v27  ;;  %vm2471_vm15 = vweird.f32 %v2463_v27 }
 0x713   : > { %8260 = vrcp.f32 %v2464_v34  ;;  %v2435_v30 = vpop.f32.mrf.mxu2  ;;  %v2448_v13 = vpop.f32.mrf.mxu3  ;;  %v2492_v1 = vand.u32 2147483648, %v2464_v34  ;;  %v2490_v53 = vand.u32 2147483647, %v2464_v34  ;;  %vm2486_vm0 = vweird.f32 %v2464_v34 }
 0x714   : > { %v2478_v45 = vor.u32 1.1754944e-38, %v2477_v26  ;;  %vm2476_vm3 = vcmp.eq.f32.partialorder %v2475_v36, 8.507059e+37 }
 0x715   : > { %v2493_v41 = vor.u32 1.1754944e-38, %v2492_v1  ;;  %vm2491_vm4 = vcmp.eq.f32.partialorder %v2490_v53, 8.507059e+37  ;;  %v12490_v53 = vld [vmem:[#allocation15_spill] sm:$0xff] }
 0x716   : > { %v8257_v5 = vpop.eup %8256 }
 0x717   : > { %v2465_v18 = vadd.f32 1.0, %v8257_v5 }
 0x718   : > { %v8259_v61 = vpop.eup %8258 }
 0x719   : > { %v8261_v50 = vpop.eup %8260  ;;  %v2467_v4 = vmul.f32 %v8259_v61, %v2463_v27  ;;  %8262 = vrcp.f32 %v2465_v18  ;;  %vm2472_vm13 = vweird.f32 %v8259_v61  ;;  %vm2501_vm6 = vweird.f32 %v2465_v18 }
 0x71a   : > { %v2482_v29 = vmul.f32 %v8261_v50, %v2464_v34  ;;  %8264 = vtanh.f32 %v2453_v16  ;;  %vm2487_vm14 = vweird.f32 %v8261_v50  ;;  %vm2473_vm1 = vmor %vm2471_vm15, %vm2472_vm13 }
 0x71b   : > { %v2468_v55 = vsub.f32 1.0, %v2467_v4  ;;  %vm2488_vm2 = vmor %vm2486_vm0, %vm2487_vm14 }
 0x71c   : > { %v2483_v54 = vsub.f32 1.0, %v2482_v29 }
 0x71d   : > { %v2469_v3 = vmul.f32 %v8259_v61, %v2468_v55 }
 0x71e   : > { %v2484_v12 = vmul.f32 %v8261_v50, %v2483_v54  ;;  %v2507_v54 = vand.u32 2147483648, %v2465_v18 }
 0x71f   : > { %v8263_v0 = vpop.eup %8262  ;;  %v2470_v58 = vadd.f32 %v8259_v61, %v2469_v3 }
 0x720   : > { %v2497_v38 = vmul.f32 %v8263_v0, %v2465_v18  ;;  %v2485_v57 = vadd.f32 %v8261_v50, %v2484_v12  ;;  %v8265_v13 = vpop.eup %8264  ;;  %vm2502_vm5 = vweird.f32 %v8263_v0  ;;  %v2508_v1 = vor.u32 1.1754944e-38, %v2507_v54 }
 0x721   : > { %v2474_v30 = vsel %vm2473_vm1, %v8259_v61, %v2470_v58  ;;  %v2505_v61 = vand.u32 2147483647, %v2465_v18  ;;  %vm2503_vm7 = vmor %vm2501_vm6, %vm2502_vm5 }
 0x722   : > { %v2498_v5 = vsub.f32 1.0, %v2497_v38  ;;  %v2479_v6 = vsel %vm2476_vm3, %v2478_v45, %v2474_v30  ;;  %v2489_v48 = vsel %vm2488_vm2, %v8261_v50, %v2485_v57 }
 0x723   : > { %v2494_v16 = vsel %vm2491_vm4, %v2493_v41, %v2489_v48  ;;  %v2513_v4 = vmul.f32 %v8265_v13, %v2479_v6  ;;  %vm2506_vm8 = vcmp.eq.f32.partialorder %v2505_v61, 8.507059e+37  ;;  %v12491_v13 = vld [vmem:[#allocation9_spill] sm:$0xff] }
 0x724   : > { %v2499_v29 = vmul.f32 %v8263_v0, %v2498_v5  ;;  %v2512_v55 = vmul.f32 %v2494_v16, %v10150_v32  ;;  %v12489_v32 = vld [vmem:[#allocation8_spill] sm:$0xff]  ;;  %v2001_v5 = vadd.f32 %v12491_v13, %v10144_v25 }
 0x725   : > { %v1943_v18 = vadd.f32 %v12489_v32, %v10134_v44 }
 0x726   : > { %v10194_v27 = vadd.f32 %v2513_v4, %v2512_v55  ;;  %v2500_v34 = vadd.f32 %v8263_v0, %v2499_v29 }
 0x728   : > { %8266 = vtanh.f32 %v10194_v27  ;;  %v2504_v26 = vsel %vm2503_vm7, %v8263_v0, %v2500_v34  ;;  %v1972_v0 = vadd.f32 %v12490_v53, %v10136_v59 }
 0x729   : > { %v2509_v3 = vsel %vm2506_vm8, %v2508_v1, %v2504_v26 }
 0x72e   : > { %v8267_v50 = vpop.eup %8266 }
 0x72f   : > { %v2516_v36 = vmul.f32 %v8267_v50, %v2509_v3 }
 0x731   : > { %v2517_v12 = vpack.c.bf16 %v2516_v36, %v2516_v36  ;;  %v12492_v36 = vld [vmem:[#allocation6_spill] sm:$0xff] }
 0x733   : > { %2518 = vst [vmem:[#allocation3 + $0x4] sm:$0xf] %v2517_v12  ;;  %2531 = vmatmul.bf16.vlgmr.msra.gmra.mxu0 %v2517_v12  ;;  %2544 = vmatmul.bf16.vlgmr.msrb.gmra.mxu1 %v2517_v12 }
 0x734   : > { %2557 = vmatmul.bf16.vlgmr.msra.gmra.mxu2 %v2517_v12  ;;  %2570 = vmatmul.bf16.vlgmr.msra.gmra.mxu3 %v2517_v12  ;;  %v2030_v12 = vadd.f32 %v12492_v36, %v12487_v21 }
 0x735   : > { %2773 = vmatpush.bf16.msra.mxu0 %v9660_v23  ;;  %2786 = vmatpush.bf16.msrb.mxu1 %v9671_v56 }
 0x736   : > { %2799 = vmatpush.bf16.msra.mxu2 %v9673_v62  ;;  %2812 = vmatpush.bf16.msra.mxu3 %v9682_v10 }
 0x739   : > { %2774 = vmatpush.bf16.msra.mxu0 %v9697_v51  ;;  %2787 = vmatpush.bf16.msrb.mxu1 %v9708_v43 }
 0x73a   : > { %2800 = vmatpush.bf16.msra.mxu2 %v9727_v14  ;;  %2813 = vmatpush.bf16.msra.mxu3 %v9735_v9 }
 0x73d   : > { %2775 = vmatpush.bf16.msra.mxu0 %v9747_v8  ;;  %2788 = vmatpush.bf16.msrb.mxu1 %v9749_v60 }
 0x73e   : > { %2801 = vmatpush.bf16.msra.mxu2 %v9764_v15  ;;  %2814 = vmatpush.bf16.msra.mxu3 %v9819_v2 }
 0x741   : > { %2776 = vmatpush.bf16.msra.mxu0 %v9777_v33  ;;  %2789 = vmatpush.bf16.msrb.mxu1 %v9779_v47 }
 0x742   : > { %2802 = vmatpush.bf16.msra.mxu2 %v9817_v63  ;;  %2815 = vmatpush.bf16.msra.mxu3 %v9859_v39 }
 0x745   : > { %2777 = vmatpush.bf16.msra.mxu0 %v9842_v42  ;;  %2790 = vmatpush.bf16.msrb.mxu1 %v9855_v35 }
 0x746   : > { %2803 = vmatpush.bf16.msra.mxu2 %v9857_v24  ;;  %2816 = vmatpush.bf16.msra.mxu3 %v9906_v22 }
 0x749   : > { %2778 = vmatpush.bf16.msra.mxu0 %v9898_v46  ;;  %2791 = vmatpush.bf16.msrb.mxu1 %v9904_v49 }
 0x74a   : > { %2804 = vmatpush.bf16.msra.mxu2 %v9923_v37  ;;  %2817 = vmatpush.bf16.msra.mxu3 %v9951_v28 }
 0x74d   : > { %2779 = vmatpush.bf16.msra.mxu0 %v9945_v19  ;;  %2792 = vmatpush.bf16.msrb.mxu1 %v9949_v20 }
 0x74e   : > { %2805 = vmatpush.bf16.msra.mxu2 %v9963_v52  ;;  %2818 = vmatpush.bf16.msra.mxu3 %v9992_v40 }
 0x751   : > { %2780 = vmatpush.bf16.msra.mxu0 %v9984_v31  ;;  %2793 = vmatpush.bf16.msrb.mxu1 %v9990_v7 }
 0x752   : > { %2806 = vmatpush.bf16.msra.mxu2 %v9995_v11  ;;  %2819 = vmatpush.bf16.msra.mxu3 %v10007_v17 }
 0x7b0   : > { %v2532_v58 = vpop.f32.mrf.mxu0  ;;  %v2545_v38 = vpop.f32.mrf.mxu1 }
 0x7b1   : > { %v2575_v45 = vadd.f32 %v2532_v58, %v1943_v18  ;;  %v2576_v57 = vadd.f32 %v2545_v38, %v1972_v0 }
 0x7b3   : > { %v7070_v41 = vmul.f32 -1.442695, %v2575_v45  ;;  %v7071_v30 = vmul.f32 -1.442695, %v2576_v57 }
 0x7b5   : > { %8268 = vpow2.f32 %v7070_v41 }
 0x7b6   : > { %8270 = vpow2.f32 %v7071_v30 }
 0x7b7   : > { %v2558_v6 = vpop.f32.mrf.mxu2  ;;  %v2571_v48 = vpop.f32.mrf.mxu3 }
 0x7b8   : > { %v2577_v16 = vadd.f32 %v2558_v6, %v2001_v5  ;;  %v2534_v4 = vpop.f32.mrf.mxu0  ;;  %v2547_v29 = vpop.f32.mrf.mxu1  ;;  %v2578_v53 = vadd.f32 %v2571_v48, %v2030_v12 }
 0x7ba   : > { %v7072_v55 = vmul.f32 -1.442695, %v2577_v16 }
 0x7bb   : > { %v8269_v34 = vpop.eup %8268 }
 0x7bc   : > { %v8271_v54 = vpop.eup %8270  ;;  %v2588_v61 = vadd.f32 1.0, %v8269_v34  ;;  %8272 = vpow2.f32 %v7072_v55 }
 0x7bd   : > { %v2589_v26 = vadd.f32 1.0, %v8271_v54 }
 0x7be   : > { %8274 = vrcp.f32 %v2588_v61  ;;  %v2602_v41 = vand.u32 2147483648, %v2588_v61  ;;  %v2600_v5 = vand.u32 2147483647, %v2588_v61  ;;  %vm2596_vm11 = vweird.f32 %v2588_v61 }
 0x7bf   : > { %8276 = vrcp.f32 %v2589_v26  ;;  %v2560_v1 = vpop.f32.mrf.mxu2  ;;  %v2573_v50 = vpop.f32.mrf.mxu3  ;;  %v2617_v30 = vand.u32 2147483648, %v2589_v26  ;;  %v2615_v16 = vand.u32 2147483647, %v2589_v26  ;;  %vm2611_vm12 = vweird.f32 %v2589_v26 }
 0x7c0   : > { %v2603_v55 = vor.u32 1.1754944e-38, %v2602_v41  ;;  %vm2601_vm15 = vcmp.eq.f32.partialorder %v2600_v5, 8.507059e+37 }
 0x7c1   : > { %v2618_v54 = vor.u32 1.1754944e-38, %v2617_v30  ;;  %vm2616_vm0 = vcmp.eq.f32.partialorder %v2615_v16, 8.507059e+37  ;;  %v12494_v16 = vld [vmem:[#allocation11_spill] sm:$0xff] }
 0x7c2   : > { %v8273_v3 = vpop.eup %8272 }
 0x7c3   : > { %v2590_v32 = vadd.f32 1.0, %v8273_v3 }
 0x7c4   : > { %v8275_v18 = vpop.eup %8274 }
 0x7c5   : > { %v8277_v0 = vpop.eup %8276  ;;  %v2592_v58 = vmul.f32 %v8275_v18, %v2588_v61  ;;  %8278 = vrcp.f32 %v2590_v32  ;;  %vm2597_vm9 = vweird.f32 %v8275_v18  ;;  %vm2626_vm2 = vweird.f32 %v2590_v32 }
 0x7c6   : > { %v2607_v38 = vmul.f32 %v8277_v0, %v2589_v26  ;;  %8280 = vtanh.f32 %v2578_v53  ;;  %vm2612_vm10 = vweird.f32 %v8277_v0  ;;  %vm2598_vm13 = vmor %vm2596_vm11, %vm2597_vm9 }
 0x7c7   : > { %v2593_v45 = vsub.f32 1.0, %v2592_v58  ;;  %vm2613_vm14 = vmor %vm2611_vm12, %vm2612_vm10 }
 0x7c8   : > { %v2608_v57 = vsub.f32 1.0, %v2607_v38 }
 0x7c9   : > { %v2594_v13 = vmul.f32 %v8275_v18, %v2593_v45 }
 0x7ca   : > { %v2609_v6 = vmul.f32 %v8277_v0, %v2608_v57  ;;  %v2632_v57 = vand.u32 2147483648, %v2590_v32 }
 0x7cb   : > { %v8279_v4 = vpop.eup %8278  ;;  %v2595_v29 = vadd.f32 %v8275_v18, %v2594_v13 }
 0x7cc   : > { %v2622_v48 = vmul.f32 %v8279_v4, %v2590_v32  ;;  %v2610_v34 = vadd.f32 %v8277_v0, %v2609_v6  ;;  %v8281_v50 = vpop.eup %8280  ;;  %vm2627_vm1 = vweird.f32 %v8279_v4  ;;  %v2633_v30 = vor.u32 1.1754944e-38, %v2632_v57 }
 0x7cd   : > { %v2599_v1 = vsel %vm2598_vm13, %v8275_v18, %v2595_v29  ;;  %v2630_v18 = vand.u32 2147483647, %v2590_v32  ;;  %vm2628_vm3 = vmor %vm2626_vm2, %vm2627_vm1 }
 0x7ce   : > { %v2623_v3 = vsub.f32 1.0, %v2622_v48  ;;  %v2604_v36 = vsel %vm2601_vm15, %v2603_v55, %v2599_v1  ;;  %v2614_v12 = vsel %vm2613_vm14, %v8277_v0, %v2610_v34 }
 0x7cf   : > { %v2619_v53 = vsel %vm2616_vm0, %v2618_v54, %v2614_v12  ;;  %v2638_v58 = vmul.f32 %v8281_v50, %v2604_v36  ;;  %vm2631_vm4 = vcmp.eq.f32.partialorder %v2630_v18, 8.507059e+37  ;;  %v12495_v50 = vld [vmem:[#allocation18_spill] sm:$0xff] }
 0x7d0   : > { %v2624_v38 = vmul.f32 %v8279_v4, %v2623_v3  ;;  %v2637_v45 = vmul.f32 %v2619_v53, %v10194_v27  ;;  %v12493_v27 = vld [vmem:[#allocation10_spill] sm:$0xff]  ;;  %v2003_v3 = vadd.f32 %v12495_v50, %v10144_v25 }
 0x7d1   : > { %v1945_v32 = vadd.f32 %v12493_v27, %v10134_v44 }
 0x7d2   : > { %v10238_v61 = vadd.f32 %v2638_v58, %v2637_v45  ;;  %v2625_v26 = vadd.f32 %v8279_v4, %v2624_v38 }
 0x7d4   : > { %8282 = vtanh.f32 %v10238_v61  ;;  %v2629_v41 = vsel %vm2628_vm3, %v8279_v4, %v2625_v26  ;;  %v1974_v4 = vadd.f32 %v12494_v16, %v10136_v59 }
 0x7d5   : > { %v2634_v13 = vsel %vm2631_vm4, %v2633_v30, %v2629_v41 }
 0x7da   : > { %v8283_v0 = vpop.eup %8282 }
 0x7db   : > { %v2641_v5 = vmul.f32 %v8283_v0, %v2634_v13 }
 0x7dd   : > { %v2642_v6 = vpack.c.bf16 %v2641_v5, %v2641_v5  ;;  %v12496_v5 = vld [vmem:[#allocation12_spill] sm:$0xff] }
 0x7df   : > { %2643 = vst [vmem:[#allocation3 + $0x8] sm:$0xf] %v2642_v6  ;;  %2656 = vmatmul.bf16.vlgmr.msrb.gmra.mxu0 %v2642_v6  ;;  %2669 = vmatmul.bf16.vlgmr.msra.gmra.mxu1 %v2642_v6 }
 0x7e0   : > { %2682 = vmatmul.bf16.vlgmr.msrb.gmra.mxu2 %v2642_v6  ;;  %2695 = vmatmul.bf16.vlgmr.msrb.gmra.mxu3 %v2642_v6  ;;  %v2032_v6 = vadd.f32 %v12496_v5, %v12487_v21 }
 0x7e1   : > { %2898 = vmatpush.bf16.msrb.mxu0 %v9660_v23  ;;  %2911 = vmatpush.bf16.msra.mxu1 %v9671_v56 }
 0x7e2   : > { %2924 = vmatpush.bf16.msrb.mxu2 %v9673_v62  ;;  %2937 = vmatpush.bf16.msrb.mxu3 %v9682_v10 }
 0x7e5   : > { %2899 = vmatpush.bf16.msrb.mxu0 %v9697_v51  ;;  %2912 = vmatpush.bf16.msra.mxu1 %v9708_v43 }
 0x7e6   : > { %2925 = vmatpush.bf16.msrb.mxu2 %v9727_v14  ;;  %2938 = vmatpush.bf16.msrb.mxu3 %v9735_v9 }
 0x7e9   : > { %2900 = vmatpush.bf16.msrb.mxu0 %v9747_v8  ;;  %2913 = vmatpush.bf16.msra.mxu1 %v9749_v60 }
 0x7ea   : > { %2926 = vmatpush.bf16.msrb.mxu2 %v9764_v15  ;;  %2939 = vmatpush.bf16.msrb.mxu3 %v9819_v2 }
 0x7ed   : > { %2901 = vmatpush.bf16.msrb.mxu0 %v9777_v33  ;;  %2914 = vmatpush.bf16.msra.mxu1 %v9779_v47 }
 0x7ee   : > { %2927 = vmatpush.bf16.msrb.mxu2 %v9817_v63  ;;  %2940 = vmatpush.bf16.msrb.mxu3 %v9859_v39 }
 0x7f1   : > { %2902 = vmatpush.bf16.msrb.mxu0 %v9842_v42  ;;  %2915 = vmatpush.bf16.msra.mxu1 %v9855_v35 }
 0x7f2   : > { %2928 = vmatpush.bf16.msrb.mxu2 %v9857_v24  ;;  %2941 = vmatpush.bf16.msrb.mxu3 %v9906_v22 }
 0x7f5   : > { %2903 = vmatpush.bf16.msrb.mxu0 %v9898_v46  ;;  %2916 = vmatpush.bf16.msra.mxu1 %v9904_v49 }
 0x7f6   : > { %2929 = vmatpush.bf16.msrb.mxu2 %v9923_v37  ;;  %2942 = vmatpush.bf16.msrb.mxu3 %v9951_v28 }
 0x7f9   : > { %2904 = vmatpush.bf16.msrb.mxu0 %v9945_v19  ;;  %2917 = vmatpush.bf16.msra.mxu1 %v9949_v20 }
 0x7fa   : > { %2930 = vmatpush.bf16.msrb.mxu2 %v9963_v52  ;;  %2943 = vmatpush.bf16.msrb.mxu3 %v9992_v40 }
 0x7fd   : > { %2905 = vmatpush.bf16.msrb.mxu0 %v9984_v31  ;;  %2918 = vmatpush.bf16.msra.mxu1 %v9990_v7 }
 0x7fe   : > { %2931 = vmatpush.bf16.msrb.mxu2 %v9995_v11  ;;  %2944 = vmatpush.bf16.msrb.mxu3 %v10007_v17 }
 0x85c   : > { %v2657_v29 = vpop.f32.mrf.mxu0  ;;  %v2670_v48 = vpop.f32.mrf.mxu1 }
 0x85d   : > { %v2700_v55 = vadd.f32 %v2657_v29, %v1945_v32  ;;  %v2701_v34 = vadd.f32 %v2670_v48, %v1974_v4 }
 0x85f   : > { %v7073_v54 = vmul.f32 -1.442695, %v2700_v55  ;;  %v7074_v1 = vmul.f32 -1.442695, %v2701_v34 }
 0x861   : > { %8284 = vpow2.f32 %v7073_v54 }
 0x862   : > { %8286 = vpow2.f32 %v7074_v1 }
 0x863   : > { %v2683_v36 = vpop.f32.mrf.mxu2  ;;  %v2696_v12 = vpop.f32.mrf.mxu3 }
 0x864   : > { %v2702_v53 = vadd.f32 %v2683_v36, %v2003_v3  ;;  %v2659_v58 = vpop.f32.mrf.mxu0  ;;  %v2672_v38 = vpop.f32.mrf.mxu1  ;;  %v2703_v16 = vadd.f32 %v2696_v12, %v2032_v6 }
 0x866   : > { %v7075_v45 = vmul.f32 -1.442695, %v2702_v53 }
 0x867   : > { %v8285_v26 = vpop.eup %8284 }
 0x868   : > { %v8287_v57 = vpop.eup %8286  ;;  %v2713_v18 = vadd.f32 1.0, %v8285_v26  ;;  %8288 = vpow2.f32 %v7075_v45 }
 0x869   : > { %v2714_v41 = vadd.f32 1.0, %v8287_v57 }
 0x86a   : > { %8290 = vrcp.f32 %v2713_v18  ;;  %v2727_v54 = vand.u32 2147483648, %v2713_v18  ;;  %v2725_v3 = vand.u32 2147483647, %v2713_v18  ;;  %vm2721_vm7 = vweird.f32 %v2713_v18 }
 0x86b   : > { %8292 = vrcp.f32 %v2714_v41  ;;  %v2685_v30 = vpop.f32.mrf.mxu2  ;;  %v2698_v0 = vpop.f32.mrf.mxu3  ;;  %v2742_v1 = vand.u32 2147483648, %v2714_v41  ;;  %v2740_v53 = vand.u32 2147483647, %v2714_v41  ;;  %vm2736_vm8 = vweird.f32 %v2714_v41 }
 0x86c   : > { %v2728_v45 = vor.u32 1.1754944e-38, %v2727_v54  ;;  %vm2726_vm11 = vcmp.eq.f32.partialorder %v2725_v3, 8.507059e+37 }
 0x86d   : > { %v2743_v57 = vor.u32 1.1754944e-38, %v2742_v1  ;;  %vm2741_vm12 = vcmp.eq.f32.partialorder %v2740_v53, 8.507059e+37  ;;  %v12498_v53 = vld [vmem:[#allocation14_spill] sm:$0xff] }
 0x86e   : > { %v8289_v13 = vpop.eup %8288 }
 0x86f   : > { %v2715_v27 = vadd.f32 1.0, %v8289_v13 }
 0x870   : > { %v8291_v32 = vpop.eup %8290 }
 0x871   : > { %v8293_v4 = vpop.eup %8292  ;;  %v2717_v29 = vmul.f32 %v8291_v32, %v2713_v18  ;;  %8294 = vrcp.f32 %v2715_v27  ;;  %vm2722_vm5 = vweird.f32 %v8291_v32  ;;  %vm2751_vm14 = vweird.f32 %v2715_v27 }
 0x872   : > { %v2732_v48 = vmul.f32 %v8293_v4, %v2714_v41  ;;  %8296 = vtanh.f32 %v2703_v16  ;;  %vm2737_vm6 = vweird.f32 %v8293_v4  ;;  %vm2723_vm9 = vmor %vm2721_vm7, %vm2722_vm5 }
 0x873   : > { %v2718_v55 = vsub.f32 1.0, %v2717_v29  ;;  %vm2738_vm10 = vmor %vm2736_vm8, %vm2737_vm6 }
 0x874   : > { %v2733_v34 = vsub.f32 1.0, %v2732_v48 }
 0x875   : > { %v2719_v50 = vmul.f32 %v8291_v32, %v2718_v55 }
 0x876   : > { %v2734_v36 = vmul.f32 %v8293_v4, %v2733_v34  ;;  %v2757_v34 = vand.u32 2147483648, %v2715_v27 }
 0x877   : > { %v8295_v58 = vpop.eup %8294  ;;  %v2720_v38 = vadd.f32 %v8291_v32, %v2719_v50 }
 0x878   : > { %v2747_v12 = vmul.f32 %v8295_v58, %v2715_v27  ;;  %v2735_v26 = vadd.f32 %v8293_v4, %v2734_v36  ;;  %v8297_v0 = vpop.eup %8296  ;;  %vm2752_vm13 = vweird.f32 %v8295_v58  ;;  %v2758_v1 = vor.u32 1.1754944e-38, %v2757_v34 }
 0x879   : > { %v2724_v30 = vsel %vm2723_vm9, %v8291_v32, %v2720_v38  ;;  %v2755_v32 = vand.u32 2147483647, %v2715_v27  ;;  %vm2753_vm15 = vmor %vm2751_vm14, %vm2752_vm13 }
 0x87a   : > { %v2748_v13 = vsub.f32 1.0, %v2747_v12  ;;  %v2729_v5 = vsel %vm2726_vm11, %v2728_v45, %v2724_v30  ;;  %v2739_v6 = vsel %vm2738_vm10, %v8293_v4, %v2735_v26 }
 0x87b   : > { %v2744_v16 = vsel %vm2741_vm12, %v2743_v57, %v2739_v6  ;;  %v2763_v29 = vmul.f32 %v8297_v0, %v2729_v5  ;;  %vm2756_vm0 = vcmp.eq.f32.partialorder %v2755_v32, 8.507059e+37  ;;  %v12499_v0 = vld [vmem:[#allocation21_spill] sm:$0xff] }
 0x87c   : > { %v2749_v48 = vmul.f32 %v8295_v58, %v2748_v13  ;;  %v2762_v55 = vmul.f32 %v2744_v16, %v10238_v61  ;;  %v12497_v61 = vld [vmem:[#allocation13_spill] sm:$0xff]  ;;  %v2006_v13 = vadd.f32 %v12499_v0, %v10144_v25 }
 0x87d   : > { %v1948_v27 = vadd.f32 %v12497_v61, %v10134_v44 }
 0x87e   : > { %v10282_v18 = vadd.f32 %v2763_v29, %v2762_v55  ;;  %v2750_v41 = vadd.f32 %v8295_v58, %v2749_v48 }
 0x880   : > { %8298 = vtanh.f32 %v10282_v18  ;;  %v2754_v54 = vsel %vm2753_vm15, %v8295_v58, %v2750_v41  ;;  %v1977_v58 = vadd.f32 %v12498_v53, %v10136_v59 }
 0x881   : > { %v2759_v50 = vsel %vm2756_vm0, %v2758_v1, %v2754_v54 }
 0x886   : > { %v8299_v4 = vpop.eup %8298 }
 0x887   : > { %v2766_v3 = vmul.f32 %v8299_v4, %v2759_v50 }
 0x889   : > { %v2767_v36 = vpack.c.bf16 %v2766_v3, %v2766_v3  ;;  %v12500_v3 = vld [vmem:[#allocation16_spill] sm:$0xff] }
 0x88b   : > { %2768 = vst [vmem:[#allocation3 + $0xc] sm:$0xf] %v2767_v36  ;;  %2781 = vmatmul.bf16.vlgmr.msra.gmra.mxu0 %v2767_v36  ;;  %2794 = vmatmul.bf16.vlgmr.msrb.gmra.mxu1 %v2767_v36 }
 0x88c   : > { %2807 = vmatmul.bf16.vlgmr.msra.gmra.mxu2 %v2767_v36  ;;  %2820 = vmatmul.bf16.vlgmr.msra.gmra.mxu3 %v2767_v36  ;;  %v2035_v36 = vadd.f32 %v12500_v3, %v12487_v21 }
 0x88d   : > { %3023 = vmatpush.bf16.msra.mxu0 %v9660_v23  ;;  %3036 = vmatpush.bf16.msrb.mxu1 %v9671_v56 }
 0x88e   : > { %3049 = vmatpush.bf16.msra.mxu2 %v9673_v62  ;;  %3062 = vmatpush.bf16.msra.mxu3 %v9682_v10 }
 0x891   : > { %3024 = vmatpush.bf16.msra.mxu0 %v9697_v51  ;;  %3037 = vmatpush.bf16.msrb.mxu1 %v9708_v43 }
 0x892   : > { %3050 = vmatpush.bf16.msra.mxu2 %v9727_v14  ;;  %3063 = vmatpush.bf16.msra.mxu3 %v9735_v9 }
 0x895   : > { %3025 = vmatpush.bf16.msra.mxu0 %v9747_v8  ;;  %3038 = vmatpush.bf16.msrb.mxu1 %v9749_v60 }
 0x896   : > { %3051 = vmatpush.bf16.msra.mxu2 %v9764_v15  ;;  %3064 = vmatpush.bf16.msra.mxu3 %v9819_v2 }
 0x899   : > { %3026 = vmatpush.bf16.msra.mxu0 %v9777_v33  ;;  %3039 = vmatpush.bf16.msrb.mxu1 %v9779_v47 }
 0x89a   : > { %3052 = vmatpush.bf16.msra.mxu2 %v9817_v63  ;;  %3065 = vmatpush.bf16.msra.mxu3 %v9859_v39 }
 0x89d   : > { %3027 = vmatpush.bf16.msra.mxu0 %v9842_v42  ;;  %3040 = vmatpush.bf16.msrb.mxu1 %v9855_v35 }
 0x89e   : > { %3053 = vmatpush.bf16.msra.mxu2 %v9857_v24  ;;  %3066 = vmatpush.bf16.msra.mxu3 %v9906_v22 }
 0x8a1   : > { %3028 = vmatpush.bf16.msra.mxu0 %v9898_v46  ;;  %3041 = vmatpush.bf16.msrb.mxu1 %v9904_v49 }
 0x8a2   : > { %3054 = vmatpush.bf16.msra.mxu2 %v9923_v37  ;;  %3067 = vmatpush.bf16.msra.mxu3 %v9951_v28 }
 0x8a5   : > { %3029 = vmatpush.bf16.msra.mxu0 %v9945_v19  ;;  %3042 = vmatpush.bf16.msrb.mxu1 %v9949_v20 }
 0x8a6   : > { %3055 = vmatpush.bf16.msra.mxu2 %v9963_v52  ;;  %3068 = vmatpush.bf16.msra.mxu3 %v9992_v40 }
 0x8a9   : > { %3030 = vmatpush.bf16.msra.mxu0 %v9984_v31  ;;  %3043 = vmatpush.bf16.msrb.mxu1 %v9990_v7 }
 0x8aa   : > { %3056 = vmatpush.bf16.msra.mxu2 %v9995_v11  ;;  %3069 = vmatpush.bf16.msra.mxu3 %v10007_v17 }
 0x908   : > { %v2782_v38 = vpop.f32.mrf.mxu0  ;;  %v2795_v12 = vpop.f32.mrf.mxu1 }
 0x909   : > { %v2825_v45 = vadd.f32 %v2782_v38, %v1948_v27  ;;  %v2826_v26 = vadd.f32 %v2795_v12, %v1977_v58 }
 0x90b   : > { %v7076_v57 = vmul.f32 -1.442695, %v2825_v45  ;;  %v7077_v30 = vmul.f32 -1.442695, %v2826_v26 }
 0x90d   : > { %8300 = vpow2.f32 %v7076_v57 }
 0x90e   : > { %8302 = vpow2.f32 %v7077_v30 }
 0x90f   : > { %v2808_v5 = vpop.f32.mrf.mxu2  ;;  %v2821_v6 = vpop.f32.mrf.mxu3 }
 0x910   : > { %v2827_v16 = vadd.f32 %v2808_v5, %v2006_v13  ;;  %v2784_v29 = vpop.f32.mrf.mxu0  ;;  %v2797_v48 = vpop.f32.mrf.mxu1  ;;  %v2828_v53 = vadd.f32 %v2821_v6, %v2035_v36 }
 0x912   : > { %v7078_v55 = vmul.f32 -1.442695, %v2827_v16 }
 0x913   : > { %v8301_v41 = vpop.eup %8300 }
 0x914   : > { %v8303_v34 = vpop.eup %8302  ;;  %v2838_v32 = vadd.f32 1.0, %v8301_v41  ;;  %8304 = vpow2.f32 %v7078_v55 }
 0x915   : > { %v2839_v54 = vadd.f32 1.0, %v8303_v34 }
 0x916   : > { %8306 = vrcp.f32 %v2838_v32  ;;  %v2852_v57 = vand.u32 2147483648, %v2838_v32  ;;  %v2850_v13 = vand.u32 2147483647, %v2838_v32  ;;  %vm2846_vm3 = vweird.f32 %v2838_v32 }
 0x917   : > { %8308 = vrcp.f32 %v2839_v54  ;;  %v2810_v1 = vpop.f32.mrf.mxu2  ;;  %v2823_v4 = vpop.f32.mrf.mxu3  ;;  %v2867_v30 = vand.u32 2147483648, %v2839_v54  ;;  %v2865_v16 = vand.u32 2147483647, %v2839_v54  ;;  %vm2861_vm4 = vweird.f32 %v2839_v54 }
 0x918   : > { %v2853_v55 = vor.u32 1.1754944e-38, %v2852_v57  ;;  %vm2851_vm7 = vcmp.eq.f32.partialorder %v2850_v13, 8.507059e+37 }
 0x919   : > { %v2868_v34 = vor.u32 1.1754944e-38, %v2867_v30  ;;  %vm2866_vm8 = vcmp.eq.f32.partialorder %v2865_v16, 8.507059e+37 }
 0x91a   : > { %v8305_v50 = vpop.eup %8304 }
 0x91b   : > { %v2840_v61 = vadd.f32 1.0, %v8305_v50 }
 0x91c   : > { %v8307_v27 = vpop.eup %8306 }
 0x91d   : > { %v8309_v58 = vpop.eup %8308  ;;  %v2842_v38 = vmul.f32 %v8307_v27, %v2838_v32  ;;  %8310 = vrcp.f32 %v2840_v61  ;;  %vm2847_vm1 = vweird.f32 %v8307_v27  ;;  %vm2876_vm10 = vweird.f32 %v2840_v61 }
 0x91e   : > { %v2857_v12 = vmul.f32 %v8309_v58, %v2839_v54  ;;  %8312 = vtanh.f32 %v2828_v53  ;;  %vm2862_vm2 = vweird.f32 %v8309_v58  ;;  %vm2848_vm5 = vmor %vm2846_vm3, %vm2847_vm1 }
 0x91f   : > { %v2843_v45 = vsub.f32 1.0, %v2842_v38  ;;  %vm2863_vm6 = vmor %vm2861_vm4, %vm2862_vm2 }
 0x920   : > { %v2858_v26 = vsub.f32 1.0, %v2857_v12 }
 0x921   : > { %v2844_v0 = vmul.f32 %v8307_v27, %v2843_v45 }
 0x922   : > { %v2859_v5 = vmul.f32 %v8309_v58, %v2858_v26  ;;  %v2882_v26 = vand.u32 2147483648, %v2840_v61 }
 0x923   : > { %v8311_v29 = vpop.eup %8310  ;;  %v2845_v48 = vadd.f32 %v8307_v27, %v2844_v0 }
 0x924   : > { %v2872_v6 = vmul.f32 %v8311_v29, %v2840_v61  ;;  %v2860_v41 = vadd.f32 %v8309_v58, %v2859_v5  ;;  %v8313_v4 = vpop.eup %8312  ;;  %vm2877_vm9 = vweird.f32 %v8311_v29  ;;  %v2883_v30 = vor.u32 1.1754944e-38, %v2882_v26 }
 0x925   : > { %v2849_v1 = vsel %vm2848_vm5, %v8307_v27, %v2845_v48  ;;  %v2880_v27 = vand.u32 2147483647, %v2840_v61  ;;  %vm2878_vm11 = vmor %vm2876_vm10, %vm2877_vm9 }
 0x926   : > { %v2873_v50 = vsub.f32 1.0, %v2872_v6  ;;  %v2854_v3 = vsel %vm2851_vm7, %v2853_v55, %v2849_v1  ;;  %v2864_v36 = vsel %vm2863_vm6, %v8309_v58, %v2860_v41 }
 0x927   : > { %v2869_v53 = vsel %vm2866_vm8, %v2868_v34, %v2864_v36  ;;  %v2888_v38 = vmul.f32 %v8313_v4, %v2854_v3  ;;  %vm2881_vm12 = vcmp.eq.f32.partialorder %v2880_v27, 8.507059e+37 }
 0x928   : > { %v2874_v12 = vmul.f32 %v8311_v29, %v2873_v50  ;;  %v2887_v45 = vmul.f32 %v2869_v53, %v10282_v18 }
 0x92a   : > { %v10326_v32 = vadd.f32 %v2888_v38, %v2887_v45  ;;  %v2875_v54 = vadd.f32 %v8311_v29, %v2874_v12 }
 0x92c   : > { %8314 = vtanh.f32 %v10326_v32  ;;  %v2879_v57 = vsel %vm2878_vm11, %v8311_v29, %v2875_v54 }
 0x92d   : > { %v2884_v0 = vsel %vm2881_vm12, %v2883_v30, %v2879_v57 }
 0x932   : > { %v8315_v58 = vpop.eup %8314 }
 0x933   : > { %v2891_v13 = vmul.f32 %v8315_v58, %v2884_v0 }
 0x935   : > { %v2892_v5 = vpack.c.bf16 %v2891_v13, %v2891_v13 }
 0x937   : > { %2893 = vst [vmem:[#allocation3 + $0x10] sm:$0xf] %v2892_v5  ;;  %2906 = vmatmul.bf16.vlgmr.msrb.gmra.mxu0 %v2892_v5  ;;  %2919 = vmatmul.bf16.vlgmr.msra.gmra.mxu1 %v2892_v5 }
 0x938   : > { %2932 = vmatmul.bf16.vlgmr.msrb.gmra.mxu2 %v2892_v5  ;;  %2945 = vmatmul.bf16.vlgmr.msrb.gmra.mxu3 %v2892_v5 }
 0x939   : > { %3148 = vmatpush.bf16.msrb.mxu0 %v9660_v23  ;;  %3161 = vmatpush.bf16.msra.mxu1 %v9671_v56  ;;  %v12501_v23 = vld [vmem:[#allocation17_spill] sm:$0xff] }
 0x93a   : > { %3174 = vmatpush.bf16.msrb.mxu2 %v9673_v62  ;;  %3187 = vmatpush.bf16.msrb.mxu3 %v9682_v10  ;;  %v1950_v56 = vadd.f32 %v12501_v23, %v10134_v44  ;;  %v12502_v62 = vld [vmem:[#allocation4_spill] sm:$0xff] }
 0x93b   : > { %v1979_v10 = vadd.f32 %v12502_v62, %v10136_v59 }
 0x93d   : > { %3149 = vmatpush.bf16.msrb.mxu0 %v9697_v51  ;;  %3162 = vmatpush.bf16.msra.mxu1 %v9708_v43 }
 0x93e   : > { %3175 = vmatpush.bf16.msrb.mxu2 %v9727_v14  ;;  %3188 = vmatpush.bf16.msrb.mxu3 %v9735_v9 }
 0x941   : > { %3150 = vmatpush.bf16.msrb.mxu0 %v9747_v8  ;;  %3163 = vmatpush.bf16.msra.mxu1 %v9749_v60 }
 0x942   : > { %3176 = vmatpush.bf16.msrb.mxu2 %v9764_v15  ;;  %3189 = vmatpush.bf16.msrb.mxu3 %v9819_v2  ;;  %v12503_v15 = vld [vmem:[#allocation24_spill] sm:$0xff] }
 0x945   : > { %3151 = vmatpush.bf16.msrb.mxu0 %v9777_v33  ;;  %3164 = vmatpush.bf16.msra.mxu1 %v9779_v47  ;;  %v2008_v33 = vadd.f32 %v12503_v15, %v10144_v25 }
 0x946   : > { %3177 = vmatpush.bf16.msrb.mxu2 %v9817_v63  ;;  %3190 = vmatpush.bf16.msrb.mxu3 %v9859_v39 }
 0x949   : > { %3152 = vmatpush.bf16.msrb.mxu0 %v9842_v42  ;;  %3165 = vmatpush.bf16.msra.mxu1 %v9855_v35 }
 0x94a   : > { %3178 = vmatpush.bf16.msrb.mxu2 %v9857_v24  ;;  %3191 = vmatpush.bf16.msrb.mxu3 %v9906_v22 }
 0x94d   : > { %3153 = vmatpush.bf16.msrb.mxu0 %v9898_v46  ;;  %3166 = vmatpush.bf16.msra.mxu1 %v9904_v49 }
 0x94e   : > { %3179 = vmatpush.bf16.msrb.mxu2 %v9923_v37  ;;  %3192 = vmatpush.bf16.msrb.mxu3 %v9951_v28  ;;  %v12504_v28 = vld [vmem:[#allocation19_spill] sm:$0xff] }
 0x951   : > { %3154 = vmatpush.bf16.msrb.mxu0 %v9945_v19  ;;  %3167 = vmatpush.bf16.msra.mxu1 %v9949_v20 }
 0x952   : > { %3180 = vmatpush.bf16.msrb.mxu2 %v9963_v52  ;;  %3193 = vmatpush.bf16.msrb.mxu3 %v9992_v40  ;;  %v2037_v52 = vadd.f32 %v12504_v28, %v12487_v21 }
 0x955   : > { %3155 = vmatpush.bf16.msrb.mxu0 %v9984_v31  ;;  %3168 = vmatpush.bf16.msra.mxu1 %v9990_v7 }
 0x956   : > { %3181 = vmatpush.bf16.msrb.mxu2 %v9995_v11  ;;  %3194 = vmatpush.bf16.msrb.mxu3 %v10007_v17 }
 0x9b4   : > { %v2907_v51 = vpop.f32.mrf.mxu0  ;;  %v2920_v43 = vpop.f32.mrf.mxu1 }
 0x9b5   : > { %v2950_v14 = vadd.f32 %v2907_v51, %v1950_v56  ;;  %v2951_v9 = vadd.f32 %v2920_v43, %v1979_v10 }
 0x9b7   : > { %v7079_v8 = vmul.f32 -1.442695, %v2950_v14  ;;  %v7080_v60 = vmul.f32 -1.442695, %v2951_v9  ;;  %v7987_v9 = vld [vmem:[%s12388_s2 + $0x1ec] sm:$0xf0] }
 0x9b9   : > { %8316 = vpow2.f32 %v7079_v8  ;;  %v7985_v8 = vld [vmem:[%s12388_s2 + $0x1e4] sm:$0xf] }
 0x9ba   : > { %8318 = vpow2.f32 %v7080_v60  ;;  %v12505_v60 = vld [vmem:[#allocation20_spill] sm:$0xff] }
 0x9bb   : > { %v2933_v47 = vpop.f32.mrf.mxu2  ;;  %v2946_v63 = vpop.f32.mrf.mxu3  ;;  %v1953_v15 = vadd.f32 %v12505_v60, %v10134_v44  ;;  %v7974_v60 = vld [vmem:[%s12388_s2 + $0x18c] sm:$0xf] }
 0x9bc   : > { %v2952_v2 = vadd.f32 %v2933_v47, %v2008_v33  ;;  %v2909_v42 = vpop.f32.mrf.mxu0  ;;  %v2922_v35 = vpop.f32.mrf.mxu1  ;;  %v2953_v40 = vadd.f32 %v2946_v63, %v2037_v52  ;;  %v12506_v33 = vld [vmem:[#allocation5_spill] sm:$0xff]  ;;  %v7235_v52 = vld [vmem:[%s12388_s2 + $0x1c0] sm:$0xf] }
 0x9bd   : > { %v1982_v47 = vadd.f32 %v12506_v33, %v10136_v59  ;;  %v7259_v42 = vld [vmem:[%s12388_s2 + $0x1e8] sm:$0xf]  ;;  %v7988_v35 = vld [vmem:[%s12388_s2 + $0x1f4] sm:$0xf0] }
 0x9be   : > { %v7081_v24 = vmul.f32 -1.442695, %v2952_v2  ;;  %v7253_v2 = vld [vmem:[%s12388_s2 + $0x1f0] sm:$0xf0] }
 0x9bf   : > { %v8317_v39 = vpop.eup %8316 }
 0x9c0   : > { %v8319_v46 = vpop.eup %8318  ;;  %v2963_v49 = vadd.f32 1.0, %v8317_v39  ;;  %8320 = vpow2.f32 %v7081_v24 }
 0x9c1   : > { %v2964_v22 = vadd.f32 1.0, %v8319_v46  ;;  %v7256_v46 = vor.u32 %v7985_v8, %v7253_v2 }
 0x9c2   : > { %8322 = vrcp.f32 %v2963_v49  ;;  %v2977_v29 = vand.u32 2147483648, %v2963_v49  ;;  %v2975_v55 = vand.u32 2147483647, %v2963_v49  ;;  %vm2971_vm15 = vweird.f32 %v2963_v49 }
 0x9c3   : > { %8324 = vrcp.f32 %v2964_v22  ;;  %v2935_v37 = vpop.f32.mrf.mxu2  ;;  %v2948_v19 = vpop.f32.mrf.mxu3  ;;  %v2992_v48 = vand.u32 2147483648, %v2964_v22  ;;  %v2990_v34 = vand.u32 2147483647, %v2964_v22  ;;  %vm2986_vm0 = vweird.f32 %v2964_v22 }
 0x9c4   : > { %v2978_v3 = vor.u32 1.1754944e-38, %v2977_v29  ;;  %vm2976_vm3 = vcmp.eq.f32.partialorder %v2975_v55, 8.507059e+37  ;;  %v7261_v37 = vld [vmem:[%s12388_s2 + $0x1f8] sm:$0xf0]  ;;  %v7984_v29 = vld [vmem:[%s12388_s2 + $0x1d4] sm:$0xf0] }
 0x9c5   : > { %v2993_v53 = vor.u32 1.1754944e-38, %v2992_v48  ;;  %vm2991_vm4 = vcmp.eq.f32.partialorder %v2990_v34, 8.507059e+37  ;;  %v7982_v48 = vld [vmem:[%s12388_s2 + $0x1cc] sm:$0xf]  ;;  %v7245_v55 = vld [vmem:[%s12388_s2 + $0x1d8] sm:$0xf0] }
 0x9c6   : > { %v8321_v20 = vpop.eup %8320  ;;  %v7979_v34 = vld [vmem:[%s12388_s2 + $0x1ac] sm:$0xf0] }
 0x9c7   : > { %v2965_v31 = vadd.f32 1.0, %v8321_v20 }
 0x9c8   : > { %v8323_v7 = vpop.eup %8322 }
 0x9c9   : > { %v8325_v11 = vpop.eup %8324  ;;  %v2967_v17 = vmul.f32 %v8323_v7, %v2963_v49  ;;  %8326 = vrcp.f32 %v2965_v31  ;;  %vm2972_vm13 = vweird.f32 %v8323_v7  ;;  %v3007_v5 = vand.u32 2147483648, %v2965_v31 }
 0x9ca   : > { %v2982_v18 = vmul.f32 %v8325_v11, %v2964_v22  ;;  %8328 = vtanh.f32 %v2953_v40  ;;  %vm2987_vm14 = vweird.f32 %v8325_v11  ;;  %vm2973_vm1 = vmor %vm2971_vm15, %vm2972_vm13  ;;  %vm3001_vm6 = vweird.f32 %v2965_v31  ;;  %v7986_v22 = vld [vmem:[%s12388_s2 + $0x1ec] sm:$0xf] }
 0x9cb   : > { %v2968_v61 = vsub.f32 1.0, %v2967_v17  ;;  %vm2988_vm2 = vmor %vm2986_vm0, %vm2987_vm14  ;;  %v3005_v23 = vand.u32 2147483647, %v2965_v31  ;;  %v3008_v62 = vor.u32 1.1754944e-38, %v3007_v5  ;;  %v7260_v49 = vor.u32 %v7988_v35, %v7259_v42 }
 0x9cc   : > { %v2983_v16 = vsub.f32 1.0, %v2982_v18  ;;  %v7264_v28 = vor.u32 %v7986_v22, %v7261_v37  ;;  %v7237_v18 = vld [vmem:[%s12388_s2 + $0x1d0] sm:$0xf0] }
 0x9cd   : > { %v2969_v6 = vmul.f32 %v8323_v7, %v2968_v61  ;;  %vm3006_vm8 = vcmp.eq.f32.partialorder %v3005_v23, 8.507059e+37  ;;  %v12508_v22 = vld [vmem:[#allocation22_spill] sm:$0xff] }
 0x9ce   : > { %v2984_v41 = vmul.f32 %v8325_v11, %v2983_v16  ;;  %v7243_v16 = vld [vmem:[%s12388_s2 + $0x1c8] sm:$0xf]  ;;  %v2040_v37 = vadd.f32 %v12508_v22, %v12487_v21 }
 0x9cf   : > { %v8327_v1 = vpop.eup %8326  ;;  %v2970_v4 = vadd.f32 %v8323_v7, %v2969_v6  ;;  %v7244_v6 = vor.u32 %v7984_v29, %v7243_v16  ;;  %v7197_v16 = vld [vmem:[%s12388_s2 + $0x178] sm:$0xf0]  ;;  %v7171_v29 = vld [vmem:[%s12388_s2 + $0x140] sm:$0xf] }
 0x9d0   : > { %v2997_v50 = vmul.f32 %v8327_v1, %v2965_v31  ;;  %v2985_v36 = vadd.f32 %v8325_v11, %v2984_v41  ;;  %v8329_v12 = vpop.eup %8328  ;;  %vm3002_vm5 = vweird.f32 %v8327_v1  ;;  %v7983_v31 = vld [vmem:[%s12388_s2 + $0x1cc] sm:$0xf0]  ;;  %v7219_v41 = vld [vmem:[%s12388_s2 + $0x1a0] sm:$0xf] }
 0x9d1   : > { %v2974_v38 = vsel %vm2973_vm1, %v8323_v7, %v2970_v4  ;;  %vm3003_vm7 = vmor %vm3001_vm6, %vm3002_vm5  ;;  %v7981_v7 = vld [vmem:[%s12388_s2 + $0x1c4] sm:$0xf]  ;;  %v7236_v17 = vor.u32 %v7983_v31, %v7235_v52 }
 0x9d2   : > { %v2998_v45 = vsub.f32 1.0, %v2997_v50  ;;  %v2979_v54 = vsel %vm2976_vm3, %v2978_v3, %v2974_v38  ;;  %v2989_v26 = vsel %vm2988_vm2, %v8325_v11, %v2985_v36  ;;  %v7240_v61 = vor.u32 %v7981_v7, %v7237_v18  ;;  %v7977_v36 = vld [vmem:[%s12388_s2 + $0x1a4] sm:$0xf]  ;;  %v7227_v38 = vld [vmem:[%s12388_s2 + $0x1a8] sm:$0xf] }
 0x9d3   : > { %v2994_v27 = vsel %vm2991_vm4, %v2993_v53, %v2989_v26  ;;  %v3013_v57 = vmul.f32 %v8329_v12, %v2979_v54  ;;  %v7248_v50 = vor.u32 %v7982_v48, %v7245_v55  ;;  %v7220_v3 = vor.u32 %v7979_v34, %v7219_v41  ;;  %v7221_v53 = vld [vmem:[%s12388_s2 + $0x1b0] sm:$0xf0]  ;;  %v7980_v26 = vld [vmem:[%s12388_s2 + $0x1b4] sm:$0xf0]  ;;  %v7195_v7 = vld [vmem:[%s12388_s2 + $0x168] sm:$0xf] }
 0x9d4   : > { %v2999_v30 = vmul.f32 %v8327_v1, %v2998_v45  ;;  %v3012_v58 = vmul.f32 %v2994_v27, %v10326_v32  ;;  %v7251_v32 = vld [vmem:[%s12388_s2 + $0x1e0] sm:$0xf]  ;;  %v7224_v54 = vor.u32 %v7977_v36, %v7221_v53  ;;  %v7978_v27 = vld [vmem:[%s12388_s2 + $0x1ac] sm:$0xf]  ;;  %v7228_v5 = vor.u32 %v7980_v26, %v7227_v38  ;;  %v7967_v55 = vld [vmem:[%s12388_s2 + $0x14c] sm:$0xf0] }
 0x9d5   : > { %v7252_v63 = vor.u32 %v7987_v9, %v7251_v32  ;;  %v7976_v32 = vld [vmem:[%s12388_s2 + $0x194] sm:$0xf0]  ;;  %v7965_v41 = vld [vmem:[%s12388_s2 + $0x144] sm:$0xf] }
 0x9d6   : > { %v10370_v0 = vadd.f32 %v3013_v57, %v3012_v58  ;;  %v3000_v13 = vadd.f32 %v8327_v1, %v2999_v30  ;;  %v7229_v57 = vld [vmem:[%s12388_s2 + $0x1b8] sm:$0xf0] }
 0x9d7   : > { %v7232_v23 = vor.u32 %v7978_v27, %v7229_v57  ;;  %v7155_v27 = vld [vmem:[%s12388_s2 + $0x120] sm:$0xf]  ;;  %v7963_v57 = vld [vmem:[%s12388_s2 + $0x12c] sm:$0xf0] }
 0x9d8   : > { %8330 = vtanh.f32 %v10370_v0  ;;  %v3004_v56 = vsel %vm3003_vm7, %v8327_v1, %v3000_v13  ;;  %v12507_v1 = vld [vmem:[#allocation25_spill] sm:$0xff] }
 0x9d9   : > { %v3009_v51 = vsel %vm3006_vm8, %v3008_v62, %v3004_v56  ;;  %v2011_v4 = vadd.f32 %v12507_v1, %v10144_v25  ;;  %v7203_v56 = vld [vmem:[%s12388_s2 + $0x180] sm:$0xf]  ;;  %v7975_v62 = vld [vmem:[%s12388_s2 + $0x18c] sm:$0xf0]  ;;  %v7172_v1 = vor.u32 %v7967_v55, %v7171_v29 }
 0x9de   : > { %v8331_v10 = vpop.eup %8330 }
 0x9df   : > { %v3016_v43 = vmul.f32 %v8331_v10, %v3009_v51  ;;  %v7973_v10 = vld [vmem:[%s12388_s2 + $0x184] sm:$0xf]  ;;  %v7204_v51 = vor.u32 %v7975_v62, %v7203_v56  ;;  %v7157_v56 = vld [vmem:[%s12388_s2 + $0x130] sm:$0xf0] }
 0x9e1   : > { %v3017_v14 = vpack.c.bf16 %v3016_v43, %v3016_v43  ;;  %v7205_v43 = vld [vmem:[%s12388_s2 + $0x190] sm:$0xf0] }
 0x9e2   : > { %v7208_v8 = vor.u32 %v7973_v10, %v7205_v43  ;;  %v7156_v43 = vor.u32 %v7963_v57, %v7155_v27  ;;  %v7954_v27 = vld [vmem:[#allocation3 + $0x8] sm:$0xff]  ;;  %v12511_v57 = vld [vmem:[#allocation23_spill] sm:$0xff] }
 0x9e3   : > { %3018 = vst [vmem:[#allocation3 + $0x14] sm:$0xf] %v3017_v14  ;;  %3031 = vmatmul.bf16.vlgmr.msra.gmra.mxu0 %v3017_v14  ;;  %3044 = vmatmul.bf16.vlgmr.msrb.gmra.mxu1 %v3017_v14 }
 0x9e4   : > { %3057 = vmatmul.bf16.vlgmr.msra.gmra.mxu2 %v3017_v14  ;;  %3070 = vmatmul.bf16.vlgmr.msra.gmra.mxu3 %v3017_v14  ;;  %v7211_v14 = vld [vmem:[%s12388_s2 + $0x188] sm:$0xf] }
 0x9e5   : > { %3505 = vmatpush.bf16.msra.mxu0 %v7252_v63  ;;  %3534 = vmatpush.bf16.msrb.mxu1 %v7256_v46 }
 0x9e6   : > { %3563 = vmatpush.bf16.msra.mxu2 %v7260_v49  ;;  %3592 = vmatpush.bf16.msra.mxu3 %v7264_v28  ;;  %v7971_v49 = vld [vmem:[%s12388_s2 + $0x16c] sm:$0xf0]  ;;  %v7189_v28 = vld [vmem:[%s12388_s2 + $0x170] sm:$0xf0] }
 0x9e9   : > { %3506 = vmatpush.bf16.msra.mxu0 %v7236_v17  ;;  %3535 = vmatpush.bf16.msrb.mxu1 %v7240_v61  ;;  %v7970_v61 = vld [vmem:[%s12388_s2 + $0x16c] sm:$0xf] }
 0x9ea   : > { %3564 = vmatpush.bf16.msra.mxu2 %v7244_v6  ;;  %3593 = vmatpush.bf16.msra.mxu3 %v7248_v50  ;;  %v7200_v6 = vor.u32 %v7970_v61, %v7197_v16  ;;  %v7179_v50 = vld [vmem:[%s12388_s2 + $0x148] sm:$0xf] }
 0x9ed   : > { %3507 = vmatpush.bf16.msra.mxu0 %v7220_v3  ;;  %3536 = vmatpush.bf16.msrb.mxu1 %v7224_v54  ;;  %v7968_v3 = vld [vmem:[%s12388_s2 + $0x154] sm:$0xf0] }
 0x9ee   : > { %3565 = vmatpush.bf16.msra.mxu2 %v7228_v5  ;;  %3594 = vmatpush.bf16.msra.mxu3 %v7232_v23  ;;  %v7180_v5 = vor.u32 %v7968_v3, %v7179_v50  ;;  %v7961_v23 = vld [vmem:[%s12388_s2 + $0x124] sm:$0xf] }
 0x9f1   : > { %3508 = vmatpush.bf16.msra.mxu0 %v7204_v51  ;;  %3537 = vmatpush.bf16.msrb.mxu1 %v7208_v8  ;;  %v7160_v8 = vor.u32 %v7961_v23, %v7157_v56 }
 0xa60   : > { %v3032_v24 = vpop.f32.mrf.mxu0  ;;  %v3045_v39 = vpop.f32.mrf.mxu1 }
 0xa61   : > { %v3075_v19 = vadd.f32 %v3032_v24, %v1953_v15  ;;  %v3076_v20 = vadd.f32 %v3045_v39, %v1982_v47  ;;  %v7213_v15 = vld [vmem:[%s12388_s2 + $0x198] sm:$0xf0]  ;;  %v7212_v47 = vor.u32 %v7976_v32, %v7211_v14  ;;  %v7187_v24 = vld [vmem:[%s12388_s2 + $0x160] sm:$0xf]  ;;  %v7163_v14 = vld [vmem:[%s12388_s2 + $0x128] sm:$0xf] }
 0xa62   : > { %v7216_v42 = vor.u32 %v7974_v60, %v7213_v15  ;;  %v7964_v32 = vld [vmem:[%s12388_s2 + $0x134] sm:$0xf0]  ;;  %v7962_v15 = vld [vmem:[%s12388_s2 + $0x12c] sm:$0xf] }
 0xa63   : > { %v7082_v40 = vmul.f32 -1.442695, %v3075_v19  ;;  %v7083_v11 = vmul.f32 -1.442695, %v3076_v20  ;;  %3566 = vmatpush.bf16.msra.mxu2 %v7212_v47  ;;  %v7188_v19 = vor.u32 %v7971_v49, %v7187_v24  ;;  %v7969_v20 = vld [vmem:[%s12388_s2 + $0x164] sm:$0xf]  ;;  %v7164_v60 = vor.u32 %v7964_v32, %v7163_v14 }
 0xa64   : > { %3595 = vmatpush.bf16.msra.mxu3 %v7216_v42  ;;  %v7192_v31 = vor.u32 %v7969_v20, %v7189_v28  ;;  %v7139_v47 = vld [vmem:[%s12388_s2 + $0x100] sm:$0xf]  ;;  %v7959_v24 = vld [vmem:[%s12388_s2 + $0x10c] sm:$0xf0]  ;;  %v7960_v20 = vld [vmem:[%s12388_s2 + $0x114] sm:$0xf0] }
 0xa65   : > { %8332 = vpow2.f32 %v7082_v40  ;;  %v7972_v40 = vld [vmem:[%s12388_s2 + $0x174] sm:$0xf0]  ;;  %3509 = vmatpush.bf16.msra.mxu0 %v7188_v19  ;;  %v7147_v19 = vld [vmem:[%s12388_s2 + $0x108] sm:$0xf]  ;;  %v7958_v28 = vld [vmem:[%s12388_s2 + $0x10c] sm:$0xf] }
 0xa66   : > { %8334 = vpow2.f32 %v7083_v11  ;;  %v7196_v18 = vor.u32 %v7972_v40, %v7195_v7  ;;  %3538 = vmatpush.bf16.msrb.mxu1 %v7192_v31  ;;  %v7149_v40 = vld [vmem:[%s12388_s2 + $0x118] sm:$0xf0] }
 0xa67   : > { %v3058_v12 = vpop.f32.mrf.mxu2  ;;  %v3071_v45 = vpop.f32.mrf.mxu3 }
 0xa68   : > { %v3077_v30 = vadd.f32 %v3058_v12, %v2011_v4  ;;  %v3034_v58 = vpop.f32.mrf.mxu0  ;;  %v3047_v13 = vpop.f32.mrf.mxu1  ;;  %v3078_v17 = vadd.f32 %v3071_v45, %v2040_v37  ;;  %3567 = vmatpush.bf16.msra.mxu2 %v7196_v18  ;;  %v7173_v4 = vld [vmem:[%s12388_s2 + $0x150] sm:$0xf0]  ;;  %3596 = vmatpush.bf16.msra.mxu3 %v7200_v6  ;;  %v7966_v12 = vld [vmem:[%s12388_s2 + $0x14c] sm:$0xf]  ;;  %v7181_v45 = vld [vmem:[%s12388_s2 + $0x158] sm:$0xf0]  ;;  %v7140_v37 = vor.u32 %v7959_v24, %v7139_v47 }
 0xa69   : > { %3510 = vmatpush.bf16.msra.mxu0 %v7172_v1  ;;  %v7176_v13 = vor.u32 %v7965_v41, %v7173_v4  ;;  %v7184_v51 = vor.u32 %v7966_v12, %v7181_v45  ;;  %v7148_v18 = vor.u32 %v7960_v20, %v7147_v19  ;;  %v7152_v6 = vor.u32 %v7958_v28, %v7149_v40  ;;  %v7413_v47 = vld [vmem:[%s12389_s3 + $0x2f0] sm:$0xf0]  ;;  %v7395_v20 = vld [vmem:[%s12389_s3 + $0x2c0] sm:$0xf]  ;;  %v8015_v28 = vld [vmem:[%s12389_s3 + $0x2cc] sm:$0xf0] }
 0xa6a   : > { %v7084_v9 = vmul.f32 -1.442695, %v3077_v30  ;;  %v7403_v40 = vld [vmem:[%s12389_s3 + $0x2c8] sm:$0xf] }
 0xa6b   : > { %v8333_v33 = vpop.eup %8332  ;;  %3539 = vmatpush.bf16.msrb.mxu1 %v7176_v13 }
 0xa6c   : > { %v8335_v63 = vpop.eup %8334  ;;  %v10475_v2 = vadd.f32 1.0, %v8333_v33  ;;  %8336 = vpow2.f32 %v7084_v9  ;;  %3568 = vmatpush.bf16.msra.mxu2 %v7180_v5  ;;  %v7165_v33 = vld [vmem:[%s12388_s2 + $0x138] sm:$0xf0]  ;;  %3597 = vmatpush.bf16.msra.mxu3 %v7184_v51 }
 0xa6d   : > { %v10477_v35 = vadd.f32 1.0, %v8335_v63  ;;  %3511 = vmatpush.bf16.msra.mxu0 %v7156_v43  ;;  %v7168_v42 = vor.u32 %v7962_v15, %v7165_v33  ;;  %v12513_v43 = vld [vmem:[#allocation27_spill] sm:$0xff] }
 0xa6e   : > { %8338 = vrcp.f32 %v10475_v2  ;;  %v3100_v52 = vand.u32 2147483647, %v10475_v2  ;;  %v3102_v38 = vand.u32 2147483648, %v10475_v2  ;;  %vm3096_vm13 = vweird.f32 %v10475_v2 }
 0xa6f   : > { %8340 = vrcp.f32 %v10477_v35  ;;  %v3060_v39 = vpop.f32.mrf.mxu2  ;;  %v3073_v46 = vpop.f32.mrf.mxu3  ;;  %v3115_v26 = vand.u32 2147483647, %v10477_v35  ;;  %v3117_v58 = vand.u32 2147483648, %v10477_v35  ;;  %vm3111_vm12 = vweird.f32 %v10477_v35  ;;  %3540 = vmatpush.bf16.msrb.mxu1 %v7160_v8  ;;  %v8017_v8 = vld [vmem:[%s12389_s3 + $0x2e4] sm:$0xf] }
 0xa70   : > { %vm10558_vm9 = vcmp.eq.f32.partialorder %v3100_v52, 8.507059e+37  ;;  %v7957_v39 = vld [vmem:[%s12388_s2 + $0x104] sm:$0xf]  ;;  %v7141_v46 = vld [vmem:[%s12388_s2 + $0x110] sm:$0xf0]  ;;  %3569 = vmatpush.bf16.msra.mxu2 %v7164_v60  ;;  %3598 = vmatpush.bf16.msra.mxu3 %v7168_v42  ;;  %v2013_v14 = vadd.f32 %v12513_v43, %v10144_v25  ;;  %v10650_v24 = vor.u32 %v8017_v8, %v7413_v47 }
 0xa71   : > { %v3118_v31 = vor.u32 1.1754944e-38, %v3117_v58  ;;  %vm3116_vm0 = vcmp.eq.f32.partialorder %v3115_v26, 8.507059e+37  ;;  %3512 = vmatpush.bf16.msra.mxu0 %v7140_v37  ;;  %v7953_v26 = vld [vmem:[#allocation3] sm:$0xff]  ;;  %v12512_v58 = vld [vmem:[#allocation26_spill] sm:$0xff]  ;;  %v8020_v42 = vld [vmem:[%s12389_s3 + $0x2f4] sm:$0xf0] }
 0xa72   : > { %v8337_v11 = vpop.eup %8336  ;;  %v1984_v13 = vadd.f32 %v12512_v58, %v10136_v59  ;;  %v8019_v59 = vld [vmem:[%s12389_s3 + $0x2ec] sm:$0xf0]  ;;  %v8008_v43 = vld [vmem:[%s12389_s3 + $0x294] sm:$0xf0]  ;;  %v7389_v8 = vld [vmem:[%s12389_s3 + $0x2b8] sm:$0xf0] }
 0xa73   : > { %v10511_v48 = vadd.f32 1.0, %v8337_v11  ;;  %v8001_v47 = vld [vmem:[%s12389_s3 + $0x264] sm:$0xf] }
 0xa74   : > { %v10519_v34 = vpop.eup %8338  ;;  %3570 = vmatpush.bf16.msra.mxu2 %v7148_v18  ;;  %3599 = vmatpush.bf16.msra.mxu3 %v7152_v6  ;;  %v8016_v18 = vld [vmem:[%s12389_s3 + $0x2d4] sm:$0xf0] }
 0xa75   : > { %v10530_v36 = vpop.eup %8340  ;;  %v3092_v53 = vmul.f32 %v10519_v34, %v10475_v2  ;;  %8342 = vrcp.f32 %v10511_v48  ;;  %vm3097_vm10 = vweird.f32 %v10519_v34  ;;  %v3103_v2 = vor.u32 1.1754944e-38, %v3102_v38 }
 0xa76   : > { %v3107_v54 = vmul.f32 %v10530_v36, %v10477_v35  ;;  %8344 = vtanh.f32 %v3078_v17  ;;  %vm3112_vm11 = vweird.f32 %v10530_v36  ;;  %vm3098_vm14 = vmor %vm3096_vm13, %vm3097_vm10  ;;  %v7144_v17 = vor.u32 %v7957_v39, %v7141_v46  ;;  %v8018_v46 = vld [vmem:[%s12389_s3 + $0x2ec] sm:$0xf] }
 0xa77   : > { %v3093_v30 = vsub.f32 1.0, %v3092_v53  ;;  %vm3113_vm15 = vmor %vm3111_vm12, %vm3112_vm11  ;;  %v3132_v3 = vand.u32 2147483648, %v10511_v48  ;;  %vm3126_vm2 = vweird.f32 %v10511_v48 }
 0xa78   : > { %v3108_v62 = vsub.f32 1.0, %v3107_v54  ;;  %3541 = vmatpush.bf16.msrb.mxu1 %v7144_v17 }
 0xa79   : > { %v3094_v9 = vmul.f32 %v10519_v34, %v3093_v30  ;;  %v3133_v38 = vor.u32 1.1754944e-38, %v3132_v3  ;;  %v1955_v30 = vadd.f32 %v12511_v57, %v10134_v44  ;;  %v7411_v44 = vld [vmem:[%s12389_s3 + $0x2e0] sm:$0xf] }
 0xa7a   : > { %v3109_v63 = vmul.f32 %v10530_v36, %v3108_v62  ;;  %v10639_v25 = vor.u32 %v8019_v59, %v7411_v44 }
 0xa7b   : > { %v8343_v49 = vpop.eup %8342  ;;  %v3095_v22 = vadd.f32 %v10519_v34, %v3094_v9 }
 0xa7c   : > { %v8345_v52 = vpop.eup %8344  ;;  %v3122_v35 = vmul.f32 %v8343_v49, %v10511_v48  ;;  %v3110_v7 = vadd.f32 %v10530_v36, %v3109_v63  ;;  %vm3127_vm1 = vweird.f32 %v8343_v49  ;;  %v7419_v63 = vld [vmem:[%s12389_s3 + $0x2e8] sm:$0xf] }
 0xa7d   : > { %v3099_v11 = vsel %vm3098_vm14, %v10519_v34, %v3095_v22  ;;  %vm3128_vm3 = vmor %vm3126_vm2, %vm3127_vm1  ;;  %v10652_v39 = vor.u32 %v8020_v42, %v7419_v63 }
 0xa7e   : > { %v3123_v61 = vsub.f32 1.0, %v3122_v35  ;;  %v3104_v16 = vsel %vm10558_vm9, %v3103_v2, %v3099_v11  ;;  %v3114_v29 = vsel %vm3113_vm15, %v10530_v36, %v3110_v7  ;;  %v3130_v36 = vand.u32 2147483647, %v10511_v48  ;;  %v7955_v48 = vld [vmem:[#allocation3 + $0x10] sm:$0xff] }
 0xa7f   : > { %v3119_v55 = vsel %vm3116_vm0, %v3118_v31, %v3114_v29  ;;  %v3138_v41 = vmul.f32 %v8345_v52, %v3104_v16  ;;  %v8013_v52 = vld [vmem:[%s12389_s3 + $0x2c4] sm:$0xf]  ;;  %v10676_v2 = vor.u32 %v8015_v28, %v7395_v20  ;;  %v7397_v7 = vld [vmem:[%s12389_s3 + $0x2d0] sm:$0xf0]  ;;  %v7405_v16 = vld [vmem:[%s12389_s3 + $0x2d8] sm:$0xf0] }
 0xa80   : > { %v3124_v1 = vmul.f32 %v8343_v49, %v3123_v61  ;;  %v3137_v4 = vmul.f32 %v3119_v55, %v10370_v0  ;;  %vm3131_vm4 = vcmp.eq.f32.partialorder %v3130_v36, 8.507059e+37  ;;  %v10687_v17 = vor.u32 %v8013_v52, %v7397_v7  ;;  %v8014_v61 = vld [vmem:[%s12389_s3 + $0x2cc] sm:$0xf]  ;;  %v7379_v55 = vld [vmem:[%s12389_s3 + $0x2a0] sm:$0xf] }
 0xa81   : > { %v10714_v3 = vor.u32 %v8014_v61, %v7405_v16  ;;  %v8006_v7 = vld [vmem:[%s12389_s3 + $0x28c] sm:$0xf]  ;;  %v7331_v61 = vld [vmem:[%s12389_s3 + $0x240] sm:$0xf]  ;;  %v7999_v16 = vld [vmem:[%s12389_s3 + $0x24c] sm:$0xf0] }
 0xa82   : > { %v10616_v34 = vadd.f32 %v3138_v41, %v3137_v4  ;;  %v3125_v50 = vadd.f32 %v8343_v49, %v3124_v1  ;;  %v10706_v1 = vor.u32 %v8016_v18, %v7403_v40  ;;  %v8011_v4 = vld [vmem:[%s12389_s3 + $0x2ac] sm:$0xf0]  ;;  %v7373_v18 = vld [vmem:[%s12389_s3 + $0x298] sm:$0xf0] }
 0xa84   : > { %8346 = vtanh.f32 %v10616_v34  ;;  %v3129_v53 = vsel %vm3128_vm3, %v8343_v49, %v3125_v50  ;;  %v7421_v49 = vld [vmem:[%s12389_s3 + $0x2f8] sm:$0xf0]  ;;  %v8009_v50 = vld [vmem:[%s12389_s3 + $0x2a4] sm:$0xf] }
 0xa85   : > { %v3134_v12 = vsel %vm3131_vm4, %v3133_v38, %v3129_v53  ;;  %v10661_v37 = vor.u32 %v8018_v46, %v7421_v49  ;;  %v7381_v53 = vld [vmem:[%s12389_s3 + $0x2b0] sm:$0xf0]  ;;  %v7387_v38 = vld [vmem:[%s12389_s3 + $0x2a8] sm:$0xf] }
 0xa8a   : > { %v8347_v0 = vpop.eup %8346 }
 0xa8b   : > { %v3141_v45 = vmul.f32 %v8347_v0, %v3134_v12  ;;  %v12514_v12 = vld [vmem:[#allocation28_spill] sm:$0xff] }
 0xa8d   : > { %v3142_v54 = vpack.c.bf16 %v3141_v45, %v3141_v45  ;;  %v2042_v45 = vadd.f32 %v12514_v12, %v12487_v21  ;;  %v8007_v21 = vld [vmem:[%s12389_s3 + $0x28c] sm:$0xf0]  ;;  %v8002_v12 = vld [vmem:[%s12389_s3 + $0x26c] sm:$0xf] }
 0xa8f   : > { %3143 = vst [vmem:[#allocation3 + $0x18] sm:$0xf] %v3142_v54  ;;  %3156 = vmatmul.bf16.vlgmr.msrb.gmra.mxu0 %v3142_v54  ;;  %3169 = vmatmul.bf16.vlgmr.msra.gmra.mxu1 %v3142_v54 }
 0xa90   : > { %3182 = vmatmul.bf16.vlgmr.msrb.gmra.mxu2 %v3142_v54  ;;  %3195 = vmatmul.bf16.vlgmr.msrb.gmra.mxu3 %v3142_v54  ;;  %v10726_v54 = vor.u32 %v8011_v4, %v7379_v55  ;;  %v7997_v4 = vld [vmem:[%s12389_s3 + $0x244] sm:$0xf] }
 0xa91   : > { %3850 = vmatpush.bf16.msrb.mxu0 %v10639_v25  ;;  %3863 = vmatpush.bf16.msra.mxu1 %v10650_v24 }
 0xa92   : > { %3876 = vmatpush.bf16.msrb.mxu2 %v10652_v39  ;;  %3889 = vmatpush.bf16.msrb.mxu3 %v10661_v37 }
 0xa95   : > { %3851 = vmatpush.bf16.msrb.mxu0 %v10676_v2  ;;  %3864 = vmatpush.bf16.msra.mxu1 %v10687_v17 }
 0xa96   : > { %3877 = vmatpush.bf16.msrb.mxu2 %v10706_v1  ;;  %3890 = vmatpush.bf16.msrb.mxu3 %v10714_v3 }
 0xa99   : > { %3852 = vmatpush.bf16.msrb.mxu0 %v10726_v54 }
 0xa9f   : > { %3513 = vmatmul.bf16.vlgmr.msra.gmra.mxu0 %v7953_v26  ;;  %3542 = vmatmul.bf16.vlgmr.msrb.gmra.mxu1 %v7953_v26 }
 0xaa0   : > { %3571 = vmatmul.bf16.vlgmr.msra.gmra.mxu2 %v7953_v26  ;;  %3600 = vmatmul.bf16.vlgmr.msra.gmra.mxu3 %v7953_v26  ;;  %v10728_v26 = vor.u32 %v8009_v50, %v7381_v53  ;;  %v7333_v50 = vld [vmem:[%s12389_s3 + $0x250] sm:$0xf0] }
 0xaa2   : > { %3865 = vmatpush.bf16.msra.mxu1 %v10728_v26 }
 0xaaf   : > { %3518 = vmatmul.bf16.gmra.mxu0 %v7954_v27  ;;  %3547 = vmatmul.bf16.gmra.mxu1 %v7954_v27 }
 0xab0   : > { %3576 = vmatmul.bf16.gmra.mxu2 %v7954_v27  ;;  %3605 = vmatmul.bf16.gmra.mxu3 %v7954_v27  ;;  %v8012_v27 = vld [vmem:[%s12389_s3 + $0x2b4] sm:$0xf0] }
 0xab1   : > { %v10743_v58 = vor.u32 %v8012_v27, %v7387_v38 }
 0xab3   : > { %3878 = vmatpush.bf16.msrb.mxu2 %v10743_v58 }
 0xabf   : > { %3523 = vmatmul.bf16.gmra.mxu0 %v7955_v48  ;;  %3552 = vmatmul.bf16.gmra.mxu1 %v7955_v48 }
 0xac0   : > { %3581 = vmatmul.bf16.gmra.mxu2 %v7955_v48  ;;  %3610 = vmatmul.bf16.gmra.mxu3 %v7955_v48  ;;  %v7363_v48 = vld [vmem:[%s12389_s3 + $0x280] sm:$0xf] }
 0xb0c   : > { %v3157_v5 = vpop.f32.mrf.mxu0  ;;  %v3170_v23 = vpop.f32.mrf.mxu1 }
 0xb0d   : > { %v3200_v56 = vadd.f32 %v3157_v5, %v1955_v30  ;;  %v3201_v62 = vadd.f32 %v3170_v23, %v1984_v13  ;;  %v8005_v13 = vld [vmem:[%s12389_s3 + $0x284] sm:$0xf]  ;;  %v7365_v5 = vld [vmem:[%s12389_s3 + $0x290] sm:$0xf0] }
 0xb0f   : > { %v7085_v10 = vmul.f32 -1.442695, %v3200_v56  ;;  %v7086_v51 = vmul.f32 -1.442695, %v3201_v62  ;;  %v10756_v62 = vor.u32 %v8007_v21, %v7363_v48 }
 0xb11   : > { %8348 = vpow2.f32 %v7085_v10  ;;  %v10758_v10 = vor.u32 %v8005_v13, %v7365_v5  ;;  %3853 = vmatpush.bf16.msrb.mxu0 %v10756_v62  ;;  %v10883_v5 = vor.u32 %v7997_v4, %v7333_v50  ;;  %v7307_v50 = vld [vmem:[%s12389_s3 + $0x208] sm:$0xf] }
 0xb12   : > { %8350 = vpow2.f32 %v7086_v51  ;;  %v7371_v51 = vld [vmem:[%s12389_s3 + $0x288] sm:$0xf] }
 0xb13   : > { %v3183_v32 = vpop.f32.mrf.mxu2  ;;  %v10628_v9 = vpop.f32.mrf.mxu3  ;;  %v10796_v46 = vor.u32 %v8008_v43, %v7371_v51  ;;  %3866 = vmatpush.bf16.msra.mxu1 %v10758_v10  ;;  %v7315_v51 = vld [vmem:[%s12389_s3 + $0x220] sm:$0xf]  ;;  %v7995_v43 = vld [vmem:[%s12389_s3 + $0x22c] sm:$0xf0] }
 0xb14   : > { %v3202_v60 = vadd.f32 %v3183_v32, %v2013_v14  ;;  %v3159_v15 = vpop.f32.mrf.mxu0  ;;  %v3172_v33 = vpop.f32.mrf.mxu1  ;;  %v3203_v56 = vadd.f32 %v10628_v9, %v2042_v45  ;;  %v8010_v14 = vld [vmem:[%s12389_s3 + $0x2ac] sm:$0xf]  ;;  %v7357_v45 = vld [vmem:[%s12389_s3 + $0x278] sm:$0xf0] }
 0xb15   : > { %v7347_v15 = vld [vmem:[%s12389_s3 + $0x260] sm:$0xf]  ;;  %v8003_v33 = vld [vmem:[%s12389_s3 + $0x26c] sm:$0xf0]  ;;  %v10798_v49 = vor.u32 %v8010_v14, %v7389_v8  ;;  %3879 = vmatpush.bf16.msrb.mxu2 %v10796_v46  ;;  %v7993_v14 = vld [vmem:[%s12389_s3 + $0x224] sm:$0xf] }
 0xb16   : > { %v7087_v22 = vmul.f32 -1.442695, %v3202_v60 }
 0xb17   : > { %v8349_v19 = vpop.eup %8348  ;;  %3891 = vmatpush.bf16.msrb.mxu3 %v10798_v49 }
 0xb18   : > { %v8351_v31 = vpop.eup %8350  ;;  %v10674_v35 = vadd.f32 1.0, %v8349_v19  ;;  %8352 = vpow2.f32 %v7087_v22  ;;  %v7349_v22 = vld [vmem:[%s12389_s3 + $0x270] sm:$0xf0]  ;;  %v7355_v19 = vld [vmem:[%s12389_s3 + $0x268] sm:$0xf] }
 0xb19   : > { %v10685_v11 = vadd.f32 1.0, %v8351_v31  ;;  %v8004_v31 = vld [vmem:[%s12389_s3 + $0x274] sm:$0xf0] }
 0xb1a   : > { %8354 = vrcp.f32 %v10674_v35  ;;  %v3225_v41 = vand.u32 2147483647, %v10674_v35  ;;  %v3227_v36 = vand.u32 2147483648, %v10674_v35  ;;  %v10836_v55 = vor.u32 %v8004_v31, %v7355_v19  ;;  %v7299_v31 = vld [vmem:[%s12389_s3 + $0x200] sm:$0xf] }
 0xb1b   : > { %8356 = vrcp.f32 %v10685_v11  ;;  %v3185_v29 = vpop.f32.mrf.mxu2  ;;  %v3198_v6 = vpop.f32.mrf.mxu3  ;;  %v3242_v57 = vand.u32 2147483648, %v10685_v11  ;;  %v3240_v59 = vand.u32 2147483647, %v10685_v11  ;;  %vm3236_vm6 = vweird.f32 %v10685_v11 }
 0xb1c   : > { %vm10774_vm5 = vcmp.eq.f32.partialorder %v3225_v41, 8.507059e+37  ;;  %v3228_v42 = vor.u32 1.1754944e-38, %v3227_v36  ;;  %v10834_v6 = vor.u32 %v8001_v47, %v7349_v22  ;;  %v10838_v41 = vor.u32 %v8006_v7, %v7373_v18  ;;  %v7339_v36 = vld [vmem:[%s12389_s3 + $0x248] sm:$0xf]  ;;  %3880 = vmatpush.bf16.msrb.mxu2 %v10836_v55  ;;  %v7994_v7 = vld [vmem:[%s12389_s3 + $0x22c] sm:$0xf] }
 0xb1d   : > { %v3243_v52 = vor.u32 1.1754944e-38, %v3242_v57  ;;  %vm3221_vm10 = vweird.f32 %v10674_v35  ;;  %vm10871_vm12 = vcmp.eq.f32.partialorder %v3240_v59, 8.507059e+37  ;;  %v10877_v57 = vor.u32 %v7999_v16, %v7331_v61  ;;  %v7989_v61 = vld [vmem:[%s12389_s3 + $0x204] sm:$0xf]  ;;  %v7301_v16 = vld [vmem:[%s12389_s3 + $0x210] sm:$0xf0] }
 0xb1e   : > { %v8353_v0 = vpop.eup %8352  ;;  %3867 = vmatpush.bf16.msra.mxu1 %v10834_v6  ;;  %3892 = vmatpush.bf16.msrb.mxu3 %v10838_v41 }
 0xb1f   : > { %v10741_v30 = vadd.f32 1.0, %v8353_v0  ;;  %v8000_v0 = vld [vmem:[%s12389_s3 + $0x254] sm:$0xf0] }
 0xb20   : > { %v10751_v23 = vpop.eup %8354 }
 0xb21   : > { %v10769_v32 = vpop.eup %8356  ;;  %v3217_v9 = vmul.f32 %v10751_v23, %v10674_v35  ;;  %8358 = vrcp.f32 %v10741_v30  ;;  %vm3222_vm9 = vweird.f32 %v10751_v23  ;;  %vm3251_vm14 = vweird.f32 %v10741_v30 }
 0xb22   : > { %v3232_v60 = vmul.f32 %v10769_v32, %v10685_v11  ;;  %vm3237_vm7 = vweird.f32 %v10769_v32  ;;  %8360 = vtanh.f32 %v3203_v56  ;;  %v10821_v11 = vor.u32 %v8003_v33, %v7347_v15  ;;  %vm10866_vm11 = vmor %vm3221_vm10, %vm3222_vm9  ;;  %v7317_v15 = vld [vmem:[%s12389_s3 + $0x230] sm:$0xf0]  ;;  %v7998_v33 = vld [vmem:[%s12389_s3 + $0x24c] sm:$0xf]  ;;  %3868 = vmatpush.bf16.msra.mxu1 %v10883_v5 }
 0xb23   : > { %v3218_v63 = vsub.f32 1.0, %v3217_v9  ;;  %vm10806_vm8 = vmor %vm3236_vm6, %vm3237_vm7  ;;  %v10885_v56 = vor.u32 %v8002_v12, %v7357_v45  ;;  %v10928_v28 = vor.u32 %v7993_v14, %v7317_v15  ;;  %v3255_v12 = vand.u32 2147483647, %v10741_v30  ;;  %v3543_v15 = vpop.f32.mrf.mxu1 }
 0xb24   : > { %v3233_v20 = vsub.f32 1.0, %v3232_v60  ;;  %3854 = vmatpush.bf16.msrb.mxu0 %v10821_v11  ;;  %v10902_v60 = vor.u32 %v8000_v0, %v7339_v36  ;;  %v7992_v36 = vld [vmem:[%s12389_s3 + $0x214] sm:$0xf0]  ;;  %v10969_v45 = vor.u32 %v7989_v61, %v7301_v16 }
 0xb25   : > { %v3219_v40 = vmul.f32 %v10751_v23, %v3218_v63  ;;  %v7996_v63 = vld [vmem:[%s12389_s3 + $0x234] sm:$0xf0]  ;;  %3893 = vmatpush.bf16.msrb.mxu3 %v10885_v56  ;;  %v10974_v48 = vor.u32 %v7992_v36, %v7307_v50  ;;  %vm3256_vm0 = vcmp.eq.f32.partialorder %v3255_v12, 8.507059e+37 }
 0xb26   : > { %v3234_v29 = vmul.f32 %v10769_v32, %v3233_v20  ;;  %v10924_v20 = vor.u32 %v7995_v43, %v7315_v51  ;;  %3881 = vmatpush.bf16.msrb.mxu2 %v10902_v60  ;;  %3869 = vmatpush.bf16.msra.mxu1 %v10928_v28 }
 0xb27   : > { %v10849_v53 = vpop.eup %8358  ;;  %v3220_v38 = vadd.f32 %v10751_v23, %v3219_v40 }
 0xb28   : > { %v3247_v27 = vmul.f32 %v10849_v53, %v10741_v30  ;;  %v3235_v35 = vadd.f32 %v10769_v32, %v3234_v29  ;;  %v8361_v9 = vpop.eup %8360  ;;  %3855 = vmatpush.bf16.msrb.mxu0 %v10877_v57  ;;  %v7325_v29 = vld [vmem:[%s12389_s3 + $0x238] sm:$0xf0]  ;;  %vm3252_vm13 = vweird.f32 %v10849_v53 }
 0xb29   : > { %v3224_v13 = vsel %vm10866_vm11, %v10751_v23, %v3220_v38  ;;  %v3257_v38 = vand.u32 2147483648, %v10741_v30  ;;  %vm3253_vm15 = vmor %vm3251_vm14, %vm3252_vm13  ;;  %v7309_v30 = vld [vmem:[%s12389_s3 + $0x218] sm:$0xf0] }
 0xb2a   : > { %v3248_v23 = vsub.f32 1.0, %v3247_v27  ;;  %v3229_v59 = vsel %vm10774_vm5, %v3228_v42, %v3224_v13  ;;  %v3239_v8 = vsel %vm10806_vm8, %v10769_v32, %v3235_v35  ;;  %v7323_v32 = vld [vmem:[%s12389_s3 + $0x228] sm:$0xf]  ;;  %v7341_v42 = vld [vmem:[%s12389_s3 + $0x258] sm:$0xf0]  ;;  %v10971_v27 = vor.u32 %v7994_v7, %v7325_v29  ;;  %3870 = vmatpush.bf16.msra.mxu1 %v10969_v45 }
 0xb2b   : > { %v3244_v44 = vsel %vm10871_vm12, %v3243_v52, %v3239_v8  ;;  %v3263_v47 = vmul.f32 %v8361_v9, %v3229_v59  ;;  %v10930_v52 = vor.u32 %v7998_v33, %v7341_v42  ;;  %v10942_v18 = vor.u32 %v7996_v63, %v7323_v32  ;;  %v7990_v35 = vld [vmem:[%s12389_s3 + $0x20c] sm:$0xf]  ;;  %v3514_v8 = vpop.f32.mrf.mxu0  ;;  %v3572_v33 = vpop.f32.mrf.mxu2 }
 0xb2c   : > { %v3249_v22 = vmul.f32 %v10849_v53, %v3248_v23  ;;  %v3262_v19 = vmul.f32 %v3244_v44, %v10616_v34  ;;  %v7991_v34 = vld [vmem:[%s12389_s3 + $0x20c] sm:$0xf0]  ;;  %3856 = vmatpush.bf16.msrb.mxu0 %v10924_v20  ;;  %v3258_v13 = vor.u32 1.1754944e-38, %v3257_v38  ;;  %v10986_v51 = vor.u32 %v7990_v35, %v7309_v30  ;;  %v3601_v44 = vpop.f32.mrf.mxu3  ;;  %v11060_v32 = vpop.f32.mrf.mxu1 }
 0xb2d   : > { %v10963_v0 = vor.u32 %v7991_v34, %v7299_v31  ;;  %3894 = vmatpush.bf16.msrb.mxu3 %v10930_v52  ;;  %3882 = vmatpush.bf16.msrb.mxu2 %v10942_v18  ;;  %v12523_v59 = vmov 0  }
 0xb2e   : > { %v3264_v40 = vadd.f32 %v3263_v47, %v3262_v19  ;;  %v3250_v4 = vadd.f32 %v10849_v53, %v3249_v22  ;;  %3988 = vmatpush.bf16.msrb.mxu1 %v10650_v24 }
 0xb30   : > { %8362 = vtanh.f32 %v3264_v40  ;;  %v3254_v21 = vsel %vm3253_vm15, %v10849_v53, %v3250_v4  ;;  %3857 = vmatpush.bf16.msrb.mxu0 %v10963_v0 }
 0xb31   : > { %3895 = vmatpush.bf16.msrb.mxu3 %v10971_v27  ;;  %v3259_v14 = vsel %vm3256_vm0, %v3258_v13, %v3254_v21  ;;  %3883 = vmatpush.bf16.msrb.mxu2 %v10974_v48 }
 0xb32   : > { %3989 = vmatpush.bf16.msrb.mxu1 %v10687_v17 }
 0xb33   : > { %v11058_v47 = vpop.f32.mrf.mxu0  ;;  %v11062_v63 = vpop.f32.mrf.mxu2 }
 0xb34   : > { %3975 = vmatpush.bf16.msra.mxu0 %v10639_v25  ;;  %v11064_v42 = vpop.f32.mrf.mxu3  ;;  %v11068_v19 = vpop.f32.mrf.mxu1 }
 0xb35   : > { %4001 = vmatpush.bf16.msra.mxu2 %v10652_v39  ;;  %3896 = vmatpush.bf16.msrb.mxu3 %v10986_v51  ;;  %12524 = vst [vmem:[#allocation29_spill] sm:$0xff] %v11064_v42 }
 0xb36   : > { %v8363_v43 = vpop.eup %8362  ;;  %3990 = vmatpush.bf16.msrb.mxu1 %v10728_v26  ;;  %12526 = vst [vmem:[#allocation8_spill] sm:$0xff] %v11068_v19 }
 0xb37   : > { %v3266_v9 = vmul.f32 %v8363_v43, %v3259_v14 }
 0xb38   : > { %3976 = vmatpush.bf16.msra.mxu0 %v10676_v2 }
 0xb39   : > { %v3267_v53 = vpack.c.bf16 %v3266_v9, %v3266_v9  ;;  %4014 = vmatpush.bf16.msra.mxu3 %v10661_v37  ;;  %4002 = vmatpush.bf16.msra.mxu2 %v10706_v1  ;;  %v7120_v9 = vld [vmem:[%s12390_s4 + $0x8] sm:$0xf] }
 0xb3a   : > { %3991 = vmatpush.bf16.msrb.mxu1 %v10758_v10 }
 0xb3b   : > { %3268 = vst [vmem:[#allocation3 + $0x1c] sm:$0xf] %v3267_v53  ;;  %v11066_v22 = vpop.f32.mrf.mxu0  ;;  %v11070_v31 = vpop.f32.mrf.mxu2 }
 0xb3c   : > { %3977 = vmatpush.bf16.msra.mxu0 %v10726_v54  ;;  %12525 = vst [vmem:[#allocation7_spill] sm:$0xff] %v11066_v22  ;;  %v11072_v34 = vpop.f32.mrf.mxu3  ;;  %v11076_v40 = vpop.f32.mrf.mxu1 }
 0xb3d   : > { %4015 = vmatpush.bf16.msra.mxu3 %v10714_v3  ;;  %4003 = vmatpush.bf16.msra.mxu2 %v10743_v58  ;;  %12527 = vst [vmem:[#allocation15_spill] sm:$0xff] %v11070_v31 }
 0xb3e   : > { %3992 = vmatpush.bf16.msrb.mxu1 %v10834_v6  ;;  %12528 = vst [vmem:[#allocation9_spill] sm:$0xff] %v11072_v34 }
 0xb3f   : > { %12530 = vst [vmem:[#allocation10_spill] sm:$0xff] %v11076_v40 }
 0xb40   : > { %3978 = vmatpush.bf16.msra.mxu0 %v10756_v62 }
 0xb41   : > { %4016 = vmatpush.bf16.msra.mxu3 %v10798_v49  ;;  %4004 = vmatpush.bf16.msra.mxu2 %v10796_v46 }
 0xb42   : > { %v7956_v23 = vld [vmem:[#allocation3 + $0x18] sm:$0xff]  ;;  %3993 = vmatpush.bf16.msrb.mxu1 %v10883_v5 }
 0xb43   : > { %3528 = vmatmul.bf16.gmra.mxu0 %v7956_v23  ;;  %3557 = vmatmul.bf16.gmra.mxu1 %v7956_v23  ;;  %v11074_v7 = vpop.f32.mrf.mxu0  ;;  %v11078_v61 = vpop.f32.mrf.mxu2 }
 0xb44   : > { %3586 = vmatmul.bf16.gmra.mxu2 %v7956_v23  ;;  %3615 = vmatmul.bf16.gmra.mxu3 %v7956_v23  ;;  %12529 = vst [vmem:[#allocation6_spill] sm:$0xff] %v11074_v7  ;;  %v11080_v16 = vpop.f32.mrf.mxu3  ;;  %v11084_v4 = vpop.f32.mrf.mxu1 }
 0xb45   : > { %4017 = vmatpush.bf16.msra.mxu3 %v10838_v41  ;;  %3979 = vmatpush.bf16.msra.mxu0 %v10821_v11  ;;  %12531 = vst [vmem:[#allocation11_spill] sm:$0xff] %v11078_v61 }
 0xb46   : > { %4005 = vmatpush.bf16.msra.mxu2 %v10836_v55  ;;  %3994 = vmatpush.bf16.msrb.mxu1 %v10928_v28  ;;  %12532 = vst [vmem:[#allocation18_spill] sm:$0xff] %v11080_v16 }
 0xb47   : > { %12534 = vst [vmem:[#allocation13_spill] sm:$0xff] %v11084_v4 }
 0xb49   : > { %4018 = vmatpush.bf16.msra.mxu3 %v10885_v56  ;;  %3980 = vmatpush.bf16.msra.mxu0 %v10877_v57 }
 0xb4a   : > { %4006 = vmatpush.bf16.msra.mxu2 %v10902_v60  ;;  %3995 = vmatpush.bf16.msrb.mxu1 %v10969_v45 }
 0xb4b   : > { %v11082_v29 = vpop.f32.mrf.mxu0  ;;  %v11086_v50 = vpop.f32.mrf.mxu2 }
 0xb4c   : > { %12533 = vst [vmem:[#allocation12_spill] sm:$0xff] %v11082_v29  ;;  %v11088_v36 = vpop.f32.mrf.mxu3  ;;  %v11092_v12 = vpop.f32.mrf.mxu1 }
 0xb4d   : > { %4019 = vmatpush.bf16.msra.mxu3 %v10930_v52  ;;  %3981 = vmatpush.bf16.msra.mxu0 %v10924_v20  ;;  %12535 = vst [vmem:[#allocation14_spill] sm:$0xff] %v11086_v50  ;;  %v11123_v50 = vperm.slane %v7120_v9, 2 }
 0xb4e   : > { %4007 = vmatpush.bf16.msra.mxu2 %v10942_v18  ;;  %12536 = vst [vmem:[#allocation21_spill] sm:$0xff] %v11088_v36 }
 0xb4f   : > { %12538 = vst [vmem:[#allocation17_spill] sm:$0xff] %v11092_v12  ;;  %v3573_v4 = vadd.f32 %v3572_v33, %v11123_v50 }
 0xb51   : > { %4020 = vmatpush.bf16.msra.mxu3 %v10971_v27  ;;  %3982 = vmatpush.bf16.msra.mxu0 %v10963_v0 }
 0xb52   : > { %4008 = vmatpush.bf16.msra.mxu2 %v10974_v48 }
 0xb53   : > { %3858 = vmatmul.bf16.vlgmr.msrb.gmra.mxu0 %v12523_v59  ;;  %3871 = vmatmul.bf16.vlgmr.msra.gmra.mxu1 %v12523_v59  ;;  %v11090_v38 = vpop.f32.mrf.mxu0  ;;  %v11094_v35 = vpop.f32.mrf.mxu2 }
 0xb54   : > { %3884 = vmatmul.bf16.vlgmr.msrb.gmra.mxu2 %v12523_v59  ;;  %3897 = vmatmul.bf16.vlgmr.msrb.gmra.mxu3 %v12523_v59  ;;  %12537 = vst [vmem:[#allocation16_spill] sm:$0xff] %v11090_v38  ;;  %v11096_v30 = vpop.f32.mrf.mxu3  ;;  %v11113_v59 = vperm.slane %v7120_v9, 0 }
 0xb55   : > { %4021 = vmatpush.bf16.msra.mxu3 %v10986_v51  ;;  %4100 = vmatpush.bf16.msrb.mxu0 %v10639_v25  ;;  %12539 = vst [vmem:[#allocation4_spill] sm:$0xff] %v11094_v35  ;;  %v11115_v35 = vperm.slane %v7120_v9, 1 }
 0xb56   : > { %4113 = vmatpush.bf16.msra.mxu1 %v10650_v24  ;;  %4126 = vmatpush.bf16.msrb.mxu2 %v10652_v39  ;;  %12540 = vst [vmem:[#allocation24_spill] sm:$0xff] %v11096_v30 }
 0xb59   : > { %4139 = vmatpush.bf16.msrb.mxu3 %v10661_v37  ;;  %4101 = vmatpush.bf16.msrb.mxu0 %v10676_v2 }
 0xb5a   : > { %4114 = vmatpush.bf16.msra.mxu1 %v10687_v17  ;;  %4127 = vmatpush.bf16.msrb.mxu2 %v10706_v1 }
 0xb5d   : > { %4140 = vmatpush.bf16.msrb.mxu3 %v10714_v3  ;;  %4102 = vmatpush.bf16.msrb.mxu0 %v10726_v54 }
 0xb5e   : > { %4115 = vmatpush.bf16.msra.mxu1 %v10728_v26  ;;  %4128 = vmatpush.bf16.msrb.mxu2 %v10743_v58 }
 0xb61   : > { %4141 = vmatpush.bf16.msrb.mxu3 %v10798_v49  ;;  %4103 = vmatpush.bf16.msrb.mxu0 %v10756_v62 }
 0xb62   : > { %4116 = vmatpush.bf16.msra.mxu1 %v10758_v10  ;;  %4129 = vmatpush.bf16.msrb.mxu2 %v10796_v46 }
 0xb65   : > { %4142 = vmatpush.bf16.msrb.mxu3 %v10838_v41  ;;  %4104 = vmatpush.bf16.msrb.mxu0 %v10821_v11 }
 0xb66   : > { %4117 = vmatpush.bf16.msra.mxu1 %v10834_v6  ;;  %4130 = vmatpush.bf16.msrb.mxu2 %v10836_v55 }
 0xb69   : > { %4143 = vmatpush.bf16.msrb.mxu3 %v10885_v56  ;;  %4105 = vmatpush.bf16.msrb.mxu0 %v10877_v57 }
 0xb6a   : > { %4118 = vmatpush.bf16.msra.mxu1 %v10883_v5  ;;  %4131 = vmatpush.bf16.msrb.mxu2 %v10902_v60 }
 0xb6d   : > { %4144 = vmatpush.bf16.msrb.mxu3 %v10930_v52  ;;  %4106 = vmatpush.bf16.msrb.mxu0 %v10924_v20 }
 0xb6e   : > { %4119 = vmatpush.bf16.msra.mxu1 %v10928_v28  ;;  %4132 = vmatpush.bf16.msrb.mxu2 %v10942_v18 }
 0xb71   : > { %4145 = vmatpush.bf16.msrb.mxu3 %v10971_v27  ;;  %4107 = vmatpush.bf16.msrb.mxu0 %v10963_v0 }
 0xb72   : > { %4120 = vmatpush.bf16.msra.mxu1 %v10969_v45  ;;  %4133 = vmatpush.bf16.msrb.mxu2 %v10974_v48 }
 0xb75   : > { %4146 = vmatpush.bf16.msrb.mxu3 %v10986_v51 }
 0xbc0   : > { %v11098_v21 = vpop.f32.mrf.mxu0  ;;  %v11100_v13 = vpop.f32.mrf.mxu1 }
 0xbc1   : > { %12541 = vst [vmem:[#allocation19_spill] sm:$0xff] %v11098_v21  ;;  %v3515_v21 = vadd.f32 %v3514_v8, %v11113_v59 }
 0xbc2   : > { %12542 = vst [vmem:[#allocation20_spill] sm:$0xff] %v11100_v13  ;;  %v3544_v13 = vadd.f32 %v3543_v15, %v11115_v35 }
 0xbc7   : > { %v11102_v43 = vpop.f32.mrf.mxu2  ;;  %v11104_v14 = vpop.f32.mrf.mxu3 }
 0xbc8   : > { %12543 = vst [vmem:[#allocation5_spill] sm:$0xff] %v11102_v43  ;;  %v11109_v53 = vpop.f32.mrf.mxu0  ;;  %v11111_v23 = vpop.f32.mrf.mxu1 }
 0xbc9   : > { %12544 = vst [vmem:[#allocation25_spill] sm:$0xff] %v11104_v14 }
 0xbca   : > { %12545 = vst [vmem:[#allocation22_spill] sm:$0xff] %v11109_v53 }
 0xbcb   : > { %12546 = vst [vmem:[#allocation23_spill] sm:$0xff] %v11111_v23 }
 0xbcf   : > { %v11119_v30 = vpop.f32.mrf.mxu2  ;;  %v11121_v43 = vpop.f32.mrf.mxu3 }
 0xbd0   : > { %12547 = vst [vmem:[#allocation26_spill] sm:$0xff] %v11119_v30  ;;  %v3859_v14 = vpop.f32.mrf.mxu0  ;;  %v3872_v12 = vpop.f32.mrf.mxu1 }
 0xbd1   : > { %12548 = vst [vmem:[#allocation27_spill] sm:$0xff] %v11121_v43  ;;  %v3902_v38 = vadd.f32 %v3859_v14, %v3515_v21  ;;  %v3903_v36 = vadd.f32 %v3872_v12, %v3544_v13  ;;  %v11126_v12 = vperm.slane %v7120_v9, 3 }
 0xbd3   : > { %v7425_v53 = vmul.f32 -1.442695, %v3902_v38  ;;  %v7426_v23 = vmul.f32 -1.442695, %v3903_v36  ;;  %12549 = vst [vmem:[#allocation28_spill] sm:$0xff] %v11126_v12  ;;  %v3602_v33 = vadd.f32 %v3601_v44, %v11126_v12 }
 0xbd5   : > { %8364 = vpow2.f32 %v7425_v53 }
 0xbd6   : > { %8366 = vpow2.f32 %v7426_v23 }
 0xbd7   : > { %v3885_v29 = vpop.f32.mrf.mxu2  ;;  %v3898_v8 = vpop.f32.mrf.mxu3 }
 0xbd8   : > { %v3904_v16 = vadd.f32 %v3885_v29, %v3573_v4  ;;  %v3861_v15 = vpop.f32.mrf.mxu0  ;;  %v3874_v61 = vpop.f32.mrf.mxu1  ;;  %v3905_v29 = vadd.f32 %v3898_v8, %v3602_v33 }
 0xbda   : > { %v7427_v30 = vmul.f32 -1.442695, %v3904_v16 }
 0xbdb   : > { %v8365_v40 = vpop.eup %8364 }
 0xbdc   : > { %v8367_v43 = vpop.eup %8366  ;;  %v3915_v7 = vadd.f32 1.0, %v8365_v40  ;;  %8368 = vpow2.f32 %v7427_v30 }
 0xbdd   : > { %v3916_v21 = vadd.f32 1.0, %v8367_v43 }
 0xbde   : > { %8370 = vrcp.f32 %v3915_v7  ;;  %v3929_v30 = vand.u32 2147483648, %v3915_v7  ;;  %v3927_v15 = vand.u32 2147483647, %v3915_v7  ;;  %vm3923_vm3 = vweird.f32 %v3915_v7 }
 0xbdf   : > { %8372 = vrcp.f32 %v3916_v21  ;;  %v3887_v36 = vpop.f32.mrf.mxu2  ;;  %v3900_v38 = vpop.f32.mrf.mxu3  ;;  %v3944_v43 = vand.u32 2147483648, %v3916_v21  ;;  %vm3938_vm4 = vweird.f32 %v3916_v21 }
 0xbe0   : > { %v3942_v38 = vand.u32 2147483647, %v3916_v21  ;;  %vm3928_vm6 = vcmp.eq.f32.partialorder %v3927_v15, 8.507059e+37 }
 0xbe1   : > { %v3945_v31 = vor.u32 1.1754944e-38, %v3944_v43 }
 0xbe2   : > { %v8369_v13 = vpop.eup %8368  ;;  %vm3943_vm8 = vcmp.eq.f32.partialorder %v3942_v38, 8.507059e+37 }
 0xbe3   : > { %v3917_v14 = vadd.f32 1.0, %v8369_v13  ;;  %v3930_v13 = vor.u32 1.1754944e-38, %v3929_v30 }
 0xbe4   : > { %v8371_v53 = vpop.eup %8370 }
 0xbe5   : > { %v8373_v4 = vpop.eup %8372  ;;  %v3919_v61 = vmul.f32 %v8371_v53, %v3915_v7  ;;  %8374 = vrcp.f32 %v3917_v14  ;;  %vm3924_vm1 = vweird.f32 %v8371_v53  ;;  %vm3953_vm10 = vweird.f32 %v3917_v14 }
 0xbe6   : > { %v3934_v16 = vmul.f32 %v8373_v4, %v3916_v21  ;;  %8376 = vtanh.f32 %v3905_v29  ;;  %vm3939_vm2 = vweird.f32 %v8373_v4  ;;  %vm3925_vm5 = vmor %vm3923_vm3, %vm3924_vm1  ;;  %v3959_v21 = vand.u32 2147483648, %v3917_v14 }
 0xbe7   : > { %v3920_v23 = vsub.f32 1.0, %v3919_v61  ;;  %vm3940_vm7 = vmor %vm3938_vm4, %vm3939_vm2 }
 0xbe8   : > { %v3935_v40 = vsub.f32 1.0, %v3934_v16  ;;  %v3960_v43 = vor.u32 1.1754944e-38, %v3959_v21 }
 0xbe9   : > { %v3921_v9 = vmul.f32 %v8371_v53, %v3920_v23 }
 0xbea   : > { %v3936_v36 = vmul.f32 %v8373_v4, %v3935_v40 }
 0xbeb   : > { %v8375_v34 = vpop.eup %8374  ;;  %v3922_v44 = vadd.f32 %v8371_v53, %v3921_v9 }
 0xbec   : > { %v3949_v8 = vmul.f32 %v8375_v34, %v3917_v14  ;;  %v3937_v33 = vadd.f32 %v8373_v4, %v3936_v36  ;;  %v8377_v29 = vpop.eup %8376  ;;  %vm3954_vm9 = vweird.f32 %v8375_v34 }
 0xbed   : > { %v3926_v61 = vsel %vm3925_vm5, %v8371_v53, %v3922_v44  ;;  %v3957_v53 = vand.u32 2147483647, %v3917_v14  ;;  %vm3955_vm11 = vmor %vm3953_vm10, %vm3954_vm9 }
 0xbee   : > { %v3950_v16 = vsub.f32 1.0, %v3949_v8  ;;  %v3931_v23 = vsel %vm3928_vm6, %v3930_v13, %v3926_v61  ;;  %v3941_v19 = vsel %vm3940_vm7, %v8373_v4, %v3937_v33  ;;  %v3575_v8 = vadd.f32 %v11062_v63, %v11123_v50 }
 0xbef   : > { %v3946_v40 = vsel %vm3943_vm8, %v3945_v31, %v3941_v19  ;;  %v3965_v22 = vmul.f32 %v8377_v29, %v3931_v23  ;;  %vm3958_vm12 = vcmp.eq.f32.partialorder %v3957_v53, 8.507059e+37 }
 0xbf0   : > { %v3951_v42 = vmul.f32 %v8375_v34, %v3950_v16  ;;  %v3964_v12 = vmul.f32 0.0, %v3946_v40 }
 0xbf2   : > { %v11129_v9 = vadd.f32 %v3965_v22, %v3964_v12  ;;  %v3952_v7 = vadd.f32 %v8375_v34, %v3951_v42  ;;  %v3517_v42 = vadd.f32 %v11058_v47, %v11113_v59  ;;  %v3546_v22 = vadd.f32 %v11060_v32, %v11115_v35 }
 0xbf4   : > { %8378 = vtanh.f32 %v11129_v9  ;;  %v3956_v30 = vsel %vm3955_vm11, %v8375_v34, %v3952_v7 }
 0xbf5   : > { %v3961_v4 = vsel %vm3958_vm12, %v3960_v43, %v3956_v30  ;;  %v12550_v43 = vld [vmem:[#allocation28_spill] sm:$0xff] }
 0xbfa   : > { %v8379_v15 = vpop.eup %8378 }
 0xbfb   : > { %v3968_v36 = vmul.f32 %v8379_v15, %v3961_v4  ;;  %v12551_v15 = vld [vmem:[#allocation29_spill] sm:$0xff] }
 0xbfc   : > { %v3604_v63 = vadd.f32 %v12551_v15, %v12550_v43 }
 0xbfd   : > { %v3969_v19 = vpack.c.bf16 %v3968_v36, %v3968_v36 }
 0xbff   : > { %3970 = vst [vmem:[#allocation3] sm:$0xf] %v3969_v19  ;;  %3983 = vmatmul.bf16.vlgmr.msra.gmra.mxu0 %v3969_v19  ;;  %3996 = vmatmul.bf16.vlgmr.msrb.gmra.mxu1 %v3969_v19 }
 0xc00   : > { %4009 = vmatmul.bf16.vlgmr.msra.gmra.mxu2 %v3969_v19  ;;  %4022 = vmatmul.bf16.vlgmr.msra.gmra.mxu3 %v3969_v19 }
 0xc01   : > { %4225 = vmatpush.bf16.msra.mxu0 %v10639_v25  ;;  %4238 = vmatpush.bf16.msrb.mxu1 %v10650_v24 }
 0xc02   : > { %4251 = vmatpush.bf16.msra.mxu2 %v10652_v39  ;;  %4264 = vmatpush.bf16.msra.mxu3 %v10661_v37 }
 0xc05   : > { %4226 = vmatpush.bf16.msra.mxu0 %v10676_v2  ;;  %4239 = vmatpush.bf16.msrb.mxu1 %v10687_v17 }
 0xc06   : > { %4252 = vmatpush.bf16.msra.mxu2 %v10706_v1  ;;  %4265 = vmatpush.bf16.msra.mxu3 %v10714_v3 }
 0xc09   : > { %4227 = vmatpush.bf16.msra.mxu0 %v10726_v54  ;;  %4240 = vmatpush.bf16.msrb.mxu1 %v10728_v26 }
 0xc0a   : > { %4253 = vmatpush.bf16.msra.mxu2 %v10743_v58  ;;  %4266 = vmatpush.bf16.msra.mxu3 %v10798_v49 }
 0xc0d   : > { %4228 = vmatpush.bf16.msra.mxu0 %v10756_v62  ;;  %4241 = vmatpush.bf16.msrb.mxu1 %v10758_v10 }
 0xc0e   : > { %4254 = vmatpush.bf16.msra.mxu2 %v10796_v46  ;;  %4267 = vmatpush.bf16.msra.mxu3 %v10838_v41 }
 0xc11   : > { %4229 = vmatpush.bf16.msra.mxu0 %v10821_v11  ;;  %4242 = vmatpush.bf16.msrb.mxu1 %v10834_v6 }
 0xc12   : > { %4255 = vmatpush.bf16.msra.mxu2 %v10836_v55  ;;  %4268 = vmatpush.bf16.msra.mxu3 %v10885_v56 }
 0xc15   : > { %4230 = vmatpush.bf16.msra.mxu0 %v10877_v57  ;;  %4243 = vmatpush.bf16.msrb.mxu1 %v10883_v5 }
 0xc16   : > { %4256 = vmatpush.bf16.msra.mxu2 %v10902_v60  ;;  %4269 = vmatpush.bf16.msra.mxu3 %v10930_v52 }
 0xc19   : > { %4231 = vmatpush.bf16.msra.mxu0 %v10924_v20  ;;  %4244 = vmatpush.bf16.msrb.mxu1 %v10928_v28 }
 0xc1a   : > { %4257 = vmatpush.bf16.msra.mxu2 %v10942_v18  ;;  %4270 = vmatpush.bf16.msra.mxu3 %v10971_v27 }
 0xc1d   : > { %4232 = vmatpush.bf16.msra.mxu0 %v10963_v0  ;;  %4245 = vmatpush.bf16.msrb.mxu1 %v10969_v45 }
 0xc1e   : > { %4258 = vmatpush.bf16.msra.mxu2 %v10974_v48  ;;  %4271 = vmatpush.bf16.msra.mxu3 %v10986_v51 }
 0xc7c   : > { %v3984_v31 = vpop.f32.mrf.mxu0  ;;  %v3997_v34 = vpop.f32.mrf.mxu1 }
 0xc7d   : > { %v4027_v12 = vadd.f32 %v3984_v31, %v3517_v42  ;;  %v4028_v14 = vadd.f32 %v3997_v34, %v3546_v22 }
 0xc7f   : > { %v7428_v38 = vmul.f32 -1.442695, %v4027_v12  ;;  %v7429_v44 = vmul.f32 -1.442695, %v4028_v14 }
 0xc81   : > { %8380 = vpow2.f32 %v7428_v38 }
 0xc82   : > { %8382 = vpow2.f32 %v7429_v44 }
 0xc83   : > { %v4010_v13 = vpop.f32.mrf.mxu2  ;;  %v4023_v33 = vpop.f32.mrf.mxu3 }
 0xc84   : > { %v4029_v61 = vadd.f32 %v4010_v13, %v3575_v8  ;;  %v3986_v29 = vpop.f32.mrf.mxu0  ;;  %v3999_v16 = vpop.f32.mrf.mxu1  ;;  %v4030_v19 = vadd.f32 %v4023_v33, %v3604_v63 }
 0xc86   : > { %v7430_v47 = vmul.f32 -1.442695, %v4029_v61 }
 0xc87   : > { %v8381_v23 = vpop.eup %8380 }
 0xc88   : > { %v8383_v40 = vpop.eup %8382  ;;  %v4040_v32 = vadd.f32 1.0, %v8381_v23  ;;  %8384 = vpow2.f32 %v7430_v47 }
 0xc89   : > { %v4041_v7 = vadd.f32 1.0, %v8383_v40 }
 0xc8a   : > { %8386 = vrcp.f32 %v4040_v32  ;;  %v4054_v14 = vand.u32 2147483648, %v4040_v32  ;;  %v4052_v8 = vand.u32 2147483647, %v4040_v32  ;;  %vm4048_vm15 = vweird.f32 %v4040_v32 }
 0xc8b   : > { %8388 = vrcp.f32 %v4041_v7  ;;  %v4012_v21 = vpop.f32.mrf.mxu2  ;;  %v4025_v53 = vpop.f32.mrf.mxu3  ;;  %v4069_v38 = vand.u32 2147483648, %v4041_v7  ;;  %v4067_v61 = vand.u32 2147483647, %v4041_v7  ;;  %vm4063_vm0 = vweird.f32 %v4041_v7 }
 0xc8c   : > { %v4055_v47 = vor.u32 1.1754944e-38, %v4054_v14  ;;  %vm4053_vm3 = vcmp.eq.f32.partialorder %v4052_v8, 8.507059e+37 }
 0xc8d   : > { %v4070_v40 = vor.u32 1.1754944e-38, %v4069_v38  ;;  %vm4068_vm4 = vcmp.eq.f32.partialorder %v4067_v61, 8.507059e+37  ;;  %v12553_v61 = vld [vmem:[#allocation8_spill] sm:$0xff] }
 0xc8e   : > { %v8385_v30 = vpop.eup %8384 }
 0xc8f   : > { %v4042_v4 = vadd.f32 1.0, %v8385_v30 }
 0xc90   : > { %v8387_v36 = vpop.eup %8386 }
 0xc91   : > { %v8389_v42 = vpop.eup %8388  ;;  %v4044_v22 = vmul.f32 %v8387_v36, %v4040_v32  ;;  %8390 = vrcp.f32 %v4042_v4  ;;  %vm4049_vm13 = vweird.f32 %v8387_v36  ;;  %vm4078_vm6 = vweird.f32 %v4042_v4 }
 0xc92   : > { %v4059_v31 = vmul.f32 %v8389_v42, %v4041_v7  ;;  %8392 = vtanh.f32 %v4030_v19  ;;  %vm4064_vm14 = vweird.f32 %v8389_v42  ;;  %vm4050_vm1 = vmor %vm4048_vm15, %vm4049_vm13 }
 0xc93   : > { %v4045_v34 = vsub.f32 1.0, %v4044_v22  ;;  %vm4065_vm2 = vmor %vm4063_vm0, %vm4064_vm14 }
 0xc94   : > { %v4060_v12 = vsub.f32 1.0, %v4059_v31 }
 0xc95   : > { %v4046_v44 = vmul.f32 %v8387_v36, %v4045_v34 }
 0xc96   : > { %v4061_v13 = vmul.f32 %v8389_v42, %v4060_v12  ;;  %v4084_v12 = vand.u32 2147483648, %v4042_v4 }
 0xc97   : > { %v8391_v29 = vpop.eup %8390  ;;  %v4047_v16 = vadd.f32 %v8387_v36, %v4046_v44 }
 0xc98   : > { %v4074_v33 = vmul.f32 %v8391_v29, %v4042_v4  ;;  %v4062_v23 = vadd.f32 %v8389_v42, %v4061_v13  ;;  %v8393_v53 = vpop.eup %8392  ;;  %vm4079_vm5 = vweird.f32 %v8391_v29  ;;  %v4085_v38 = vor.u32 1.1754944e-38, %v4084_v12 }
 0xc99   : > { %v4051_v21 = vsel %vm4050_vm1, %v8387_v36, %v4047_v16  ;;  %v4082_v36 = vand.u32 2147483647, %v4042_v4  ;;  %vm4080_vm7 = vmor %vm4078_vm6, %vm4079_vm5 }
 0xc9a   : > { %v4075_v30 = vsub.f32 1.0, %v4074_v33  ;;  %v4056_v15 = vsel %vm4053_vm3, %v4055_v47, %v4051_v21  ;;  %v4066_v63 = vsel %vm4065_vm2, %v8389_v42, %v4062_v23 }
 0xc9b   : > { %v4071_v19 = vsel %vm4068_vm4, %v4070_v40, %v4066_v63  ;;  %v4090_v22 = vmul.f32 %v8393_v53, %v4056_v15  ;;  %vm4083_vm8 = vcmp.eq.f32.partialorder %v4082_v36, 8.507059e+37  ;;  %v12554_v53 = vld [vmem:[#allocation15_spill] sm:$0xff] }
 0xc9c   : > { %v4076_v31 = vmul.f32 %v8391_v29, %v4075_v30  ;;  %v4089_v34 = vmul.f32 %v4071_v19, %v11129_v9  ;;  %v12552_v9 = vld [vmem:[#allocation7_spill] sm:$0xff]  ;;  %v3578_v30 = vadd.f32 %v12554_v53, %v11123_v50 }
 0xc9d   : > { %v3520_v4 = vadd.f32 %v12552_v9, %v11113_v59 }
 0xc9e   : > { %v11173_v32 = vadd.f32 %v4090_v22, %v4089_v34  ;;  %v4077_v7 = vadd.f32 %v8391_v29, %v4076_v31 }
 0xca0   : > { %8394 = vtanh.f32 %v11173_v32  ;;  %v4081_v14 = vsel %vm4080_vm7, %v8391_v29, %v4077_v7  ;;  %v3549_v29 = vadd.f32 %v12553_v61, %v11115_v35 }
 0xca1   : > { %v4086_v44 = vsel %vm4083_vm8, %v4085_v38, %v4081_v14 }
 0xca6   : > { %v8395_v42 = vpop.eup %8394 }
 0xca7   : > { %v4093_v8 = vmul.f32 %v8395_v42, %v4086_v44 }
 0xca9   : > { %v4094_v13 = vpack.c.bf16 %v4093_v8, %v4093_v8  ;;  %v12555_v8 = vld [vmem:[#allocation9_spill] sm:$0xff] }
 0xcab   : > { %4095 = vst [vmem:[#allocation3 + $0x4] sm:$0xf] %v4094_v13  ;;  %4108 = vmatmul.bf16.vlgmr.msrb.gmra.mxu0 %v4094_v13  ;;  %4121 = vmatmul.bf16.vlgmr.msra.gmra.mxu1 %v4094_v13 }
 0xcac   : > { %4134 = vmatmul.bf16.vlgmr.msrb.gmra.mxu2 %v4094_v13  ;;  %4147 = vmatmul.bf16.vlgmr.msrb.gmra.mxu3 %v4094_v13  ;;  %v3607_v13 = vadd.f32 %v12555_v8, %v12550_v43 }
 0xcad   : > { %4350 = vmatpush.bf16.msrb.mxu0 %v10639_v25  ;;  %4363 = vmatpush.bf16.msra.mxu1 %v10650_v24 }
 0xcae   : > { %4376 = vmatpush.bf16.msrb.mxu2 %v10652_v39  ;;  %4389 = vmatpush.bf16.msrb.mxu3 %v10661_v37 }
 0xcb1   : > { %4351 = vmatpush.bf16.msrb.mxu0 %v10676_v2  ;;  %4364 = vmatpush.bf16.msra.mxu1 %v10687_v17 }
 0xcb2   : > { %4377 = vmatpush.bf16.msrb.mxu2 %v10706_v1  ;;  %4390 = vmatpush.bf16.msrb.mxu3 %v10714_v3 }
 0xcb5   : > { %4352 = vmatpush.bf16.msrb.mxu0 %v10726_v54  ;;  %4365 = vmatpush.bf16.msra.mxu1 %v10728_v26 }
 0xcb6   : > { %4378 = vmatpush.bf16.msrb.mxu2 %v10743_v58  ;;  %4391 = vmatpush.bf16.msrb.mxu3 %v10798_v49 }
 0xcb9   : > { %4353 = vmatpush.bf16.msrb.mxu0 %v10756_v62  ;;  %4366 = vmatpush.bf16.msra.mxu1 %v10758_v10 }
 0xcba   : > { %4379 = vmatpush.bf16.msrb.mxu2 %v10796_v46  ;;  %4392 = vmatpush.bf16.msrb.mxu3 %v10838_v41 }
 0xcbd   : > { %4354 = vmatpush.bf16.msrb.mxu0 %v10821_v11  ;;  %4367 = vmatpush.bf16.msra.mxu1 %v10834_v6 }
 0xcbe   : > { %4380 = vmatpush.bf16.msrb.mxu2 %v10836_v55  ;;  %4393 = vmatpush.bf16.msrb.mxu3 %v10885_v56 }
 0xcc1   : > { %4355 = vmatpush.bf16.msrb.mxu0 %v10877_v57  ;;  %4368 = vmatpush.bf16.msra.mxu1 %v10883_v5 }
 0xcc2   : > { %4381 = vmatpush.bf16.msrb.mxu2 %v10902_v60  ;;  %4394 = vmatpush.bf16.msrb.mxu3 %v10930_v52 }
 0xcc5   : > { %4356 = vmatpush.bf16.msrb.mxu0 %v10924_v20  ;;  %4369 = vmatpush.bf16.msra.mxu1 %v10928_v28 }
 0xcc6   : > { %4382 = vmatpush.bf16.msrb.mxu2 %v10942_v18  ;;  %4395 = vmatpush.bf16.msrb.mxu3 %v10971_v27 }
 0xcc9   : > { %4357 = vmatpush.bf16.msrb.mxu0 %v10963_v0  ;;  %4370 = vmatpush.bf16.msra.mxu1 %v10969_v45 }
 0xcca   : > { %4383 = vmatpush.bf16.msrb.mxu2 %v10974_v48  ;;  %4396 = vmatpush.bf16.msrb.mxu3 %v10986_v51 }
 0xd28   : > { %v4109_v16 = vpop.f32.mrf.mxu0  ;;  %v4122_v33 = vpop.f32.mrf.mxu1 }
 0xd29   : > { %v4152_v47 = vadd.f32 %v4109_v16, %v3520_v4  ;;  %v4153_v23 = vadd.f32 %v4122_v33, %v3549_v29 }
 0xd2b   : > { %v7431_v40 = vmul.f32 -1.442695, %v4152_v47  ;;  %v7432_v21 = vmul.f32 -1.442695, %v4153_v23 }
 0xd2d   : > { %8396 = vpow2.f32 %v7431_v40 }
 0xd2e   : > { %8398 = vpow2.f32 %v7432_v21 }
 0xd2f   : > { %v4135_v15 = vpop.f32.mrf.mxu2  ;;  %v4148_v63 = vpop.f32.mrf.mxu3 }
 0xd30   : > { %v4154_v19 = vadd.f32 %v4135_v15, %v3578_v30  ;;  %v4111_v22 = vpop.f32.mrf.mxu0  ;;  %v4124_v31 = vpop.f32.mrf.mxu1  ;;  %v4155_v61 = vadd.f32 %v4148_v63, %v3607_v13 }
 0xd32   : > { %v7433_v34 = vmul.f32 -1.442695, %v4154_v19 }
 0xd33   : > { %v8397_v7 = vpop.eup %8396 }
 0xd34   : > { %v8399_v12 = vpop.eup %8398  ;;  %v4165_v36 = vadd.f32 1.0, %v8397_v7  ;;  %8400 = vpow2.f32 %v7433_v34 }
 0xd35   : > { %v4166_v14 = vadd.f32 1.0, %v8399_v12 }
 0xd36   : > { %8402 = vrcp.f32 %v4165_v36  ;;  %v4179_v40 = vand.u32 2147483648, %v4165_v36  ;;  %v4177_v30 = vand.u32 2147483647, %v4165_v36  ;;  %vm4173_vm11 = vweird.f32 %v4165_v36 }
 0xd37   : > { %8404 = vrcp.f32 %v4166_v14  ;;  %v4137_v38 = vpop.f32.mrf.mxu2  ;;  %v4150_v42 = vpop.f32.mrf.mxu3  ;;  %v4194_v21 = vand.u32 2147483648, %v4166_v14  ;;  %v4192_v19 = vand.u32 2147483647, %v4166_v14  ;;  %vm4188_vm12 = vweird.f32 %v4166_v14 }
 0xd38   : > { %v4180_v34 = vor.u32 1.1754944e-38, %v4179_v40  ;;  %vm4178_vm15 = vcmp.eq.f32.partialorder %v4177_v30, 8.507059e+37 }
 0xd39   : > { %v4195_v12 = vor.u32 1.1754944e-38, %v4194_v21  ;;  %vm4193_vm0 = vcmp.eq.f32.partialorder %v4192_v19, 8.507059e+37  ;;  %v12557_v19 = vld [vmem:[#allocation10_spill] sm:$0xff] }
 0xd3a   : > { %v8401_v44 = vpop.eup %8400 }
 0xd3b   : > { %v4167_v9 = vadd.f32 1.0, %v8401_v44 }
 0xd3c   : > { %v8403_v4 = vpop.eup %8402 }
 0xd3d   : > { %v8405_v29 = vpop.eup %8404  ;;  %v4169_v16 = vmul.f32 %v8403_v4, %v4165_v36  ;;  %8406 = vrcp.f32 %v4167_v9  ;;  %vm4174_vm9 = vweird.f32 %v8403_v4  ;;  %vm4203_vm2 = vweird.f32 %v4167_v9 }
 0xd3e   : > { %v4184_v33 = vmul.f32 %v8405_v29, %v4166_v14  ;;  %8408 = vtanh.f32 %v4155_v61  ;;  %vm4189_vm10 = vweird.f32 %v8405_v29  ;;  %vm4175_vm13 = vmor %vm4173_vm11, %vm4174_vm9 }
 0xd3f   : > { %v4170_v47 = vsub.f32 1.0, %v4169_v16  ;;  %vm4190_vm14 = vmor %vm4188_vm12, %vm4189_vm10 }
 0xd40   : > { %v4185_v23 = vsub.f32 1.0, %v4184_v33 }
 0xd41   : > { %v4171_v53 = vmul.f32 %v8403_v4, %v4170_v47 }
 0xd42   : > { %v4186_v15 = vmul.f32 %v8405_v29, %v4185_v23  ;;  %v4209_v23 = vand.u32 2147483648, %v4167_v9 }
 0xd43   : > { %v8407_v22 = vpop.eup %8406  ;;  %v4172_v31 = vadd.f32 %v8403_v4, %v4171_v53 }
 0xd44   : > { %v4199_v63 = vmul.f32 %v8407_v22, %v4167_v9  ;;  %v4187_v7 = vadd.f32 %v8405_v29, %v4186_v15  ;;  %v8409_v42 = vpop.eup %8408  ;;  %vm4204_vm1 = vweird.f32 %v8407_v22  ;;  %v4210_v21 = vor.u32 1.1754944e-38, %v4209_v23 }
 0xd45   : > { %v4176_v38 = vsel %vm4175_vm13, %v8403_v4, %v4172_v31  ;;  %v4207_v4 = vand.u32 2147483647, %v4167_v9  ;;  %vm4205_vm3 = vmor %vm4203_vm2, %vm4204_vm1 }
 0xd46   : > { %v4200_v44 = vsub.f32 1.0, %v4199_v63  ;;  %v4181_v8 = vsel %vm4178_vm15, %v4180_v34, %v4176_v38  ;;  %v4191_v13 = vsel %vm4190_vm14, %v8405_v29, %v4187_v7 }
 0xd47   : > { %v4196_v61 = vsel %vm4193_vm0, %v4195_v12, %v4191_v13  ;;  %v4215_v16 = vmul.f32 %v8409_v42, %v4181_v8  ;;  %vm4208_vm4 = vcmp.eq.f32.partialorder %v4207_v4, 8.507059e+37  ;;  %v12558_v42 = vld [vmem:[#allocation11_spill] sm:$0xff] }
 0xd48   : > { %v4201_v33 = vmul.f32 %v8407_v22, %v4200_v44  ;;  %v4214_v47 = vmul.f32 %v4196_v61, %v11173_v32  ;;  %v12556_v32 = vld [vmem:[#allocation6_spill] sm:$0xff]  ;;  %v3580_v44 = vadd.f32 %v12558_v42, %v11123_v50 }
 0xd49   : > { %v3522_v9 = vadd.f32 %v12556_v32, %v11113_v59 }
 0xd4a   : > { %v11217_v36 = vadd.f32 %v4215_v16, %v4214_v47  ;;  %v4202_v14 = vadd.f32 %v8407_v22, %v4201_v33 }
 0xd4c   : > { %8410 = vtanh.f32 %v11217_v36  ;;  %v4206_v40 = vsel %vm4205_vm3, %v8407_v22, %v4202_v14  ;;  %v3551_v22 = vadd.f32 %v12557_v19, %v11115_v35 }
 0xd4d   : > { %v4211_v53 = vsel %vm4208_vm4, %v4210_v21, %v4206_v40 }
 0xd52   : > { %v8411_v29 = vpop.eup %8410 }
 0xd53   : > { %v4218_v30 = vmul.f32 %v8411_v29, %v4211_v53 }
 0xd55   : > { %v4219_v15 = vpack.c.bf16 %v4218_v30, %v4218_v30  ;;  %v12559_v30 = vld [vmem:[#allocation18_spill] sm:$0xff] }
 0xd57   : > { %4220 = vst [vmem:[#allocation3 + $0x8] sm:$0xf] %v4219_v15  ;;  %4233 = vmatmul.bf16.vlgmr.msra.gmra.mxu0 %v4219_v15  ;;  %4246 = vmatmul.bf16.vlgmr.msrb.gmra.mxu1 %v4219_v15 }
 0xd58   : > { %4259 = vmatmul.bf16.vlgmr.msra.gmra.mxu2 %v4219_v15  ;;  %4272 = vmatmul.bf16.vlgmr.msra.gmra.mxu3 %v4219_v15  ;;  %v3609_v15 = vadd.f32 %v12559_v30, %v12550_v43 }
 0xd59   : > { %4475 = vmatpush.bf16.msra.mxu0 %v10639_v25  ;;  %4488 = vmatpush.bf16.msrb.mxu1 %v10650_v24 }
 0xd5a   : > { %4501 = vmatpush.bf16.msra.mxu2 %v10652_v39  ;;  %4514 = vmatpush.bf16.msra.mxu3 %v10661_v37 }
 0xd5d   : > { %4476 = vmatpush.bf16.msra.mxu0 %v10676_v2  ;;  %4489 = vmatpush.bf16.msrb.mxu1 %v10687_v17 }
 0xd5e   : > { %4502 = vmatpush.bf16.msra.mxu2 %v10706_v1  ;;  %4515 = vmatpush.bf16.msra.mxu3 %v10714_v3 }
 0xd61   : > { %4477 = vmatpush.bf16.msra.mxu0 %v10726_v54  ;;  %4490 = vmatpush.bf16.msrb.mxu1 %v10728_v26 }
 0xd62   : > { %4503 = vmatpush.bf16.msra.mxu2 %v10743_v58  ;;  %4516 = vmatpush.bf16.msra.mxu3 %v10798_v49 }
 0xd65   : > { %4478 = vmatpush.bf16.msra.mxu0 %v10756_v62  ;;  %4491 = vmatpush.bf16.msrb.mxu1 %v10758_v10 }
 0xd66   : > { %4504 = vmatpush.bf16.msra.mxu2 %v10796_v46  ;;  %4517 = vmatpush.bf16.msra.mxu3 %v10838_v41 }
 0xd69   : > { %4479 = vmatpush.bf16.msra.mxu0 %v10821_v11  ;;  %4492 = vmatpush.bf16.msrb.mxu1 %v10834_v6 }
 0xd6a   : > { %4505 = vmatpush.bf16.msra.mxu2 %v10836_v55  ;;  %4518 = vmatpush.bf16.msra.mxu3 %v10885_v56 }
 0xd6d   : > { %4480 = vmatpush.bf16.msra.mxu0 %v10877_v57  ;;  %4493 = vmatpush.bf16.msrb.mxu1 %v10883_v5 }
 0xd6e   : > { %4506 = vmatpush.bf16.msra.mxu2 %v10902_v60  ;;  %4519 = vmatpush.bf16.msra.mxu3 %v10930_v52 }
 0xd71   : > { %4481 = vmatpush.bf16.msra.mxu0 %v10924_v20  ;;  %4494 = vmatpush.bf16.msrb.mxu1 %v10928_v28 }
 0xd72   : > { %4507 = vmatpush.bf16.msra.mxu2 %v10942_v18  ;;  %4520 = vmatpush.bf16.msra.mxu3 %v10971_v27 }
 0xd75   : > { %4482 = vmatpush.bf16.msra.mxu0 %v10963_v0  ;;  %4495 = vmatpush.bf16.msrb.mxu1 %v10969_v45 }
 0xd76   : > { %4508 = vmatpush.bf16.msra.mxu2 %v10974_v48  ;;  %4521 = vmatpush.bf16.msra.mxu3 %v10986_v51 }
 0xdd4   : > { %v4234_v31 = vpop.f32.mrf.mxu0  ;;  %v4247_v63 = vpop.f32.mrf.mxu1 }
 0xdd5   : > { %v4277_v34 = vadd.f32 %v4234_v31, %v3522_v9  ;;  %v4278_v7 = vadd.f32 %v4247_v63, %v3551_v22 }
 0xdd7   : > { %v7434_v12 = vmul.f32 -1.442695, %v4277_v34  ;;  %v7435_v38 = vmul.f32 -1.442695, %v4278_v7 }
 0xdd9   : > { %8412 = vpow2.f32 %v7434_v12 }
 0xdda   : > { %8414 = vpow2.f32 %v7435_v38 }
 0xddb   : > { %v4260_v8 = vpop.f32.mrf.mxu2  ;;  %v4273_v13 = vpop.f32.mrf.mxu3 }
 0xddc   : > { %v4279_v61 = vadd.f32 %v4260_v8, %v3580_v44  ;;  %v4236_v16 = vpop.f32.mrf.mxu0  ;;  %v4249_v33 = vpop.f32.mrf.mxu1  ;;  %v4280_v19 = vadd.f32 %v4273_v13, %v3609_v15 }
 0xdde   : > { %v7436_v47 = vmul.f32 -1.442695, %v4279_v61 }
 0xddf   : > { %v8413_v14 = vpop.eup %8412 }
 0xde0   : > { %v8415_v23 = vpop.eup %8414  ;;  %v4290_v4 = vadd.f32 1.0, %v8413_v14  ;;  %8416 = vpow2.f32 %v7436_v47 }
 0xde1   : > { %v4291_v40 = vadd.f32 1.0, %v8415_v23 }
 0xde2   : > { %8418 = vrcp.f32 %v4290_v4  ;;  %v4304_v12 = vand.u32 2147483648, %v4290_v4  ;;  %v4302_v44 = vand.u32 2147483647, %v4290_v4  ;;  %vm4298_vm7 = vweird.f32 %v4290_v4 }
 0xde3   : > { %8420 = vrcp.f32 %v4291_v40  ;;  %v4262_v21 = vpop.f32.mrf.mxu2  ;;  %v4275_v29 = vpop.f32.mrf.mxu3  ;;  %v4319_v38 = vand.u32 2147483648, %v4291_v40  ;;  %v4317_v61 = vand.u32 2147483647, %v4291_v40  ;;  %vm4313_vm8 = vweird.f32 %v4291_v40 }
 0xde4   : > { %v4305_v47 = vor.u32 1.1754944e-38, %v4304_v12  ;;  %vm4303_vm11 = vcmp.eq.f32.partialorder %v4302_v44, 8.507059e+37 }
 0xde5   : > { %v4320_v23 = vor.u32 1.1754944e-38, %v4319_v38  ;;  %vm4318_vm12 = vcmp.eq.f32.partialorder %v4317_v61, 8.507059e+37  ;;  %v12561_v61 = vld [vmem:[#allocation13_spill] sm:$0xff] }
 0xde6   : > { %v8417_v53 = vpop.eup %8416 }
 0xde7   : > { %v4292_v32 = vadd.f32 1.0, %v8417_v53 }
 0xde8   : > { %v8419_v9 = vpop.eup %8418 }
 0xde9   : > { %v8421_v22 = vpop.eup %8420  ;;  %v4294_v31 = vmul.f32 %v8419_v9, %v4290_v4  ;;  %8422 = vrcp.f32 %v4292_v32  ;;  %vm4299_vm5 = vweird.f32 %v8419_v9  ;;  %vm4328_vm14 = vweird.f32 %v4292_v32 }
 0xdea   : > { %v4309_v63 = vmul.f32 %v8421_v22, %v4291_v40  ;;  %8424 = vtanh.f32 %v4280_v19  ;;  %vm4314_vm6 = vweird.f32 %v8421_v22  ;;  %vm4300_vm9 = vmor %vm4298_vm7, %vm4299_vm5 }
 0xdeb   : > { %v4295_v34 = vsub.f32 1.0, %v4294_v31  ;;  %vm4315_vm10 = vmor %vm4313_vm8, %vm4314_vm6 }
 0xdec   : > { %v4310_v7 = vsub.f32 1.0, %v4309_v63 }
 0xded   : > { %v4296_v42 = vmul.f32 %v8419_v9, %v4295_v34 }
 0xdee   : > { %v4311_v8 = vmul.f32 %v8421_v22, %v4310_v7  ;;  %v4334_v7 = vand.u32 2147483648, %v4292_v32 }
 0xdef   : > { %v8423_v16 = vpop.eup %8422  ;;  %v4297_v33 = vadd.f32 %v8419_v9, %v4296_v42 }
 0xdf0   : > { %v4324_v13 = vmul.f32 %v8423_v16, %v4292_v32  ;;  %v4312_v14 = vadd.f32 %v8421_v22, %v4311_v8  ;;  %v8425_v29 = vpop.eup %8424  ;;  %vm4329_vm13 = vweird.f32 %v8423_v16  ;;  %v4335_v38 = vor.u32 1.1754944e-38, %v4334_v7 }
 0xdf1   : > { %v4301_v21 = vsel %vm4300_vm9, %v8419_v9, %v4297_v33  ;;  %v4332_v9 = vand.u32 2147483647, %v4292_v32  ;;  %vm4330_vm15 = vmor %vm4328_vm14, %vm4329_vm13 }
 0xdf2   : > { %v4325_v53 = vsub.f32 1.0, %v4324_v13  ;;  %v4306_v30 = vsel %vm4303_vm11, %v4305_v47, %v4301_v21  ;;  %v4316_v15 = vsel %vm4315_vm10, %v8421_v22, %v4312_v14 }
 0xdf3   : > { %v4321_v19 = vsel %vm4318_vm12, %v4320_v23, %v4316_v15  ;;  %v4340_v31 = vmul.f32 %v8425_v29, %v4306_v30  ;;  %vm4333_vm0 = vcmp.eq.f32.partialorder %v4332_v9, 8.507059e+37  ;;  %v12562_v29 = vld [vmem:[#allocation14_spill] sm:$0xff] }
 0xdf4   : > { %v4326_v63 = vmul.f32 %v8423_v16, %v4325_v53  ;;  %v4339_v34 = vmul.f32 %v4321_v19, %v11217_v36  ;;  %v12560_v36 = vld [vmem:[#allocation12_spill] sm:$0xff]  ;;  %v3583_v53 = vadd.f32 %v12562_v29, %v11123_v50 }
 0xdf5   : > { %v3525_v32 = vadd.f32 %v12560_v36, %v11113_v59 }
 0xdf6   : > { %v11261_v4 = vadd.f32 %v4340_v31, %v4339_v34  ;;  %v4327_v40 = vadd.f32 %v8423_v16, %v4326_v63 }
 0xdf8   : > { %8426 = vtanh.f32 %v11261_v4  ;;  %v4331_v12 = vsel %vm4330_vm15, %v8423_v16, %v4327_v40  ;;  %v3554_v16 = vadd.f32 %v12561_v61, %v11115_v35 }
 0xdf9   : > { %v4336_v42 = vsel %vm4333_vm0, %v4335_v38, %v4331_v12 }
 0xdfe   : > { %v8427_v22 = vpop.eup %8426 }
 0xdff   : > { %v4343_v44 = vmul.f32 %v8427_v22, %v4336_v42 }
 0xe01   : > { %v4344_v8 = vpack.c.bf16 %v4343_v44, %v4343_v44  ;;  %v12563_v44 = vld [vmem:[#allocation21_spill] sm:$0xff] }
 0xe03   : > { %4345 = vst [vmem:[#allocation3 + $0xc] sm:$0xf] %v4344_v8  ;;  %4358 = vmatmul.bf16.vlgmr.msrb.gmra.mxu0 %v4344_v8  ;;  %4371 = vmatmul.bf16.vlgmr.msra.gmra.mxu1 %v4344_v8 }
 0xe04   : > { %4384 = vmatmul.bf16.vlgmr.msrb.gmra.mxu2 %v4344_v8  ;;  %4397 = vmatmul.bf16.vlgmr.msrb.gmra.mxu3 %v4344_v8  ;;  %v3612_v8 = vadd.f32 %v12563_v44, %v12550_v43 }
 0xe05   : > { %4600 = vmatpush.bf16.msrb.mxu0 %v10639_v25  ;;  %4613 = vmatpush.bf16.msra.mxu1 %v10650_v24 }
 0xe06   : > { %4626 = vmatpush.bf16.msrb.mxu2 %v10652_v39  ;;  %4639 = vmatpush.bf16.msrb.mxu3 %v10661_v37 }
 0xe09   : > { %4601 = vmatpush.bf16.msrb.mxu0 %v10676_v2  ;;  %4614 = vmatpush.bf16.msra.mxu1 %v10687_v17 }
 0xe0a   : > { %4627 = vmatpush.bf16.msrb.mxu2 %v10706_v1  ;;  %4640 = vmatpush.bf16.msrb.mxu3 %v10714_v3 }
 0xe0d   : > { %4602 = vmatpush.bf16.msrb.mxu0 %v10726_v54  ;;  %4615 = vmatpush.bf16.msra.mxu1 %v10728_v26 }
 0xe0e   : > { %4628 = vmatpush.bf16.msrb.mxu2 %v10743_v58  ;;  %4641 = vmatpush.bf16.msrb.mxu3 %v10798_v49 }
 0xe11   : > { %4603 = vmatpush.bf16.msrb.mxu0 %v10756_v62  ;;  %4616 = vmatpush.bf16.msra.mxu1 %v10758_v10 }
 0xe12   : > { %4629 = vmatpush.bf16.msrb.mxu2 %v10796_v46  ;;  %4642 = vmatpush.bf16.msrb.mxu3 %v10838_v41 }
 0xe15   : > { %4604 = vmatpush.bf16.msrb.mxu0 %v10821_v11  ;;  %4617 = vmatpush.bf16.msra.mxu1 %v10834_v6 }
 0xe16   : > { %4630 = vmatpush.bf16.msrb.mxu2 %v10836_v55  ;;  %4643 = vmatpush.bf16.msrb.mxu3 %v10885_v56 }
 0xe19   : > { %4605 = vmatpush.bf16.msrb.mxu0 %v10877_v57  ;;  %4618 = vmatpush.bf16.msra.mxu1 %v10883_v5 }
 0xe1a   : > { %4631 = vmatpush.bf16.msrb.mxu2 %v10902_v60  ;;  %4644 = vmatpush.bf16.msrb.mxu3 %v10930_v52 }
 0xe1d   : > { %4606 = vmatpush.bf16.msrb.mxu0 %v10924_v20  ;;  %4619 = vmatpush.bf16.msra.mxu1 %v10928_v28 }
 0xe1e   : > { %4632 = vmatpush.bf16.msrb.mxu2 %v10942_v18  ;;  %4645 = vmatpush.bf16.msrb.mxu3 %v10971_v27 }
 0xe21   : > { %4607 = vmatpush.bf16.msrb.mxu0 %v10963_v0  ;;  %4620 = vmatpush.bf16.msra.mxu1 %v10969_v45 }
 0xe22   : > { %4633 = vmatpush.bf16.msrb.mxu2 %v10974_v48  ;;  %4646 = vmatpush.bf16.msrb.mxu3 %v10986_v51 }
 0xe80   : > { %v4359_v33 = vpop.f32.mrf.mxu0  ;;  %v4372_v13 = vpop.f32.mrf.mxu1 }
 0xe81   : > { %v4402_v47 = vadd.f32 %v4359_v33, %v3525_v32  ;;  %v4403_v14 = vadd.f32 %v4372_v13, %v3554_v16 }
 0xe83   : > { %v7437_v23 = vmul.f32 -1.442695, %v4402_v47  ;;  %v7438_v21 = vmul.f32 -1.442695, %v4403_v14 }
 0xe85   : > { %8428 = vpow2.f32 %v7437_v23 }
 0xe86   : > { %8430 = vpow2.f32 %v7438_v21 }
 0xe87   : > { %v4385_v30 = vpop.f32.mrf.mxu2  ;;  %v4398_v15 = vpop.f32.mrf.mxu3 }
 0xe88   : > { %v4404_v19 = vadd.f32 %v4385_v30, %v3583_v53  ;;  %v4361_v31 = vpop.f32.mrf.mxu0  ;;  %v4374_v63 = vpop.f32.mrf.mxu1  ;;  %v4405_v61 = vadd.f32 %v4398_v15, %v3612_v8 }
 0xe8a   : > { %v7439_v34 = vmul.f32 -1.442695, %v4404_v19 }
 0xe8b   : > { %v8429_v40 = vpop.eup %8428 }
 0xe8c   : > { %v8431_v7 = vpop.eup %8430  ;;  %v4415_v9 = vadd.f32 1.0, %v8429_v40  ;;  %8432 = vpow2.f32 %v7439_v34 }
 0xe8d   : > { %v4416_v12 = vadd.f32 1.0, %v8431_v7 }
 0xe8e   : > { %8434 = vrcp.f32 %v4415_v9  ;;  %v4429_v23 = vand.u32 2147483648, %v4415_v9  ;;  %v4427_v53 = vand.u32 2147483647, %v4415_v9  ;;  %vm4423_vm3 = vweird.f32 %v4415_v9 }
 0xe8f   : > { %8436 = vrcp.f32 %v4416_v12  ;;  %v4387_v38 = vpop.f32.mrf.mxu2  ;;  %v4400_v22 = vpop.f32.mrf.mxu3  ;;  %v4444_v21 = vand.u32 2147483648, %v4416_v12  ;;  %v4442_v19 = vand.u32 2147483647, %v4416_v12  ;;  %vm4438_vm4 = vweird.f32 %v4416_v12 }
 0xe90   : > { %v4430_v34 = vor.u32 1.1754944e-38, %v4429_v23  ;;  %vm4428_vm7 = vcmp.eq.f32.partialorder %v4427_v53, 8.507059e+37 }
 0xe91   : > { %v4445_v7 = vor.u32 1.1754944e-38, %v4444_v21  ;;  %vm4443_vm8 = vcmp.eq.f32.partialorder %v4442_v19, 8.507059e+37 }
 0xe92   : > { %v8433_v42 = vpop.eup %8432 }
 0xe93   : > { %v4417_v36 = vadd.f32 1.0, %v8433_v42 }
 0xe94   : > { %v8435_v32 = vpop.eup %8434 }
 0xe95   : > { %v8437_v16 = vpop.eup %8436  ;;  %v4419_v33 = vmul.f32 %v8435_v32, %v4415_v9  ;;  %8438 = vrcp.f32 %v4417_v36  ;;  %vm4424_vm1 = vweird.f32 %v8435_v32  ;;  %vm4453_vm10 = vweird.f32 %v4417_v36 }
 0xe96   : > { %v4434_v13 = vmul.f32 %v8437_v16, %v4416_v12  ;;  %8440 = vtanh.f32 %v4405_v61  ;;  %vm4439_vm2 = vweird.f32 %v8437_v16  ;;  %vm4425_vm5 = vmor %vm4423_vm3, %vm4424_vm1 }
 0xe97   : > { %v4420_v47 = vsub.f32 1.0, %v4419_v33  ;;  %vm4440_vm6 = vmor %vm4438_vm4, %vm4439_vm2 }
 0xe98   : > { %v4435_v14 = vsub.f32 1.0, %v4434_v13 }
 0xe99   : > { %v4421_v29 = vmul.f32 %v8435_v32, %v4420_v47 }
 0xe9a   : > { %v4436_v30 = vmul.f32 %v8437_v16, %v4435_v14  ;;  %v4459_v14 = vand.u32 2147483648, %v4417_v36 }
 0xe9b   : > { %v8439_v31 = vpop.eup %8438  ;;  %v4422_v63 = vadd.f32 %v8435_v32, %v4421_v29 }
 0xe9c   : > { %v4449_v15 = vmul.f32 %v8439_v31, %v4417_v36  ;;  %v4437_v40 = vadd.f32 %v8437_v16, %v4436_v30  ;;  %v8441_v22 = vpop.eup %8440  ;;  %vm4454_vm9 = vweird.f32 %v8439_v31  ;;  %v4460_v21 = vor.u32 1.1754944e-38, %v4459_v14 }
 0xe9d   : > { %v4426_v38 = vsel %vm4425_vm5, %v8435_v32, %v4422_v63  ;;  %v4457_v32 = vand.u32 2147483647, %v4417_v36  ;;  %vm4455_vm11 = vmor %vm4453_vm10, %vm4454_vm9 }
 0xe9e   : > { %v4450_v42 = vsub.f32 1.0, %v4449_v15  ;;  %v4431_v44 = vsel %vm4428_vm7, %v4430_v34, %v4426_v38  ;;  %v4441_v8 = vsel %vm4440_vm6, %v8437_v16, %v4437_v40 }
 0xe9f   : > { %v4446_v61 = vsel %vm4443_vm8, %v4445_v7, %v4441_v8  ;;  %v4465_v33 = vmul.f32 %v8441_v22, %v4431_v44  ;;  %vm4458_vm12 = vcmp.eq.f32.partialorder %v4457_v32, 8.507059e+37 }
 0xea0   : > { %v4451_v13 = vmul.f32 %v8439_v31, %v4450_v42  ;;  %v4464_v47 = vmul.f32 %v4446_v61, %v11261_v4 }
 0xea2   : > { %v11305_v9 = vadd.f32 %v4465_v33, %v4464_v47  ;;  %v4452_v12 = vadd.f32 %v8439_v31, %v4451_v13 }
 0xea4   : > { %8442 = vtanh.f32 %v11305_v9  ;;  %v4456_v23 = vsel %vm4455_vm11, %v8439_v31, %v4452_v12 }
 0xea5   : > { %v4461_v29 = vsel %vm4458_vm12, %v4460_v21, %v4456_v23 }
 0xeaa   : > { %v8443_v16 = vpop.eup %8442 }
 0xeab   : > { %v4468_v53 = vmul.f32 %v8443_v16, %v4461_v29 }
 0xead   : > { %v4469_v30 = vpack.c.bf16 %v4468_v53, %v4468_v53 }
 0xeaf   : > { %4470 = vst [vmem:[#allocation3 + $0x10] sm:$0xf] %v4469_v30  ;;  %4483 = vmatmul.bf16.vlgmr.msra.gmra.mxu0 %v4469_v30  ;;  %4496 = vmatmul.bf16.vlgmr.msrb.gmra.mxu1 %v4469_v30 }
 0xeb0   : > { %4509 = vmatmul.bf16.vlgmr.msra.gmra.mxu2 %v4469_v30  ;;  %4522 = vmatmul.bf16.vlgmr.msra.gmra.mxu3 %v4469_v30 }
 0xeb1   : > { %4725 = vmatpush.bf16.msra.mxu0 %v10639_v25  ;;  %4738 = vmatpush.bf16.msrb.mxu1 %v10650_v24  ;;  %v12564_v25 = vld [vmem:[#allocation16_spill] sm:$0xff] }
 0xeb2   : > { %4751 = vmatpush.bf16.msra.mxu2 %v10652_v39  ;;  %4764 = vmatpush.bf16.msra.mxu3 %v10661_v37  ;;  %v3527_v24 = vadd.f32 %v12564_v25, %v11113_v59  ;;  %v12565_v39 = vld [vmem:[#allocation17_spill] sm:$0xff] }
 0xeb3   : > { %v3556_v37 = vadd.f32 %v12565_v39, %v11115_v35 }
 0xeb5   : > { %4726 = vmatpush.bf16.msra.mxu0 %v10676_v2  ;;  %4739 = vmatpush.bf16.msrb.mxu1 %v10687_v17 }
 0xeb6   : > { %4752 = vmatpush.bf16.msra.mxu2 %v10706_v1  ;;  %4765 = vmatpush.bf16.msra.mxu3 %v10714_v3 }
 0xeb9   : > { %4727 = vmatpush.bf16.msra.mxu0 %v10726_v54  ;;  %4740 = vmatpush.bf16.msrb.mxu1 %v10728_v26 }
 0xeba   : > { %4753 = vmatpush.bf16.msra.mxu2 %v10743_v58  ;;  %4766 = vmatpush.bf16.msra.mxu3 %v10798_v49  ;;  %v12566_v58 = vld [vmem:[#allocation4_spill] sm:$0xff] }
 0xebd   : > { %4728 = vmatpush.bf16.msra.mxu0 %v10756_v62  ;;  %4741 = vmatpush.bf16.msrb.mxu1 %v10758_v10  ;;  %v3585_v62 = vadd.f32 %v12566_v58, %v11123_v50 }
 0xebe   : > { %4754 = vmatpush.bf16.msra.mxu2 %v10796_v46  ;;  %4767 = vmatpush.bf16.msra.mxu3 %v10838_v41 }
 0xec1   : > { %4729 = vmatpush.bf16.msra.mxu0 %v10821_v11  ;;  %4742 = vmatpush.bf16.msrb.mxu1 %v10834_v6 }
 0xec2   : > { %4755 = vmatpush.bf16.msra.mxu2 %v10836_v55  ;;  %4768 = vmatpush.bf16.msra.mxu3 %v10885_v56 }
 0xec5   : > { %4730 = vmatpush.bf16.msra.mxu0 %v10877_v57  ;;  %4743 = vmatpush.bf16.msrb.mxu1 %v10883_v5 }
 0xec6   : > { %4756 = vmatpush.bf16.msra.mxu2 %v10902_v60  ;;  %4769 = vmatpush.bf16.msra.mxu3 %v10930_v52  ;;  %v12567_v52 = vld [vmem:[#allocation24_spill] sm:$0xff] }
 0xec9   : > { %4731 = vmatpush.bf16.msra.mxu0 %v10924_v20  ;;  %4744 = vmatpush.bf16.msrb.mxu1 %v10928_v28 }
 0xeca   : > { %4757 = vmatpush.bf16.msra.mxu2 %v10942_v18  ;;  %4770 = vmatpush.bf16.msra.mxu3 %v10971_v27  ;;  %v3614_v18 = vadd.f32 %v12567_v52, %v12550_v43 }
 0xecd   : > { %4732 = vmatpush.bf16.msra.mxu0 %v10963_v0  ;;  %4745 = vmatpush.bf16.msrb.mxu1 %v10969_v45 }
 0xece   : > { %4758 = vmatpush.bf16.msra.mxu2 %v10974_v48  ;;  %4771 = vmatpush.bf16.msra.mxu3 %v10986_v51 }
 0xf2c   : > { %v4484_v2 = vpop.f32.mrf.mxu0  ;;  %v4497_v17 = vpop.f32.mrf.mxu1 }
 0xf2d   : > { %v4527_v1 = vadd.f32 %v4484_v2, %v3527_v24  ;;  %v4528_v3 = vadd.f32 %v4497_v17, %v3556_v37 }
 0xf2f   : > { %v7440_v54 = vmul.f32 -1.442695, %v4527_v1  ;;  %v7441_v26 = vmul.f32 -1.442695, %v4528_v3  ;;  %v8055_v3 = vld [vmem:[%s12388_s2 + $0x2ec] sm:$0xf0] }
 0xf31   : > { %8444 = vpow2.f32 %v7440_v54  ;;  %v8053_v54 = vld [vmem:[%s12388_s2 + $0x2e4] sm:$0xf] }
 0xf32   : > { %8446 = vpow2.f32 %v7441_v26  ;;  %v12568_v26 = vld [vmem:[#allocation19_spill] sm:$0xff] }
 0xf33   : > { %v4510_v10 = vpop.f32.mrf.mxu2  ;;  %v4523_v46 = vpop.f32.mrf.mxu3  ;;  %v3530_v58 = vadd.f32 %v12568_v26, %v11113_v59  ;;  %v8042_v26 = vld [vmem:[%s12388_s2 + $0x28c] sm:$0xf] }
 0xf34   : > { %v4529_v49 = vadd.f32 %v4510_v10, %v3585_v62  ;;  %v4486_v11 = vpop.f32.mrf.mxu0  ;;  %v4499_v6 = vpop.f32.mrf.mxu1  ;;  %v4530_v27 = vadd.f32 %v4523_v46, %v3614_v18  ;;  %v12569_v62 = vld [vmem:[#allocation20_spill] sm:$0xff] }
 0xf35   : > { %v3559_v10 = vadd.f32 %v12569_v62, %v11115_v35  ;;  %v7620_v11 = vld [vmem:[%s12388_s2 + $0x2e8] sm:$0xf]  ;;  %v8056_v6 = vld [vmem:[%s12388_s2 + $0x2f4] sm:$0xf0]  ;;  %v7596_v18 = vld [vmem:[%s12388_s2 + $0x2c0] sm:$0xf] }
 0xf36   : > { %v7442_v55 = vmul.f32 -1.442695, %v4529_v49  ;;  %v7614_v49 = vld [vmem:[%s12388_s2 + $0x2f0] sm:$0xf0] }
 0xf37   : > { %v8445_v41 = vpop.eup %8444 }
 0xf38   : > { %v8447_v57 = vpop.eup %8446  ;;  %v4540_v5 = vadd.f32 1.0, %v8445_v41  ;;  %8448 = vpow2.f32 %v7442_v55 }
 0xf39   : > { %v4541_v56 = vadd.f32 1.0, %v8447_v57  ;;  %v7617_v57 = vor.u32 %v8053_v54, %v7614_v49 }
 0xf3a   : > { %8450 = vrcp.f32 %v4540_v5  ;;  %v4554_v31 = vand.u32 2147483648, %v4540_v5  ;;  %v4552_v34 = vand.u32 2147483647, %v4540_v5  ;;  %vm4548_vm15 = vweird.f32 %v4540_v5 }
 0xf3b   : > { %8452 = vrcp.f32 %v4541_v56  ;;  %v4512_v60 = vpop.f32.mrf.mxu2  ;;  %v4525_v20 = vpop.f32.mrf.mxu3  ;;  %v4569_v63 = vand.u32 2147483648, %v4541_v56  ;;  %v4567_v7 = vand.u32 2147483647, %v4541_v56  ;;  %vm4563_vm0 = vweird.f32 %v4541_v56 }
 0xf3c   : > { %v4555_v44 = vor.u32 1.1754944e-38, %v4554_v31  ;;  %vm4553_vm3 = vcmp.eq.f32.partialorder %v4552_v34, 8.507059e+37  ;;  %v7622_v60 = vld [vmem:[%s12388_s2 + $0x2f8] sm:$0xf0]  ;;  %v8052_v31 = vld [vmem:[%s12388_s2 + $0x2d4] sm:$0xf0] }
 0xf3d   : > { %v4570_v61 = vor.u32 1.1754944e-38, %v4569_v63  ;;  %vm4568_vm4 = vcmp.eq.f32.partialorder %v4567_v7, 8.507059e+37  ;;  %v8050_v63 = vld [vmem:[%s12388_s2 + $0x2cc] sm:$0xf]  ;;  %v7606_v34 = vld [vmem:[%s12388_s2 + $0x2d8] sm:$0xf0] }
 0xf3e   : > { %v8449_v28 = vpop.eup %8448  ;;  %v8047_v7 = vld [vmem:[%s12388_s2 + $0x2ac] sm:$0xf0] }
 0xf3f   : > { %v4542_v0 = vadd.f32 1.0, %v8449_v28 }
 0xf40   : > { %v8451_v45 = vpop.eup %8450 }
 0xf41   : > { %v8453_v48 = vpop.eup %8452  ;;  %v4544_v51 = vmul.f32 %v8451_v45, %v4540_v5  ;;  %8454 = vrcp.f32 %v4542_v0  ;;  %vm4549_vm13 = vweird.f32 %v8451_v45  ;;  %v4584_v30 = vand.u32 2147483648, %v4542_v0 }
 0xf42   : > { %v4559_v4 = vmul.f32 %v8453_v48, %v4541_v56  ;;  %8456 = vtanh.f32 %v4530_v27  ;;  %vm4564_vm14 = vweird.f32 %v8453_v48  ;;  %vm4550_vm1 = vmor %vm4548_vm15, %vm4549_vm13  ;;  %vm4578_vm6 = vweird.f32 %v4542_v0  ;;  %v8054_v56 = vld [vmem:[%s12388_s2 + $0x2ec] sm:$0xf] }
 0xf43   : > { %v4545_v36 = vsub.f32 1.0, %v4544_v51  ;;  %vm4565_vm2 = vmor %vm4563_vm0, %vm4564_vm14  ;;  %v4582_v25 = vand.u32 2147483647, %v4542_v0  ;;  %v4585_v39 = vor.u32 1.1754944e-38, %v4584_v30  ;;  %v7621_v5 = vor.u32 %v8056_v6, %v7620_v11 }
 0xf44   : > { %v4560_v19 = vsub.f32 1.0, %v4559_v4  ;;  %v7625_v52 = vor.u32 %v8054_v56, %v7622_v60  ;;  %v7598_v4 = vld [vmem:[%s12388_s2 + $0x2d0] sm:$0xf0]  ;;  %v12571_v56 = vld [vmem:[#allocation25_spill] sm:$0xff] }
 0xf45   : > { %v4546_v15 = vmul.f32 %v8451_v45, %v4545_v36  ;;  %vm4583_vm8 = vcmp.eq.f32.partialorder %v4582_v25, 8.507059e+37  ;;  %v3617_v60 = vadd.f32 %v12571_v56, %v12550_v43 }
 0xf46   : > { %v4561_v40 = vmul.f32 %v8453_v48, %v4560_v19  ;;  %v7604_v19 = vld [vmem:[%s12388_s2 + $0x2c8] sm:$0xf] }
 0xf47   : > { %v8455_v38 = vpop.eup %8454  ;;  %v4547_v22 = vadd.f32 %v8451_v45, %v4546_v15  ;;  %v7605_v15 = vor.u32 %v8052_v31, %v7604_v19  ;;  %v7558_v19 = vld [vmem:[%s12388_s2 + $0x278] sm:$0xf0]  ;;  %v7532_v31 = vld [vmem:[%s12388_s2 + $0x240] sm:$0xf] }
 0xf48   : > { %v4574_v42 = vmul.f32 %v8455_v38, %v4542_v0  ;;  %v4562_v8 = vadd.f32 %v8453_v48, %v4561_v40  ;;  %v8457_v13 = vpop.eup %8456  ;;  %vm4579_vm5 = vweird.f32 %v8455_v38  ;;  %v8051_v0 = vld [vmem:[%s12388_s2 + $0x2cc] sm:$0xf0]  ;;  %v7580_v40 = vld [vmem:[%s12388_s2 + $0x2a0] sm:$0xf] }
 0xf49   : > { %v4551_v33 = vsel %vm4550_vm1, %v8451_v45, %v4547_v22  ;;  %vm4580_vm7 = vmor %vm4578_vm6, %vm4579_vm5  ;;  %v8049_v45 = vld [vmem:[%s12388_s2 + $0x2c4] sm:$0xf]  ;;  %v7597_v51 = vor.u32 %v8051_v0, %v7596_v18 }
 0xf4a   : > { %v4575_v47 = vsub.f32 1.0, %v4574_v42  ;;  %v4556_v12 = vsel %vm4553_vm3, %v4555_v44, %v4551_v33  ;;  %v4566_v14 = vsel %vm4565_vm2, %v8453_v48, %v4562_v8  ;;  %v7601_v36 = vor.u32 %v8049_v45, %v7598_v4  ;;  %v8045_v8 = vld [vmem:[%s12388_s2 + $0x2a4] sm:$0xf]  ;;  %v7588_v33 = vld [vmem:[%s12388_s2 + $0x2a8] sm:$0xf] }
 0xf4b   : > { %v4571_v32 = vsel %vm4568_vm4, %v4570_v61, %v4566_v14  ;;  %v4590_v23 = vmul.f32 %v8457_v13, %v4556_v12  ;;  %v7609_v42 = vor.u32 %v8050_v63, %v7606_v34  ;;  %v7581_v44 = vor.u32 %v8047_v7, %v7580_v40  ;;  %v7582_v61 = vld [vmem:[%s12388_s2 + $0x2b0] sm:$0xf0]  ;;  %v8048_v14 = vld [vmem:[%s12388_s2 + $0x2b4] sm:$0xf0]  ;;  %v7556_v45 = vld [vmem:[%s12388_s2 + $0x268] sm:$0xf] }
 0xf4c   : > { %v4576_v21 = vmul.f32 %v8455_v38, %v4575_v47  ;;  %v4589_v16 = vmul.f32 %v4571_v32, %v11305_v9  ;;  %v7612_v9 = vld [vmem:[%s12388_s2 + $0x2e0] sm:$0xf]  ;;  %v7585_v12 = vor.u32 %v8045_v8, %v7582_v61  ;;  %v8046_v32 = vld [vmem:[%s12388_s2 + $0x2ac] sm:$0xf]  ;;  %v7589_v30 = vor.u32 %v8048_v14, %v7588_v33  ;;  %v8035_v34 = vld [vmem:[%s12388_s2 + $0x24c] sm:$0xf0] }
 0xf4d   : > { %v7613_v46 = vor.u32 %v8055_v3, %v7612_v9  ;;  %v8044_v9 = vld [vmem:[%s12388_s2 + $0x294] sm:$0xf0]  ;;  %v8033_v40 = vld [vmem:[%s12388_s2 + $0x244] sm:$0xf] }
 0xf4e   : > { %v11349_v29 = vadd.f32 %v4590_v23, %v4589_v16  ;;  %v4577_v53 = vadd.f32 %v8455_v38, %v4576_v21  ;;  %v7590_v23 = vld [vmem:[%s12388_s2 + $0x2b8] sm:$0xf0] }
 0xf4f   : > { %v7593_v25 = vor.u32 %v8046_v32, %v7590_v23  ;;  %v7516_v32 = vld [vmem:[%s12388_s2 + $0x220] sm:$0xf]  ;;  %v8031_v23 = vld [vmem:[%s12388_s2 + $0x22c] sm:$0xf0] }
 0xf50   : > { %8458 = vtanh.f32 %v11349_v29  ;;  %v4581_v24 = vsel %vm4580_vm7, %v8455_v38, %v4577_v53  ;;  %v12570_v38 = vld [vmem:[#allocation5_spill] sm:$0xff] }
 0xf51   : > { %v4586_v2 = vsel %vm4583_vm8, %v4585_v39, %v4581_v24  ;;  %v3588_v22 = vadd.f32 %v12570_v38, %v11123_v50  ;;  %v7564_v24 = vld [vmem:[%s12388_s2 + $0x280] sm:$0xf]  ;;  %v8043_v39 = vld [vmem:[%s12388_s2 + $0x28c] sm:$0xf0]  ;;  %v7533_v38 = vor.u32 %v8035_v34, %v7532_v31 }
 0xf56   : > { %v8459_v37 = vpop.eup %8458 }
 0xf57   : > { %v4593_v17 = vmul.f32 %v8459_v37, %v4586_v2  ;;  %v8041_v37 = vld [vmem:[%s12388_s2 + $0x284] sm:$0xf]  ;;  %v7565_v2 = vor.u32 %v8043_v39, %v7564_v24  ;;  %v7518_v24 = vld [vmem:[%s12388_s2 + $0x230] sm:$0xf0] }
 0xf59   : > { %v4594_v1 = vpack.c.bf16 %v4593_v17, %v4593_v17  ;;  %v7566_v17 = vld [vmem:[%s12388_s2 + $0x290] sm:$0xf0] }
 0xf5a   : > { %v7569_v54 = vor.u32 %v8041_v37, %v7566_v17  ;;  %v7517_v17 = vor.u32 %v8031_v23, %v7516_v32  ;;  %v8022_v32 = vld [vmem:[#allocation3 + $0x8] sm:$0xff]  ;;  %v12574_v23 = vld [vmem:[#allocation22_spill] sm:$0xff] }
 0xf5b   : > { %4595 = vst [vmem:[#allocation3 + $0x14] sm:$0xf] %v4594_v1  ;;  %4608 = vmatmul.bf16.vlgmr.msrb.gmra.mxu0 %v4594_v1  ;;  %4621 = vmatmul.bf16.vlgmr.msra.gmra.mxu1 %v4594_v1 }
 0xf5c   : > { %4634 = vmatmul.bf16.vlgmr.msrb.gmra.mxu2 %v4594_v1  ;;  %4647 = vmatmul.bf16.vlgmr.msrb.gmra.mxu3 %v4594_v1  ;;  %v7572_v1 = vld [vmem:[%s12388_s2 + $0x288] sm:$0xf] }
 0xf5d   : > { %5082 = vmatpush.bf16.msrb.mxu0 %v7613_v46  ;;  %5111 = vmatpush.bf16.msra.mxu1 %v7617_v57 }
 0xf5e   : > { %5140 = vmatpush.bf16.msrb.mxu2 %v7621_v5  ;;  %5169 = vmatpush.bf16.msrb.mxu3 %v7625_v52  ;;  %v8039_v5 = vld [vmem:[%s12388_s2 + $0x26c] sm:$0xf0]  ;;  %v7550_v52 = vld [vmem:[%s12388_s2 + $0x270] sm:$0xf0] }
 0xf61   : > { %5083 = vmatpush.bf16.msrb.mxu0 %v7597_v51  ;;  %5112 = vmatpush.bf16.msra.mxu1 %v7601_v36  ;;  %v8038_v36 = vld [vmem:[%s12388_s2 + $0x26c] sm:$0xf] }
 0xf62   : > { %5141 = vmatpush.bf16.msrb.mxu2 %v7605_v15  ;;  %5170 = vmatpush.bf16.msrb.mxu3 %v7609_v42  ;;  %v7561_v15 = vor.u32 %v8038_v36, %v7558_v19  ;;  %v7540_v42 = vld [vmem:[%s12388_s2 + $0x248] sm:$0xf] }
 0xf65   : > { %5084 = vmatpush.bf16.msrb.mxu0 %v7581_v44  ;;  %5113 = vmatpush.bf16.msra.mxu1 %v7585_v12  ;;  %v8036_v44 = vld [vmem:[%s12388_s2 + $0x254] sm:$0xf0] }
 0xf66   : > { %5142 = vmatpush.bf16.msrb.mxu2 %v7589_v30  ;;  %5171 = vmatpush.bf16.msrb.mxu3 %v7593_v25  ;;  %v7541_v30 = vor.u32 %v8036_v44, %v7540_v42  ;;  %v8029_v25 = vld [vmem:[%s12388_s2 + $0x224] sm:$0xf] }
 0xf69   : > { %5085 = vmatpush.bf16.msrb.mxu0 %v7565_v2  ;;  %5114 = vmatpush.bf16.msra.mxu1 %v7569_v54  ;;  %v7521_v54 = vor.u32 %v8029_v25, %v7518_v24 }
 0xfd8   : > { %v4609_v55 = vpop.f32.mrf.mxu0  ;;  %v4622_v41 = vpop.f32.mrf.mxu1 }
 0xfd9   : > { %v4652_v20 = vadd.f32 %v4609_v55, %v3530_v58  ;;  %v4653_v28 = vadd.f32 %v4622_v41, %v3559_v10  ;;  %v7574_v58 = vld [vmem:[%s12388_s2 + $0x298] sm:$0xf0]  ;;  %v7573_v10 = vor.u32 %v8044_v9, %v7572_v1  ;;  %v7548_v55 = vld [vmem:[%s12388_s2 + $0x260] sm:$0xf]  ;;  %v7524_v1 = vld [vmem:[%s12388_s2 + $0x228] sm:$0xf] }
 0xfda   : > { %v7577_v11 = vor.u32 %v8042_v26, %v7574_v58  ;;  %v8032_v9 = vld [vmem:[%s12388_s2 + $0x234] sm:$0xf0]  ;;  %v8030_v58 = vld [vmem:[%s12388_s2 + $0x22c] sm:$0xf] }
 0xfdb   : > { %v7443_v27 = vmul.f32 -1.442695, %v4652_v20  ;;  %v7444_v48 = vmul.f32 -1.442695, %v4653_v28  ;;  %5143 = vmatpush.bf16.msrb.mxu2 %v7573_v10  ;;  %v7549_v20 = vor.u32 %v8039_v5, %v7548_v55  ;;  %v8037_v28 = vld [vmem:[%s12388_s2 + $0x264] sm:$0xf]  ;;  %v7525_v26 = vor.u32 %v8032_v9, %v7524_v1 }
 0xfdc   : > { %5172 = vmatpush.bf16.msrb.mxu3 %v7577_v11  ;;  %v7553_v0 = vor.u32 %v8037_v28, %v7550_v52  ;;  %v7500_v10 = vld [vmem:[%s12388_s2 + $0x200] sm:$0xf]  ;;  %v8027_v55 = vld [vmem:[%s12388_s2 + $0x20c] sm:$0xf0]  ;;  %v8028_v28 = vld [vmem:[%s12388_s2 + $0x214] sm:$0xf0] }
 0xfdd   : > { %8460 = vpow2.f32 %v7443_v27  ;;  %v8040_v27 = vld [vmem:[%s12388_s2 + $0x274] sm:$0xf0]  ;;  %5086 = vmatpush.bf16.msrb.mxu0 %v7549_v20  ;;  %v7508_v20 = vld [vmem:[%s12388_s2 + $0x208] sm:$0xf]  ;;  %v8026_v52 = vld [vmem:[%s12388_s2 + $0x20c] sm:$0xf] }
 0xfde   : > { %8462 = vpow2.f32 %v7444_v48  ;;  %v7557_v4 = vor.u32 %v8040_v27, %v7556_v45  ;;  %5115 = vmatpush.bf16.msra.mxu1 %v7553_v0  ;;  %v7510_v27 = vld [vmem:[%s12388_s2 + $0x218] sm:$0xf0] }
 0xfdf   : > { %v4635_v13 = vpop.f32.mrf.mxu2  ;;  %v4648_v47 = vpop.f32.mrf.mxu3 }
 0xfe0   : > { %v4654_v21 = vadd.f32 %v4635_v13, %v3588_v22  ;;  %v4611_v16 = vpop.f32.mrf.mxu0  ;;  %v4624_v53 = vpop.f32.mrf.mxu1  ;;  %v4655_v51 = vadd.f32 %v4648_v47, %v3617_v60  ;;  %5144 = vmatpush.bf16.msrb.mxu2 %v7557_v4  ;;  %v7534_v22 = vld [vmem:[%s12388_s2 + $0x250] sm:$0xf0]  ;;  %5173 = vmatpush.bf16.msrb.mxu3 %v7561_v15  ;;  %v8034_v13 = vld [vmem:[%s12388_s2 + $0x24c] sm:$0xf]  ;;  %v7542_v47 = vld [vmem:[%s12388_s2 + $0x258] sm:$0xf0]  ;;  %v7501_v60 = vor.u32 %v8027_v55, %v7500_v10 }
 0xfe1   : > { %5087 = vmatpush.bf16.msrb.mxu0 %v7533_v38  ;;  %v7537_v53 = vor.u32 %v8033_v40, %v7534_v22  ;;  %v7545_v2 = vor.u32 %v8034_v13, %v7542_v47  ;;  %v7509_v4 = vor.u32 %v8028_v28, %v7508_v20  ;;  %v7513_v15 = vor.u32 %v8026_v52, %v7510_v27  ;;  %v7774_v10 = vld [vmem:[%s12389_s3 + $0x3f0] sm:$0xf0]  ;;  %v7756_v28 = vld [vmem:[%s12389_s3 + $0x3c0] sm:$0xf]  ;;  %v8083_v52 = vld [vmem:[%s12389_s3 + $0x3cc] sm:$0xf0] }
 0xfe2   : > { %v7445_v3 = vmul.f32 -1.442695, %v4654_v21  ;;  %v7764_v27 = vld [vmem:[%s12389_s3 + $0x3c8] sm:$0xf] }
 0xfe3   : > { %v8461_v62 = vpop.eup %8460  ;;  %5116 = vmatpush.bf16.msra.mxu1 %v7537_v53 }
 0xfe4   : > { %v8463_v46 = vpop.eup %8462  ;;  %v11454_v49 = vadd.f32 1.0, %v8461_v62  ;;  %8464 = vpow2.f32 %v7445_v3  ;;  %5145 = vmatpush.bf16.msrb.mxu2 %v7541_v30  ;;  %v7526_v62 = vld [vmem:[%s12388_s2 + $0x238] sm:$0xf0]  ;;  %5174 = vmatpush.bf16.msrb.mxu3 %v7545_v2 }
 0xfe5   : > { %v11456_v6 = vadd.f32 1.0, %v8463_v46  ;;  %5088 = vmatpush.bf16.msrb.mxu0 %v7517_v17  ;;  %v7529_v11 = vor.u32 %v8030_v58, %v7526_v62  ;;  %v12576_v17 = vld [vmem:[#allocation26_spill] sm:$0xff] }
 0xfe6   : > { %8466 = vrcp.f32 %v11454_v49  ;;  %v4677_v18 = vand.u32 2147483647, %v11454_v49  ;;  %v4679_v33 = vand.u32 2147483648, %v11454_v49  ;;  %vm4673_vm13 = vweird.f32 %v11454_v49 }
 0xfe7   : > { %8468 = vrcp.f32 %v11456_v6  ;;  %v4637_v41 = vpop.f32.mrf.mxu2  ;;  %v4650_v57 = vpop.f32.mrf.mxu3  ;;  %v4692_v14 = vand.u32 2147483647, %v11456_v6  ;;  %v4694_v16 = vand.u32 2147483648, %v11456_v6  ;;  %vm4688_vm12 = vweird.f32 %v11456_v6  ;;  %5117 = vmatpush.bf16.msra.mxu1 %v7521_v54  ;;  %v8085_v54 = vld [vmem:[%s12389_s3 + $0x3e4] sm:$0xf] }
 0xfe8   : > { %vm11537_vm9 = vcmp.eq.f32.partialorder %v4677_v18, 8.507059e+37  ;;  %v8025_v41 = vld [vmem:[%s12388_s2 + $0x204] sm:$0xf]  ;;  %v7502_v57 = vld [vmem:[%s12388_s2 + $0x210] sm:$0xf0]  ;;  %5146 = vmatpush.bf16.msrb.mxu2 %v7525_v26  ;;  %5175 = vmatpush.bf16.msrb.mxu3 %v7529_v11  ;;  %v3590_v1 = vadd.f32 %v12576_v17, %v11123_v50  ;;  %v11629_v55 = vor.u32 %v8085_v54, %v7774_v10 }
 0xfe9   : > { %v4695_v0 = vor.u32 1.1754944e-38, %v4694_v16  ;;  %vm4693_vm0 = vcmp.eq.f32.partialorder %v4692_v14, 8.507059e+37  ;;  %5089 = vmatpush.bf16.msrb.mxu0 %v7501_v60  ;;  %v8021_v14 = vld [vmem:[#allocation3] sm:$0xff]  ;;  %v12575_v16 = vld [vmem:[#allocation23_spill] sm:$0xff] }
 0xfea   : > { %v8465_v48 = vpop.eup %8464  ;;  %v3561_v53 = vadd.f32 %v12575_v16, %v11115_v35  ;;  %v8087_v35 = vld [vmem:[%s12389_s3 + $0x3ec] sm:$0xf0]  ;;  %v8088_v11 = vld [vmem:[%s12389_s3 + $0x3f4] sm:$0xf0]  ;;  %v7750_v54 = vld [vmem:[%s12389_s3 + $0x3b8] sm:$0xf0] }
 0xfeb   : > { %v11490_v63 = vadd.f32 1.0, %v8465_v48  ;;  %v8076_v17 = vld [vmem:[%s12389_s3 + $0x394] sm:$0xf0]  ;;  %v8069_v10 = vld [vmem:[%s12389_s3 + $0x364] sm:$0xf] }
 0xfec   : > { %v11498_v7 = vpop.eup %8466  ;;  %5147 = vmatpush.bf16.msrb.mxu2 %v7509_v4  ;;  %5176 = vmatpush.bf16.msrb.mxu3 %v7513_v15  ;;  %v8084_v4 = vld [vmem:[%s12389_s3 + $0x3d4] sm:$0xf0] }
 0xfed   : > { %v11509_v8 = vpop.eup %8468  ;;  %v4669_v61 = vmul.f32 %v11498_v7, %v11454_v49  ;;  %8470 = vrcp.f32 %v11490_v63  ;;  %vm4674_vm10 = vweird.f32 %v11498_v7  ;;  %v4680_v49 = vor.u32 1.1754944e-38, %v4679_v33 }
 0xfee   : > { %v4684_v12 = vmul.f32 %v11509_v8, %v11456_v6  ;;  %8472 = vtanh.f32 %v4655_v51  ;;  %vm4689_vm11 = vweird.f32 %v11509_v8  ;;  %vm4675_vm14 = vmor %vm4673_vm13, %vm4674_vm10  ;;  %v7505_v51 = vor.u32 %v8025_v41, %v7502_v57  ;;  %v8086_v57 = vld [vmem:[%s12389_s3 + $0x3ec] sm:$0xf] }
 0xfef   : > { %v4670_v21 = vsub.f32 1.0, %v4669_v61  ;;  %vm4690_vm15 = vmor %vm4688_vm12, %vm4689_vm11  ;;  %v4709_v44 = vand.u32 2147483648, %v11490_v63  ;;  %vm4703_vm2 = vweird.f32 %v11490_v63 }
 0xff0   : > { %v4685_v39 = vsub.f32 1.0, %v4684_v12  ;;  %5118 = vmatpush.bf16.msra.mxu1 %v7505_v51 }
 0xff1   : > { %v4671_v3 = vmul.f32 %v11498_v7, %v4670_v21  ;;  %v4710_v33 = vor.u32 1.1754944e-38, %v4709_v44  ;;  %v3532_v21 = vadd.f32 %v12574_v23, %v11113_v59  ;;  %v7772_v59 = vld [vmem:[%s12389_s3 + $0x3e0] sm:$0xf] }
 0xff2   : > { %v4686_v46 = vmul.f32 %v11509_v8, %v4685_v39  ;;  %v11618_v50 = vor.u32 %v8087_v35, %v7772_v59 }
 0xff3   : > { %v8471_v5 = vpop.eup %8470  ;;  %v4672_v56 = vadd.f32 %v11498_v7, %v4671_v3 }
 0xff4   : > { %v8473_v18 = vpop.eup %8472  ;;  %v4699_v6 = vmul.f32 %v8471_v5, %v11490_v63  ;;  %v4687_v45 = vadd.f32 %v11509_v8, %v4686_v46  ;;  %vm4704_vm1 = vweird.f32 %v8471_v5  ;;  %v7780_v46 = vld [vmem:[%s12389_s3 + $0x3e8] sm:$0xf] }
 0xff5   : > { %v4676_v48 = vsel %vm4675_vm14, %v11498_v7, %v4672_v56  ;;  %vm4705_vm3 = vmor %vm4703_vm2, %vm4704_vm1  ;;  %v11631_v41 = vor.u32 %v8088_v11, %v7780_v46 }
 0xff6   : > { %v4700_v36 = vsub.f32 1.0, %v4699_v6  ;;  %v4681_v19 = vsel %vm11537_vm9, %v4680_v49, %v4676_v48  ;;  %v4691_v31 = vsel %vm4690_vm15, %v11509_v8, %v4687_v45  ;;  %v4707_v8 = vand.u32 2147483647, %v11490_v63  ;;  %v8023_v63 = vld [vmem:[#allocation3 + $0x10] sm:$0xff] }
 0xff7   : > { %v4696_v34 = vsel %vm4693_vm0, %v4695_v0, %v4691_v31  ;;  %v4715_v40 = vmul.f32 %v8473_v18, %v4681_v19  ;;  %v8081_v18 = vld [vmem:[%s12389_s3 + $0x3c4] sm:$0xf]  ;;  %v11655_v49 = vor.u32 %v8083_v52, %v7756_v28  ;;  %v7758_v45 = vld [vmem:[%s12389_s3 + $0x3d0] sm:$0xf0]  ;;  %v7766_v19 = vld [vmem:[%s12389_s3 + $0x3d8] sm:$0xf0] }
 0xff8   : > { %v4701_v38 = vmul.f32 %v8471_v5, %v4700_v36  ;;  %v4714_v22 = vmul.f32 %v4696_v34, %v11349_v29  ;;  %vm4708_vm4 = vcmp.eq.f32.partialorder %v4707_v8, 8.507059e+37  ;;  %v11666_v51 = vor.u32 %v8081_v18, %v7758_v45  ;;  %v8082_v36 = vld [vmem:[%s12389_s3 + $0x3cc] sm:$0xf]  ;;  %v7740_v34 = vld [vmem:[%s12389_s3 + $0x3a0] sm:$0xf] }
 0xff9   : > { %v11693_v44 = vor.u32 %v8082_v36, %v7766_v19  ;;  %v8074_v45 = vld [vmem:[%s12389_s3 + $0x38c] sm:$0xf]  ;;  %v7692_v36 = vld [vmem:[%s12389_s3 + $0x340] sm:$0xf]  ;;  %v8067_v19 = vld [vmem:[%s12389_s3 + $0x34c] sm:$0xf0] }
 0xffa   : > { %v11595_v7 = vadd.f32 %v4715_v40, %v4714_v22  ;;  %v4702_v42 = vadd.f32 %v8471_v5, %v4701_v38  ;;  %v11685_v38 = vor.u32 %v8084_v4, %v7764_v27  ;;  %v8079_v22 = vld [vmem:[%s12389_s3 + $0x3ac] sm:$0xf0]  ;;  %v7734_v4 = vld [vmem:[%s12389_s3 + $0x398] sm:$0xf0] }
 0xffc   : > { %8474 = vtanh.f32 %v11595_v7  ;;  %v4706_v61 = vsel %vm4705_vm3, %v8471_v5, %v4702_v42  ;;  %v7782_v5 = vld [vmem:[%s12389_s3 + $0x3f8] sm:$0xf0]  ;;  %v8077_v42 = vld [vmem:[%s12389_s3 + $0x3a4] sm:$0xf] }
 0xffd   : > { %v4711_v13 = vsel %vm4708_vm4, %v4710_v33, %v4706_v61  ;;  %v11640_v60 = vor.u32 %v8086_v57, %v7782_v5  ;;  %v7742_v61 = vld [vmem:[%s12389_s3 + $0x3b0] sm:$0xf0]  ;;  %v7748_v33 = vld [vmem:[%s12389_s3 + $0x3a8] sm:$0xf] }
0x1002   : > { %v8475_v29 = vpop.eup %8474 }
0x1003   : > { %v4718_v47 = vmul.f32 %v8475_v29, %v4711_v13  ;;  %v12577_v13 = vld [vmem:[#allocation27_spill] sm:$0xff] }
0x1005   : > { %v4719_v12 = vpack.c.bf16 %v4718_v47, %v4718_v47  ;;  %v3619_v47 = vadd.f32 %v12577_v13, %v12550_v43  ;;  %v8075_v43 = vld [vmem:[%s12389_s3 + $0x38c] sm:$0xf0]  ;;  %v8070_v13 = vld [vmem:[%s12389_s3 + $0x36c] sm:$0xf] }
0x1007   : > { %4720 = vst [vmem:[#allocation3 + $0x18] sm:$0xf] %v4719_v12  ;;  %4733 = vmatmul.bf16.vlgmr.msra.gmra.mxu0 %v4719_v12  ;;  %4746 = vmatmul.bf16.vlgmr.msrb.gmra.mxu1 %v4719_v12 }
0x1008   : > { %4759 = vmatmul.bf16.vlgmr.msra.gmra.mxu2 %v4719_v12  ;;  %4772 = vmatmul.bf16.vlgmr.msra.gmra.mxu3 %v4719_v12  ;;  %v11705_v12 = vor.u32 %v8079_v22, %v7740_v34  ;;  %v8065_v22 = vld [vmem:[%s12389_s3 + $0x344] sm:$0xf] }
0x1009   : > { %5427 = vmatpush.bf16.msra.mxu0 %v11618_v50  ;;  %5440 = vmatpush.bf16.msrb.mxu1 %v11629_v55 }
0x100a   : > { %5453 = vmatpush.bf16.msra.mxu2 %v11631_v41  ;;  %5466 = vmatpush.bf16.msra.mxu3 %v11640_v60 }
0x100d   : > { %5428 = vmatpush.bf16.msra.mxu0 %v11655_v49  ;;  %5441 = vmatpush.bf16.msrb.mxu1 %v11666_v51 }
0x100e   : > { %5454 = vmatpush.bf16.msra.mxu2 %v11685_v38  ;;  %5467 = vmatpush.bf16.msra.mxu3 %v11693_v44 }
0x1011   : > { %5429 = vmatpush.bf16.msra.mxu0 %v11705_v12 }
0x1017   : > { %5090 = vmatmul.bf16.vlgmr.msrb.gmra.mxu0 %v8021_v14  ;;  %5119 = vmatmul.bf16.vlgmr.msra.gmra.mxu1 %v8021_v14 }
0x1018   : > { %5148 = vmatmul.bf16.vlgmr.msrb.gmra.mxu2 %v8021_v14  ;;  %5177 = vmatmul.bf16.vlgmr.msrb.gmra.mxu3 %v8021_v14  ;;  %v11707_v14 = vor.u32 %v8077_v42, %v7742_v61  ;;  %v7694_v42 = vld [vmem:[%s12389_s3 + $0x350] sm:$0xf0] }
0x101a   : > { %5442 = vmatpush.bf16.msrb.mxu1 %v11707_v14 }
0x1027   : > { %5095 = vmatmul.bf16.gmra.mxu0 %v8022_v32  ;;  %5124 = vmatmul.bf16.gmra.mxu1 %v8022_v32 }
0x1028   : > { %5153 = vmatmul.bf16.gmra.mxu2 %v8022_v32  ;;  %5182 = vmatmul.bf16.gmra.mxu3 %v8022_v32  ;;  %v8080_v32 = vld [vmem:[%s12389_s3 + $0x3b4] sm:$0xf0] }
0x1029   : > { %v11722_v16 = vor.u32 %v8080_v32, %v7748_v33 }
0x102b   : > { %5455 = vmatpush.bf16.msra.mxu2 %v11722_v16 }
0x1037   : > { %5100 = vmatmul.bf16.gmra.mxu0 %v8023_v63  ;;  %5129 = vmatmul.bf16.gmra.mxu1 %v8023_v63 }
0x1038   : > { %5158 = vmatmul.bf16.gmra.mxu2 %v8023_v63  ;;  %5187 = vmatmul.bf16.gmra.mxu3 %v8023_v63  ;;  %v7724_v63 = vld [vmem:[%s12389_s3 + $0x380] sm:$0xf] }
0x1084   : > { %v4734_v30 = vpop.f32.mrf.mxu0  ;;  %v4747_v25 = vpop.f32.mrf.mxu1 }
0x1085   : > { %v4777_v24 = vadd.f32 %v4734_v30, %v3532_v21  ;;  %v4778_v39 = vadd.f32 %v4747_v25, %v3561_v53  ;;  %v8073_v53 = vld [vmem:[%s12389_s3 + $0x384] sm:$0xf]  ;;  %v7726_v30 = vld [vmem:[%s12389_s3 + $0x390] sm:$0xf0] }
0x1087   : > { %v7446_v37 = vmul.f32 -1.442695, %v4777_v24  ;;  %v7447_v2 = vmul.f32 -1.442695, %v4778_v39  ;;  %v11735_v39 = vor.u32 %v8075_v43, %v7724_v63 }
0x1089   : > { %8476 = vpow2.f32 %v7446_v37  ;;  %v11737_v37 = vor.u32 %v8073_v53, %v7726_v30  ;;  %5430 = vmatpush.bf16.msra.mxu0 %v11735_v39  ;;  %v11862_v30 = vor.u32 %v8065_v22, %v7694_v42  ;;  %v7668_v42 = vld [vmem:[%s12389_s3 + $0x308] sm:$0xf] }
0x108a   : > { %8478 = vpow2.f32 %v7447_v2  ;;  %v7732_v2 = vld [vmem:[%s12389_s3 + $0x388] sm:$0xf] }
0x108b   : > { %v4760_v9 = vpop.f32.mrf.mxu2  ;;  %v11607_v3 = vpop.f32.mrf.mxu3  ;;  %v11775_v57 = vor.u32 %v8076_v17, %v7732_v2  ;;  %5443 = vmatpush.bf16.msrb.mxu1 %v11737_v37  ;;  %v7676_v2 = vld [vmem:[%s12389_s3 + $0x320] sm:$0xf]  ;;  %v8063_v17 = vld [vmem:[%s12389_s3 + $0x32c] sm:$0xf0] }
0x108c   : > { %v4779_v26 = vadd.f32 %v4760_v9, %v3590_v1  ;;  %v4736_v58 = vpop.f32.mrf.mxu0  ;;  %v4749_v62 = vpop.f32.mrf.mxu1  ;;  %v4780_v24 = vadd.f32 %v11607_v3, %v3619_v47  ;;  %v8078_v1 = vld [vmem:[%s12389_s3 + $0x3ac] sm:$0xf]  ;;  %v7718_v47 = vld [vmem:[%s12389_s3 + $0x378] sm:$0xf0] }
0x108d   : > { %v7708_v58 = vld [vmem:[%s12389_s3 + $0x360] sm:$0xf]  ;;  %v8071_v62 = vld [vmem:[%s12389_s3 + $0x36c] sm:$0xf0]  ;;  %v11777_v5 = vor.u32 %v8078_v1, %v7750_v54  ;;  %5456 = vmatpush.bf16.msra.mxu2 %v11775_v57  ;;  %v8061_v1 = vld [vmem:[%s12389_s3 + $0x324] sm:$0xf] }
0x108e   : > { %v7448_v56 = vmul.f32 -1.442695, %v4779_v26 }
0x108f   : > { %v8477_v20 = vpop.eup %8476  ;;  %5468 = vmatpush.bf16.msra.mxu3 %v11777_v5 }
0x1090   : > { %v8479_v0 = vpop.eup %8478  ;;  %v11653_v6 = vadd.f32 1.0, %v8477_v20  ;;  %8480 = vpow2.f32 %v7448_v56  ;;  %v7710_v56 = vld [vmem:[%s12389_s3 + $0x370] sm:$0xf0]  ;;  %v7716_v20 = vld [vmem:[%s12389_s3 + $0x368] sm:$0xf] }
0x1091   : > { %v11664_v48 = vadd.f32 1.0, %v8479_v0  ;;  %v8072_v0 = vld [vmem:[%s12389_s3 + $0x374] sm:$0xf0] }
0x1092   : > { %8482 = vrcp.f32 %v11653_v6  ;;  %v4802_v40 = vand.u32 2147483647, %v11653_v6  ;;  %v4804_v8 = vand.u32 2147483648, %v11653_v6  ;;  %v11815_v34 = vor.u32 %v8072_v0, %v7716_v20  ;;  %v7660_v0 = vld [vmem:[%s12389_s3 + $0x300] sm:$0xf] }
0x1093   : > { %8484 = vrcp.f32 %v11664_v48  ;;  %v4762_v31 = vpop.f32.mrf.mxu2  ;;  %v4775_v15 = vpop.f32.mrf.mxu3  ;;  %v4819_v23 = vand.u32 2147483648, %v11664_v48  ;;  %v4817_v35 = vand.u32 2147483647, %v11664_v48  ;;  %vm4813_vm6 = vweird.f32 %v11664_v48 }
0x1094   : > { %vm11753_vm5 = vcmp.eq.f32.partialorder %v4802_v40, 8.507059e+37  ;;  %v4805_v11 = vor.u32 1.1754944e-38, %v4804_v8  ;;  %v11813_v15 = vor.u32 %v8069_v10, %v7710_v56  ;;  %v11817_v40 = vor.u32 %v8074_v45, %v7734_v4  ;;  %v7700_v8 = vld [vmem:[%s12389_s3 + $0x348] sm:$0xf]  ;;  %5457 = vmatpush.bf16.msra.mxu2 %v11815_v34  ;;  %v8062_v45 = vld [vmem:[%s12389_s3 + $0x32c] sm:$0xf] }
0x1095   : > { %v4820_v18 = vor.u32 1.1754944e-38, %v4819_v23  ;;  %vm4798_vm10 = vweird.f32 %v11653_v6  ;;  %vm11850_vm12 = vcmp.eq.f32.partialorder %v4817_v35, 8.507059e+37  ;;  %v11856_v23 = vor.u32 %v8067_v19, %v7692_v36  ;;  %v8057_v36 = vld [vmem:[%s12389_s3 + $0x304] sm:$0xf]  ;;  %v7662_v19 = vld [vmem:[%s12389_s3 + $0x310] sm:$0xf0] }
0x1096   : > { %v8481_v29 = vpop.eup %8480  ;;  %5444 = vmatpush.bf16.msrb.mxu1 %v11813_v15  ;;  %5469 = vmatpush.bf16.msra.mxu3 %v11817_v40 }
0x1097   : > { %v11720_v21 = vadd.f32 1.0, %v8481_v29  ;;  %v8068_v29 = vld [vmem:[%s12389_s3 + $0x354] sm:$0xf0] }
0x1098   : > { %v11730_v25 = vpop.eup %8482 }
0x1099   : > { %v11748_v9 = vpop.eup %8484  ;;  %v4794_v3 = vmul.f32 %v11730_v25, %v11653_v6  ;;  %8486 = vrcp.f32 %v11720_v21  ;;  %vm4799_vm9 = vweird.f32 %v11730_v25  ;;  %vm4828_vm14 = vweird.f32 %v11720_v21 }
0x109a   : > { %v4809_v26 = vmul.f32 %v11748_v9, %v11664_v48  ;;  %vm4814_vm7 = vweird.f32 %v11748_v9  ;;  %8488 = vtanh.f32 %v4780_v24  ;;  %v11800_v48 = vor.u32 %v8071_v62, %v7708_v58  ;;  %vm11845_vm11 = vmor %vm4798_vm10, %vm4799_vm9  ;;  %v7678_v58 = vld [vmem:[%s12389_s3 + $0x330] sm:$0xf0]  ;;  %v8066_v62 = vld [vmem:[%s12389_s3 + $0x34c] sm:$0xf]  ;;  %5445 = vmatpush.bf16.msrb.mxu1 %v11862_v30 }
0x109b   : > { %v4795_v46 = vsub.f32 1.0, %v4794_v3  ;;  %vm11785_vm8 = vmor %vm4813_vm6, %vm4814_vm7  ;;  %v11864_v24 = vor.u32 %v8070_v13, %v7718_v47  ;;  %v11907_v52 = vor.u32 %v8061_v1, %v7678_v58  ;;  %v4832_v13 = vand.u32 2147483647, %v11720_v21  ;;  %v5120_v58 = vpop.f32.mrf.mxu1 }
0x109c   : > { %v4810_v28 = vsub.f32 1.0, %v4809_v26  ;;  %5431 = vmatpush.bf16.msra.mxu0 %v11800_v48  ;;  %v11881_v26 = vor.u32 %v8068_v29, %v7700_v8  ;;  %v8060_v8 = vld [vmem:[%s12389_s3 + $0x314] sm:$0xf0]  ;;  %v11948_v47 = vor.u32 %v8057_v36, %v7662_v19 }
0x109d   : > { %v4796_v27 = vmul.f32 %v11730_v25, %v4795_v46  ;;  %v8064_v46 = vld [vmem:[%s12389_s3 + $0x334] sm:$0xf0]  ;;  %5470 = vmatpush.bf16.msra.mxu3 %v11864_v24  ;;  %v11953_v63 = vor.u32 %v8060_v8, %v7668_v42  ;;  %vm4833_vm0 = vcmp.eq.f32.partialorder %v4832_v13, 8.507059e+37 }
0x109e   : > { %v4811_v31 = vmul.f32 %v11748_v9, %v4810_v28  ;;  %v11903_v28 = vor.u32 %v8063_v17, %v7676_v2  ;;  %5458 = vmatpush.bf16.msra.mxu2 %v11881_v26  ;;  %5446 = vmatpush.bf16.msrb.mxu1 %v11907_v52 }
0x109f   : > { %v11828_v61 = vpop.eup %8486  ;;  %v4797_v33 = vadd.f32 %v11730_v25, %v4796_v27 }
0x10a0   : > { %v4824_v32 = vmul.f32 %v11828_v61, %v11720_v21  ;;  %v4812_v6 = vadd.f32 %v11748_v9, %v4811_v31  ;;  %v8489_v3 = vpop.eup %8488  ;;  %5432 = vmatpush.bf16.msra.mxu0 %v11856_v23  ;;  %v7686_v31 = vld [vmem:[%s12389_s3 + $0x338] sm:$0xf0]  ;;  %vm4829_vm13 = vweird.f32 %v11828_v61 }
0x10a1   : > { %v4801_v53 = vsel %vm11845_vm11, %v11730_v25, %v4797_v33  ;;  %v4834_v33 = vand.u32 2147483648, %v11720_v21  ;;  %vm4830_vm15 = vmor %vm4828_vm14, %vm4829_vm13  ;;  %v7670_v21 = vld [vmem:[%s12389_s3 + $0x318] sm:$0xf0] }
0x10a2   : > { %v4825_v25 = vsub.f32 1.0, %v4824_v32  ;;  %v4806_v35 = vsel %vm11753_vm5, %v4805_v11, %v4801_v53  ;;  %v4816_v54 = vsel %vm11785_vm8, %v11748_v9, %v4812_v6  ;;  %v7684_v9 = vld [vmem:[%s12389_s3 + $0x328] sm:$0xf]  ;;  %v7702_v11 = vld [vmem:[%s12389_s3 + $0x358] sm:$0xf0]  ;;  %v11950_v32 = vor.u32 %v8062_v45, %v7686_v31  ;;  %5447 = vmatpush.bf16.msrb.mxu1 %v11948_v47 }
0x10a3   : > { %v4821_v59 = vsel %vm11850_vm12, %v4820_v18, %v4816_v54  ;;  %v4840_v10 = vmul.f32 %v8489_v3, %v4806_v35  ;;  %v11909_v18 = vor.u32 %v8066_v62, %v7702_v11  ;;  %v11921_v4 = vor.u32 %v8064_v46, %v7684_v9  ;;  %v8058_v6 = vld [vmem:[%s12389_s3 + $0x30c] sm:$0xf]  ;;  %v5091_v54 = vpop.f32.mrf.mxu0  ;;  %v5149_v62 = vpop.f32.mrf.mxu2 }
0x10a4   : > { %v4826_v56 = vmul.f32 %v11828_v61, %v4825_v25  ;;  %v4839_v20 = vmul.f32 %v4821_v59, %v11595_v7  ;;  %v8059_v7 = vld [vmem:[%s12389_s3 + $0x30c] sm:$0xf0]  ;;  %5433 = vmatpush.bf16.msra.mxu0 %v11903_v28  ;;  %v4835_v53 = vor.u32 1.1754944e-38, %v4834_v33  ;;  %v11965_v2 = vor.u32 %v8058_v6, %v7670_v21  ;;  %v5178_v59 = vpop.f32.mrf.mxu3  ;;  %v12039_v9 = vpop.f32.mrf.mxu1 }
0x10a5   : > { %v11942_v29 = vor.u32 %v8059_v7, %v7660_v0  ;;  %5471 = vmatpush.bf16.msra.mxu3 %v11909_v18  ;;  %5459 = vmatpush.bf16.msra.mxu2 %v11921_v4  ;;  %v12586_v35 = vmov 0  }
0x10a6   : > { %v4841_v27 = vadd.f32 %v4840_v10, %v4839_v20  ;;  %v4827_v22 = vadd.f32 %v11828_v61, %v4826_v56  ;;  %5564 = vmatpush.bf16.msra.mxu1 %v11629_v55 }
0x10a8   : > { %8490 = vtanh.f32 %v4841_v27  ;;  %v4831_v43 = vsel %vm4830_vm15, %v11828_v61, %v4827_v22  ;;  %5434 = vmatpush.bf16.msra.mxu0 %v11942_v29 }
0x10a9   : > { %5472 = vmatpush.bf16.msra.mxu3 %v11950_v32  ;;  %v4836_v1 = vsel %vm4833_vm0, %v4835_v53, %v4831_v43  ;;  %5460 = vmatpush.bf16.msra.mxu2 %v11953_v63 }
0x10aa   : > { %5565 = vmatpush.bf16.msra.mxu1 %v11666_v51 }
0x10ab   : > { %v12037_v10 = vpop.f32.mrf.mxu0  ;;  %v12041_v46 = vpop.f32.mrf.mxu2 }
0x10ac   : > { %5551 = vmatpush.bf16.msrb.mxu0 %v11618_v50  ;;  %v12043_v11 = vpop.f32.mrf.mxu3  ;;  %v12047_v20 = vpop.f32.mrf.mxu1 }
0x10ad   : > { %5577 = vmatpush.bf16.msrb.mxu2 %v11631_v41  ;;  %5473 = vmatpush.bf16.msra.mxu3 %v11965_v2  ;;  %12587 = vst [vmem:[#allocation28_spill] sm:$0xff] %v12043_v11 }
0x10ae   : > { %v8491_v17 = vpop.eup %8490  ;;  %5566 = vmatpush.bf16.msra.mxu1 %v11707_v14  ;;  %12589 = vst [vmem:[#allocation7_spill] sm:$0xff] %v12047_v20 }
0x10af   : > { %v4843_v3 = vmul.f32 %v8491_v17, %v4836_v1 }
0x10b0   : > { %5552 = vmatpush.bf16.msrb.mxu0 %v11655_v49 }
0x10b1   : > { %v4844_v61 = vpack.c.bf16 %v4843_v3, %v4843_v3  ;;  %5590 = vmatpush.bf16.msrb.mxu3 %v11640_v60  ;;  %5578 = vmatpush.bf16.msrb.mxu2 %v11685_v38  ;;  %v7481_v3 = vld [vmem:[%s12390_s4 + $0xc] sm:$0xf] }
0x10b2   : > { %5567 = vmatpush.bf16.msra.mxu1 %v11737_v37 }
0x10b3   : > { %4845 = vst [vmem:[#allocation3 + $0x1c] sm:$0xf] %v4844_v61  ;;  %v12045_v56 = vpop.f32.mrf.mxu0  ;;  %v12049_v0 = vpop.f32.mrf.mxu2 }
0x10b4   : > { %5553 = vmatpush.bf16.msrb.mxu0 %v11705_v12  ;;  %12588 = vst [vmem:[#allocation29_spill] sm:$0xff] %v12045_v56  ;;  %v12051_v7 = vpop.f32.mrf.mxu3  ;;  %v12055_v27 = vpop.f32.mrf.mxu1 }
0x10b5   : > { %5591 = vmatpush.bf16.msrb.mxu3 %v11693_v44  ;;  %5579 = vmatpush.bf16.msrb.mxu2 %v11722_v16  ;;  %12590 = vst [vmem:[#allocation8_spill] sm:$0xff] %v12049_v0 }
0x10b6   : > { %5568 = vmatpush.bf16.msra.mxu1 %v11813_v15  ;;  %12591 = vst [vmem:[#allocation15_spill] sm:$0xff] %v12051_v7 }
0x10b7   : > { %12593 = vst [vmem:[#allocation6_spill] sm:$0xff] %v12055_v27 }
0x10b8   : > { %5554 = vmatpush.bf16.msrb.mxu0 %v11735_v39 }
0x10b9   : > { %5592 = vmatpush.bf16.msrb.mxu3 %v11777_v5  ;;  %5580 = vmatpush.bf16.msrb.mxu2 %v11775_v57 }
0x10ba   : > { %v8024_v25 = vld [vmem:[#allocation3 + $0x18] sm:$0xff]  ;;  %5569 = vmatpush.bf16.msra.mxu1 %v11862_v30 }
0x10bb   : > { %5105 = vmatmul.bf16.gmra.mxu0 %v8024_v25  ;;  %5134 = vmatmul.bf16.gmra.mxu1 %v8024_v25  ;;  %v12053_v45 = vpop.f32.mrf.mxu0  ;;  %v12057_v36 = vpop.f32.mrf.mxu2 }
0x10bc   : > { %5163 = vmatmul.bf16.gmra.mxu2 %v8024_v25  ;;  %5192 = vmatmul.bf16.gmra.mxu3 %v8024_v25  ;;  %12592 = vst [vmem:[#allocation9_spill] sm:$0xff] %v12053_v45  ;;  %v12059_v19 = vpop.f32.mrf.mxu3  ;;  %v12063_v22 = vpop.f32.mrf.mxu1 }
0x10bd   : > { %5593 = vmatpush.bf16.msrb.mxu3 %v11817_v40  ;;  %5555 = vmatpush.bf16.msrb.mxu0 %v11800_v48  ;;  %12594 = vst [vmem:[#allocation10_spill] sm:$0xff] %v12057_v36 }
0x10be   : > { %5581 = vmatpush.bf16.msrb.mxu2 %v11815_v34  ;;  %5570 = vmatpush.bf16.msra.mxu1 %v11907_v52  ;;  %12595 = vst [vmem:[#allocation11_spill] sm:$0xff] %v12059_v19 }
0x10bf   : > { %12597 = vst [vmem:[#allocation12_spill] sm:$0xff] %v12063_v22 }
0x10c1   : > { %5594 = vmatpush.bf16.msrb.mxu3 %v11864_v24  ;;  %5556 = vmatpush.bf16.msrb.mxu0 %v11856_v23 }
0x10c2   : > { %5582 = vmatpush.bf16.msrb.mxu2 %v11881_v26  ;;  %5571 = vmatpush.bf16.msra.mxu1 %v11948_v47 }
0x10c3   : > { %v12061_v31 = vpop.f32.mrf.mxu0  ;;  %v12065_v42 = vpop.f32.mrf.mxu2 }
0x10c4   : > { %12596 = vst [vmem:[#allocation18_spill] sm:$0xff] %v12061_v31  ;;  %v12067_v8 = vpop.f32.mrf.mxu3  ;;  %v12071_v13 = vpop.f32.mrf.mxu1 }
0x10c5   : > { %5595 = vmatpush.bf16.msrb.mxu3 %v11909_v18  ;;  %5557 = vmatpush.bf16.msrb.mxu0 %v11903_v28  ;;  %12598 = vst [vmem:[#allocation13_spill] sm:$0xff] %v12065_v42  ;;  %v12102_v42 = vperm.slane %v7481_v3, 2 }
0x10c6   : > { %5583 = vmatpush.bf16.msrb.mxu2 %v11921_v4  ;;  %12599 = vst [vmem:[#allocation14_spill] sm:$0xff] %v12067_v8 }
0x10c7   : > { %12601 = vst [vmem:[#allocation16_spill] sm:$0xff] %v12071_v13  ;;  %v5150_v22 = vadd.f32 %v5149_v62, %v12102_v42 }
0x10c9   : > { %5596 = vmatpush.bf16.msrb.mxu3 %v11950_v32  ;;  %5558 = vmatpush.bf16.msrb.mxu0 %v11942_v29 }
0x10ca   : > { %5584 = vmatpush.bf16.msrb.mxu2 %v11953_v63 }
0x10cb   : > { %5435 = vmatmul.bf16.vlgmr.msra.gmra.mxu0 %v12586_v35  ;;  %5448 = vmatmul.bf16.vlgmr.msrb.gmra.mxu1 %v12586_v35  ;;  %v12069_v33 = vpop.f32.mrf.mxu0  ;;  %v12073_v6 = vpop.f32.mrf.mxu2 }
0x10cc   : > { %5461 = vmatmul.bf16.vlgmr.msra.gmra.mxu2 %v12586_v35  ;;  %5474 = vmatmul.bf16.vlgmr.msra.gmra.mxu3 %v12586_v35  ;;  %12600 = vst [vmem:[#allocation21_spill] sm:$0xff] %v12069_v33  ;;  %v12075_v21 = vpop.f32.mrf.mxu3  ;;  %v12092_v35 = vperm.slane %v7481_v3, 0 }
0x10cd   : > { %5597 = vmatpush.bf16.msrb.mxu3 %v11965_v2  ;;  %5675 = vmatpush.bf16.msra.mxu0 %v11618_v50  ;;  %12602 = vst [vmem:[#allocation17_spill] sm:$0xff] %v12073_v6  ;;  %v12094_v6 = vperm.slane %v7481_v3, 1 }
0x10ce   : > { %5688 = vmatpush.bf16.msrb.mxu1 %v11629_v55  ;;  %5701 = vmatpush.bf16.msra.mxu2 %v11631_v41  ;;  %12603 = vst [vmem:[#allocation4_spill] sm:$0xff] %v12075_v21 }
0x10d1   : > { %5714 = vmatpush.bf16.msra.mxu3 %v11640_v60  ;;  %5676 = vmatpush.bf16.msra.mxu0 %v11655_v49 }
0x10d2   : > { %5689 = vmatpush.bf16.msrb.mxu1 %v11666_v51  ;;  %5702 = vmatpush.bf16.msra.mxu2 %v11685_v38 }
0x10d5   : > { %5715 = vmatpush.bf16.msra.mxu3 %v11693_v44  ;;  %5677 = vmatpush.bf16.msra.mxu0 %v11705_v12 }
0x10d6   : > { %5690 = vmatpush.bf16.msrb.mxu1 %v11707_v14  ;;  %5703 = vmatpush.bf16.msra.mxu2 %v11722_v16 }
0x10d9   : > { %5716 = vmatpush.bf16.msra.mxu3 %v11777_v5  ;;  %5678 = vmatpush.bf16.msra.mxu0 %v11735_v39 }
0x10da   : > { %5691 = vmatpush.bf16.msrb.mxu1 %v11737_v37  ;;  %5704 = vmatpush.bf16.msra.mxu2 %v11775_v57 }
0x10dd   : > { %5717 = vmatpush.bf16.msra.mxu3 %v11817_v40  ;;  %5679 = vmatpush.bf16.msra.mxu0 %v11800_v48 }
0x10de   : > { %5692 = vmatpush.bf16.msrb.mxu1 %v11813_v15  ;;  %5705 = vmatpush.bf16.msra.mxu2 %v11815_v34 }
0x10e1   : > { %5718 = vmatpush.bf16.msra.mxu3 %v11864_v24  ;;  %5680 = vmatpush.bf16.msra.mxu0 %v11856_v23 }
0x10e2   : > { %5693 = vmatpush.bf16.msrb.mxu1 %v11862_v30  ;;  %5706 = vmatpush.bf16.msra.mxu2 %v11881_v26 }
0x10e5   : > { %5719 = vmatpush.bf16.msra.mxu3 %v11909_v18  ;;  %5681 = vmatpush.bf16.msra.mxu0 %v11903_v28 }
0x10e6   : > { %5694 = vmatpush.bf16.msrb.mxu1 %v11907_v52  ;;  %5707 = vmatpush.bf16.msra.mxu2 %v11921_v4 }
0x10e9   : > { %5720 = vmatpush.bf16.msra.mxu3 %v11950_v32  ;;  %5682 = vmatpush.bf16.msra.mxu0 %v11942_v29 }
0x10ea   : > { %5695 = vmatpush.bf16.msrb.mxu1 %v11948_v47  ;;  %5708 = vmatpush.bf16.msra.mxu2 %v11953_v63 }
0x10ed   : > { %5721 = vmatpush.bf16.msra.mxu3 %v11965_v2 }
0x1138   : > { %v12077_v43 = vpop.f32.mrf.mxu0  ;;  %v12079_v53 = vpop.f32.mrf.mxu1 }
0x1139   : > { %12604 = vst [vmem:[#allocation24_spill] sm:$0xff] %v12077_v43  ;;  %v5092_v43 = vadd.f32 %v5091_v54, %v12092_v35 }
0x113a   : > { %12605 = vst [vmem:[#allocation19_spill] sm:$0xff] %v12079_v53  ;;  %v5121_v53 = vadd.f32 %v5120_v58, %v12094_v6 }
0x113f   : > { %v12081_v17 = vpop.f32.mrf.mxu2  ;;  %v12083_v1 = vpop.f32.mrf.mxu3 }
0x1140   : > { %12606 = vst [vmem:[#allocation20_spill] sm:$0xff] %v12081_v17  ;;  %v12088_v61 = vpop.f32.mrf.mxu0  ;;  %v12090_v25 = vpop.f32.mrf.mxu1 }
0x1141   : > { %12607 = vst [vmem:[#allocation5_spill] sm:$0xff] %v12083_v1 }
0x1142   : > { %12608 = vst [vmem:[#allocation25_spill] sm:$0xff] %v12088_v61 }
0x1143   : > { %12609 = vst [vmem:[#allocation22_spill] sm:$0xff] %v12090_v25 }
0x1147   : > { %v12098_v21 = vpop.f32.mrf.mxu2  ;;  %v12100_v17 = vpop.f32.mrf.mxu3 }
0x1148   : > { %12610 = vst [vmem:[#allocation23_spill] sm:$0xff] %v12098_v21  ;;  %v5436_v1 = vpop.f32.mrf.mxu0  ;;  %v5449_v13 = vpop.f32.mrf.mxu1 }
0x1149   : > { %12611 = vst [vmem:[#allocation26_spill] sm:$0xff] %v12100_v17  ;;  %v5479_v33 = vadd.f32 %v5436_v1, %v5092_v43  ;;  %v5480_v8 = vadd.f32 %v5449_v13, %v5121_v53  ;;  %v12105_v13 = vperm.slane %v7481_v3, 3 }
0x114b   : > { %v7786_v61 = vmul.f32 -1.442695, %v5479_v33  ;;  %v7787_v25 = vmul.f32 -1.442695, %v5480_v8  ;;  %12612 = vst [vmem:[#allocation27_spill] sm:$0xff] %v12105_v13  ;;  %v5179_v62 = vadd.f32 %v5178_v59, %v12105_v13 }
0x114d   : > { %8492 = vpow2.f32 %v7786_v61 }
0x114e   : > { %8494 = vpow2.f32 %v7787_v25 }
0x114f   : > { %v5462_v31 = vpop.f32.mrf.mxu2  ;;  %v5475_v54 = vpop.f32.mrf.mxu3 }
0x1150   : > { %v5481_v19 = vadd.f32 %v5462_v31, %v5150_v22  ;;  %v5438_v58 = vpop.f32.mrf.mxu0  ;;  %v5451_v36 = vpop.f32.mrf.mxu1  ;;  %v5482_v31 = vadd.f32 %v5475_v54, %v5179_v62 }
0x1152   : > { %v7788_v21 = vmul.f32 -1.442695, %v5481_v19 }
0x1153   : > { %v8493_v27 = vpop.eup %8492 }
0x1154   : > { %v8495_v17 = vpop.eup %8494  ;;  %v5492_v45 = vadd.f32 1.0, %v8493_v27  ;;  %8496 = vpow2.f32 %v7788_v21 }
0x1155   : > { %v5493_v43 = vadd.f32 1.0, %v8495_v17 }
0x1156   : > { %8498 = vrcp.f32 %v5492_v45  ;;  %v5506_v21 = vand.u32 2147483648, %v5492_v45  ;;  %v5504_v58 = vand.u32 2147483647, %v5492_v45  ;;  %vm5500_vm3 = vweird.f32 %v5492_v45 }
0x1157   : > { %8500 = vrcp.f32 %v5493_v43  ;;  %v5464_v8 = vpop.f32.mrf.mxu2  ;;  %v5477_v33 = vpop.f32.mrf.mxu3  ;;  %v5521_v17 = vand.u32 2147483648, %v5493_v43  ;;  %vm5515_vm4 = vweird.f32 %v5493_v43 }
0x1158   : > { %v5519_v33 = vand.u32 2147483647, %v5493_v43  ;;  %vm5505_vm6 = vcmp.eq.f32.partialorder %v5504_v58, 8.507059e+37 }
0x1159   : > { %v5522_v0 = vor.u32 1.1754944e-38, %v5521_v17 }
0x115a   : > { %v8497_v53 = vpop.eup %8496  ;;  %vm5520_vm8 = vcmp.eq.f32.partialorder %v5519_v33, 8.507059e+37 }
0x115b   : > { %v5494_v1 = vadd.f32 1.0, %v8497_v53  ;;  %v5507_v53 = vor.u32 1.1754944e-38, %v5506_v21 }
0x115c   : > { %v8499_v61 = vpop.eup %8498 }
0x115d   : > { %v8501_v22 = vpop.eup %8500  ;;  %v5496_v36 = vmul.f32 %v8499_v61, %v5492_v45  ;;  %8502 = vrcp.f32 %v5494_v1  ;;  %vm5501_vm1 = vweird.f32 %v8499_v61  ;;  %vm5530_vm10 = vweird.f32 %v5494_v1 }
0x115e   : > { %v5511_v19 = vmul.f32 %v8501_v22, %v5493_v43  ;;  %8504 = vtanh.f32 %v5482_v31  ;;  %vm5516_vm2 = vweird.f32 %v8501_v22  ;;  %vm5502_vm5 = vmor %vm5500_vm3, %vm5501_vm1  ;;  %v5536_v43 = vand.u32 2147483648, %v5494_v1 }
0x115f   : > { %v5497_v25 = vsub.f32 1.0, %v5496_v36  ;;  %vm5517_vm7 = vmor %vm5515_vm4, %vm5516_vm2 }
0x1160   : > { %v5512_v27 = vsub.f32 1.0, %v5511_v19  ;;  %v5537_v17 = vor.u32 1.1754944e-38, %v5536_v43 }
0x1161   : > { %v5498_v3 = vmul.f32 %v8499_v61, %v5497_v25 }
0x1162   : > { %v5513_v8 = vmul.f32 %v8501_v22, %v5512_v27 }
0x1163   : > { %v8503_v7 = vpop.eup %8502  ;;  %v5499_v59 = vadd.f32 %v8499_v61, %v5498_v3 }
0x1164   : > { %v5526_v54 = vmul.f32 %v8503_v7, %v5494_v1  ;;  %v5514_v62 = vadd.f32 %v8501_v22, %v5513_v8  ;;  %v8505_v31 = vpop.eup %8504  ;;  %vm5531_vm9 = vweird.f32 %v8503_v7 }
0x1165   : > { %v5503_v36 = vsel %vm5502_vm5, %v8499_v61, %v5499_v59  ;;  %v5534_v61 = vand.u32 2147483647, %v5494_v1  ;;  %vm5532_vm11 = vmor %vm5530_vm10, %vm5531_vm9 }
0x1166   : > { %v5527_v19 = vsub.f32 1.0, %v5526_v54  ;;  %v5508_v25 = vsel %vm5505_vm6, %v5507_v53, %v5503_v36  ;;  %v5518_v20 = vsel %vm5517_vm7, %v8501_v22, %v5514_v62  ;;  %v5152_v54 = vadd.f32 %v12041_v46, %v12102_v42 }
0x1167   : > { %v5523_v27 = vsel %vm5520_vm8, %v5522_v0, %v5518_v20  ;;  %v5542_v56 = vmul.f32 %v8505_v31, %v5508_v25  ;;  %vm5535_vm12 = vcmp.eq.f32.partialorder %v5534_v61, 8.507059e+37 }
0x1168   : > { %v5528_v11 = vmul.f32 %v8503_v7, %v5527_v19  ;;  %v5541_v13 = vmul.f32 0.0, %v5523_v27 }
0x116a   : > { %v12108_v3 = vadd.f32 %v5542_v56, %v5541_v13  ;;  %v5529_v45 = vadd.f32 %v8503_v7, %v5528_v11  ;;  %v5094_v11 = vadd.f32 %v12037_v10, %v12092_v35  ;;  %v5123_v56 = vadd.f32 %v12039_v9, %v12094_v6 }
0x116c   : > { %8506 = vtanh.f32 %v12108_v3  ;;  %v5533_v21 = vsel %vm5532_vm11, %v8503_v7, %v5529_v45 }
0x116d   : > { %v5538_v22 = vsel %vm5535_vm12, %v5537_v17, %v5533_v21  ;;  %v12613_v17 = vld [vmem:[#allocation27_spill] sm:$0xff] }
0x1172   : > { %v8507_v58 = vpop.eup %8506 }
0x1173   : > { %v5545_v8 = vmul.f32 %v8507_v58, %v5538_v22  ;;  %v12614_v58 = vld [vmem:[#allocation28_spill] sm:$0xff] }
0x1174   : > { %v5181_v46 = vadd.f32 %v12614_v58, %v12613_v17 }
0x1175   : > { %v5550_v20 = vpack.c.bf16 %v5545_v8, %v5545_v8 }
0x1177   : > { %5559 = vmatmul.bf16.vlgmr.msrb.gmra.mxu0 %v5550_v20  ;;  %5572 = vmatmul.bf16.vlgmr.msra.gmra.mxu1 %v5550_v20 }
0x1178   : > { %5585 = vmatmul.bf16.vlgmr.msrb.gmra.mxu2 %v5550_v20  ;;  %5598 = vmatmul.bf16.vlgmr.msrb.gmra.mxu3 %v5550_v20 }
0x1179   : > { %5799 = vmatpush.bf16.msrb.mxu0 %v11618_v50  ;;  %5812 = vmatpush.bf16.msra.mxu1 %v11629_v55 }
0x117a   : > { %5825 = vmatpush.bf16.msrb.mxu2 %v11631_v41  ;;  %5838 = vmatpush.bf16.msrb.mxu3 %v11640_v60 }
0x117d   : > { %5800 = vmatpush.bf16.msrb.mxu0 %v11655_v49  ;;  %5813 = vmatpush.bf16.msra.mxu1 %v11666_v51 }
0x117e   : > { %5826 = vmatpush.bf16.msrb.mxu2 %v11685_v38  ;;  %5839 = vmatpush.bf16.msrb.mxu3 %v11693_v44 }
0x1181   : > { %5801 = vmatpush.bf16.msrb.mxu0 %v11705_v12  ;;  %5814 = vmatpush.bf16.msra.mxu1 %v11707_v14 }
0x1182   : > { %5827 = vmatpush.bf16.msrb.mxu2 %v11722_v16  ;;  %5840 = vmatpush.bf16.msrb.mxu3 %v11777_v5 }
0x1185   : > { %5802 = vmatpush.bf16.msrb.mxu0 %v11735_v39  ;;  %5815 = vmatpush.bf16.msra.mxu1 %v11737_v37 }
0x1186   : > { %5828 = vmatpush.bf16.msrb.mxu2 %v11775_v57  ;;  %5841 = vmatpush.bf16.msrb.mxu3 %v11817_v40 }
0x1189   : > { %5803 = vmatpush.bf16.msrb.mxu0 %v11800_v48  ;;  %5816 = vmatpush.bf16.msra.mxu1 %v11813_v15 }
0x118a   : > { %5829 = vmatpush.bf16.msrb.mxu2 %v11815_v34  ;;  %5842 = vmatpush.bf16.msrb.mxu3 %v11864_v24 }
0x118d   : > { %5804 = vmatpush.bf16.msrb.mxu0 %v11856_v23  ;;  %5817 = vmatpush.bf16.msra.mxu1 %v11862_v30 }
0x118e   : > { %5830 = vmatpush.bf16.msrb.mxu2 %v11881_v26  ;;  %5843 = vmatpush.bf16.msrb.mxu3 %v11909_v18 }
0x1191   : > { %5805 = vmatpush.bf16.msrb.mxu0 %v11903_v28  ;;  %5818 = vmatpush.bf16.msra.mxu1 %v11907_v52 }
0x1192   : > { %5831 = vmatpush.bf16.msrb.mxu2 %v11921_v4  ;;  %5844 = vmatpush.bf16.msrb.mxu3 %v11950_v32 }
0x1195   : > { %5806 = vmatpush.bf16.msrb.mxu0 %v11942_v29  ;;  %5819 = vmatpush.bf16.msra.mxu1 %v11948_v47 }
0x1196   : > { %5832 = vmatpush.bf16.msrb.mxu2 %v11953_v63  ;;  %5845 = vmatpush.bf16.msrb.mxu3 %v11965_v2 }
0x11f4   : > { %v5560_v0 = vpop.f32.mrf.mxu0  ;;  %v5573_v7 = vpop.f32.mrf.mxu1 }
0x11f5   : > { %v5603_v13 = vadd.f32 %v5560_v0, %v5094_v11  ;;  %v5604_v1 = vadd.f32 %v5573_v7, %v5123_v56 }
0x11f7   : > { %v7789_v33 = vmul.f32 -1.442695, %v5603_v13  ;;  %v7790_v59 = vmul.f32 -1.442695, %v5604_v1 }
0x11f9   : > { %8508 = vpow2.f32 %v7789_v33 }
0x11fa   : > { %8510 = vpow2.f32 %v7790_v59 }
0x11fb   : > { %v5586_v53 = vpop.f32.mrf.mxu2  ;;  %v5599_v62 = vpop.f32.mrf.mxu3 }
0x11fc   : > { %v5605_v36 = vadd.f32 %v5586_v53, %v5152_v54  ;;  %v5562_v31 = vpop.f32.mrf.mxu0  ;;  %v5575_v19 = vpop.f32.mrf.mxu1  ;;  %v5606_v20 = vadd.f32 %v5599_v62, %v5181_v46 }
0x11fe   : > { %v7791_v10 = vmul.f32 -1.442695, %v5605_v36 }
0x11ff   : > { %v8509_v25 = vpop.eup %8508 }
0x1200   : > { %v8511_v27 = vpop.eup %8510  ;;  %v5616_v9 = vadd.f32 1.0, %v8509_v25  ;;  %8512 = vpow2.f32 %v7791_v10 }
0x1201   : > { %v5617_v45 = vadd.f32 1.0, %v8511_v27 }
0x1202   : > { %8514 = vrcp.f32 %v5616_v9  ;;  %v5630_v1 = vand.u32 2147483648, %v5616_v9  ;;  %v5628_v54 = vand.u32 2147483647, %v5616_v9  ;;  %vm5624_vm15 = vweird.f32 %v5616_v9 }
0x1203   : > { %8516 = vrcp.f32 %v5617_v45  ;;  %v5588_v43 = vpop.f32.mrf.mxu2  ;;  %v5601_v61 = vpop.f32.mrf.mxu3  ;;  %v5645_v33 = vand.u32 2147483648, %v5617_v45  ;;  %v5643_v36 = vand.u32 2147483647, %v5617_v45  ;;  %vm5639_vm0 = vweird.f32 %v5617_v45 }
0x1204   : > { %v5631_v10 = vor.u32 1.1754944e-38, %v5630_v1  ;;  %vm5629_vm3 = vcmp.eq.f32.partialorder %v5628_v54, 8.507059e+37 }
0x1205   : > { %v5646_v27 = vor.u32 1.1754944e-38, %v5645_v33  ;;  %vm5644_vm4 = vcmp.eq.f32.partialorder %v5643_v36, 8.507059e+37  ;;  %v12616_v36 = vld [vmem:[#allocation7_spill] sm:$0xff] }
0x1206   : > { %v8513_v21 = vpop.eup %8512 }
0x1207   : > { %v5618_v22 = vadd.f32 1.0, %v8513_v21 }
0x1208   : > { %v8515_v8 = vpop.eup %8514 }
0x1209   : > { %v8517_v11 = vpop.eup %8516  ;;  %v5620_v56 = vmul.f32 %v8515_v8, %v5616_v9  ;;  %8518 = vrcp.f32 %v5618_v22  ;;  %vm5625_vm13 = vweird.f32 %v8515_v8  ;;  %vm5654_vm6 = vweird.f32 %v5618_v22 }
0x120a   : > { %v5635_v0 = vmul.f32 %v8517_v11, %v5617_v45  ;;  %8520 = vtanh.f32 %v5606_v20  ;;  %vm5640_vm14 = vweird.f32 %v8517_v11  ;;  %vm5626_vm1 = vmor %vm5624_vm15, %vm5625_vm13 }
0x120b   : > { %v5621_v7 = vsub.f32 1.0, %v5620_v56  ;;  %vm5641_vm2 = vmor %vm5639_vm0, %vm5640_vm14 }
0x120c   : > { %v5636_v13 = vsub.f32 1.0, %v5635_v0 }
0x120d   : > { %v5622_v59 = vmul.f32 %v8515_v8, %v5621_v7 }
0x120e   : > { %v5637_v53 = vmul.f32 %v8517_v11, %v5636_v13  ;;  %v5660_v13 = vand.u32 2147483648, %v5618_v22 }
0x120f   : > { %v8519_v31 = vpop.eup %8518  ;;  %v5623_v19 = vadd.f32 %v8515_v8, %v5622_v59 }
0x1210   : > { %v5650_v62 = vmul.f32 %v8519_v31, %v5618_v22  ;;  %v5638_v25 = vadd.f32 %v8517_v11, %v5637_v53  ;;  %v8521_v61 = vpop.eup %8520  ;;  %vm5655_vm5 = vweird.f32 %v8519_v31  ;;  %v5661_v33 = vor.u32 1.1754944e-38, %v5660_v13 }
0x1211   : > { %v5627_v43 = vsel %vm5626_vm1, %v8515_v8, %v5623_v19  ;;  %v5658_v8 = vand.u32 2147483647, %v5618_v22  ;;  %vm5656_vm7 = vmor %vm5654_vm6, %vm5655_vm5 }
0x1212   : > { %v5651_v21 = vsub.f32 1.0, %v5650_v62  ;;  %v5632_v58 = vsel %vm5629_vm3, %v5631_v10, %v5627_v43  ;;  %v5642_v46 = vsel %vm5641_vm2, %v8517_v11, %v5638_v25 }
0x1213   : > { %v5647_v20 = vsel %vm5644_vm4, %v5646_v27, %v5642_v46  ;;  %v5666_v56 = vmul.f32 %v8521_v61, %v5632_v58  ;;  %vm5659_vm8 = vcmp.eq.f32.partialorder %v5658_v8, 8.507059e+37  ;;  %v12617_v61 = vld [vmem:[#allocation8_spill] sm:$0xff] }
0x1214   : > { %v5652_v0 = vmul.f32 %v8519_v31, %v5651_v21  ;;  %v5665_v7 = vmul.f32 %v5647_v20, %v12108_v3  ;;  %v12615_v3 = vld [vmem:[#allocation29_spill] sm:$0xff]  ;;  %v5155_v21 = vadd.f32 %v12617_v61, %v12102_v42 }
0x1215   : > { %v5097_v22 = vadd.f32 %v12615_v3, %v12092_v35 }
0x1216   : > { %v12152_v9 = vadd.f32 %v5666_v56, %v5665_v7  ;;  %v5653_v45 = vadd.f32 %v8519_v31, %v5652_v0 }
0x1218   : > { %8522 = vtanh.f32 %v12152_v9  ;;  %v5657_v1 = vsel %vm5656_vm7, %v8519_v31, %v5653_v45  ;;  %v5126_v31 = vadd.f32 %v12616_v36, %v12094_v6 }
0x1219   : > { %v5662_v59 = vsel %vm5659_vm8, %v5661_v33, %v5657_v1 }
0x121e   : > { %v8523_v11 = vpop.eup %8522 }
0x121f   : > { %v5669_v54 = vmul.f32 %v8523_v11, %v5662_v59 }
0x1221   : > { %v5674_v53 = vpack.c.bf16 %v5669_v54, %v5669_v54  ;;  %v12618_v54 = vld [vmem:[#allocation15_spill] sm:$0xff] }
0x1223   : > { %5683 = vmatmul.bf16.vlgmr.msra.gmra.mxu0 %v5674_v53  ;;  %5696 = vmatmul.bf16.vlgmr.msrb.gmra.mxu1 %v5674_v53 }
0x1224   : > { %5709 = vmatmul.bf16.vlgmr.msra.gmra.mxu2 %v5674_v53  ;;  %5722 = vmatmul.bf16.vlgmr.msra.gmra.mxu3 %v5674_v53  ;;  %v5184_v53 = vadd.f32 %v12618_v54, %v12613_v17 }
0x1225   : > { %5923 = vmatpush.bf16.msra.mxu0 %v11618_v50  ;;  %5936 = vmatpush.bf16.msrb.mxu1 %v11629_v55 }
0x1226   : > { %5949 = vmatpush.bf16.msra.mxu2 %v11631_v41  ;;  %5962 = vmatpush.bf16.msra.mxu3 %v11640_v60 }
0x1229   : > { %5924 = vmatpush.bf16.msra.mxu0 %v11655_v49  ;;  %5937 = vmatpush.bf16.msrb.mxu1 %v11666_v51 }
0x122a   : > { %5950 = vmatpush.bf16.msra.mxu2 %v11685_v38  ;;  %5963 = vmatpush.bf16.msra.mxu3 %v11693_v44 }
0x122d   : > { %5925 = vmatpush.bf16.msra.mxu0 %v11705_v12  ;;  %5938 = vmatpush.bf16.msrb.mxu1 %v11707_v14 }
0x122e   : > { %5951 = vmatpush.bf16.msra.mxu2 %v11722_v16  ;;  %5964 = vmatpush.bf16.msra.mxu3 %v11777_v5 }
0x1231   : > { %5926 = vmatpush.bf16.msra.mxu0 %v11735_v39  ;;  %5939 = vmatpush.bf16.msrb.mxu1 %v11737_v37 }
0x1232   : > { %5952 = vmatpush.bf16.msra.mxu2 %v11775_v57  ;;  %5965 = vmatpush.bf16.msra.mxu3 %v11817_v40 }
0x1235   : > { %5927 = vmatpush.bf16.msra.mxu0 %v11800_v48  ;;  %5940 = vmatpush.bf16.msrb.mxu1 %v11813_v15 }
0x1236   : > { %5953 = vmatpush.bf16.msra.mxu2 %v11815_v34  ;;  %5966 = vmatpush.bf16.msra.mxu3 %v11864_v24 }
0x1239   : > { %5928 = vmatpush.bf16.msra.mxu0 %v11856_v23  ;;  %5941 = vmatpush.bf16.msrb.mxu1 %v11862_v30 }
0x123a   : > { %5954 = vmatpush.bf16.msra.mxu2 %v11881_v26  ;;  %5967 = vmatpush.bf16.msra.mxu3 %v11909_v18 }
0x123d   : > { %5929 = vmatpush.bf16.msra.mxu0 %v11903_v28  ;;  %5942 = vmatpush.bf16.msrb.mxu1 %v11907_v52 }
0x123e   : > { %5955 = vmatpush.bf16.msra.mxu2 %v11921_v4  ;;  %5968 = vmatpush.bf16.msra.mxu3 %v11950_v32 }
0x1241   : > { %5930 = vmatpush.bf16.msra.mxu0 %v11942_v29  ;;  %5943 = vmatpush.bf16.msrb.mxu1 %v11948_v47 }
0x1242   : > { %5956 = vmatpush.bf16.msra.mxu2 %v11953_v63  ;;  %5969 = vmatpush.bf16.msra.mxu3 %v11965_v2 }
0x12a0   : > { %v5684_v19 = vpop.f32.mrf.mxu0  ;;  %v5697_v62 = vpop.f32.mrf.mxu1 }
0x12a1   : > { %v5727_v10 = vadd.f32 %v5684_v19, %v5097_v22  ;;  %v5728_v25 = vadd.f32 %v5697_v62, %v5126_v31 }
0x12a3   : > { %v7792_v27 = vmul.f32 -1.442695, %v5727_v10  ;;  %v7793_v43 = vmul.f32 -1.442695, %v5728_v25 }
0x12a5   : > { %8524 = vpow2.f32 %v7792_v27 }
0x12a6   : > { %8526 = vpow2.f32 %v7793_v43 }
0x12a7   : > { %v5710_v58 = vpop.f32.mrf.mxu2  ;;  %v5723_v46 = vpop.f32.mrf.mxu3 }
0x12a8   : > { %v5729_v20 = vadd.f32 %v5710_v58, %v5155_v21  ;;  %v5686_v56 = vpop.f32.mrf.mxu0  ;;  %v5699_v0 = vpop.f32.mrf.mxu1  ;;  %v5730_v36 = vadd.f32 %v5723_v46, %v5184_v53 }
0x12aa   : > { %v7794_v7 = vmul.f32 -1.442695, %v5729_v20 }
0x12ab   : > { %v8525_v45 = vpop.eup %8524 }
0x12ac   : > { %v8527_v13 = vpop.eup %8526  ;;  %v5740_v8 = vadd.f32 1.0, %v8525_v45  ;;  %8528 = vpow2.f32 %v7794_v7 }
0x12ad   : > { %v5741_v1 = vadd.f32 1.0, %v8527_v13 }
0x12ae   : > { %8530 = vrcp.f32 %v5740_v8  ;;  %v5754_v27 = vand.u32 2147483648, %v5740_v8  ;;  %v5752_v21 = vand.u32 2147483647, %v5740_v8  ;;  %vm5748_vm11 = vweird.f32 %v5740_v8 }
0x12af   : > { %8532 = vrcp.f32 %v5741_v1  ;;  %v5712_v33 = vpop.f32.mrf.mxu2  ;;  %v5725_v11 = vpop.f32.mrf.mxu3  ;;  %v5769_v43 = vand.u32 2147483648, %v5741_v1  ;;  %v5767_v20 = vand.u32 2147483647, %v5741_v1  ;;  %vm5763_vm12 = vweird.f32 %v5741_v1 }
0x12b0   : > { %v5755_v7 = vor.u32 1.1754944e-38, %v5754_v27  ;;  %vm5753_vm15 = vcmp.eq.f32.partialorder %v5752_v21, 8.507059e+37 }
0x12b1   : > { %v5770_v13 = vor.u32 1.1754944e-38, %v5769_v43  ;;  %vm5768_vm0 = vcmp.eq.f32.partialorder %v5767_v20, 8.507059e+37  ;;  %v12620_v20 = vld [vmem:[#allocation6_spill] sm:$0xff] }
0x12b2   : > { %v8529_v59 = vpop.eup %8528 }
0x12b3   : > { %v5742_v3 = vadd.f32 1.0, %v8529_v59 }
0x12b4   : > { %v8531_v22 = vpop.eup %8530 }
0x12b5   : > { %v8533_v31 = vpop.eup %8532  ;;  %v5744_v19 = vmul.f32 %v8531_v22, %v5740_v8  ;;  %8534 = vrcp.f32 %v5742_v3  ;;  %vm5749_vm9 = vweird.f32 %v8531_v22  ;;  %vm5778_vm2 = vweird.f32 %v5742_v3 }
0x12b6   : > { %v5759_v62 = vmul.f32 %v8533_v31, %v5741_v1  ;;  %8536 = vtanh.f32 %v5730_v36  ;;  %vm5764_vm10 = vweird.f32 %v8533_v31  ;;  %vm5750_vm13 = vmor %vm5748_vm11, %vm5749_vm9 }
0x12b7   : > { %v5745_v10 = vsub.f32 1.0, %v5744_v19  ;;  %vm5765_vm14 = vmor %vm5763_vm12, %vm5764_vm10 }
0x12b8   : > { %v5760_v25 = vsub.f32 1.0, %v5759_v62 }
0x12b9   : > { %v5746_v61 = vmul.f32 %v8531_v22, %v5745_v10 }
0x12ba   : > { %v5761_v58 = vmul.f32 %v8533_v31, %v5760_v25  ;;  %v5784_v25 = vand.u32 2147483648, %v5742_v3 }
0x12bb   : > { %v8535_v56 = vpop.eup %8534  ;;  %v5747_v0 = vadd.f32 %v8531_v22, %v5746_v61 }
0x12bc   : > { %v5774_v46 = vmul.f32 %v8535_v56, %v5742_v3  ;;  %v5762_v45 = vadd.f32 %v8533_v31, %v5761_v58  ;;  %v8537_v11 = vpop.eup %8536  ;;  %vm5779_vm1 = vweird.f32 %v8535_v56  ;;  %v5785_v43 = vor.u32 1.1754944e-38, %v5784_v25 }
0x12bd   : > { %v5751_v33 = vsel %vm5750_vm13, %v8531_v22, %v5747_v0  ;;  %v5782_v22 = vand.u32 2147483647, %v5742_v3  ;;  %vm5780_vm3 = vmor %vm5778_vm2, %vm5779_vm1 }
0x12be   : > { %v5775_v59 = vsub.f32 1.0, %v5774_v46  ;;  %v5756_v54 = vsel %vm5753_vm15, %v5755_v7, %v5751_v33  ;;  %v5766_v53 = vsel %vm5765_vm14, %v8533_v31, %v5762_v45 }
0x12bf   : > { %v5771_v36 = vsel %vm5768_vm0, %v5770_v13, %v5766_v53  ;;  %v5790_v19 = vmul.f32 %v8537_v11, %v5756_v54  ;;  %vm5783_vm4 = vcmp.eq.f32.partialorder %v5782_v22, 8.507059e+37  ;;  %v12621_v11 = vld [vmem:[#allocation10_spill] sm:$0xff] }
0x12c0   : > { %v5776_v62 = vmul.f32 %v8535_v56, %v5775_v59  ;;  %v5789_v10 = vmul.f32 %v5771_v36, %v12152_v9  ;;  %v12619_v9 = vld [vmem:[#allocation9_spill] sm:$0xff]  ;;  %v5157_v59 = vadd.f32 %v12621_v11, %v12102_v42 }
0x12c1   : > { %v5099_v3 = vadd.f32 %v12619_v9, %v12092_v35 }
0x12c2   : > { %v12196_v8 = vadd.f32 %v5790_v19, %v5789_v10  ;;  %v5777_v1 = vadd.f32 %v8535_v56, %v5776_v62 }
0x12c4   : > { %8538 = vtanh.f32 %v12196_v8  ;;  %v5781_v27 = vsel %vm5780_vm3, %v8535_v56, %v5777_v1  ;;  %v5128_v56 = vadd.f32 %v12620_v20, %v12094_v6 }
0x12c5   : > { %v5786_v61 = vsel %vm5783_vm4, %v5785_v43, %v5781_v27 }
0x12ca   : > { %v8539_v31 = vpop.eup %8538 }
0x12cb   : > { %v5793_v21 = vmul.f32 %v8539_v31, %v5786_v61 }
0x12cd   : > { %v5798_v58 = vpack.c.bf16 %v5793_v21, %v5793_v21  ;;  %v12622_v21 = vld [vmem:[#allocation11_spill] sm:$0xff] }
0x12cf   : > { %5807 = vmatmul.bf16.vlgmr.msrb.gmra.mxu0 %v5798_v58  ;;  %5820 = vmatmul.bf16.vlgmr.msra.gmra.mxu1 %v5798_v58 }
0x12d0   : > { %5833 = vmatmul.bf16.vlgmr.msrb.gmra.mxu2 %v5798_v58  ;;  %5846 = vmatmul.bf16.vlgmr.msrb.gmra.mxu3 %v5798_v58  ;;  %v5186_v58 = vadd.f32 %v12622_v21, %v12613_v17 }
0x12d1   : > { %6047 = vmatpush.bf16.msrb.mxu0 %v11618_v50  ;;  %6060 = vmatpush.bf16.msra.mxu1 %v11629_v55 }
0x12d2   : > { %6073 = vmatpush.bf16.msrb.mxu2 %v11631_v41  ;;  %6086 = vmatpush.bf16.msrb.mxu3 %v11640_v60 }
0x12d5   : > { %6048 = vmatpush.bf16.msrb.mxu0 %v11655_v49  ;;  %6061 = vmatpush.bf16.msra.mxu1 %v11666_v51 }
0x12d6   : > { %6074 = vmatpush.bf16.msrb.mxu2 %v11685_v38  ;;  %6087 = vmatpush.bf16.msrb.mxu3 %v11693_v44 }
0x12d9   : > { %6049 = vmatpush.bf16.msrb.mxu0 %v11705_v12  ;;  %6062 = vmatpush.bf16.msra.mxu1 %v11707_v14 }
0x12da   : > { %6075 = vmatpush.bf16.msrb.mxu2 %v11722_v16  ;;  %6088 = vmatpush.bf16.msrb.mxu3 %v11777_v5 }
0x12dd   : > { %6050 = vmatpush.bf16.msrb.mxu0 %v11735_v39  ;;  %6063 = vmatpush.bf16.msra.mxu1 %v11737_v37 }
0x12de   : > { %6076 = vmatpush.bf16.msrb.mxu2 %v11775_v57  ;;  %6089 = vmatpush.bf16.msrb.mxu3 %v11817_v40 }
0x12e1   : > { %6051 = vmatpush.bf16.msrb.mxu0 %v11800_v48  ;;  %6064 = vmatpush.bf16.msra.mxu1 %v11813_v15 }
0x12e2   : > { %6077 = vmatpush.bf16.msrb.mxu2 %v11815_v34  ;;  %6090 = vmatpush.bf16.msrb.mxu3 %v11864_v24 }
0x12e5   : > { %6052 = vmatpush.bf16.msrb.mxu0 %v11856_v23  ;;  %6065 = vmatpush.bf16.msra.mxu1 %v11862_v30 }
0x12e6   : > { %6078 = vmatpush.bf16.msrb.mxu2 %v11881_v26  ;;  %6091 = vmatpush.bf16.msrb.mxu3 %v11909_v18 }
0x12e9   : > { %6053 = vmatpush.bf16.msrb.mxu0 %v11903_v28  ;;  %6066 = vmatpush.bf16.msra.mxu1 %v11907_v52 }
0x12ea   : > { %6079 = vmatpush.bf16.msrb.mxu2 %v11921_v4  ;;  %6092 = vmatpush.bf16.msrb.mxu3 %v11950_v32 }
0x12ed   : > { %6054 = vmatpush.bf16.msrb.mxu0 %v11942_v29  ;;  %6067 = vmatpush.bf16.msra.mxu1 %v11948_v47 }
0x12ee   : > { %6080 = vmatpush.bf16.msrb.mxu2 %v11953_v63  ;;  %6093 = vmatpush.bf16.msrb.mxu3 %v11965_v2 }
0x134c   : > { %v5808_v0 = vpop.f32.mrf.mxu0  ;;  %v5821_v46 = vpop.f32.mrf.mxu1 }
0x134d   : > { %v5851_v7 = vadd.f32 %v5808_v0, %v5099_v3  ;;  %v5852_v45 = vadd.f32 %v5821_v46, %v5128_v56 }
0x134f   : > { %v7795_v13 = vmul.f32 -1.442695, %v5851_v7  ;;  %v7796_v33 = vmul.f32 -1.442695, %v5852_v45 }
0x1351   : > { %8540 = vpow2.f32 %v7795_v13 }
0x1352   : > { %8542 = vpow2.f32 %v7796_v33 }
0x1353   : > { %v5834_v54 = vpop.f32.mrf.mxu2  ;;  %v5847_v53 = vpop.f32.mrf.mxu3 }
0x1354   : > { %v5853_v36 = vadd.f32 %v5834_v54, %v5157_v59  ;;  %v5810_v19 = vpop.f32.mrf.mxu0  ;;  %v5823_v62 = vpop.f32.mrf.mxu1  ;;  %v5854_v20 = vadd.f32 %v5847_v53, %v5186_v58 }
0x1356   : > { %v7797_v10 = vmul.f32 -1.442695, %v5853_v36 }
0x1357   : > { %v8541_v1 = vpop.eup %8540 }
0x1358   : > { %v8543_v25 = vpop.eup %8542  ;;  %v5864_v22 = vadd.f32 1.0, %v8541_v1  ;;  %8544 = vpow2.f32 %v7797_v10 }
0x1359   : > { %v5865_v27 = vadd.f32 1.0, %v8543_v25 }
0x135a   : > { %8546 = vrcp.f32 %v5864_v22  ;;  %v5878_v13 = vand.u32 2147483648, %v5864_v22  ;;  %v5876_v59 = vand.u32 2147483647, %v5864_v22  ;;  %vm5872_vm7 = vweird.f32 %v5864_v22 }
0x135b   : > { %8548 = vrcp.f32 %v5865_v27  ;;  %v5836_v43 = vpop.f32.mrf.mxu2  ;;  %v5849_v31 = vpop.f32.mrf.mxu3  ;;  %v5893_v33 = vand.u32 2147483648, %v5865_v27  ;;  %v5891_v36 = vand.u32 2147483647, %v5865_v27  ;;  %vm5887_vm8 = vweird.f32 %v5865_v27 }
0x135c   : > { %v5879_v10 = vor.u32 1.1754944e-38, %v5878_v13  ;;  %vm5877_vm11 = vcmp.eq.f32.partialorder %v5876_v59, 8.507059e+37 }
0x135d   : > { %v5894_v25 = vor.u32 1.1754944e-38, %v5893_v33  ;;  %vm5892_vm12 = vcmp.eq.f32.partialorder %v5891_v36, 8.507059e+37  ;;  %v12624_v36 = vld [vmem:[#allocation12_spill] sm:$0xff] }
0x135e   : > { %v8545_v61 = vpop.eup %8544 }
0x135f   : > { %v5866_v9 = vadd.f32 1.0, %v8545_v61 }
0x1360   : > { %v8547_v3 = vpop.eup %8546 }
0x1361   : > { %v8549_v56 = vpop.eup %8548  ;;  %v5868_v0 = vmul.f32 %v8547_v3, %v5864_v22  ;;  %8550 = vrcp.f32 %v5866_v9  ;;  %vm5873_vm5 = vweird.f32 %v8547_v3  ;;  %vm5902_vm14 = vweird.f32 %v5866_v9 }
0x1362   : > { %v5883_v46 = vmul.f32 %v8549_v56, %v5865_v27  ;;  %8552 = vtanh.f32 %v5854_v20  ;;  %vm5888_vm6 = vweird.f32 %v8549_v56  ;;  %vm5874_vm9 = vmor %vm5872_vm7, %vm5873_vm5 }
0x1363   : > { %v5869_v7 = vsub.f32 1.0, %v5868_v0  ;;  %vm5889_vm10 = vmor %vm5887_vm8, %vm5888_vm6 }
0x1364   : > { %v5884_v45 = vsub.f32 1.0, %v5883_v46 }
0x1365   : > { %v5870_v11 = vmul.f32 %v8547_v3, %v5869_v7 }
0x1366   : > { %v5885_v54 = vmul.f32 %v8549_v56, %v5884_v45  ;;  %v5908_v45 = vand.u32 2147483648, %v5866_v9 }
0x1367   : > { %v8551_v19 = vpop.eup %8550  ;;  %v5871_v62 = vadd.f32 %v8547_v3, %v5870_v11 }
0x1368   : > { %v5898_v53 = vmul.f32 %v8551_v19, %v5866_v9  ;;  %v5886_v1 = vadd.f32 %v8549_v56, %v5885_v54  ;;  %v8553_v31 = vpop.eup %8552  ;;  %vm5903_vm13 = vweird.f32 %v8551_v19  ;;  %v5909_v33 = vor.u32 1.1754944e-38, %v5908_v45 }
0x1369   : > { %v5875_v43 = vsel %vm5874_vm9, %v8547_v3, %v5871_v62  ;;  %v5906_v3 = vand.u32 2147483647, %v5866_v9  ;;  %vm5904_vm15 = vmor %vm5902_vm14, %vm5903_vm13 }
0x136a   : > { %v5899_v61 = vsub.f32 1.0, %v5898_v53  ;;  %v5880_v21 = vsel %vm5877_vm11, %v5879_v10, %v5875_v43  ;;  %v5890_v58 = vsel %vm5889_vm10, %v8549_v56, %v5886_v1 }
0x136b   : > { %v5895_v20 = vsel %vm5892_vm12, %v5894_v25, %v5890_v58  ;;  %v5914_v0 = vmul.f32 %v8553_v31, %v5880_v21  ;;  %vm5907_vm0 = vcmp.eq.f32.partialorder %v5906_v3, 8.507059e+37  ;;  %v12625_v31 = vld [vmem:[#allocation13_spill] sm:$0xff] }
0x136c   : > { %v5900_v46 = vmul.f32 %v8551_v19, %v5899_v61  ;;  %v5913_v7 = vmul.f32 %v5895_v20, %v12196_v8  ;;  %v12623_v8 = vld [vmem:[#allocation18_spill] sm:$0xff]  ;;  %v5160_v61 = vadd.f32 %v12625_v31, %v12102_v42 }
0x136d   : > { %v5102_v9 = vadd.f32 %v12623_v8, %v12092_v35 }
0x136e   : > { %v12240_v22 = vadd.f32 %v5914_v0, %v5913_v7  ;;  %v5901_v27 = vadd.f32 %v8551_v19, %v5900_v46 }
0x1370   : > { %8554 = vtanh.f32 %v12240_v22  ;;  %v5905_v13 = vsel %vm5904_vm15, %v8551_v19, %v5901_v27  ;;  %v5131_v19 = vadd.f32 %v12624_v36, %v12094_v6 }
0x1371   : > { %v5910_v11 = vsel %vm5907_vm0, %v5909_v33, %v5905_v13 }
0x1376   : > { %v8555_v56 = vpop.eup %8554 }
0x1377   : > { %v5917_v59 = vmul.f32 %v8555_v56, %v5910_v11 }
0x1379   : > { %v5922_v54 = vpack.c.bf16 %v5917_v59, %v5917_v59  ;;  %v12626_v59 = vld [vmem:[#allocation14_spill] sm:$0xff] }
0x137b   : > { %5931 = vmatmul.bf16.vlgmr.msra.gmra.mxu0 %v5922_v54  ;;  %5944 = vmatmul.bf16.vlgmr.msrb.gmra.mxu1 %v5922_v54 }
0x137c   : > { %5957 = vmatmul.bf16.vlgmr.msra.gmra.mxu2 %v5922_v54  ;;  %5970 = vmatmul.bf16.vlgmr.msra.gmra.mxu3 %v5922_v54  ;;  %v5189_v54 = vadd.f32 %v12626_v59, %v12613_v17 }
0x137d   : > { %6171 = vmatpush.bf16.msra.mxu0 %v11618_v50  ;;  %6184 = vmatpush.bf16.msrb.mxu1 %v11629_v55 }
0x137e   : > { %6197 = vmatpush.bf16.msra.mxu2 %v11631_v41  ;;  %6210 = vmatpush.bf16.msra.mxu3 %v11640_v60 }
0x1381   : > { %6172 = vmatpush.bf16.msra.mxu0 %v11655_v49  ;;  %6185 = vmatpush.bf16.msrb.mxu1 %v11666_v51 }
0x1382   : > { %6198 = vmatpush.bf16.msra.mxu2 %v11685_v38  ;;  %6211 = vmatpush.bf16.msra.mxu3 %v11693_v44 }
0x1385   : > { %6173 = vmatpush.bf16.msra.mxu0 %v11705_v12  ;;  %6186 = vmatpush.bf16.msrb.mxu1 %v11707_v14 }
0x1386   : > { %6199 = vmatpush.bf16.msra.mxu2 %v11722_v16  ;;  %6212 = vmatpush.bf16.msra.mxu3 %v11777_v5 }
0x1389   : > { %6174 = vmatpush.bf16.msra.mxu0 %v11735_v39  ;;  %6187 = vmatpush.bf16.msrb.mxu1 %v11737_v37 }
0x138a   : > { %6200 = vmatpush.bf16.msra.mxu2 %v11775_v57  ;;  %6213 = vmatpush.bf16.msra.mxu3 %v11817_v40 }
0x138d   : > { %6175 = vmatpush.bf16.msra.mxu0 %v11800_v48  ;;  %6188 = vmatpush.bf16.msrb.mxu1 %v11813_v15 }
0x138e   : > { %6201 = vmatpush.bf16.msra.mxu2 %v11815_v34  ;;  %6214 = vmatpush.bf16.msra.mxu3 %v11864_v24 }
0x1391   : > { %6176 = vmatpush.bf16.msra.mxu0 %v11856_v23  ;;  %6189 = vmatpush.bf16.msrb.mxu1 %v11862_v30 }
0x1392   : > { %6202 = vmatpush.bf16.msra.mxu2 %v11881_v26  ;;  %6215 = vmatpush.bf16.msra.mxu3 %v11909_v18 }
0x1395   : > { %6177 = vmatpush.bf16.msra.mxu0 %v11903_v28  ;;  %6190 = vmatpush.bf16.msrb.mxu1 %v11907_v52 }
0x1396   : > { %6203 = vmatpush.bf16.msra.mxu2 %v11921_v4  ;;  %6216 = vmatpush.bf16.msra.mxu3 %v11950_v32 }
0x1399   : > { %6178 = vmatpush.bf16.msra.mxu0 %v11942_v29  ;;  %6191 = vmatpush.bf16.msrb.mxu1 %v11948_v47 }
0x139a   : > { %6204 = vmatpush.bf16.msra.mxu2 %v11953_v63  ;;  %6217 = vmatpush.bf16.msra.mxu3 %v11965_v2 }
0x13f8   : > { %v5932_v62 = vpop.f32.mrf.mxu0  ;;  %v5945_v53 = vpop.f32.mrf.mxu1 }
0x13f9   : > { %v5975_v10 = vadd.f32 %v5932_v62, %v5102_v9  ;;  %v5976_v1 = vadd.f32 %v5945_v53, %v5131_v19 }
0x13fb   : > { %v7798_v25 = vmul.f32 -1.442695, %v5975_v10  ;;  %v7799_v43 = vmul.f32 -1.442695, %v5976_v1 }
0x13fd   : > { %8556 = vpow2.f32 %v7798_v25 }
0x13fe   : > { %8558 = vpow2.f32 %v7799_v43 }
0x13ff   : > { %v5958_v21 = vpop.f32.mrf.mxu2  ;;  %v5971_v58 = vpop.f32.mrf.mxu3 }
0x1400   : > { %v5977_v20 = vadd.f32 %v5958_v21, %v5160_v61  ;;  %v5934_v0 = vpop.f32.mrf.mxu0  ;;  %v5947_v46 = vpop.f32.mrf.mxu1  ;;  %v5978_v36 = vadd.f32 %v5971_v58, %v5189_v54 }
0x1402   : > { %v7800_v7 = vmul.f32 -1.442695, %v5977_v20 }
0x1403   : > { %v8557_v27 = vpop.eup %8556 }
0x1404   : > { %v8559_v45 = vpop.eup %8558  ;;  %v5988_v3 = vadd.f32 1.0, %v8557_v27  ;;  %8560 = vpow2.f32 %v7800_v7 }
0x1405   : > { %v5989_v13 = vadd.f32 1.0, %v8559_v45 }
0x1406   : > { %8562 = vrcp.f32 %v5988_v3  ;;  %v6002_v25 = vand.u32 2147483648, %v5988_v3  ;;  %v6000_v61 = vand.u32 2147483647, %v5988_v3  ;;  %vm5996_vm3 = vweird.f32 %v5988_v3 }
0x1407   : > { %8564 = vrcp.f32 %v5989_v13  ;;  %v5960_v33 = vpop.f32.mrf.mxu2  ;;  %v5973_v56 = vpop.f32.mrf.mxu3  ;;  %v6017_v43 = vand.u32 2147483648, %v5989_v13  ;;  %v6015_v20 = vand.u32 2147483647, %v5989_v13  ;;  %vm6011_vm4 = vweird.f32 %v5989_v13 }
0x1408   : > { %v6003_v7 = vor.u32 1.1754944e-38, %v6002_v25  ;;  %vm6001_vm7 = vcmp.eq.f32.partialorder %v6000_v61, 8.507059e+37 }
0x1409   : > { %v6018_v45 = vor.u32 1.1754944e-38, %v6017_v43  ;;  %vm6016_vm8 = vcmp.eq.f32.partialorder %v6015_v20, 8.507059e+37 }
0x140a   : > { %v8561_v11 = vpop.eup %8560 }
0x140b   : > { %v5990_v8 = vadd.f32 1.0, %v8561_v11 }
0x140c   : > { %v8563_v9 = vpop.eup %8562 }
0x140d   : > { %v8565_v19 = vpop.eup %8564  ;;  %v5992_v62 = vmul.f32 %v8563_v9, %v5988_v3  ;;  %8566 = vrcp.f32 %v5990_v8  ;;  %vm5997_vm1 = vweird.f32 %v8563_v9  ;;  %vm6026_vm10 = vweird.f32 %v5990_v8 }
0x140e   : > { %v6007_v53 = vmul.f32 %v8565_v19, %v5989_v13  ;;  %8568 = vtanh.f32 %v5978_v36  ;;  %vm6012_vm2 = vweird.f32 %v8565_v19  ;;  %vm5998_vm5 = vmor %vm5996_vm3, %vm5997_vm1 }
0x140f   : > { %v5993_v10 = vsub.f32 1.0, %v5992_v62  ;;  %vm6013_vm6 = vmor %vm6011_vm4, %vm6012_vm2 }
0x1410   : > { %v6008_v1 = vsub.f32 1.0, %v6007_v53 }
0x1411   : > { %v5994_v31 = vmul.f32 %v8563_v9, %v5993_v10 }
0x1412   : > { %v6009_v21 = vmul.f32 %v8565_v19, %v6008_v1  ;;  %v6032_v1 = vand.u32 2147483648, %v5990_v8 }
0x1413   : > { %v8567_v0 = vpop.eup %8566  ;;  %v5995_v46 = vadd.f32 %v8563_v9, %v5994_v31 }
0x1414   : > { %v6022_v58 = vmul.f32 %v8567_v0, %v5990_v8  ;;  %v6010_v27 = vadd.f32 %v8565_v19, %v6009_v21  ;;  %v8569_v56 = vpop.eup %8568  ;;  %vm6027_vm9 = vweird.f32 %v8567_v0  ;;  %v6033_v43 = vor.u32 1.1754944e-38, %v6032_v1 }
0x1415   : > { %v5999_v33 = vsel %vm5998_vm5, %v8563_v9, %v5995_v46  ;;  %v6030_v9 = vand.u32 2147483647, %v5990_v8  ;;  %vm6028_vm11 = vmor %vm6026_vm10, %vm6027_vm9 }
0x1416   : > { %v6023_v11 = vsub.f32 1.0, %v6022_v58  ;;  %v6004_v59 = vsel %vm6001_vm7, %v6003_v7, %v5999_v33  ;;  %v6014_v54 = vsel %vm6013_vm6, %v8565_v19, %v6010_v27 }
0x1417   : > { %v6019_v36 = vsel %vm6016_vm8, %v6018_v45, %v6014_v54  ;;  %v6038_v62 = vmul.f32 %v8569_v56, %v6004_v59  ;;  %vm6031_vm12 = vcmp.eq.f32.partialorder %v6030_v9, 8.507059e+37 }
0x1418   : > { %v6024_v53 = vmul.f32 %v8567_v0, %v6023_v11  ;;  %v6037_v10 = vmul.f32 %v6019_v36, %v12240_v22 }
0x141a   : > { %v12284_v3 = vadd.f32 %v6038_v62, %v6037_v10  ;;  %v6025_v13 = vadd.f32 %v8567_v0, %v6024_v53 }
0x141c   : > { %8570 = vtanh.f32 %v12284_v3  ;;  %v6029_v25 = vsel %vm6028_vm11, %v8567_v0, %v6025_v13 }
0x141d   : > { %v6034_v31 = vsel %vm6031_vm12, %v6033_v43, %v6029_v25 }
0x1422   : > { %v8571_v19 = vpop.eup %8570 }
0x1423   : > { %v6041_v61 = vmul.f32 %v8571_v19, %v6034_v31 }
0x1425   : > { %v6046_v21 = vpack.c.bf16 %v6041_v61, %v6041_v61 }
0x1427   : > { %6055 = vmatmul.bf16.vlgmr.msrb.gmra.mxu0 %v6046_v21  ;;  %6068 = vmatmul.bf16.vlgmr.msra.gmra.mxu1 %v6046_v21 }
0x1428   : > { %6081 = vmatmul.bf16.vlgmr.msrb.gmra.mxu2 %v6046_v21  ;;  %6094 = vmatmul.bf16.vlgmr.msrb.gmra.mxu3 %v6046_v21 }
0x1429   : > { %6295 = vmatpush.bf16.msrb.mxu0 %v11618_v50  ;;  %6308 = vmatpush.bf16.msra.mxu1 %v11629_v55  ;;  %v12627_v50 = vld [vmem:[#allocation21_spill] sm:$0xff] }
0x142a   : > { %6321 = vmatpush.bf16.msrb.mxu2 %v11631_v41  ;;  %6334 = vmatpush.bf16.msrb.mxu3 %v11640_v60  ;;  %v5104_v55 = vadd.f32 %v12627_v50, %v12092_v35  ;;  %v12628_v41 = vld [vmem:[#allocation16_spill] sm:$0xff] }
0x142b   : > { %v5133_v60 = vadd.f32 %v12628_v41, %v12094_v6 }
0x142d   : > { %6296 = vmatpush.bf16.msrb.mxu0 %v11655_v49  ;;  %6309 = vmatpush.bf16.msra.mxu1 %v11666_v51 }
0x142e   : > { %6322 = vmatpush.bf16.msrb.mxu2 %v11685_v38  ;;  %6335 = vmatpush.bf16.msrb.mxu3 %v11693_v44 }
0x1431   : > { %6297 = vmatpush.bf16.msrb.mxu0 %v11705_v12  ;;  %6310 = vmatpush.bf16.msra.mxu1 %v11707_v14 }
0x1432   : > { %6323 = vmatpush.bf16.msrb.mxu2 %v11722_v16  ;;  %6336 = vmatpush.bf16.msrb.mxu3 %v11777_v5  ;;  %v12629_v16 = vld [vmem:[#allocation17_spill] sm:$0xff] }
0x1435   : > { %6298 = vmatpush.bf16.msrb.mxu0 %v11735_v39  ;;  %6311 = vmatpush.bf16.msra.mxu1 %v11737_v37  ;;  %v5162_v39 = vadd.f32 %v12629_v16, %v12102_v42 }
0x1436   : > { %6324 = vmatpush.bf16.msrb.mxu2 %v11775_v57  ;;  %6337 = vmatpush.bf16.msrb.mxu3 %v11817_v40 }
0x1439   : > { %6299 = vmatpush.bf16.msrb.mxu0 %v11800_v48  ;;  %6312 = vmatpush.bf16.msra.mxu1 %v11813_v15 }
0x143a   : > { %6325 = vmatpush.bf16.msrb.mxu2 %v11815_v34  ;;  %6338 = vmatpush.bf16.msrb.mxu3 %v11864_v24 }
0x143d   : > { %6300 = vmatpush.bf16.msrb.mxu0 %v11856_v23  ;;  %6313 = vmatpush.bf16.msra.mxu1 %v11862_v30 }
0x143e   : > { %6326 = vmatpush.bf16.msrb.mxu2 %v11881_v26  ;;  %6339 = vmatpush.bf16.msrb.mxu3 %v11909_v18  ;;  %v12630_v18 = vld [vmem:[#allocation4_spill] sm:$0xff] }
0x1441   : > { %6301 = vmatpush.bf16.msrb.mxu0 %v11903_v28  ;;  %6314 = vmatpush.bf16.msra.mxu1 %v11907_v52 }
0x1442   : > { %6327 = vmatpush.bf16.msrb.mxu2 %v11921_v4  ;;  %6340 = vmatpush.bf16.msrb.mxu3 %v11950_v32  ;;  %v5191_v4 = vadd.f32 %v12630_v18, %v12613_v17 }
0x1445   : > { %6302 = vmatpush.bf16.msrb.mxu0 %v11942_v29  ;;  %6315 = vmatpush.bf16.msra.mxu1 %v11948_v47 }
0x1446   : > { %6328 = vmatpush.bf16.msrb.mxu2 %v11953_v63  ;;  %6341 = vmatpush.bf16.msrb.mxu3 %v11965_v2 }
0x14a4   : > { %v6056_v49 = vpop.f32.mrf.mxu0  ;;  %v6069_v51 = vpop.f32.mrf.mxu1 }
0x14a5   : > { %v6099_v38 = vadd.f32 %v6056_v49, %v5104_v55  ;;  %v6100_v44 = vadd.f32 %v6069_v51, %v5133_v60 }
0x14a7   : > { %v7801_v12 = vmul.f32 -1.442695, %v6099_v38  ;;  %v7802_v14 = vmul.f32 -1.442695, %v6100_v44 }
0x14a9   : > { %8572 = vpow2.f32 %v7801_v12  ;;  %v12632_v12 = vld [vmem:[#allocation19_spill] sm:$0xff] }
0x14aa   : > { %8574 = vpow2.f32 %v7802_v14  ;;  %v5136_v14 = vadd.f32 %v12632_v12, %v12094_v6 }
0x14ab   : > { %v6082_v37 = vpop.f32.mrf.mxu2  ;;  %v6095_v57 = vpop.f32.mrf.mxu3 }
0x14ac   : > { %v6101_v5 = vadd.f32 %v6082_v37, %v5162_v39  ;;  %v6058_v48 = vpop.f32.mrf.mxu0  ;;  %v6071_v15 = vpop.f32.mrf.mxu1  ;;  %v6102_v32 = vadd.f32 %v6095_v57, %v5191_v4 }
0x14ad   : > { %v12633_v15 = vld [vmem:[#allocation20_spill] sm:$0xff] }
0x14ae   : > { %v7803_v34 = vmul.f32 -1.442695, %v6101_v5 }
0x14af   : > { %v8573_v40 = vpop.eup %8572 }
0x14b0   : > { %v8575_v23 = vpop.eup %8574  ;;  %v6112_v30 = vadd.f32 1.0, %v8573_v40  ;;  %8576 = vpow2.f32 %v7803_v34  ;;  %v5165_v34 = vadd.f32 %v12633_v15, %v12102_v42  ;;  %v12635_v15 = vld [vmem:[#allocation25_spill] sm:$0xff] }
0x14b1   : > { %v6113_v24 = vadd.f32 1.0, %v8575_v23 }
0x14b2   : > { %8578 = vrcp.f32 %v6112_v30  ;;  %v6126_v0 = vand.u32 2147483648, %v6112_v30  ;;  %v6124_v7 = vand.u32 2147483647, %v6112_v30  ;;  %vm6120_vm15 = vweird.f32 %v6112_v30 }
0x14b3   : > { %8580 = vrcp.f32 %v6113_v24  ;;  %v6084_v26 = vpop.f32.mrf.mxu2  ;;  %v6097_v28 = vpop.f32.mrf.mxu3  ;;  %v6141_v46 = vand.u32 2147483648, %v6113_v24  ;;  %v6139_v45 = vand.u32 2147483647, %v6113_v24  ;;  %vm6135_vm0 = vweird.f32 %v6113_v24 }
0x14b4   : > { %v6127_v59 = vor.u32 1.1754944e-38, %v6126_v0  ;;  %vm6125_vm3 = vcmp.eq.f32.partialorder %v6124_v7, 8.507059e+37 }
0x14b5   : > { %v6142_v36 = vor.u32 1.1754944e-38, %v6141_v46  ;;  %vm6140_vm4 = vcmp.eq.f32.partialorder %v6139_v45, 8.507059e+37 }
0x14b6   : > { %v8577_v52 = vpop.eup %8576 }
0x14b7   : > { %v6114_v29 = vadd.f32 1.0, %v8577_v52 }
0x14b8   : > { %v8579_v47 = vpop.eup %8578 }
0x14b9   : > { %v8581_v63 = vpop.eup %8580  ;;  %v6116_v2 = vmul.f32 %v8579_v47, %v6112_v30  ;;  %8582 = vrcp.f32 %v6114_v29  ;;  %vm6121_vm13 = vweird.f32 %v8579_v47  ;;  %v6156_v21 = vand.u32 2147483648, %v6114_v29 }
0x14ba   : > { %v6131_v22 = vmul.f32 %v8581_v63, %v6113_v24  ;;  %8584 = vtanh.f32 %v6102_v32  ;;  %vm6136_vm14 = vweird.f32 %v8581_v63  ;;  %vm6122_vm1 = vmor %vm6120_vm15, %vm6121_vm13  ;;  %vm6150_vm6 = vweird.f32 %v6114_v29 }
0x14bb   : > { %v6117_v8 = vsub.f32 1.0, %v6116_v2  ;;  %vm6137_vm2 = vmor %vm6135_vm0, %vm6136_vm14  ;;  %v6154_v50 = vand.u32 2147483647, %v6114_v29  ;;  %v6157_v41 = vor.u32 1.1754944e-38, %v6156_v21  ;;  %v12634_v2 = vld [vmem:[#allocation5_spill] sm:$0xff] }
0x14bc   : > { %v6132_v20 = vsub.f32 1.0, %v6131_v22  ;;  %v5194_v22 = vadd.f32 %v12634_v2, %v12613_v17 }
0x14bd   : > { %v6118_v58 = vmul.f32 %v8579_v47, %v6117_v8  ;;  %vm6155_vm8 = vcmp.eq.f32.partialorder %v6154_v50, 8.507059e+37 }
0x14be   : > { %v6133_v27 = vmul.f32 %v8581_v63, %v6132_v20 }
0x14bf   : > { %v8583_v33 = vpop.eup %8582  ;;  %v6119_v56 = vadd.f32 %v8579_v47, %v6118_v58 }
0x14c0   : > { %v6146_v11 = vmul.f32 %v8583_v33, %v6114_v29  ;;  %v6134_v54 = vadd.f32 %v8581_v63, %v6133_v27  ;;  %v8585_v53 = vpop.eup %8584  ;;  %vm6151_vm5 = vweird.f32 %v8583_v33 }
0x14c1   : > { %v6123_v62 = vsel %vm6122_vm1, %v8579_v47, %v6119_v56  ;;  %vm6152_vm7 = vmor %vm6150_vm6, %vm6151_vm5 }
0x14c2   : > { %v6147_v10 = vsub.f32 1.0, %v6146_v11  ;;  %v6128_v13 = vsel %vm6125_vm3, %v6127_v59, %v6123_v62  ;;  %v6138_v1 = vsel %vm6137_vm2, %v8581_v63, %v6134_v54 }
0x14c3   : > { %v6143_v9 = vsel %vm6140_vm4, %v6142_v36, %v6138_v1  ;;  %v6162_v25 = vmul.f32 %v8585_v53, %v6128_v13 }
0x14c4   : > { %v6148_v43 = vmul.f32 %v8583_v33, %v6147_v10  ;;  %v6161_v19 = vmul.f32 %v6143_v9, %v12284_v3  ;;  %v12631_v3 = vld [vmem:[#allocation24_spill] sm:$0xff] }
0x14c5   : > { %v5107_v44 = vadd.f32 %v12631_v3, %v12092_v35 }
0x14c6   : > { %v12328_v31 = vadd.f32 %v6162_v25, %v6161_v19  ;;  %v6149_v61 = vadd.f32 %v8583_v33, %v6148_v43 }
0x14c8   : > { %8586 = vtanh.f32 %v12328_v31  ;;  %v6153_v55 = vsel %vm6152_vm7, %v8583_v33, %v6149_v61 }
0x14c9   : > { %v6158_v49 = vsel %vm6155_vm8, %v6157_v41, %v6153_v55 }
0x14ce   : > { %v8587_v60 = vpop.eup %8586 }
0x14cf   : > { %v6165_v51 = vmul.f32 %v8587_v60, %v6158_v49 }
0x14d1   : > { %v6170_v38 = vpack.c.bf16 %v6165_v51, %v6165_v51 }
0x14d3   : > { %6179 = vmatmul.bf16.vlgmr.msra.gmra.mxu0 %v6170_v38  ;;  %6192 = vmatmul.bf16.vlgmr.msrb.gmra.mxu1 %v6170_v38 }
0x14d4   : > { %6205 = vmatmul.bf16.vlgmr.msra.gmra.mxu2 %v6170_v38  ;;  %6218 = vmatmul.bf16.vlgmr.msra.gmra.mxu3 %v6170_v38 }
0x1550   : > { %v6180_v16 = vpop.f32.mrf.mxu0  ;;  %v6193_v39 = vpop.f32.mrf.mxu1 }
0x1551   : > { %v6223_v37 = vadd.f32 %v6180_v16, %v5107_v44  ;;  %v6224_v57 = vadd.f32 %v6193_v39, %v5136_v14 }
0x1553   : > { %v7804_v5 = vmul.f32 -1.442695, %v6223_v37  ;;  %v7805_v48 = vmul.f32 -1.442695, %v6224_v57  ;;  %v8095_v57 = vld [vmem:[%s12391_s5 + $0x30] sm:$0xff] }
0x1555   : > { %8588 = vpow2.f32 %v7804_v5  ;;  %v8094_v5 = vld [vmem:[%s12391_s5 + $0x28] sm:$0xff] }
0x1556   : > { %8590 = vpow2.f32 %v7805_v48  ;;  %v8093_v48 = vld [vmem:[%s12391_s5 + $0x20] sm:$0xff] }
0x1557   : > { %v6206_v40 = vpop.f32.mrf.mxu2  ;;  %v6219_v23 = vpop.f32.mrf.mxu3 }
0x1558   : > { %v6225_v30 = vadd.f32 %v6206_v40, %v5165_v34  ;;  %v6182_v24 = vpop.f32.mrf.mxu0  ;;  %v6195_v26 = vpop.f32.mrf.mxu1  ;;  %v6226_v0 = vadd.f32 %v6219_v23, %v5194_v22  ;;  %v5109_v34 = vadd.f32 %v12635_v15, %v12092_v35  ;;  %v12636_v40 = vld [vmem:[#allocation22_spill] sm:$0xff]  ;;  %v12637_v35 = vld [vmem:[#allocation23_spill] sm:$0xff] }
0x1559   : > { %v5138_v23 = vadd.f32 %v12636_v40, %v12094_v6  ;;  %v8090_v6 = vld [vmem:[%s12391_s5 + $0x8] sm:$0xff] }
0x155a   : > { %v7806_v28 = vmul.f32 -1.442695, %v6225_v30  ;;  %v8092_v30 = vld [vmem:[%s12391_s5 + $0x18] sm:$0xff] }
0x155b   : > { %v8589_v52 = vpop.eup %8588 }
0x155c   : > { %v8591_v18 = vpop.eup %8590  ;;  %v6236_v4 = vadd.f32 1.0, %v8589_v52  ;;  %8592 = vpow2.f32 %v7806_v28 }
0x155d   : > { %v6237_v29 = vadd.f32 1.0, %v8591_v18 }
0x155e   : > { %8594 = vrcp.f32 %v6236_v4  ;;  %v6250_v33 = vand.u32 2147483648, %v6236_v4  ;;  %v6248_v59 = vand.u32 2147483647, %v6236_v4  ;;  %vm6244_vm11 = vweird.f32 %v6236_v4 }
0x155f   : > { %8596 = vrcp.f32 %v6237_v29  ;;  %v6208_v47 = vpop.f32.mrf.mxu2  ;;  %v6221_v32 = vpop.f32.mrf.mxu3  ;;  %v6265_v56 = vand.u32 2147483648, %v6237_v29  ;;  %v6263_v36 = vand.u32 2147483647, %v6237_v29  ;;  %vm6259_vm12 = vweird.f32 %v6237_v29 }
0x1560   : > { %v6251_v13 = vor.u32 1.1754944e-38, %v6250_v33  ;;  %vm6249_vm15 = vcmp.eq.f32.partialorder %v6248_v59, 8.507059e+37  ;;  %v5167_v47 = vadd.f32 %v12637_v35, %v12102_v42 }
0x1561   : > { %v6266_v9 = vor.u32 1.1754944e-38, %v6265_v56  ;;  %vm6264_vm0 = vcmp.eq.f32.partialorder %v6263_v36, 8.507059e+37  ;;  %v12638_v56 = vld [vmem:[#allocation26_spill] sm:$0xff] }
0x1562   : > { %v8593_v63 = vpop.eup %8592 }
0x1563   : > { %v6238_v8 = vadd.f32 1.0, %v8593_v63 }
0x1564   : > { %v8595_v20 = vpop.eup %8594 }
0x1565   : > { %v8597_v46 = vpop.eup %8596  ;;  %v6240_v58 = vmul.f32 %v8595_v20, %v6236_v4  ;;  %8598 = vrcp.f32 %v6238_v8  ;;  %vm6245_vm9 = vweird.f32 %v8595_v20  ;;  %v6280_v38 = vand.u32 2147483648, %v6238_v8 }
0x1566   : > { %v6255_v7 = vmul.f32 %v8597_v46, %v6237_v29  ;;  %8600 = vtanh.f32 %v6226_v0  ;;  %vm6260_vm10 = vweird.f32 %v8597_v46  ;;  %vm6246_vm13 = vmor %vm6244_vm11, %vm6245_vm9  ;;  %vm6274_vm2 = vweird.f32 %v6238_v8  ;;  %v8091_v29 = vld [vmem:[%s12391_s5 + $0x10] sm:$0xff] }
0x1567   : > { %v6241_v27 = vsub.f32 1.0, %v6240_v58  ;;  %vm6261_vm14 = vmor %vm6259_vm12, %vm6260_vm10  ;;  %v6278_v3 = vand.u32 2147483647, %v6238_v8  ;;  %v6281_v12 = vor.u32 1.1754944e-38, %v6280_v38 }
0x1568   : > { %v6256_v45 = vsub.f32 1.0, %v6255_v7 }
0x1569   : > { %v6242_v11 = vmul.f32 %v8595_v20, %v6241_v27  ;;  %vm6279_vm4 = vcmp.eq.f32.partialorder %v6278_v3, 8.507059e+37 }
0x156a   : > { %v6257_v54 = vmul.f32 %v8597_v46, %v6256_v45 }
0x156b   : > { %v8599_v62 = vpop.eup %8598  ;;  %v6243_v53 = vadd.f32 %v8595_v20, %v6242_v11  ;;  %v5196_v11 = vadd.f32 %v12638_v56, %v12613_v17 }
0x156c   : > { %v6270_v10 = vmul.f32 %v8599_v62, %v6238_v8  ;;  %v6258_v1 = vadd.f32 %v8597_v46, %v6257_v54  ;;  %v8601_v43 = vpop.eup %8600  ;;  %vm6275_vm1 = vweird.f32 %v8599_v62 }
0x156d   : > { %v6247_v25 = vsel %vm6246_vm13, %v8595_v20, %v6243_v53  ;;  %vm6276_vm3 = vmor %vm6274_vm2, %vm6275_vm1  ;;  %v8089_v20 = vld [vmem:[%s12391_s5] sm:$0xff]  ;;  %vm6496_vm1 = vcmask 64512  }
0x156e   : > { %v6271_v19 = vsub.f32 1.0, %v6270_v10  ;;  %v6252_v61 = vsel %vm6249_vm15, %v6251_v13, %v6247_v25  ;;  %v6262_v21 = vsel %vm6261_vm14, %v8597_v46, %v6258_v1 }
0x156f   : > { %v6267_v50 = vsel %vm6264_vm0, %v6266_v9, %v6262_v21  ;;  %v6286_v55 = vmul.f32 %v8601_v43, %v6252_v61 }
0x1570   : > { %v6272_v41 = vmul.f32 %v8599_v62, %v6271_v19  ;;  %v6285_v60 = vmul.f32 %v6267_v50, %v12328_v31  ;;  %v8096_v31 = vld [vmem:[%s12391_s5 + $0x38] sm:$0xff] }
0x1571   : > { %6483 = vmatpush.bf16.msra.mxu0 %v8096_v31 }
0x1572   : > { %v12340_v49 = vadd.f32 %v6286_v55, %v6285_v60  ;;  %v6273_v51 = vadd.f32 %v8599_v62, %v6272_v41 }
0x1574   : > { %8602 = vtanh.f32 %v12340_v49  ;;  %v6277_v44 = vsel %vm6276_vm3, %v8599_v62, %v6273_v51 }
0x1575   : > { %v6282_v16 = vsel %vm6279_vm4, %v6281_v12, %v6277_v44  ;;  %6484 = vmatpush.bf16.msra.mxu0 %v8095_v57 }
0x1579   : > { %6485 = vmatpush.bf16.msra.mxu0 %v8094_v5 }
0x157a   : > { %v8603_v14 = vpop.eup %8602 }
0x157b   : > { %v6289_v39 = vmul.f32 %v8603_v14, %v6282_v16 }
0x157d   : > { %v6294_v37 = vpack.c.bf16 %v6289_v39, %v6289_v39  ;;  %6486 = vmatpush.bf16.msra.mxu0 %v8093_v48 }
0x157f   : > { %6303 = vmatmul.bf16.vlgmr.msrb.gmra.mxu0 %v6294_v37  ;;  %6316 = vmatmul.bf16.vlgmr.msra.gmra.mxu1 %v6294_v37 }
0x1580   : > { %6329 = vmatmul.bf16.vlgmr.msrb.gmra.mxu2 %v6294_v37  ;;  %6342 = vmatmul.bf16.vlgmr.msrb.gmra.mxu3 %v6294_v37 }
0x1581   : > { %6487 = vmatpush.bf16.msra.mxu0 %v8092_v30 }
0x1585   : > { %6488 = vmatpush.bf16.msra.mxu0 %v8091_v29 }
0x1589   : > { %6489 = vmatpush.bf16.msra.mxu0 %v8090_v6 }
0x158d   : > { %6490 = vmatpush.bf16.msra.mxu0 %v8089_v20 }
0x15fc   : > { %v6304_v24 = vpop.f32.mrf.mxu0  ;;  %v6317_v26 = vpop.f32.mrf.mxu1 }
0x15fd   : > { %v6347_v28 = vadd.f32 %v6304_v24, %v5109_v34  ;;  %v6348_v52 = vadd.f32 %v6317_v26, %v5138_v23 }
0x15ff   : > { %v7807_v18 = vmul.f32 -1.442695, %v6347_v28  ;;  %v7808_v4 = vmul.f32 -1.442695, %v6348_v52 }
0x1601   : > { %8604 = vpow2.f32 %v7807_v18 }
0x1602   : > { %8606 = vpow2.f32 %v7808_v4 }
0x1603   : > { %v6330_v32 = vpop.f32.mrf.mxu2  ;;  %v6343_v63 = vpop.f32.mrf.mxu3 }
0x1604   : > { %v6349_v2 = vadd.f32 %v6330_v32, %v5167_v47  ;;  %v6306_v22 = vpop.f32.mrf.mxu0  ;;  %v6319_v8 = vpop.f32.mrf.mxu1  ;;  %v6350_v36 = vadd.f32 %v6343_v63, %v5196_v11 }
0x1606   : > { %v7809_v0 = vmul.f32 -1.442695, %v6349_v2 }
0x1607   : > { %v8605_v46 = vpop.eup %8604 }
0x1608   : > { %v8607_v58 = vpop.eup %8606  ;;  %v6360_v7 = vadd.f32 1.0, %v8605_v46  ;;  %8608 = vpow2.f32 %v7809_v0 }
0x1609   : > { %v6361_v27 = vadd.f32 1.0, %v8607_v58 }
0x160a   : > { %8610 = vrcp.f32 %v6360_v7  ;;  %v6374_v9 = vand.u32 2147483648, %v6360_v7  ;;  %v6372_v19 = vand.u32 2147483647, %v6360_v7  ;;  %vm6368_vm7 = vweird.f32 %v6360_v7 }
0x160b   : > { %8612 = vrcp.f32 %v6361_v27  ;;  %v6332_v42 = vpop.f32.mrf.mxu2  ;;  %v6345_v45 = vpop.f32.mrf.mxu3  ;;  %v6389_v25 = vand.u32 2147483648, %v6361_v27  ;;  %v6387_v21 = vand.u32 2147483647, %v6361_v27  ;;  %vm6383_vm8 = vweird.f32 %v6361_v27 }
0x160c   : > { %v6375_v41 = vor.u32 1.1754944e-38, %v6374_v9  ;;  %vm6373_vm11 = vcmp.eq.f32.partialorder %v6372_v19, 8.507059e+37 }
0x160d   : > { %v6390_v51 = vor.u32 1.1754944e-38, %v6389_v25  ;;  %vm6388_vm12 = vcmp.eq.f32.partialorder %v6387_v21, 8.507059e+37 }
0x160e   : > { %v8609_v33 = vpop.eup %8608 }
0x160f   : > { %v6362_v59 = vadd.f32 1.0, %v8609_v33 }
0x1610   : > { %v8611_v54 = vpop.eup %8610 }
0x1611   : > { %v8613_v62 = vpop.eup %8612  ;;  %v6364_v53 = vmul.f32 %v8611_v54, %v6360_v7  ;;  %8614 = vrcp.f32 %v6362_v59  ;;  %vm6369_vm5 = vweird.f32 %v8611_v54  ;;  %v6404_v48 = vand.u32 2147483648, %v6362_v59 }
0x1612   : > { %v6379_v10 = vmul.f32 %v8613_v62, %v6361_v27  ;;  %8616 = vtanh.f32 %v6350_v36  ;;  %vm6384_vm6 = vweird.f32 %v8613_v62  ;;  %vm6370_vm9 = vmor %vm6368_vm7, %vm6369_vm5  ;;  %vm6398_vm14 = vweird.f32 %v6362_v59 }
0x1613   : > { %v6365_v13 = vsub.f32 1.0, %v6364_v53  ;;  %vm6385_vm10 = vmor %vm6383_vm8, %vm6384_vm6  ;;  %v6402_v15 = vand.u32 2147483647, %v6362_v59  ;;  %v6405_v40 = vor.u32 1.1754944e-38, %v6404_v48 }
0x1614   : > { %v6380_v1 = vsub.f32 1.0, %v6379_v10 }
0x1615   : > { %v6366_v43 = vmul.f32 %v8611_v54, %v6365_v13  ;;  %vm6403_vm0 = vcmp.eq.f32.partialorder %v6402_v15, 8.507059e+37 }
0x1616   : > { %v6381_v61 = vmul.f32 %v8613_v62, %v6380_v1 }
0x1617   : > { %v8615_v50 = vpop.eup %8614  ;;  %v6367_v17 = vadd.f32 %v8611_v54, %v6366_v43 }
0x1618   : > { %v6394_v55 = vmul.f32 %v8615_v50, %v6362_v59  ;;  %v6382_v60 = vadd.f32 %v8613_v62, %v6381_v61  ;;  %v8617_v3 = vpop.eup %8616  ;;  %vm6399_vm13 = vweird.f32 %v8615_v50 }
0x1619   : > { %v6371_v38 = vsel %vm6370_vm9, %v8611_v54, %v6367_v17  ;;  %vm6400_vm15 = vmor %vm6398_vm14, %vm6399_vm13 }
0x161a   : > { %v6395_v44 = vsub.f32 1.0, %v6394_v55  ;;  %v6376_v12 = vsel %vm6373_vm11, %v6375_v41, %v6371_v38  ;;  %v6386_v14 = vsel %vm6385_vm10, %v8613_v62, %v6382_v60 }
0x161b   : > { %v6391_v16 = vsel %vm6388_vm12, %v6390_v51, %v6386_v14  ;;  %v6410_v39 = vmul.f32 %v8617_v3, %v6376_v12 }
0x161c   : > { %v6396_v37 = vmul.f32 %v8615_v50, %v6395_v44  ;;  %v6409_v31 = vmul.f32 %v6391_v16, %v12340_v49  ;;  %v8107_v49 = vld [vmem:[%s12392_s6] ss:$0 sm:$0xff] }
0x161e   : > { %v6411_v57 = vadd.f32 %v6410_v39, %v6409_v31  ;;  %v6397_v5 = vadd.f32 %v8615_v50, %v6396_v37 }
0x1620   : > { %8618 = vtanh.f32 %v6411_v57  ;;  %v6401_v34 = vsel %vm6400_vm15, %v8615_v50, %v6397_v5 }
0x1621   : > { %v6406_v30 = vsel %vm6403_vm0, %v6405_v40, %v6401_v34 }
0x1626   : > { %v8619_v23 = vpop.eup %8618 }
0x1627   : > { %v6413_v24 = vmul.f32 %v8619_v23, %v6406_v30 }
0x1629   : > { %v6414_v26 = vpack.c.bf16 %v6413_v24, %v6413_v24 }
0x162b   : > { %6491 = vmatmul.bf16.vlgmr.msra.gmra.mxu0 %v6414_v26 }
0x16a8   : > { %v6492_v28 = vpop.f32.mrf.mxu0 }
0x16a9   : > { %v6493_v52 = vadd.f32 %v8107_v49, %v6492_v28 }
0x16ab   : > { %6497 = vst.msk [vmem:[%s276_s30] sm:$0xff] %vm6496_vm1, %v6493_v52 }
0x16b0   : > { %v6494_v18 = vpop.f32.mrf.mxu0 }
0x16b1 PF: > { %s17_s24 = sadd.s32 1, %s8626_s24  }
0x16b2   : > { %p14_p4 = scmp.ge.s32.totalorder %s17_s24, 4  }
0x16b4   :  { %16 = sbr.rel (!%p14_p4) target bundleno = 1 (0x1), region = 86 }

</bundles_post_ra>
